<compile_context>
chip_gen: v7x
topology: tpu7x:2x2x1
jax: 0.10.0
libtpu: 0.0.40
codegen_flags: <defaults>
</compile_context>

<pallas_src>
import functools

import jax
import jax.numpy as jnp
from jax.experimental import pallas as pl
from jax.experimental.pallas import tpu as pltpu


BACKBONE_STRIDE = 32     # ResNet-152 total downsample factor
FEATURE_DIM = 2048       # ResNet-152 fc.in_features
EMBED_DIM = 1024         # fc2 output / facenet embedding dim
DEN_PAD = 128            # lane-dense padding for the 3-channel facenet means
IN_CH = 3


# ----------------------------------------------------------------------------
# Fused kernel: whole forward pass for one batch element per grid step.
# ----------------------------------------------------------------------------
def _fused_model_kernel(patches_ref, den_ref, pool_ref, w_bb_ref, b_bb_ref,
                        seg_ref, w_fc2_ref, b_fc2_ref, w_fn_ref, b_fn_ref,
                        w_fc_ref, b_fc_ref, feat_ref, out_ref):
    f32 = jnp.float32
    bf16 = jnp.bfloat16
    S = w_fc_ref.shape[0]                       # num_segments (static)

    # ---- base_model stub: per-patch per-channel mean (as an MXU matmul over
    #      the lane-dense 3072-wide patch rows) + 1x1 channel projection ------
    pm = jnp.dot(patches_ref[0], pool_ref[...],
                 preferred_element_type=f32)                      # (S*h*w, 3)
    feat = jnp.dot(pm, w_bb_ref[...],
                   preferred_element_type=f32) + b_bb_ref[...]    # (S*h*w, 2048)
    feat_ref[0] = feat.astype(feat_ref.dtype)                     # lane-dense store

    # ---- self.av : global spatial average pool per segment (as matmul) ------
    pooled = jnp.dot(seg_ref[...], feat,
                     preferred_element_type=f32)                  # (S, 2048)

    # ---- fc2 : 2048 -> 1024 (bf16 MXU operands, f32 accumulate) -------------
    z = jnp.dot(pooled.astype(bf16), w_fc2_ref[...],
                preferred_element_type=f32) + b_fc2_ref[...]      # (S, 1024)

    # ---- facenet stub projection: zero-padded (1,128) channel means ---------
    den_feat = jnp.dot(den_ref[0].astype(bf16), w_fn_ref[...],
                       preferred_element_type=f32) + b_fn_ref[...]  # (1, 1024)

    # ---- fusion: input + |input - den| --------------------------------------
    fused = (z + jnp.abs(z - den_feat)).astype(bf16)              # (S, 1024)

    # ---- fc : (1024*S) -> num_class (padded to 128, lane-dense store) -------
    logits = b_fc_ref[...]                                        # (1, 128) f32
    for s in range(S):                                            # static unroll
        logits = logits + jnp.dot(fused[s:s + 1, :], w_fc_ref[s],
                                  preferred_element_type=f32)
    out_ref[0] = logits.astype(out_ref.dtype)


def fused_forward(patches, den_row, pool_mat, w_bb, b_bb, seg_pool,
                  w_fc2, b_fc2, w_fn, b_fn, w_fc, b_fc):
    B, R, KP = patches.shape
    S, _, NCP = w_fc.shape
    F = w_bb.shape[1]

    batched3 = lambda b: (b, 0, 0)
    const2 = lambda b: (0, 0)
    const3 = lambda b: (0, 0, 0)

    return pl.pallas_call(
        _fused_model_kernel,
        out_shape=(jax.ShapeDtypeStruct((B, R, F), jnp.float32),
                   jax.ShapeDtypeStruct((B, 1, NCP), jnp.float32)),
        grid_spec=pltpu.PrefetchScalarGridSpec(
            num_scalar_prefetch=0,
            grid=(B,),
            in_specs=[
                pl.BlockSpec((1, R, KP), batched3),
                pl.BlockSpec((1, 1, DEN_PAD), batched3),
                pl.BlockSpec(pool_mat.shape, const2),
                pl.BlockSpec(w_bb.shape, const2),
                pl.BlockSpec(b_bb.shape, const2),
                pl.BlockSpec(seg_pool.shape, const2),
                pl.BlockSpec(w_fc2.shape, const2),
                pl.BlockSpec(b_fc2.shape, const2),
                pl.BlockSpec(w_fn.shape, const2),
                pl.BlockSpec(b_fn.shape, const2),
                pl.BlockSpec(w_fc.shape, const3),
                pl.BlockSpec(b_fc.shape, const2),
            ],
            out_specs=(
                pl.BlockSpec((1, R, F), batched3),
                pl.BlockSpec((1, 1, NCP), batched3),
            ),
        ),
        compiler_params=pltpu.CompilerParams(
            dimension_semantics=("parallel",),          # shards batch across TCs (v7x)
            vmem_limit_bytes=32 * 1024 * 1024,          # explicit; safe on v5e/v6e/v7x
        ),
    )(patches, den_row, pool_mat, w_bb, b_bb, seg_pool,
      w_fc2, b_fc2, w_fn, b_fn, w_fc, b_fc)


# ----------------------------------------------------------------------------
# Parameters (bf16 matmul weights, padded num_class / facenet channels)
# ----------------------------------------------------------------------------
def init_params(key, num_class, num_segments):
    ks = jax.random.split(key, 6)
    s = 0.02
    ncp = ((num_class + 127) // 128) * 128      # pad classes to a lane multiple

    w_fn_full = jnp.zeros((DEN_PAD, EMBED_DIM), jnp.float32)
    w_fn_full = w_fn_full.at[:IN_CH].set(
        jax.random.normal(ks[1], (IN_CH, EMBED_DIM), jnp.float32) * s)

    b_fc_full = jnp.zeros((1, ncp), jnp.float32)
    b_fc_full = b_fc_full.at[0, :num_class].set(
        jax.random.normal(ks[5], (num_class,), jnp.float32) * s)

    return {
        # TODO(synk): stand-ins for the pretrained ResNet-152 / Facenet weights.
        "w_bb": jax.random.normal(ks[0], (IN_CH, FEATURE_DIM), jnp.float32) * s,
        "b_bb": jnp.zeros((1, FEATURE_DIM), jnp.float32),
        "w_fn": w_fn_full.astype(jnp.bfloat16),
        "b_fn": jnp.zeros((1, EMBED_DIM), jnp.float32),
        # Real head parameters (fc2: 2048->1024, fc: 1024*S -> num_class padded).
        "w_fc2": (jax.random.normal(ks[2], (FEATURE_DIM, EMBED_DIM), jnp.float32)
                  * s).astype(jnp.bfloat16),
        "b_fc2": jax.random.normal(ks[3], (1, EMBED_DIM), jnp.float32) * s,
        "w_fc": (jax.random.normal(ks[4], (num_segments, EMBED_DIM, ncp),
                                   jnp.float32) * s).astype(jnp.bfloat16),
        "b_fc": b_fc_full,
    }


# ----------------------------------------------------------------------------
# Forward
# ----------------------------------------------------------------------------
@functools.partial(jax.jit, static_argnames=("num_segments", "num_class"))
def model_forward(params, x, den_x, *, num_segments, num_class):
    """x: (B, S, 3, H, W) NCHW;  den_x: (B, 3, Hd, Wd) NCHW."""
    B = x.shape[0]
    S = num_segments
    N = B * S
    C, H, W = x.shape[-3:]
    P = BACKBONE_STRIDE
    h, w = H // P, W // P

    # input.view((-1,) + input.size()[-3:]) + lane-dense patch rows for the
    # backbone stub: (B, S, 3, H, W) -> (B, S*h*w, 3*P*P).
    patches = x.reshape(B, S, C, h, P, w, P)
    patches = jnp.transpose(patches, (0, 1, 3, 5, 2, 4, 6))
    patches = patches.reshape(B, S * h * w, C * P * P)

    # facenet-branch pooling: tiny (B, 3) channel means done in plain XLA,
    # zero-padded to a lane-dense (B, 1, 128) row for the in-kernel projection.
    den = den_x.reshape((-1,) + den_x.shape[-3:])
    den_mean = jnp.mean(den, axis=(2, 3))
    den_row = jnp.zeros((B, 1, DEN_PAD), jnp.float32).at[:, 0, :C].set(den_mean)

    # Constant pooling matrices (folded into MXU matmuls inside the kernel):
    #   pool_mat: per-patch per-channel spatial mean, seg_pool: self.av pool.
    pool_mat = jnp.kron(jnp.eye(C, dtype=jnp.float32),
                        jnp.full((P * P, 1), 1.0 / (P * P), jnp.float32))
    seg_pool = jnp.kron(jnp.eye(S, dtype=jnp.float32),
                        jnp.full((1, h * w), 1.0 / (h * w), jnp.float32))

    feat_flat, logits_pad = fused_forward(
        patches, den_row, pool_mat, params["w_bb"], params["b_bb"], seg_pool,
        params["w_fc2"], params["b_fc2"], params["w_fn"], params["b_fn"],
        params["w_fc"], params["b_fc"])

    # `feature` back to PyTorch NCHW (tiny tensor; kept for semantic fidelity).
    feature = jnp.transpose(feat_flat.reshape(N, h, w, FEATURE_DIM), (0, 3, 1, 2))
    base_out = logits_pad[:, 0, :num_class]     # slice padded classes back to 10
    return base_out, feature, 2


# ----------------------------------------------------------------------------
if __name__ == "__main__":
    NUM_CLASS = 10
    NUM_SEGMENTS = 3
    B = 2
    H = W = 64          # backbone stub downsamples by 32 -> 2x2 feature map
    HD = WD = 32        # facenet-branch input

    key = jax.random.PRNGKey(0)
    kp, kx, kd = jax.random.split(key, 3)

    params = init_params(kp, NUM_CLASS, NUM_SEGMENTS)
    x = jax.random.normal(kx, (B, NUM_SEGMENTS, 3, H, W), jnp.float32)
    den_x = jax.random.normal(kd, (B, 3, HD, WD), jnp.float32)

    base_out, feature, flag = model_forward(
        params, x, den_x, num_segments=NUM_SEGMENTS, num_class=NUM_CLASS)
    jax.block_until_ready((base_out, feature))

    assert base_out.shape == (B, NUM_CLASS)
    assert feature.shape == (B * NUM_SEGMENTS, FEATURE_DIM, H // 32, W // 32)
    assert flag == 2
    print("KERNEL_OK")
</pallas_src>

<mosaic_0001>
module attributes {stable_mosaic.version = 11 : i64} {
  func.func @_fused_model_kernel(%arg0: i32, %arg1: memref<1x12x3072xf32, #tpu.memory_space<vmem>>, %arg2: memref<1x1x128xf32, #tpu.memory_space<vmem>>, %arg3: memref<3072x3xf32, #tpu.memory_space<vmem>>, %arg4: memref<3x2048xf32, #tpu.memory_space<vmem>>, %arg5: memref<1x2048xf32, #tpu.memory_space<vmem>>, %arg6: memref<3x12xf32, #tpu.memory_space<vmem>>, %arg7: memref<2048x1024xbf16, #tpu.memory_space<vmem>>, %arg8: memref<1x1024xf32, #tpu.memory_space<vmem>>, %arg9: memref<128x1024xbf16, #tpu.memory_space<vmem>>, %arg10: memref<1x1024xf32, #tpu.memory_space<vmem>>, %arg11: memref<3x1024x128xbf16, #tpu.memory_space<vmem>>, %arg12: memref<1x128xf32, #tpu.memory_space<vmem>>, %arg13: memref<1x12x2048xf32, #tpu.memory_space<vmem>>, %arg14: memref<1x1x128xf32, #tpu.memory_space<vmem>>) attributes {dimension_semantics = [#tpu.dimension_semantics<parallel>], iteration_bounds = array<i64: 2>, scalar_prefetch = 0 : i64, scratch_operands = 0 : i64, tpu.core_type = #tpu.core_type<tc>, window_params = [{transform_indices = @transform_0, window_bounds = array<i64: 1, 12, 3072>}, {transform_indices = @transform_1, window_bounds = array<i64: 1, 1, 128>}, {pipeline_mode = #tpu.pipeline_mode<synchronous>, transform_indices = @transform_2, window_bounds = array<i64: 3072, 3>}, {pipeline_mode = #tpu.pipeline_mode<synchronous>, transform_indices = @transform_3, window_bounds = array<i64: 3, 2048>}, {pipeline_mode = #tpu.pipeline_mode<synchronous>, transform_indices = @transform_4, window_bounds = array<i64: 1, 2048>}, {pipeline_mode = #tpu.pipeline_mode<synchronous>, transform_indices = @transform_5, window_bounds = array<i64: 3, 12>}, {pipeline_mode = #tpu.pipeline_mode<synchronous>, transform_indices = @transform_6, window_bounds = array<i64: 2048, 1024>}, {pipeline_mode = #tpu.pipeline_mode<synchronous>, transform_indices = @transform_7, window_bounds = array<i64: 1, 1024>}, {pipeline_mode = #tpu.pipeline_mode<synchronous>, transform_indices = @transform_8, window_bounds = array<i64: 128, 1024>}, {pipeline_mode = #tpu.pipeline_mode<synchronous>, transform_indices = @transform_9, window_bounds = array<i64: 1, 1024>}, {pipeline_mode = #tpu.pipeline_mode<synchronous>, transform_indices = @transform_10, window_bounds = array<i64: 3, 1024, 128>}, {pipeline_mode = #tpu.pipeline_mode<synchronous>, transform_indices = @transform_11, window_bounds = array<i64: 1, 128>}, {transform_indices = @transform_12, window_bounds = array<i64: 1, 12, 2048>}, {transform_indices = @transform_13, window_bounds = array<i64: 1, 1, 128>}]} {
    %c0 = arith.constant 0 : index
    %c0_0 = arith.constant 0 : index
    %c0_1 = arith.constant 0 : index
    %0 = vector.load %arg1[%c0, %c0_0, %c0_1] : memref<1x12x3072xf32, #tpu.memory_space<vmem>>, vector<1x12x3072xf32>
    %1 = vector.shape_cast %0 : vector<1x12x3072xf32> to vector<12x3072xf32>
    %c0_2 = arith.constant 0 : index
    %c0_3 = arith.constant 0 : index
    %2 = vector.load %arg3[%c0_2, %c0_3] : memref<3072x3xf32, #tpu.memory_space<vmem>>, vector<3072x3xf32>
    %cst = arith.constant dense<0.000000e+00> : vector<12x3xf32>
    %3 = tpu.matmul %1, %2, %cst {dimension_numbers = #tpu.dot_dimension_numbers<[1], [0], [0], [1], [0, 0, 1, 1], [], []>} : vector<12x3072xf32>, vector<3072x3xf32>, vector<12x3xf32> -> vector<12x3xf32>
    %c0_4 = arith.constant 0 : index
    %c0_5 = arith.constant 0 : index
    %4 = vector.load %arg4[%c0_4, %c0_5] : memref<3x2048xf32, #tpu.memory_space<vmem>>, vector<3x2048xf32>
    %cst_6 = arith.constant dense<0.000000e+00> : vector<12x2048xf32>
    %5 = tpu.matmul %3, %4, %cst_6 {dimension_numbers = #tpu.dot_dimension_numbers<[1], [0], [0], [1], [0, 0, 1, 1], [], []>} : vector<12x3xf32>, vector<3x2048xf32>, vector<12x2048xf32> -> vector<12x2048xf32>
    %c0_7 = arith.constant 0 : index
    %c0_8 = arith.constant 0 : index
    %6 = vector.load %arg5[%c0_7, %c0_8] : memref<1x2048xf32, #tpu.memory_space<vmem>>, vector<1x2048xf32>
    %7 = vector.broadcast %6 : vector<1x2048xf32> to vector<12x2048xf32>
    %8 = arith.addf %5, %7 : vector<12x2048xf32>
    %c0_9 = arith.constant 0 : index
    %c0_10 = arith.constant 0 : index
    %c0_11 = arith.constant 0 : index
    %9 = vector.load %arg13[%c0_9, %c0_10, %c0_11] : memref<1x12x2048xf32, #tpu.memory_space<vmem>>, vector<1x12x2048xf32>
    %10 = vector.shape_cast %9 : vector<1x12x2048xf32> to vector<12x2048xf32>
    %11 = vector.shape_cast %8 : vector<12x2048xf32> to vector<1x12x2048xf32>
    tpu.vector_store %arg13[%c0_9, %c0_10, %c0_11], %11 {strides = array<i32>} : memref<1x12x2048xf32, #tpu.memory_space<vmem>>, vector<1x12x2048xf32>,
    %c0_12 = arith.constant 0 : index
    %c0_13 = arith.constant 0 : index
    %12 = vector.load %arg6[%c0_12, %c0_13] : memref<3x12xf32, #tpu.memory_space<vmem>>, vector<3x12xf32>
    %cst_14 = arith.constant dense<0.000000e+00> : vector<3x2048xf32>
    %13 = tpu.matmul %12, %8, %cst_14 {dimension_numbers = #tpu.dot_dimension_numbers<[1], [0], [0], [1], [0, 0, 1, 1], [], []>} : vector<3x12xf32>, vector<12x2048xf32>, vector<3x2048xf32> -> vector<3x2048xf32>
    %14 = arith.truncf %13 : vector<3x2048xf32> to vector<3x2048xbf16>
    %c0_15 = arith.constant 0 : index
    %c0_16 = arith.constant 0 : index
    %15 = vector.load %arg7[%c0_15, %c0_16] : memref<2048x1024xbf16, #tpu.memory_space<vmem>>, vector<2048x1024xbf16>
    %cst_17 = arith.constant dense<0.000000e+00> : vector<3x1024xf32>
    %16 = tpu.matmul %14, %15, %cst_17 {dimension_numbers = #tpu.dot_dimension_numbers<[1], [0], [0], [1], [0, 0, 1, 1], [], []>} : vector<3x2048xbf16>, vector<2048x1024xbf16>, vector<3x1024xf32> -> vector<3x1024xf32>
    %c0_18 = arith.constant 0 : index
    %c0_19 = arith.constant 0 : index
    %17 = vector.load %arg8[%c0_18, %c0_19] : memref<1x1024xf32, #tpu.memory_space<vmem>>, vector<1x1024xf32>
    %18 = vector.broadcast %17 : vector<1x1024xf32> to vector<3x1024xf32>
    %19 = arith.addf %16, %18 : vector<3x1024xf32>
    %c0_20 = arith.constant 0 : index
    %c0_21 = arith.constant 0 : index
    %c0_22 = arith.constant 0 : index
    %20 = vector.load %arg2[%c0_20, %c0_21, %c0_22] : memref<1x1x128xf32, #tpu.memory_space<vmem>>, vector<1x1x128xf32>
    %21 = vector.shape_cast %20 : vector<1x1x128xf32> to vector<1x128xf32>
    %22 = arith.truncf %21 : vector<1x128xf32> to vector<1x128xbf16>
    %c0_23 = arith.constant 0 : index
    %c0_24 = arith.constant 0 : index
    %23 = vector.load %arg9[%c0_23, %c0_24] : memref<128x1024xbf16, #tpu.memory_space<vmem>>, vector<128x1024xbf16>
    %cst_25 = arith.constant dense<0.000000e+00> : vector<1x1024xf32>
    %24 = tpu.matmul %22, %23, %cst_25 {dimension_numbers = #tpu.dot_dimension_numbers<[1], [0], [0], [1], [0, 0, 1, 1], [], []>} : vector<1x128xbf16>, vector<128x1024xbf16>, vector<1x1024xf32> -> vector<1x1024xf32>
    %c0_26 = arith.constant 0 : index
    %c0_27 = arith.constant 0 : index
    %25 = vector.load %arg10[%c0_26, %c0_27] : memref<1x1024xf32, #tpu.memory_space<vmem>>, vector<1x1024xf32>
    %26 = arith.addf %24, %25 : vector<1x1024xf32>
    %27 = vector.broadcast %26 : vector<1x1024xf32> to vector<3x1024xf32>
    %28 = arith.subf %19, %27 : vector<3x1024xf32>
    %29 = math.absf %28 : vector<3x1024xf32>
    %30 = arith.addf %19, %29 : vector<3x1024xf32>
    %31 = arith.truncf %30 : vector<3x1024xf32> to vector<3x1024xbf16>
    %c0_28 = arith.constant 0 : index
    %c0_29 = arith.constant 0 : index
    %32 = vector.load %arg12[%c0_28, %c0_29] : memref<1x128xf32, #tpu.memory_space<vmem>>, vector<1x128xf32>
    %33 = vector.extract_strided_slice %31 {offsets = [0, 0], sizes = [1, 1024], strides = [1, 1]} : vector<3x1024xbf16> to vector<1x1024xbf16>
    %c0_30 = arith.constant 0 : index
    %c0_31 = arith.constant 0 : index
    %c0_32 = arith.constant 0 : index
    %34 = vector.load %arg11[%c0_30, %c0_31, %c0_32] : memref<3x1024x128xbf16, #tpu.memory_space<vmem>>, vector<1x1024x128xbf16>
    %35 = vector.shape_cast %34 : vector<1x1024x128xbf16> to vector<1024x128xbf16>
    %cst_33 = arith.constant dense<0.000000e+00> : vector<1x128xf32>
    %36 = tpu.matmul %33, %35, %cst_33 {dimension_numbers = #tpu.dot_dimension_numbers<[1], [0], [0], [1], [0, 0, 1, 1], [], []>} : vector<1x1024xbf16>, vector<1024x128xbf16>, vector<1x128xf32> -> vector<1x128xf32>
    %37 = arith.addf %32, %36 : vector<1x128xf32>
    %38 = vector.extract_strided_slice %31 {offsets = [1, 0], sizes = [1, 1024], strides = [1, 1]} : vector<3x1024xbf16> to vector<1x1024xbf16>
    %c1 = arith.constant 1 : index
    %c0_34 = arith.constant 0 : index
    %c0_35 = arith.constant 0 : index
    %39 = vector.load %arg11[%c1, %c0_34, %c0_35] : memref<3x1024x128xbf16, #tpu.memory_space<vmem>>, vector<1x1024x128xbf16>
    %40 = vector.shape_cast %39 : vector<1x1024x128xbf16> to vector<1024x128xbf16>
    %cst_36 = arith.constant dense<0.000000e+00> : vector<1x128xf32>
    %41 = tpu.matmul %38, %40, %cst_36 {dimension_numbers = #tpu.dot_dimension_numbers<[1], [0], [0], [1], [0, 0, 1, 1], [], []>} : vector<1x1024xbf16>, vector<1024x128xbf16>, vector<1x128xf32> -> vector<1x128xf32>
    %42 = arith.addf %37, %41 : vector<1x128xf32>
    %43 = vector.extract_strided_slice %31 {offsets = [2, 0], sizes = [1, 1024], strides = [1, 1]} : vector<3x1024xbf16> to vector<1x1024xbf16>
    %c2 = arith.constant 2 : index
    %c0_37 = arith.constant 0 : index
    %c0_38 = arith.constant 0 : index
    %44 = vector.load %arg11[%c2, %c0_37, %c0_38] : memref<3x1024x128xbf16, #tpu.memory_space<vmem>>, vector<1x1024x128xbf16>
    %45 = vector.shape_cast %44 : vector<1x1024x128xbf16> to vector<1024x128xbf16>
    %cst_39 = arith.constant dense<0.000000e+00> : vector<1x128xf32>
    %46 = tpu.matmul %43, %45, %cst_39 {dimension_numbers = #tpu.dot_dimension_numbers<[1], [0], [0], [1], [0, 0, 1, 1], [], []>} : vector<1x1024xbf16>, vector<1024x128xbf16>, vector<1x128xf32> -> vector<1x128xf32>
    %47 = arith.addf %42, %46 : vector<1x128xf32>
    %c0_40 = arith.constant 0 : index
    %c0_41 = arith.constant 0 : index
    %c0_42 = arith.constant 0 : index
    %48 = vector.load %arg14[%c0_40, %c0_41, %c0_42] : memref<1x1x128xf32, #tpu.memory_space<vmem>>, vector<1x1x128xf32>
    %49 = vector.shape_cast %48 : vector<1x1x128xf32> to vector<1x128xf32>
    %50 = vector.shape_cast %47 : vector<1x128xf32> to vector<1x1x128xf32>
    tpu.vector_store %arg14[%c0_40, %c0_41, %c0_42], %50 {strides = array<i32>} : memref<1x1x128xf32, #tpu.memory_space<vmem>>, vector<1x1x128xf32>,
    return
  }
  func.func @transform_0(%arg0: i32) -> (i32, i32, i32) {
    %c0_i32 = arith.constant 0 : i32
    %c0_i32_0 = arith.constant 0 : i32
    %c0_i32_1 = arith.constant 0 : i32
    return %arg0, %c0_i32, %c0_i32_0 : i32, i32, i32
  }
  func.func @transform_1(%arg0: i32) -> (i32, i32, i32) {
    %c0_i32 = arith.constant 0 : i32
    %c0_i32_0 = arith.constant 0 : i32
    %c0_i32_1 = arith.constant 0 : i32
    return %arg0, %c0_i32, %c0_i32_0 : i32, i32, i32
  }
  func.func @transform_2(%arg0: i32) -> (i32, i32) {
    %c0_i32 = arith.constant 0 : i32
    %c0_i32_0 = arith.constant 0 : i32
    %c0_i32_1 = arith.constant 0 : i32
    return %c0_i32, %c0_i32_0 : i32, i32
  }
  func.func @transform_3(%arg0: i32) -> (i32, i32) {
    %c0_i32 = arith.constant 0 : i32
    %c0_i32_0 = arith.constant 0 : i32
    %c0_i32_1 = arith.constant 0 : i32
    return %c0_i32, %c0_i32_0 : i32, i32
  }
  func.func @transform_4(%arg0: i32) -> (i32, i32) {
    %c0_i32 = arith.constant 0 : i32
    %c0_i32_0 = arith.constant 0 : i32
    %c0_i32_1 = arith.constant 0 : i32
    return %c0_i32, %c0_i32_0 : i32, i32
  }
  func.func @transform_5(%arg0: i32) -> (i32, i32) {
    %c0_i32 = arith.constant 0 : i32
    %c0_i32_0 = arith.constant 0 : i32
    %c0_i32_1 = arith.constant 0 : i32
    return %c0_i32, %c0_i32_0 : i32, i32
  }
  func.func @transform_6(%arg0: i32) -> (i32, i32) {
    %c0_i32 = arith.constant 0 : i32
    %c0_i32_0 = arith.constant 0 : i32
    %c0_i32_1 = arith.constant 0 : i32
    return %c0_i32, %c0_i32_0 : i32, i32
  }
  func.func @transform_7(%arg0: i32) -> (i32, i32) {
    %c0_i32 = arith.constant 0 : i32
    %c0_i32_0 = arith.constant 0 : i32
    %c0_i32_1 = arith.constant 0 : i32
    return %c0_i32, %c0_i32_0 : i32, i32
  }
  func.func @transform_8(%arg0: i32) -> (i32, i32) {
    %c0_i32 = arith.constant 0 : i32
    %c0_i32_0 = arith.constant 0 : i32
    %c0_i32_1 = arith.constant 0 : i32
    return %c0_i32, %c0_i32_0 : i32, i32
  }
  func.func @transform_9(%arg0: i32) -> (i32, i32) {
    %c0_i32 = arith.constant 0 : i32
    %c0_i32_0 = arith.constant 0 : i32
    %c0_i32_1 = arith.constant 0 : i32
    return %c0_i32, %c0_i32_0 : i32, i32
  }
  func.func @transform_10(%arg0: i32) -> (i32, i32, i32) {
    %c0_i32 = arith.constant 0 : i32
    %c0_i32_0 = arith.constant 0 : i32
    %c0_i32_1 = arith.constant 0 : i32
    %c0_i32_2 = arith.constant 0 : i32
    return %c0_i32, %c0_i32_0, %c0_i32_1 : i32, i32, i32
  }
  func.func @transform_11(%arg0: i32) -> (i32, i32) {
    %c0_i32 = arith.constant 0 : i32
    %c0_i32_0 = arith.constant 0 : i32
    %c0_i32_1 = arith.constant 0 : i32
    return %c0_i32, %c0_i32_0 : i32, i32
  }
  func.func @transform_12(%arg0: i32) -> (i32, i32, i32) {
    %c0_i32 = arith.constant 0 : i32
    %c0_i32_0 = arith.constant 0 : i32
    %c0_i32_1 = arith.constant 0 : i32
    return %arg0, %c0_i32, %c0_i32_0 : i32, i32, i32
  }
  func.func @transform_13(%arg0: i32) -> (i32, i32, i32) {
    %c0_i32 = arith.constant 0 : i32
    %c0_i32_0 = arith.constant 0 : i32
    %c0_i32_1 = arith.constant 0 : i32
    return %arg0, %c0_i32, %c0_i32_0 : i32, i32, i32
  }
}

</mosaic_0001>

<bundles_post_ra>
// kernel: model_forward.1
= control target key start
LH: loop header
LB: loop body
LE: loop exit
PB: predicated region body
PF: predicated region fallthrough
CT: control target
= control target key end

     0   :  { %s22491_s0 = inlined_call_operand.vmem [shape: f32[2,12,3072], index: 0, kind: input, shape index: {}]   ;;  %s22492_s1 = inlined_call_operand.vmem [shape: f32[2,1,128], index: 1, kind: input, shape index: {}]   ;;  %s22493_s2 = inlined_call_operand.vmem [shape: f32[3072,3], index: 2, kind: input, shape index: {}]   ;;  %s22494_s3 = inlined_call_operand.vmem [shape: f32[3,2048], index: 3, kind: input, shape index: {}]   ;;  %s22495_s4 = inlined_call_operand.vmem [shape: f32[1,2048], index: 4, kind: input, shape index: {}]   ;;  %s22496_s5 = inlined_call_operand.vmem [shape: f32[3,12], index: 5, kind: input, shape index: {}]   ;;  %s22497_s6 = inlined_call_operand.vmem [shape: bf16[2048,1024], index: 6, kind: input, shape index: {}]   ;;  %s22498_s7 = inlined_call_operand.vmem [shape: f32[1,1024], index: 7, kind: input, shape index: {}]   ;;  %s22499_s8 = inlined_call_operand.vmem [shape: bf16[128,1024], index: 8, kind: input, shape index: {}]   ;;  %s22500_s9 = inlined_call_operand.vmem [shape: f32[1,1024], index: 9, kind: input, shape index: {}]   ;;  %s22501_s10 = inlined_call_operand.vmem [shape: bf16[3,1024,128], index: 10, kind: input, shape index: {}]   ;;  %s22502_s11 = inlined_call_operand.vmem [shape: f32[1,128], index: 11, kind: input, shape index: {}]   ;;  %s22503_s12 = inlined_call_operand.vmem [shape: f32[2,12,2048], index: 12, kind: output, shape index: {0}]   ;;  %s22504_s13 = inlined_call_operand.hbm [shape: f32[2,1,128], index: 13, kind: output, shape index: {1}]  }
   0x1   :  { %22510 = sst [smem:[#allocation10_spill]] %s22491_s0 }
   0x2   :  { %19 = vsyncpa [#allocation3], 0 }
   0x3   :  { %21 = vsyncpa [#allocation3 + $0x1], 0  ;;  %s16831_s25 = smov 0   ;;  %s16833_s26 = smov 0  }
   0x4   :  { %s16835_s27 = smov 0   ;;  %s16837_s28 = smov 0  }
   0x5 LB: > { %22511 = sst [smem:[#allocation5_spill]] %s16743_s25  ;;  %s16852_s29 = sadd.s32 4294967295, %s16755_s28   ;;  %s16755_s28 = sphi %s16837_s28, %s22523_s28   ;;  %s16751_s27 = sphi %s16835_s27, %s22525_s27   ;;  %s16747_s26 = sphi %s16833_s26, %s22527_s26   ;;  %s16743_s25 = sphi %s16831_s25, %s22526_s25  }
   0x6   : > { %22512 = sst [smem:[#allocation6_spill]] %s16751_s27  ;;  %s13575_s30 = sadd.s32 4294967294, %s16755_s28  }
   0x7   : > { %s16856_s14 = sadd.s32 1, %s16755_s28   ;;  %s322_s15 = sadd.s32 1, %s16751_s27 }
   0x8   : > { %22513 = sst [smem:[#allocation7_spill]] %s16856_s14  ;;  %s319_s16 = ssub.s32 %s16755_s28, %s16856_s14 }
   0x9   : > { %p332_p0 = scmp.ne.s32.totalorder %s16751_s27, %s16747_s26  ;;  %p320_p1 = scmp.eq.s32.totalorder %s319_s16, 0 }
   0xa   : > { %p333_p2 = scmp.eq.s32.totalorder %s16852_s29, 1  ;;  %p338_p3 = scmp.ne.s32.totalorder %s16747_s26, %s16743_s25 }
   0xb   : > { %p339_p4 = scmp.eq.s32.totalorder %s13575_s30, 1  ;;  %p13578_p7 = scmp.ge.s32.totalorder %s16755_s28, 1 }
   0xc   : > { %s16867_s17 = scalar_select %p320_p1, %s16751_s27, %s322_s15  }
   0xd   : > { %p16869_p5 = por %p333_p2, %p332_p0  ;;  %p16873_p6 = por %p339_p4, %p338_p3 }
   0xe   : > { %22514 = sst [smem:[#allocation8_spill]] %s16867_s17  ;;  %p401_p8 = scmp.lt.s32.totalorder %s16755_s28, 3 }
   0xf   : > { %s22516_s19 = scalar_select %p16873_p6, 1, 0 }
  0x10   : > { %p402_p9 = pnand %p13578_p7, %p401_p8 }
  0x11   : > { %22517 = sst [smem:[#allocation9_spill]] %s22516_s19  ;;  %v530_v0 = vld [vmem:[%s22493_s2 + $0x80] sm:$0xff] (!%p402_p9)  ;;  %v531_v1 = vld [vmem:[%s22493_s2 + $0x88] sm:$0xff] (!%p402_p9)  ;;  %v532_v11 = vld [vmem:[%s22493_s2 + $0x90] sm:$0xff] (!%p402_p9)  ;;  %p452_p10 = scmp.lt.s32.totalorder (!%p402_p9), %s16852_s29, 1  ;;  %vm1913_vm0 = vcmask (!%p402_p9), 1042432  }
  0x12   : > { %405 = sbr.rel (%p402_p9) target bundleno = 2486 (0x9b6), region = 68  ;;  %v562_v2 = vld [vmem:[%s22493_s2 + $0x180] sm:$0xff] (!%p402_p9)  ;;  %v15898_v3 = vpack.c.bf16 (!%p402_p9), %v531_v1, %v530_v0  ;;  %v563_v4 = vld [vmem:[%s22493_s2 + $0x188] sm:$0xff] (!%p402_p9)  ;;  %v533_v13 = vld [vmem:[%s22493_s2 + $0x98] sm:$0xff] (!%p402_p9)  ;;  %s22518_s0 = sld [smem:[#allocation10_spill]] (!%p402_p9)  ;;  %vm1906_vm1 = vcmask (!%p402_p9), 23552  }
  0x13   : > { %v514_v5 = vld [vmem:[%s22493_s2] sm:$0xff] (!%p402_p9)  ;;  %v515_v6 = vld [vmem:[%s22493_s2 + $0x8] sm:$0xff] (!%p402_p9)  ;;  %v15930_v7 = vpack.c.bf16 (!%p402_p9), %v563_v4, %v562_v2  ;;  %v564_v14 = vld [vmem:[%s22493_s2 + $0x190] sm:$0xff] (!%p402_p9)  ;;  %v15902_v16 = vpack.c.bf16 (!%p402_p9), %v533_v13, %v532_v11  ;;  %vm2599_vm2 = vcmask (!%p402_p9), 1043456   ;;  %vm16758_vm3 = vmmov (!%p402_p9), 1   ;;  %s450_s23 = sand.u32 (!%p402_p9), 1, %s16747_s26  }
  0x14   : > { %v15900_v8 = vpack.c.bf16 (!%p402_p9), %v515_v6, %v514_v5  ;;  %v546_v9 = vld [vmem:[%s22493_s2 + $0x100] sm:$0xff] (!%p402_p9)  ;;  %v547_v10 = vld [vmem:[%s22493_s2 + $0x108] sm:$0xff] (!%p402_p9)  ;;  %15899 = vmatprep.subr.bf16.mxu0 (!%p402_p9), %v15898_v3  ;;  %v565_v15 = vld [vmem:[%s22493_s2 + $0x198] sm:$0xff] (!%p402_p9)  ;;  %vm2595_vm5 = vcmask (!%p402_p9), 97280   ;;  %s13471_s17 = scalar_lea.sflag (!%p402_p9), [#allocation3], %s450_s23 }
  0x15   : > { %v15932_v12 = vpack.c.bf16 (!%p402_p9), %v547_v10, %v546_v9  ;;  %15931 = vmatprep.subr.bf16.mxu1 (!%p402_p9), %v15930_v7  ;;  %v15934_v17 = vpack.c.bf16 (!%p402_p9), %v565_v15, %v564_v14  ;;  %v516_v18 = vld [vmem:[%s22493_s2 + $0x10] sm:$0xff] (!%p402_p9)  ;;  %v517_v19 = vld [vmem:[%s22493_s2 + $0x18] sm:$0xff] (!%p402_p9)  ;;  %v534_v23 = vld [vmem:[%s22493_s2 + $0xa0] sm:$0xff] (!%p402_p9) }
  0x16   : > { %15901 = vmatpush3.bf16.msra.mxu0 (!%p402_p9), %v15900_v8  ;;  %v548_v20 = vld [vmem:[%s22493_s2 + $0x110] sm:$0xff] (!%p402_p9)  ;;  %v15904_v21 = vpack.c.bf16 (!%p402_p9), %v517_v19, %v516_v18  ;;  %v549_v22 = vld [vmem:[%s22493_s2 + $0x118] sm:$0xff] (!%p402_p9)  ;;  %v535_v24 = vld [vmem:[%s22493_s2 + $0xa8] sm:$0xff] (!%p402_p9) }
  0x17   : > { %15933 = vmatpush3.bf16.msra.mxu1 (!%p402_p9), %v15932_v12  ;;  %15903 = vmatprep.subr.bf16.mxu0 (!%p402_p9), %v15902_v16  ;;  %v15936_v25 = vpack.c.bf16 (!%p402_p9), %v549_v22, %v548_v20  ;;  %v15906_v26 = vpack.c.bf16 (!%p402_p9), %v535_v24, %v534_v23  ;;  %v566_v27 = vld [vmem:[%s22493_s2 + $0x1a0] sm:$0xff] (!%p402_p9)  ;;  %v567_v28 = vld [vmem:[%s22493_s2 + $0x1a8] sm:$0xff] (!%p402_p9)  ;;  %v536_v35 = vld [vmem:[%s22493_s2 + $0xb0] sm:$0xff] (!%p402_p9) }
  0x18   : > { %15935 = vmatprep.subr.bf16.mxu1 (!%p402_p9), %v15934_v17  ;;  %v518_v29 = vld [vmem:[%s22493_s2 + $0x20] sm:$0xff] (!%p402_p9)  ;;  %v15938_v30 = vpack.c.bf16 (!%p402_p9), %v567_v28, %v566_v27  ;;  %v519_v31 = vld [vmem:[%s22493_s2 + $0x28] sm:$0xff] (!%p402_p9)  ;;  %v537_v36 = vld [vmem:[%s22493_s2 + $0xb8] sm:$0xff] (!%p402_p9) }
  0x19   : > { %v550_v32 = vld [vmem:[%s22493_s2 + $0x120] sm:$0xff]  ;;  %v551_v33 = vld [vmem:[%s22493_s2 + $0x128] sm:$0xff]  ;;  %v15908_v34 = vpack.c.bf16 %v519_v31, %v518_v29  ;;  %v568_v37 = vld [vmem:[%s22493_s2 + $0x1b0] sm:$0xff]  ;;  %v15910_v39 = vpack.c.bf16 %v537_v36, %v536_v35  ;;  %s16982_s20 = scalar_select %p452_p10, %s16852_s29, 1 }
  0x1a   : > { %15905 = vmatpush3.bf16.msra.mxu0 %v15904_v21  ;;  %v15940_v38 = vpack.c.bf16 %v551_v33, %v550_v32  ;;  %v569_v40 = vld [vmem:[%s22493_s2 + $0x1b8] sm:$0xff]  ;;  %v520_v41 = vld [vmem:[%s22493_s2 + $0x30] sm:$0xff]  ;;  %v538_v46 = vld [vmem:[%s22493_s2 + $0xc0] sm:$0xff] }
  0x1b   : > { %15937 = vmatpush3.bf16.msra.mxu1 %v15936_v25  ;;  %15907 = vmatprep.subr.bf16.mxu0 %v15906_v26  ;;  %v521_v42 = vld [vmem:[%s22493_s2 + $0x38] sm:$0xff]  ;;  %v15942_v43 = vpack.c.bf16 %v569_v40, %v568_v37  ;;  %v552_v44 = vld [vmem:[%s22493_s2 + $0x130] sm:$0xff]  ;;  %v539_v47 = vld [vmem:[%s22493_s2 + $0xc8] sm:$0xff]  ;;  %s16450_s14 = smul.u32 384, %s16982_s20  ;;  %s459_s27 = scalar_lea.vmem %s22492_s1, %s16982_s20 }
  0x1c   : > { %15939 = vmatprep.subr.bf16.mxu1 %v15938_v30  ;;  %v553_v45 = vld [vmem:[%s22493_s2 + $0x138] sm:$0xff]  ;;  %v570_v48 = vld [vmem:[%s22493_s2 + $0x1c0] sm:$0xff]  ;;  %v571_v49 = vld [vmem:[%s22493_s2 + $0x1c8] sm:$0xff]  ;;  %v15912_v50 = vpack.c.bf16 %v521_v42, %v520_v41  ;;  %v15914_v52 = vpack.c.bf16 %v539_v47, %v538_v46 }
  0x1d   : > { %v15944_v51 = vpack.c.bf16 %v553_v45, %v552_v44  ;;  %v522_v53 = vld [vmem:[%s22493_s2 + $0x40] sm:$0xff]  ;;  %v523_v54 = vld [vmem:[%s22493_s2 + $0x48] sm:$0xff]  ;;  %v15946_v56 = vpack.c.bf16 %v571_v49, %v570_v48  ;;  %v540_v58 = vld [vmem:[%s22493_s2 + $0xd0] sm:$0xff]  ;;  %s17039_s25 = scalar_lea.vmem %s22518_s0, %s16450_s14  ;;  %s15177_s14 = sshll.u32 %s16982_s20, 8 }
  0x1e   : > { %15909 = vmatpush3.bf16.msra.mxu0 %v15908_v34  ;;  %v554_v55 = vld [vmem:[%s22493_s2 + $0x140] sm:$0xff]  ;;  %v555_v57 = vld [vmem:[%s22493_s2 + $0x148] sm:$0xff]  ;;  %v541_v59 = vld [vmem:[%s22493_s2 + $0xd8] sm:$0xff]  ;;  %v15916_v62 = vpack.c.bf16 %v523_v54, %v522_v53  ;;  %s18194_s19 = scalar_lea.vmem %s22503_s12, %s15177_s14  ;;  %s451_s20 = scalar_lea.vmem [#allocation2], %s450_s23 }
  0x1f   : > { %15941 = vmatpush3.bf16.msra.mxu1 %v15940_v38  ;;  %15911 = vmatprep.subr.bf16.mxu0 %v15910_v39  ;;  %v572_v60 = vld [vmem:[%s22493_s2 + $0x1d0] sm:$0xff]  ;;  %v573_v61 = vld [vmem:[%s22493_s2 + $0x1d8] sm:$0xff]  ;;  %v15948_v63 = vpack.c.bf16 %v555_v57, %v554_v55  ;;  %v15918_v0 = vpack.c.bf16 %v541_v59, %v540_v58  ;;  %v542_v6 = vld [vmem:[%s22493_s2 + $0xe0] sm:$0xff]  ;;  %s13486_s24 = sshll.u32 %s451_s20, 4  ;;  %s22451_s24 = int_to_ptr.vmem [resolvable:$true] %s13486_s24 }
  0x20   : > { %15943 = vmatprep.subr.bf16.mxu1 %v15942_v43  ;;  %v524_v1 = vld [vmem:[%s22493_s2 + $0x50] sm:$0xff]  ;;  %v525_v2 = vld [vmem:[%s22493_s2 + $0x58] sm:$0xff]  ;;  %v15950_v4 = vpack.c.bf16 %v573_v61, %v572_v60  ;;  %v543_v7 = vld [vmem:[%s22493_s2 + $0xe8] sm:$0xff] }
  0x21   : > { %v556_v3 = vld [vmem:[%s22493_s2 + $0x150] sm:$0xff]  ;;  %v557_v5 = vld [vmem:[%s22493_s2 + $0x158] sm:$0xff]  ;;  %v574_v8 = vld [vmem:[%s22493_s2 + $0x1e0] sm:$0xff]  ;;  %v15920_v10 = vpack.c.bf16 %v525_v2, %v524_v1  ;;  %v15922_v14 = vpack.c.bf16 %v543_v7, %v542_v6 }
  0x22   : > { %15913 = vmatpush3.bf16.msra.mxu0 %v15912_v50  ;;  %v575_v9 = vld [vmem:[%s22493_s2 + $0x1e8] sm:$0xff]  ;;  %v526_v11 = vld [vmem:[%s22493_s2 + $0x60] sm:$0xff]  ;;  %v15952_v13 = vpack.c.bf16 %v557_v5, %v556_v3  ;;  %v469_v17 = vld [vmem:[%s17039_s25 + $0x18] sm:$0xff] }
  0x23   : > { %15945 = vmatpush3.bf16.msra.mxu1 %v15944_v51  ;;  %15915 = vmatprep.subr.bf16.mxu0 %v15914_v52  ;;  %v527_v12 = vld [vmem:[%s22493_s2 + $0x68] sm:$0xff]  ;;  %v558_v15 = vld [vmem:[%s22493_s2 + $0x160] sm:$0xff]  ;;  %v15954_v18 = vpack.c.bf16 %v575_v9, %v574_v8  ;;  %v544_v20 = vld [vmem:[%s22493_s2 + $0xf0] sm:$0xff] }
  0x24   : > { %15947 = vmatprep.subr.bf16.mxu1 %v15946_v56  ;;  %v467_v16 = vld [vmem:[%s17039_s25 + $0x8] sm:$0xff]  ;;  %v545_v21 = vld [vmem:[%s22493_s2 + $0xf8] sm:$0xff]  ;;  %v576_v22 = vld [vmem:[%s22493_s2 + $0x1f0] sm:$0xff]  ;;  %1037 = vmatprep.mubr.f32.mxu1 %v469_v17  ;;  %v15924_v24 = vpack.c.bf16 %v527_v12, %v526_v11 }
  0x25   : > { %v559_v19 = vld [vmem:[%s22493_s2 + $0x168] sm:$0xff]  ;;  %962 = vmatprep.mubr.f32.mxu0 %v467_v16  ;;  %v577_v23 = vld [vmem:[%s22493_s2 + $0x1f8] sm:$0xff]  ;;  %v15926_v26 = vpack.c.bf16 %v545_v21, %v544_v20  ;;  %v528_v27 = vld [vmem:[%s22493_s2 + $0x70] sm:$0xff] }
  0x26   : > { %15917 = vmatpush3.bf16.msra.mxu0 %v15916_v62  ;;  %v15956_v25 = vpack.c.bf16 %v559_v19, %v558_v15  ;;  %v529_v28 = vld [vmem:[%s22493_s2 + $0x78] sm:$0xff]  ;;  %v560_v29 = vld [vmem:[%s22493_s2 + $0x170] sm:$0xff]  ;;  %v15958_v30 = vpack.c.bf16 %v577_v23, %v576_v22  ;;  %v594_v32 = vld [vmem:[%s22493_s2 + $0x280] sm:$0xff] }
  0x27   : > { %15949 = vmatpush3.bf16.msra.mxu1 %v15948_v63  ;;  %15919 = vmatprep.subr.bf16.mxu0 %v15918_v0  ;;  %v561_v31 = vld [vmem:[%s22493_s2 + $0x178] sm:$0xff]  ;;  %v595_v33 = vld [vmem:[%s22493_s2 + $0x288] sm:$0xff]  ;;  %v626_v34 = vld [vmem:[%s22493_s2 + $0x380] sm:$0xff]  ;;  %v15928_v36 = vpack.c.bf16 %v529_v28, %v528_v27 }
  0x28   : > { %15951 = vmatprep.subr.bf16.mxu1 %v15950_v4  ;;  %v627_v35 = vld [vmem:[%s22493_s2 + $0x388] sm:$0xff]  ;;  %v15960_v37 = vpack.c.bf16 %v561_v31, %v560_v29  ;;  %v15962_v38 = vpack.c.bf16 %v595_v33, %v594_v32  ;;  %v578_v39 = vld [vmem:[%s22493_s2 + $0x200] sm:$0xff]  ;;  %v596_v44 = vld [vmem:[%s22493_s2 + $0x290] sm:$0xff] }
  0x29   : > { %v579_v40 = vld [vmem:[%s22493_s2 + $0x208] sm:$0xff]  ;;  %v610_v41 = vld [vmem:[%s22493_s2 + $0x300] sm:$0xff]  ;;  %v15994_v42 = vpack.c.bf16 %v627_v35, %v626_v34  ;;  %v597_v45 = vld [vmem:[%s22493_s2 + $0x298] sm:$0xff] }
  0x2a   : > { %15921 = vmatpush3.bf16.msra.mxu0 %v15920_v10  ;;  %v611_v43 = vld [vmem:[%s22493_s2 + $0x308] sm:$0xff]  ;;  %v628_v46 = vld [vmem:[%s22493_s2 + $0x390] sm:$0xff]  ;;  %v629_v47 = vld [vmem:[%s22493_s2 + $0x398] sm:$0xff]  ;;  %v15964_v50 = vpack.c.bf16 %v579_v40, %v578_v39  ;;  %v15966_v52 = vpack.c.bf16 %v597_v45, %v596_v44 }
  0x2b   : > { %15953 = vmatpush3.bf16.msra.mxu1 %v15952_v13  ;;  %15923 = vmatprep.subr.bf16.mxu0 %v15922_v14  ;;  %v466_v48 = vld [vmem:[%s17039_s25] sm:$0xff]  ;;  %v468_v49 = vld [vmem:[%s17039_s25 + $0x10] sm:$0xff]  ;;  %v15996_v51 = vpack.c.bf16 %v611_v43, %v610_v41  ;;  %v581_v54 = vld [vmem:[%s22493_s2 + $0x218] sm:$0xff]  ;;  %v15998_v56 = vpack.c.bf16 %v629_v47, %v628_v46 }
  0x2c   : > { %15955 = vmatprep.subr.bf16.mxu1 %v15954_v18  ;;  %v580_v53 = vld [vmem:[%s22493_s2 + $0x210] sm:$0xff]  ;;  %v613_v57 = vld [vmem:[%s22493_s2 + $0x318] sm:$0xff]  ;;  %v598_v58 = vld [vmem:[%s22493_s2 + $0x2a0] sm:$0xff] }
  0x2d   : > { %v612_v55 = vld [vmem:[%s22493_s2 + $0x310] sm:$0xff]  ;;  %v599_v59 = vld [vmem:[%s22493_s2 + $0x2a8] sm:$0xff]  ;;  %v630_v60 = vld [vmem:[%s22493_s2 + $0x3a0] sm:$0xff]  ;;  %v15968_v62 = vpack.c.bf16 %v581_v54, %v580_v53 }
  0x2e   : > { %15925 = vmatpush3.bf16.msra.mxu0 %v15924_v24  ;;  %v631_v61 = vld [vmem:[%s22493_s2 + $0x3a8] sm:$0xff]  ;;  %v16000_v63 = vpack.c.bf16 %v613_v57, %v612_v55  ;;  %v15970_v0 = vpack.c.bf16 %v599_v59, %v598_v58  ;;  %v582_v1 = vld [vmem:[%s22493_s2 + $0x220] sm:$0xff]  ;;  %v600_v6 = vld [vmem:[%s22493_s2 + $0x2b0] sm:$0xff] }
  0x2f   : > { %15957 = vmatpush3.bf16.msra.mxu1 %v15956_v25  ;;  %15927 = vmatprep.subr.bf16.mxu0 %v15926_v26  ;;  %v583_v2 = vld [vmem:[%s22493_s2 + $0x228] sm:$0xff]  ;;  %v614_v3 = vld [vmem:[%s22493_s2 + $0x320] sm:$0xff]  ;;  %v16002_v4 = vpack.c.bf16 %v631_v61, %v630_v60  ;;  %v601_v7 = vld [vmem:[%s22493_s2 + $0x2b8] sm:$0xff] }
  0x30   : > { %15959 = vmatprep.subr.bf16.mxu1 %v15958_v30  ;;  %v615_v5 = vld [vmem:[%s22493_s2 + $0x328] sm:$0xff]  ;;  %v584_v8 = vld [vmem:[%s22493_s2 + $0x230] sm:$0xff]  ;;  %v633_v10 = vld [vmem:[%s22493_s2 + $0x3b8] sm:$0xff]  ;;  %v15972_v11 = vpack.c.bf16 %v583_v2, %v582_v1  ;;  %v15974_v16 = vpack.c.bf16 %v601_v7, %v600_v6 }
  0x31   : > { %v632_v9 = vld [vmem:[%s22493_s2 + $0x3b0] sm:$0xff]  ;;  %v585_v12 = vld [vmem:[%s22493_s2 + $0x238] sm:$0xff]  ;;  %v16004_v15 = vpack.c.bf16 %v615_v5, %v614_v3  ;;  %v602_v17 = vld [vmem:[%s22493_s2 + $0x2c0] sm:$0xff] }
  0x32   : > { %15929 = vmatpush3.bf16.msra.mxu0 %v15928_v36  ;;  %v616_v13 = vld [vmem:[%s22493_s2 + $0x330] sm:$0xff]  ;;  %v617_v14 = vld [vmem:[%s22493_s2 + $0x338] sm:$0xff]  ;;  %v491_v18 = vld [vmem:[%s17039_s25 + $0xc8] sm:$0xf]  ;;  %v16006_v20 = vpack.c.bf16 %v633_v10, %v632_v9  ;;  %v15976_v26 = vpack.c.bf16 %v585_v12, %v584_v8 }
  0x33   : > { %15961 = vmatpush3.bf16.msra.mxu1 %v15960_v37  ;;  %15963 = vmatprep.subr.bf16.mxu0 %v15962_v38  ;;  %v493_v19 = vld [vmem:[%s17039_s25 + $0xd8] sm:$0xf]  ;;  %v603_v21 = vld [vmem:[%s22493_s2 + $0x2c8] sm:$0xff]  ;;  %v490_v22 = vld [vmem:[%s17039_s25 + $0xc0] sm:$0xf]  ;;  %v16008_v29 = vpack.c.bf16 %v617_v14, %v616_v13 }
  0x34   : > { %15995 = vmatprep.subr.bf16.mxu1 %v15994_v42  ;;  %v492_v23 = vld [vmem:[%s17039_s25 + $0xd0] sm:$0xf]  ;;  %v634_v24 = vld [vmem:[%s22493_s2 + $0x3c0] sm:$0xff]  ;;  %v635_v25 = vld [vmem:[%s22493_s2 + $0x3c8] sm:$0xff]  ;;  %v15978_v30 = vpack.c.bf16 %v603_v21, %v602_v17 }
  0x35   : > { %963 = vmatmul.mubr.f32.vlgmr.msra.gmra.mrb[0].mxu0 %v466_v48  ;;  %v586_v27 = vld [vmem:[%s22493_s2 + $0x240] sm:$0xff]  ;;  %v587_v28 = vld [vmem:[%s22493_s2 + $0x248] sm:$0xff]  ;;  %v16010_v34 = vpack.c.bf16 %v635_v25, %v634_v24  ;;  %v604_v35 = vld [vmem:[%s22493_s2 + $0x2d0] sm:$0xff] }
  0x36   : > { %1038 = vmatmul.mubr.f32.vlgmr.msra.gmra.mrb[0].mxu1 %v468_v49  ;;  %15965 = vmatpush3.bf16.msra.mxu0 %v15964_v50  ;;  %v618_v31 = vld [vmem:[%s22493_s2 + $0x340] sm:$0xff]  ;;  %v619_v32 = vld [vmem:[%s22493_s2 + $0x348] sm:$0xff]  ;;  %v605_v36 = vld [vmem:[%s22493_s2 + $0x2d8] sm:$0xff]  ;;  %v15980_v40 = vpack.c.bf16 %v587_v28, %v586_v27 }
  0x37   : > { %15997 = vmatpush3.bf16.msra.mxu1 %v15996_v51  ;;  %15967 = vmatprep.subr.bf16.mxu0 %v15966_v52  ;;  %v471_v33 = vld [vmem:[%s17039_s25 + $0x28] sm:$0xff]  ;;  %v473_v37 = vld [vmem:[%s17039_s25 + $0x38] sm:$0xff]  ;;  %v636_v38 = vld [vmem:[%s22493_s2 + $0x3d0] sm:$0xff]  ;;  %v16012_v41 = vpack.c.bf16 %v619_v32, %v618_v31  ;;  %v15982_v42 = vpack.c.bf16 %v605_v36, %v604_v35 }
  0x38   : > { %15999 = vmatprep.subr.bf16.mxu1 %v15998_v56  ;;  %967 = vmatprep.mubr.f32.mxu0 %v491_v18  ;;  %v637_v39 = vld [vmem:[%s22493_s2 + $0x3d8] sm:$0xff]  ;;  %v588_v43 = vld [vmem:[%s22493_s2 + $0x250] sm:$0xff]  ;;  %v606_v48 = vld [vmem:[%s22493_s2 + $0x2e0] sm:$0xff] }
  0x39   : > { %1042 = vmatprep.mubr.f32.mxu1 %v493_v19  ;;  %968 = vmatmul.mubr.f32.gmra.mrb[2].mxu0 %v490_v22  ;;  %v589_v44 = vld [vmem:[%s22493_s2 + $0x258] sm:$0xff]  ;;  %v620_v45 = vld [vmem:[%s22493_s2 + $0x350] sm:$0xff]  ;;  %v16014_v46 = vpack.c.bf16 %v637_v39, %v636_v38  ;;  %v607_v49 = vld [vmem:[%s22493_s2 + $0x2e8] sm:$0xff] }
  0x3a   : > { %15969 = vmatpush3.bf16.msra.mxu0 %v15968_v62  ;;  %1043 = vmatmul.mubr.f32.gmra.mrb[2].mxu1 %v492_v23  ;;  %v621_v47 = vld [vmem:[%s22493_s2 + $0x358] sm:$0xff]  ;;  %v638_v50 = vld [vmem:[%s22493_s2 + $0x3e0] sm:$0xff]  ;;  %v639_v51 = vld [vmem:[%s22493_s2 + $0x3e8] sm:$0xff]  ;;  %v15984_v52 = vpack.c.bf16 %v589_v44, %v588_v43  ;;  %v15986_v54 = vpack.c.bf16 %v607_v49, %v606_v48 }
  0x3b   : > { %16001 = vmatpush3.bf16.msra.mxu1 %v16000_v63  ;;  %15971 = vmatprep.subr.bf16.mxu0 %v15970_v0  ;;  %v16016_v53 = vpack.c.bf16 %v621_v47, %v620_v45  ;;  %v590_v55 = vld [vmem:[%s22493_s2 + $0x260] sm:$0xff]  ;;  %v591_v56 = vld [vmem:[%s22493_s2 + $0x268] sm:$0xff]  ;;  %v16018_v58 = vpack.c.bf16 %v639_v51, %v638_v50  ;;  %v608_v60 = vld [vmem:[%s22493_s2 + $0x2f0] sm:$0xff] }
  0x3c   : > { %16003 = vmatprep.subr.bf16.mxu1 %v16002_v4  ;;  %1112 = vmatprep.mubr.f32.mxu0 %v471_v33  ;;  %v622_v57 = vld [vmem:[%s22493_s2 + $0x360] sm:$0xff]  ;;  %v623_v59 = vld [vmem:[%s22493_s2 + $0x368] sm:$0xff]  ;;  %v609_v61 = vld [vmem:[%s22493_s2 + $0x2f8] sm:$0xff]  ;;  %v15988_v0 = vpack.c.bf16 %v591_v56, %v590_v55 }
  0x3d   : > { %1187 = vmatprep.mubr.f32.mxu1 %v473_v37  ;;  %v640_v62 = vld [vmem:[%s22493_s2 + $0x3f0] sm:$0xff]  ;;  %v641_v63 = vld [vmem:[%s22493_s2 + $0x3f8] sm:$0xff]  ;;  %v16020_v1 = vpack.c.bf16 %v623_v59, %v622_v57  ;;  %v15990_v2 = vpack.c.bf16 %v609_v61, %v608_v60  ;;  %v658_v8 = vld [vmem:[%s22493_s2 + $0x480] sm:$0xff] }
  0x3e   : > { %15973 = vmatpush3.bf16.msra.mxu0 %v15972_v11  ;;  %v592_v3 = vld [vmem:[%s22493_s2 + $0x270] sm:$0xff]  ;;  %v593_v4 = vld [vmem:[%s22493_s2 + $0x278] sm:$0xff]  ;;  %v16022_v6 = vpack.c.bf16 %v641_v63, %v640_v62  ;;  %v659_v9 = vld [vmem:[%s22493_s2 + $0x488] sm:$0xff] }
  0x3f   : > { %16005 = vmatpush3.bf16.msra.mxu1 %v16004_v15  ;;  %15975 = vmatprep.subr.bf16.mxu0 %v15974_v16  ;;  %v624_v5 = vld [vmem:[%s22493_s2 + $0x370] sm:$0xff]  ;;  %v625_v7 = vld [vmem:[%s22493_s2 + $0x378] sm:$0xff]  ;;  %v690_v10 = vld [vmem:[%s22493_s2 + $0x580] sm:$0xff]  ;;  %v15992_v12 = vpack.c.bf16 %v593_v4, %v592_v3  ;;  %v16026_v14 = vpack.c.bf16 %v659_v9, %v658_v8 }
  0x40   : > { %16007 = vmatprep.subr.bf16.mxu1 %v16006_v20  ;;  %v691_v11 = vld [vmem:[%s22493_s2 + $0x588] sm:$0xff]  ;;  %v16024_v13 = vpack.c.bf16 %v625_v7, %v624_v5  ;;  %v642_v15 = vld [vmem:[%s22493_s2 + $0x400] sm:$0xff]  ;;  %v472_v21 = vld [vmem:[%s17039_s25 + $0x30] sm:$0xff] }
  0x41   : > { %v643_v16 = vld [vmem:[%s22493_s2 + $0x408] sm:$0xff]  ;;  %v470_v17 = vld [vmem:[%s17039_s25 + $0x20] sm:$0xff]  ;;  %v16058_v18 = vpack.c.bf16 %v691_v11, %v690_v10  ;;  %v660_v22 = vld [vmem:[%s22493_s2 + $0x490] sm:$0xff] }
  0x42   : > { %15977 = vmatpush3.bf16.msra.mxu0 %v15976_v26  ;;  %v674_v19 = vld [vmem:[%s22493_s2 + $0x500] sm:$0xff]  ;;  %v675_v20 = vld [vmem:[%s22493_s2 + $0x508] sm:$0xff]  ;;  %v661_v23 = vld [vmem:[%s22493_s2 + $0x498] sm:$0xff]  ;;  %v16028_v24 = vpack.c.bf16 %v643_v16, %v642_v15 }
  0x43   : > { %16009 = vmatpush3.bf16.msra.mxu1 %v16008_v29  ;;  %15979 = vmatprep.subr.bf16.mxu0 %v15978_v30  ;;  %v495_v25 = vld [vmem:[%s17039_s25 + $0xe8] sm:$0xf]  ;;  %v692_v26 = vld [vmem:[%s22493_s2 + $0x590] sm:$0xff]  ;;  %v693_v27 = vld [vmem:[%s22493_s2 + $0x598] sm:$0xff]  ;;  %v16060_v28 = vpack.c.bf16 %v675_v20, %v674_v19  ;;  %v16030_v32 = vpack.c.bf16 %v661_v23, %v660_v22 }
  0x44   : > { %16011 = vmatprep.subr.bf16.mxu1 %v16010_v34  ;;  %v644_v29 = vld [vmem:[%s22493_s2 + $0x410] sm:$0xff]  ;;  %v645_v30 = vld [vmem:[%s22493_s2 + $0x418] sm:$0xff]  ;;  %v662_v34 = vld [vmem:[%s22493_s2 + $0x4a0] sm:$0xff]  ;;  %v16062_v37 = vpack.c.bf16 %v693_v27, %v692_v26 }
  0x45   : > { %v676_v31 = vld [vmem:[%s22493_s2 + $0x510] sm:$0xff]  ;;  %v677_v33 = vld [vmem:[%s22493_s2 + $0x518] sm:$0xff]  ;;  %v663_v35 = vld [vmem:[%s22493_s2 + $0x4a8] sm:$0xff] }
  0x46   : > { %15981 = vmatpush3.bf16.msra.mxu0 %v15980_v40  ;;  %v497_v36 = vld [vmem:[%s17039_s25 + $0xf8] sm:$0xf]  ;;  %v694_v38 = vld [vmem:[%s22493_s2 + $0x5a0] sm:$0xff]  ;;  %v695_v39 = vld [vmem:[%s22493_s2 + $0x5a8] sm:$0xff]  ;;  %v16064_v43 = vpack.c.bf16 %v677_v33, %v676_v31  ;;  %v16034_v44 = vpack.c.bf16 %v663_v35, %v662_v34 }
  0x47   : > { %16013 = vmatpush3.bf16.msra.mxu1 %v16012_v41  ;;  %15983 = vmatprep.subr.bf16.mxu0 %v15982_v42  ;;  %v494_v40 = vld [vmem:[%s17039_s25 + $0xe0] sm:$0xf]  ;;  %v16032_v41 = vpack.c.bf16 %v645_v30, %v644_v29  ;;  %v496_v42 = vld [vmem:[%s17039_s25 + $0xf0] sm:$0xf]  ;;  %v16066_v48 = vpack.c.bf16 %v695_v39, %v694_v38  ;;  %v679_v49 = vld [vmem:[%s22493_s2 + $0x528] sm:$0xff] }
  0x48   : > { %16015 = vmatprep.subr.bf16.mxu1 %v16014_v46  ;;  %v646_v45 = vld [vmem:[%s22493_s2 + $0x420] sm:$0xff]  ;;  %v647_v46 = vld [vmem:[%s22493_s2 + $0x428] sm:$0xff]  ;;  %v664_v50 = vld [vmem:[%s22493_s2 + $0x4b0] sm:$0xff] }
  0x49   : > { %v678_v47 = vld [vmem:[%s22493_s2 + $0x520] sm:$0xff]  ;;  %v665_v51 = vld [vmem:[%s22493_s2 + $0x4b8] sm:$0xff]  ;;  %v16036_v55 = vpack.c.bf16 %v647_v46, %v646_v45  ;;  %v648_v59 = vld [vmem:[%s22493_s2 + $0x430] sm:$0xff] }
  0x4a   : > { %15985 = vmatpush3.bf16.msra.mxu0 %v15984_v52  ;;  %v696_v52 = vld [vmem:[%s22493_s2 + $0x5b0] sm:$0xff]  ;;  %v477_v56 = vld [vmem:[%s17039_s25 + $0x58] sm:$0xff]  ;;  %v16068_v57 = vpack.c.bf16 %v679_v49, %v678_v47  ;;  %v699_v3 = vld [vmem:[%s22493_s2 + $0x5c8] sm:$0xff] }
  0x4b   : > { %16017 = vmatpush3.bf16.msra.mxu1 %v16016_v53  ;;  %15987 = vmatprep.subr.bf16.mxu0 %v15986_v54  ;;  %v697_v53 = vld [vmem:[%s22493_s2 + $0x5b8] sm:$0xff]  ;;  %v475_v54 = vld [vmem:[%s17039_s25 + $0x48] sm:$0xff]  ;;  %v680_v61 = vld [vmem:[%s22493_s2 + $0x530] sm:$0xff] }
  0x4c   : > { %16019 = vmatprep.subr.bf16.mxu1 %v16018_v58  ;;  %v16038_v58 = vpack.c.bf16 %v665_v51, %v664_v50  ;;  %v649_v60 = vld [vmem:[%s22493_s2 + $0x438] sm:$0xff]  ;;  %v16070_v62 = vpack.c.bf16 %v697_v53, %v696_v52  ;;  %v650_v7 = vld [vmem:[%s22493_s2 + $0x440] sm:$0xff]  ;;  %v651_v8 = vld [vmem:[%s22493_s2 + $0x448] sm:$0xff] }
  0x4d   : > { %v681_v63 = vld [vmem:[%s22493_s2 + $0x538] sm:$0xff]  ;;  %v16040_v4 = vpack.c.bf16 %v649_v60, %v648_v59  ;;  %v682_v9 = vld [vmem:[%s22493_s2 + $0x540] sm:$0xff]  ;;  %v683_v11 = vld [vmem:[%s22493_s2 + $0x548] sm:$0xff]  ;;  %v16044_v16 = vpack.c.bf16 %v651_v8, %v650_v7 }
  0x4e   : > { %15989 = vmatpush3.bf16.msra.mxu0 %v15988_v0  ;;  %v666_v0 = vld [vmem:[%s22493_s2 + $0x4c0] sm:$0xff]  ;;  %v16072_v5 = vpack.c.bf16 %v681_v63, %v680_v61  ;;  %v701_v15 = vld [vmem:[%s22493_s2 + $0x5d8] sm:$0xff]  ;;  %v652_v19 = vld [vmem:[%s22493_s2 + $0x450] sm:$0xff] }
  0x4f   : > { %16021 = vmatpush3.bf16.msra.mxu1 %v16020_v1  ;;  %15991 = vmatprep.subr.bf16.mxu0 %v15990_v2  ;;  %v667_v1 = vld [vmem:[%s22493_s2 + $0x4c8] sm:$0xff]  ;;  %v698_v2 = vld [vmem:[%s22493_s2 + $0x5c0] sm:$0xff]  ;;  %v653_v20 = vld [vmem:[%s22493_s2 + $0x458] sm:$0xff] }
  0x50   : > { %16023 = vmatprep.subr.bf16.mxu1 %v16022_v6  ;;  %v16042_v6 = vpack.c.bf16 %v667_v1, %v666_v0  ;;  %v16074_v10 = vpack.c.bf16 %v699_v3, %v698_v2  ;;  %v685_v23 = vld [vmem:[%s22493_s2 + $0x558] sm:$0xff]  ;;  %v702_v26 = vld [vmem:[%s22493_s2 + $0x5e0] sm:$0xff]  ;;  %v703_v27 = vld [vmem:[%s22493_s2 + $0x5e8] sm:$0xff] }
  0x51   : > { %v654_v31 = vld [vmem:[%s22493_s2 + $0x460] sm:$0xff]  ;;  %v16082_v34 = vpack.c.bf16 %v703_v27, %v702_v26  ;;  %v687_v35 = vld [vmem:[%s22493_s2 + $0x568] sm:$0xff]  ;;  %v704_v38 = vld [vmem:[%s22493_s2 + $0x5f0] sm:$0xff] }
  0x52   : > { %15993 = vmatpush3.bf16.msra.mxu0 %v15992_v12  ;;  %v668_v12 = vld [vmem:[%s22493_s2 + $0x4d0] sm:$0xff]  ;;  %v686_v33 = vld [vmem:[%s22493_s2 + $0x560] sm:$0xff]  ;;  %v705_v39 = vld [vmem:[%s22493_s2 + $0x5f8] sm:$0xff] }
  0x53   : > { %16025 = vmatpush3.bf16.msra.mxu1 %v16024_v13  ;;  %16027 = vmatprep.subr.bf16.mxu0 %v16026_v14  ;;  %v669_v13 = vld [vmem:[%s22493_s2 + $0x4d8] sm:$0xff]  ;;  %v700_v14 = vld [vmem:[%s22493_s2 + $0x5d0] sm:$0xff]  ;;  %v16086_v46 = vpack.c.bf16 %v705_v39, %v704_v38  ;;  %v723_v49 = vld [vmem:[%s22493_s2 + $0x688] sm:$0xff] }
  0x54   : > { %16059 = vmatprep.subr.bf16.mxu1 %v16058_v18  ;;  %v16046_v18 = vpack.c.bf16 %v669_v13, %v668_v12  ;;  %v16078_v22 = vpack.c.bf16 %v701_v15, %v700_v14  ;;  %v688_v45 = vld [vmem:[%s22493_s2 + $0x570] sm:$0xff]  ;;  %v689_v47 = vld [vmem:[%s22493_s2 + $0x578] sm:$0xff]  ;;  %v754_v50 = vld [vmem:[%s22493_s2 + $0x780] sm:$0xff] }
  0x55   : > { %1113 = vmatmul.mubr.f32.vlgmr.msra.gmra.mrb[4].mxu0 %v470_v17  ;;  %v16076_v17 = vpack.c.bf16 %v683_v11, %v682_v9  ;;  %v755_v51 = vld [vmem:[%s22493_s2 + $0x788] sm:$0xff]  ;;  %v16088_v53 = vpack.c.bf16 %v689_v47, %v688_v45  ;;  %v738_v59 = vld [vmem:[%s22493_s2 + $0x700] sm:$0xff]  ;;  %v476_v61 = vld [vmem:[%s17039_s25 + $0x50] sm:$0xff] }
  0x56   : > { %16029 = vmatpush3.bf16.msra.mxu0 %v16028_v24  ;;  %1188 = vmatmul.mubr.f32.vlgmr.msra.gmra.mrb[4].mxu1 %v472_v21  ;;  %v684_v21 = vld [vmem:[%s22493_s2 + $0x550] sm:$0xff]  ;;  %v670_v24 = vld [vmem:[%s22493_s2 + $0x4e0] sm:$0xff]  ;;  %v739_v60 = vld [vmem:[%s22493_s2 + $0x708] sm:$0xff] }
  0x57   : > { %16061 = vmatpush3.bf16.msra.mxu1 %v16060_v28  ;;  %1117 = vmatprep.mubr.f32.mxu0 %v495_v25  ;;  %v671_v25 = vld [vmem:[%s22493_s2 + $0x4e8] sm:$0xff]  ;;  %v16048_v28 = vpack.c.bf16 %v653_v20, %v652_v19  ;;  %v16080_v29 = vpack.c.bf16 %v685_v23, %v684_v21  ;;  %v725_v63 = vld [vmem:[%s22493_s2 + $0x698] sm:$0xff]  ;;  %v756_v2 = vld [vmem:[%s22493_s2 + $0x790] sm:$0xff] }
  0x58   : > { %16031 = vmatprep.subr.bf16.mxu0 %v16030_v32  ;;  %1192 = vmatprep.mubr.f32.mxu1 %v497_v36  ;;  %v16050_v30 = vpack.c.bf16 %v671_v25, %v670_v24  ;;  %v655_v32 = vld [vmem:[%s22493_s2 + $0x468] sm:$0xff]  ;;  %v672_v36 = vld [vmem:[%s22493_s2 + $0x4f0] sm:$0xff]  ;;  %v757_v3 = vld [vmem:[%s22493_s2 + $0x798] sm:$0xff] }
  0x59   : > { %1118 = vmatmul.mubr.f32.gmra.mrb[6].mxu0 %v494_v40  ;;  %16063 = vmatprep.subr.bf16.mxu1 %v16062_v37  ;;  %v673_v37 = vld [vmem:[%s22493_s2 + $0x4f8] sm:$0xff]  ;;  %v16052_v40 = vpack.c.bf16 %v655_v32, %v654_v31  ;;  %v499_v1 = vld [vmem:[%s17039_s25 + $0x108] sm:$0xf]  ;;  %v740_v7 = vld [vmem:[%s22493_s2 + $0x710] sm:$0xff]  ;;  %v16126_v13 = vpack.c.bf16 %v757_v3, %v756_v2 }
  0x5a   : > { %16033 = vmatpush3.bf16.msra.mxu0 %v16032_v41  ;;  %1193 = vmatmul.mubr.f32.gmra.mrb[6].mxu1 %v496_v42  ;;  %v16084_v41 = vpack.c.bf16 %v687_v35, %v686_v33  ;;  %v16054_v42 = vpack.c.bf16 %v673_v37, %v672_v36  ;;  %v741_v9 = vld [vmem:[%s22493_s2 + $0x718] sm:$0xff]  ;;  %v727_v11 = vld [vmem:[%s22493_s2 + $0x6a8] sm:$0xff]  ;;  %v758_v14 = vld [vmem:[%s22493_s2 + $0x7a0] sm:$0xff] }
  0x5b   : > { %16065 = vmatpush3.bf16.msra.mxu1 %v16064_v43  ;;  %16035 = vmatprep.subr.bf16.mxu0 %v16034_v44  ;;  %v656_v43 = vld [vmem:[%s22493_s2 + $0x470] sm:$0xff]  ;;  %v657_v44 = vld [vmem:[%s22493_s2 + $0x478] sm:$0xff]  ;;  %v759_v15 = vld [vmem:[%s22493_s2 + $0x7a8] sm:$0xff]  ;;  %v16128_v19 = vpack.c.bf16 %v741_v9, %v740_v7 }
  0x5c   : > { %16067 = vmatprep.subr.bf16.mxu1 %v16066_v48  ;;  %1262 = vmatprep.mubr.f32.mxu0 %v475_v54  ;;  %v722_v48 = vld [vmem:[%s22493_s2 + $0x680] sm:$0xff]  ;;  %v16056_v52 = vpack.c.bf16 %v657_v44, %v656_v43  ;;  %v501_v12 = vld [vmem:[%s17039_s25 + $0x118] sm:$0xf]  ;;  %v16130_v24 = vpack.c.bf16 %v759_v15, %v758_v14  ;;  %v743_v25 = vld [vmem:[%s22493_s2 + $0x728] sm:$0xff] }
  0x5d   : > { %1337 = vmatprep.mubr.f32.mxu1 %v477_v56  ;;  %v16090_v54 = vpack.c.bf16 %v723_v49, %v722_v48  ;;  %v707_v56 = vld [vmem:[%s22493_s2 + $0x608] sm:$0xff]  ;;  %v710_v21 = vld [vmem:[%s22493_s2 + $0x620] sm:$0xff]  ;;  %v728_v26 = vld [vmem:[%s22493_s2 + $0x6b0] sm:$0xff] }
  0x5e   : > { %16037 = vmatpush3.bf16.msra.mxu0 %v16036_v55  ;;  %v706_v55 = vld [vmem:[%s22493_s2 + $0x600] sm:$0xff]  ;;  %v729_v27 = vld [vmem:[%s22493_s2 + $0x6b8] sm:$0xff]  ;;  %v712_v35 = vld [vmem:[%s22493_s2 + $0x630] sm:$0xff] }
  0x5f   : > { %16069 = vmatpush3.bf16.msra.mxu1 %v16068_v57  ;;  %16039 = vmatprep.subr.bf16.mxu0 %v16038_v58  ;;  %v474_v57 = vld [vmem:[%s17039_s25 + $0x40] sm:$0xff]  ;;  %v16122_v58 = vpack.c.bf16 %v755_v51, %v754_v50  ;;  %v16092_v0 = vpack.c.bf16 %v707_v56, %v706_v55  ;;  %v481_v32 = vld [vmem:[%s17039_s25 + $0x78] sm:$0xff]  ;;  %v744_v37 = vld [vmem:[%s22493_s2 + $0x730] sm:$0xff] }
  0x60   : > { %16071 = vmatprep.subr.bf16.mxu1 %v16070_v62  ;;  %v724_v62 = vld [vmem:[%s22493_s2 + $0x690] sm:$0xff]  ;;  %v742_v23 = vld [vmem:[%s22493_s2 + $0x720] sm:$0xff]  ;;  %v713_v36 = vld [vmem:[%s22493_s2 + $0x638] sm:$0xff] }
  0x61   : > { %v16094_v8 = vpack.c.bf16 %v725_v63, %v724_v62  ;;  %v16132_v33 = vpack.c.bf16 %v743_v25, %v742_v23  ;;  %v745_v39 = vld [vmem:[%s22493_s2 + $0x738] sm:$0xff]  ;;  %v763_v43 = vld [vmem:[%s22493_s2 + $0x7c8] sm:$0xff]  ;;  %v16104_v44 = vpack.c.bf16 %v713_v36, %v712_v35  ;;  %v714_v47 = vld [vmem:[%s22493_s2 + $0x640] sm:$0xff] }
  0x62   : > { %16041 = vmatpush3.bf16.msra.mxu0 %v16040_v4  ;;  %v16124_v4 = vpack.c.bf16 %v739_v60, %v738_v59  ;;  %v16136_v45 = vpack.c.bf16 %v745_v39, %v744_v37  ;;  %v715_v48 = vld [vmem:[%s22493_s2 + $0x648] sm:$0xff]  ;;  %v746_v49 = vld [vmem:[%s22493_s2 + $0x740] sm:$0xff]  ;;  %v765_v55 = vld [vmem:[%s22493_s2 + $0x7d8] sm:$0xff] }
  0x63   : > { %16073 = vmatpush3.bf16.msra.mxu1 %v16072_v5  ;;  %16043 = vmatprep.subr.bf16.mxu0 %v16042_v6  ;;  %v708_v5 = vld [vmem:[%s22493_s2 + $0x610] sm:$0xff]  ;;  %v709_v6 = vld [vmem:[%s22493_s2 + $0x618] sm:$0xff]  ;;  %v747_v51 = vld [vmem:[%s22493_s2 + $0x748] sm:$0xff]  ;;  %v16108_v56 = vpack.c.bf16 %v715_v48, %v714_v47 }
  0x64   : > { %16075 = vmatprep.subr.bf16.mxu1 %v16074_v10  ;;  %v726_v10 = vld [vmem:[%s22493_s2 + $0x6a0] sm:$0xff]  ;;  %v716_v59 = vld [vmem:[%s22493_s2 + $0x650] sm:$0xff]  ;;  %v717_v60 = vld [vmem:[%s22493_s2 + $0x658] sm:$0xff] }
  0x65   : > { %v16098_v20 = vpack.c.bf16 %v727_v11, %v726_v10  ;;  %v749_v63 = vld [vmem:[%s22493_s2 + $0x758] sm:$0xff]  ;;  %v766_v2 = vld [vmem:[%s22493_s2 + $0x7e0] sm:$0xff]  ;;  %v767_v3 = vld [vmem:[%s22493_s2 + $0x7e8] sm:$0xff] }
  0x66   : > { %16045 = vmatpush3.bf16.msra.mxu0 %v16044_v16  ;;  %v498_v16 = vld [vmem:[%s17039_s25 + $0x100] sm:$0xf]  ;;  %v16146_v10 = vpack.c.bf16 %v767_v3, %v766_v2  ;;  %v751_v11 = vld [vmem:[%s22493_s2 + $0x768] sm:$0xff]  ;;  %v768_v14 = vld [vmem:[%s22493_s2 + $0x7f0] sm:$0xff] }
  0x67   : > { %16077 = vmatpush3.bf16.msra.mxu1 %v16076_v17  ;;  %16047 = vmatprep.subr.bf16.mxu0 %v16046_v18  ;;  %v16096_v17 = vpack.c.bf16 %v709_v6, %v708_v5  ;;  %v500_v18 = vld [vmem:[%s17039_s25 + $0x110] sm:$0xf]  ;;  %v718_v7 = vld [vmem:[%s22493_s2 + $0x660] sm:$0xff]  ;;  %v769_v15 = vld [vmem:[%s22493_s2 + $0x7f8] sm:$0xff] }
  0x68   : > { %16079 = vmatprep.subr.bf16.mxu1 %v16078_v22  ;;  %v711_v22 = vld [vmem:[%s22493_s2 + $0x628] sm:$0xff]  ;;  %v750_v9 = vld [vmem:[%s22493_s2 + $0x760] sm:$0xff]  ;;  %v753_v23 = vld [vmem:[%s22493_s2 + $0x778] sm:$0xff] }
  0x69   : > { %v16100_v31 = vpack.c.bf16 %v711_v22, %v710_v21  ;;  %v752_v21 = vld [vmem:[%s22493_s2 + $0x770] sm:$0xff]  ;;  %v16150_v22 = vpack.c.bf16 %v769_v15, %v768_v14  ;;  %v787_v25 = vld [vmem:[%s22493_s2 + $0x888] sm:$0xff]  ;;  %v802_v35 = vld [vmem:[%s22493_s2 + $0x900] sm:$0xff] }
  0x6a   : > { %16049 = vmatpush3.bf16.msra.mxu0 %v16048_v28  ;;  %v760_v28 = vld [vmem:[%s22493_s2 + $0x7b0] sm:$0xff]  ;;  %v803_v36 = vld [vmem:[%s22493_s2 + $0x908] sm:$0xff]  ;;  %v789_v39 = vld [vmem:[%s22493_s2 + $0x898] sm:$0xff] }
  0x6b   : > { %16081 = vmatpush3.bf16.msra.mxu1 %v16080_v29  ;;  %16051 = vmatprep.subr.bf16.mxu0 %v16050_v30  ;;  %v761_v29 = vld [vmem:[%s22493_s2 + $0x7b8] sm:$0xff]  ;;  %v479_v30 = vld [vmem:[%s17039_s25 + $0x68] sm:$0xff]  ;;  %v480_v37 = vld [vmem:[%s17039_s25 + $0x70] sm:$0xff] }
  0x6c   : > { %16083 = vmatprep.subr.bf16.mxu1 %v16082_v34  ;;  %v16102_v34 = vpack.c.bf16 %v729_v27, %v728_v26  ;;  %v16134_v38 = vpack.c.bf16 %v761_v29, %v760_v28  ;;  %v818_v26 = vld [vmem:[%s22493_s2 + $0x980] sm:$0xff]  ;;  %v819_v27 = vld [vmem:[%s22493_s2 + $0x988] sm:$0xff]  ;;  %v16152_v29 = vpack.c.bf16 %v753_v23, %v752_v21  ;;  %v804_v47 = vld [vmem:[%s22493_s2 + $0x910] sm:$0xff] }
  0x6d   : > { %v792_v2 = vld [vmem:[%s22493_s2 + $0x8b0] sm:$0xff]  ;;  %v793_v3 = vld [vmem:[%s22493_s2 + $0x8b8] sm:$0xff]  ;;  %v778_v23 = vld [vmem:[%s22493_s2 + $0x840] sm:$0xff] }
  0x6e   : > { %16053 = vmatpush3.bf16.msra.mxu0 %v16052_v40  ;;  %v730_v40 = vld [vmem:[%s22493_s2 + $0x6c0] sm:$0xff]  ;;  %v809_v15 = vld [vmem:[%s22493_s2 + $0x938] sm:$0xff]  ;;  %vm18215_vm4 = vmpackc.low %vm2599_vm2, %vm16758_vm3 }
  0x6f   : > { %16085 = vmatpush3.bf16.msra.mxu1 %v16084_v41  ;;  %16055 = vmatprep.subr.bf16.mxu0 %v16054_v42  ;;  %v731_v41 = vld [vmem:[%s22493_s2 + $0x6c8] sm:$0xff]  ;;  %v762_v42 = vld [vmem:[%s22493_s2 + $0x7c0] sm:$0xff] }
  0x70   : > { %16087 = vmatprep.subr.bf16.mxu1 %v16086_v46  ;;  %v16106_v46 = vpack.c.bf16 %v731_v41, %v730_v40  ;;  %v16138_v50 = vpack.c.bf16 %v763_v43, %v762_v42  ;;  %v503_v41 = vld [vmem:[%s17039_s25 + $0x128] sm:$0xf]  ;;  %v820_v42 = vld [vmem:[%s22493_s2 + $0x990] sm:$0xff]  ;;  %v821_v43 = vld [vmem:[%s22493_s2 + $0x998] sm:$0xff] }
  0x72   : > { %16057 = vmatpush3.bf16.msra.mxu0 %v16056_v52  ;;  %v732_v52 = vld [vmem:[%s22493_s2 + $0x6d0] sm:$0xff] }
  0x73   : > { %16089 = vmatpush3.bf16.msra.mxu1 %v16088_v53  ;;  %16091 = vmatprep.subr.bf16.mxu0 %v16090_v54  ;;  %v733_v53 = vld [vmem:[%s22493_s2 + $0x6d8] sm:$0xff]  ;;  %v764_v54 = vld [vmem:[%s22493_s2 + $0x7d0] sm:$0xff] }
  0x74   : > { %16123 = vmatprep.subr.bf16.mxu1 %v16122_v58  ;;  %v16110_v58 = vpack.c.bf16 %v733_v53, %v732_v52  ;;  %v16142_v62 = vpack.c.bf16 %v765_v55, %v764_v54  ;;  %v505_v52 = vld [vmem:[%s17039_s25 + $0x138] sm:$0xf]  ;;  %v16190_v53 = vpack.c.bf16 %v821_v43, %v820_v42  ;;  %v822_v54 = vld [vmem:[%s22493_s2 + $0x9a0] sm:$0xff]  ;;  %v823_v55 = vld [vmem:[%s22493_s2 + $0x9a8] sm:$0xff] }
  0x75   : > { %1263 = vmatmul.mubr.f32.vlgmr.msra.gmra.mrb[8].mxu0 %v474_v57  ;;  %v16140_v57 = vpack.c.bf16 %v747_v51, %v746_v49  ;;  %v805_v49 = vld [vmem:[%s22493_s2 + $0x918] sm:$0xff]  ;;  %v791_v51 = vld [vmem:[%s22493_s2 + $0x8a8] sm:$0xff] }
  0x76   : > { %16093 = vmatpush3.bf16.msra.mxu0 %v16092_v0  ;;  %1338 = vmatmul.mubr.f32.vlgmr.msra.gmra.mrb[8].mxu1 %v476_v61  ;;  %v748_v61 = vld [vmem:[%s22493_s2 + $0x750] sm:$0xff]  ;;  %v734_v0 = vld [vmem:[%s22493_s2 + $0x6e0] sm:$0xff]  ;;  %v831_v42 = vld [vmem:[%s22493_s2 + $0x9e8] sm:$0xff] }
  0x77   : > { %16125 = vmatpush3.bf16.msra.mxu1 %v16124_v4  ;;  %1267 = vmatprep.mubr.f32.mxu0 %v499_v1  ;;  %v735_v1 = vld [vmem:[%s22493_s2 + $0x6e8] sm:$0xff]  ;;  %v16112_v4 = vpack.c.bf16 %v717_v60, %v716_v59  ;;  %v16144_v5 = vpack.c.bf16 %v749_v63, %v748_v61  ;;  %v16192_v59 = vpack.c.bf16 %v805_v49, %v804_v47  ;;  %v774_v61 = vld [vmem:[%s22493_s2 + $0x820] sm:$0xff]  ;;  %v800_v49 = vld [vmem:[%s22493_s2 + $0x8f0] sm:$0xff] }
  0x78   : > { %16095 = vmatprep.subr.bf16.mxu0 %v16094_v8  ;;  %1342 = vmatprep.mubr.f32.mxu1 %v501_v12  ;;  %v16114_v6 = vpack.c.bf16 %v735_v1, %v734_v0  ;;  %v719_v8 = vld [vmem:[%s22493_s2 + $0x668] sm:$0xff]  ;;  %v736_v12 = vld [vmem:[%s22493_s2 + $0x6f0] sm:$0xff]  ;;  %v806_v63 = vld [vmem:[%s22493_s2 + $0x920] sm:$0xff]  ;;  %v16194_v0 = vpack.c.bf16 %v823_v55, %v822_v54 }
  0x79   : > { %1268 = vmatmul.mubr.f32.gmra.mrb[10].mxu0 %v498_v16  ;;  %16127 = vmatprep.subr.bf16.mxu1 %v16126_v13  ;;  %v737_v13 = vld [vmem:[%s22493_s2 + $0x6f8] sm:$0xff]  ;;  %v16116_v16 = vpack.c.bf16 %v719_v8, %v718_v7  ;;  %v807_v1 = vld [vmem:[%s22493_s2 + $0x928] sm:$0xff]  ;;  %v814_v47 = vld [vmem:[%s22493_s2 + $0x960] sm:$0xff] }
  0x7a   : > { %16097 = vmatpush3.bf16.msra.mxu0 %v16096_v17  ;;  %1343 = vmatmul.mubr.f32.gmra.mrb[10].mxu1 %v500_v18  ;;  %v16148_v17 = vpack.c.bf16 %v751_v11, %v750_v9  ;;  %v16118_v18 = vpack.c.bf16 %v737_v13, %v736_v12  ;;  %v485_v8 = vld [vmem:[%s17039_s25 + $0x98] sm:$0xff]  ;;  %v16196_v9 = vpack.c.bf16 %v807_v1, %v806_v63  ;;  %v776_v11 = vld [vmem:[%s22493_s2 + $0x830] sm:$0xff]  ;;  %v882_v1 = vld [vmem:[%s22493_s2 + $0xb80] sm:$0xff] }
  0x7b   : > { %16129 = vmatpush3.bf16.msra.mxu1 %v16128_v19  ;;  %16099 = vmatprep.subr.bf16.mxu0 %v16098_v20  ;;  %v720_v19 = vld [vmem:[%s22493_s2 + $0x670] sm:$0xff]  ;;  %v721_v20 = vld [vmem:[%s22493_s2 + $0x678] sm:$0xff] }
  0x7c   : > { %16131 = vmatprep.subr.bf16.mxu1 %v16130_v24  ;;  %1412 = vmatprep.mubr.f32.mxu0 %v479_v30  ;;  %v786_v24 = vld [vmem:[%s22493_s2 + $0x880] sm:$0xff]  ;;  %v16120_v28 = vpack.c.bf16 %v721_v20, %v720_v19  ;;  %v777_v12 = vld [vmem:[%s22493_s2 + $0x838] sm:$0xff]  ;;  %v808_v13 = vld [vmem:[%s22493_s2 + $0x930] sm:$0xff] }
  0x7d   : > { %1487 = vmatprep.mubr.f32.mxu1 %v481_v32  ;;  %v16154_v30 = vpack.c.bf16 %v787_v25, %v786_v24  ;;  %v771_v32 = vld [vmem:[%s22493_s2 + $0x808] sm:$0xff]  ;;  %v16168_v20 = vpack.c.bf16 %v777_v12, %v776_v11  ;;  %v16200_v21 = vpack.c.bf16 %v809_v15, %v808_v13  ;;  %v810_v25 = vld [vmem:[%s22493_s2 + $0x940] sm:$0xff]  ;;  %v833_v54 = vld [vmem:[%s22493_s2 + $0x9f8] sm:$0xff] }
  0x7e   : > { %16101 = vmatpush3.bf16.msra.mxu0 %v16100_v31  ;;  %v770_v31 = vld [vmem:[%s22493_s2 + $0x800] sm:$0xff]  ;;  %v827_v19 = vld [vmem:[%s22493_s2 + $0x9c8] sm:$0xff]  ;;  %v852_v11 = vld [vmem:[%s22493_s2 + $0xa90] sm:$0xff] }
  0x7f   : > { %16133 = vmatpush3.bf16.msra.mxu1 %v16132_v33  ;;  %16103 = vmatprep.subr.bf16.mxu0 %v16102_v34  ;;  %v478_v33 = vld [vmem:[%s17039_s25 + $0x60] sm:$0xff]  ;;  %v16186_v34 = vpack.c.bf16 %v819_v27, %v818_v26  ;;  %v16156_v40 = vpack.c.bf16 %v771_v32, %v770_v31  ;;  %v779_v24 = vld [vmem:[%s22493_s2 + $0x848] sm:$0xff]  ;;  %v781_v31 = vld [vmem:[%s22493_s2 + $0x858] sm:$0xff] }
  0x80   : > { %16135 = vmatprep.subr.bf16.mxu1 %v16134_v38  ;;  %v788_v38 = vld [vmem:[%s22493_s2 + $0x890] sm:$0xff]  ;;  %v811_v27 = vld [vmem:[%s22493_s2 + $0x948] sm:$0xff]  ;;  %v853_v12 = vld [vmem:[%s22493_s2 + $0xa98] sm:$0xff] }
  0x81   : > { %v16158_v48 = vpack.c.bf16 %v789_v39, %v788_v38  ;;  %v828_v32 = vld [vmem:[%s22493_s2 + $0x9d0] sm:$0xff]  ;;  %v799_v38 = vld [vmem:[%s22493_s2 + $0x8e8] sm:$0xff]  ;;  %v16204_v39 = vpack.c.bf16 %v811_v27, %v810_v25  ;;  %v482_v13 = vld [vmem:[%s17039_s25 + $0x80] sm:$0xff] }
  0x82   : > { %16105 = vmatpush3.bf16.msra.mxu0 %v16104_v44  ;;  %v16188_v44 = vpack.c.bf16 %v803_v36, %v802_v35  ;;  %v812_v35 = vld [vmem:[%s22493_s2 + $0x950] sm:$0xff]  ;;  %v813_v36 = vld [vmem:[%s22493_s2 + $0x958] sm:$0xff]  ;;  %v855_v25 = vld [vmem:[%s22493_s2 + $0xaa8] sm:$0xff] }
  0x83   : > { %16137 = vmatpush3.bf16.msra.mxu1 %v16136_v45  ;;  %16107 = vmatprep.subr.bf16.mxu0 %v16106_v46  ;;  %v772_v45 = vld [vmem:[%s22493_s2 + $0x810] sm:$0xff]  ;;  %v773_v46 = vld [vmem:[%s22493_s2 + $0x818] sm:$0xff] }
  0x84   : > { %16139 = vmatprep.subr.bf16.mxu1 %v16138_v50  ;;  %v790_v50 = vld [vmem:[%s22493_s2 + $0x8a0] sm:$0xff]  ;;  %v884_v15 = vld [vmem:[%s22493_s2 + $0xb90] sm:$0xff]  ;;  %v509_v27 = vld [vmem:[%s17039_s25 + $0x158] sm:$0xf] }
  0x85   : > { %v16162_v60 = vpack.c.bf16 %v791_v51, %v790_v50  ;;  %v801_v50 = vld [vmem:[%s22493_s2 + $0x8f8] sm:$0xff]  ;;  %v16208_v51 = vpack.c.bf16 %v813_v36, %v812_v35  ;;  %v839_v35 = vld [vmem:[%s22493_s2 + $0xa28] sm:$0xff] }
  0x86   : > { %16109 = vmatpush3.bf16.msra.mxu0 %v16108_v56  ;;  %v502_v56 = vld [vmem:[%s17039_s25 + $0x120] sm:$0xf] }
  0x87   : > { %16141 = vmatpush3.bf16.msra.mxu1 %v16140_v57  ;;  %16111 = vmatprep.subr.bf16.mxu0 %v16110_v58  ;;  %v16160_v57 = vpack.c.bf16 %v773_v46, %v772_v45  ;;  %v504_v58 = vld [vmem:[%s17039_s25 + $0x130] sm:$0xf]  ;;  %v783_v45 = vld [vmem:[%s22493_s2 + $0x868] sm:$0xff] }
  0x88   : > { %16143 = vmatprep.subr.bf16.mxu1 %v16142_v62  ;;  %v775_v62 = vld [vmem:[%s22493_s2 + $0x828] sm:$0xff] }
  0x89   : > { %v16164_v7 = vpack.c.bf16 %v775_v62, %v774_v61  ;;  %v850_v61 = vld [vmem:[%s22493_s2 + $0xa80] sm:$0xff]  ;;  %v851_v62 = vld [vmem:[%s22493_s2 + $0xa88] sm:$0xff] }
  0x8a   : > { %16113 = vmatpush3.bf16.msra.mxu0 %v16112_v4  ;;  %v824_v4 = vld [vmem:[%s22493_s2 + $0x9b0] sm:$0xff] }
  0x8b   : > { %16145 = vmatpush3.bf16.msra.mxu1 %v16144_v5  ;;  %16115 = vmatprep.subr.bf16.mxu0 %v16114_v6  ;;  %v825_v5 = vld [vmem:[%s22493_s2 + $0x9b8] sm:$0xff]  ;;  %v483_v6 = vld [vmem:[%s17039_s25 + $0x88] sm:$0xff] }
  0x8c   : > { %16147 = vmatprep.subr.bf16.mxu1 %v16146_v10  ;;  %v16166_v10 = vpack.c.bf16 %v793_v3, %v792_v2  ;;  %v16198_v14 = vpack.c.bf16 %v825_v5, %v824_v4  ;;  %v883_v2 = vld [vmem:[%s22493_s2 + $0xb88] sm:$0xff]  ;;  %v834_v4 = vld [vmem:[%s22493_s2 + $0xa00] sm:$0xff] }
  0x8d   : > { %v835_v5 = vld [vmem:[%s22493_s2 + $0xa08] sm:$0xff] }
  0x8e   : > { %16117 = vmatpush3.bf16.msra.mxu0 %v16116_v16  ;;  %v794_v16 = vld [vmem:[%s22493_s2 + $0x8c0] sm:$0xff] }
  0x8f   : > { %16149 = vmatpush3.bf16.msra.mxu1 %v16148_v17  ;;  %16119 = vmatprep.subr.bf16.mxu0 %v16118_v18  ;;  %v795_v17 = vld [vmem:[%s22493_s2 + $0x8c8] sm:$0xff]  ;;  %v826_v18 = vld [vmem:[%s22493_s2 + $0x9c0] sm:$0xff] }
  0x90   : > { %16151 = vmatprep.subr.bf16.mxu1 %v16150_v22  ;;  %v16170_v22 = vpack.c.bf16 %v795_v17, %v794_v16  ;;  %v16202_v26 = vpack.c.bf16 %v827_v19, %v826_v18  ;;  %v885_v16 = vld [vmem:[%s22493_s2 + $0xb98] sm:$0xff]  ;;  %v484_v17 = vld [vmem:[%s17039_s25 + $0x90] sm:$0xff] }
  0x91   : > { %v836_v18 = vld [vmem:[%s22493_s2 + $0xa10] sm:$0xff]  ;;  %v837_v19 = vld [vmem:[%s22493_s2 + $0xa18] sm:$0xff] }
  0x92   : > { %16121 = vmatpush3.bf16.msra.mxu0 %v16120_v28  ;;  %v796_v28 = vld [vmem:[%s22493_s2 + $0x8d0] sm:$0xff]  ;;  %v16224_v36 = vpack.c.bf16 %v837_v19, %v836_v18  ;;  %v895_v18 = vld [vmem:[%s22493_s2 + $0xbe8] sm:$0xff] }
  0x93   : > { %16153 = vmatpush3.bf16.msra.mxu1 %v16152_v29  ;;  %16155 = vmatprep.subr.bf16.mxu0 %v16154_v30  ;;  %v797_v29 = vld [vmem:[%s22493_s2 + $0x8d8] sm:$0xff]  ;;  %v780_v30 = vld [vmem:[%s22493_s2 + $0x850] sm:$0xff] }
  0x94   : > { %16187 = vmatprep.subr.bf16.mxu1 %v16186_v34  ;;  %v16172_v34 = vpack.c.bf16 %v779_v24, %v778_v23  ;;  %v16176_v46 = vpack.c.bf16 %v781_v31, %v780_v30  ;;  %v869_v23 = vld [vmem:[%s22493_s2 + $0xb18] sm:$0xff]  ;;  %v854_v24 = vld [vmem:[%s22493_s2 + $0xaa0] sm:$0xff]  ;;  %v16222_v31 = vpack.c.bf16 %v853_v12, %v852_v11  ;;  %v876_v11 = vld [vmem:[%s22493_s2 + $0xb50] sm:$0xff] }
  0x95   : > { %1413 = vmatmul.mubr.f32.vlgmr.msra.gmra.mrb[12].mxu0 %v478_v33  ;;  %v829_v33 = vld [vmem:[%s22493_s2 + $0x9d8] sm:$0xff]  ;;  %v506_v30 = vld [vmem:[%s17039_s25 + $0x140] sm:$0xf] }
  0x96   : > { %16157 = vmatpush3.bf16.msra.mxu0 %v16156_v40  ;;  %1488 = vmatmul.mubr.f32.vlgmr.msra.gmra.mrb[12].mxu1 %v480_v37  ;;  %v798_v37 = vld [vmem:[%s22493_s2 + $0x8e0] sm:$0xff]  ;;  %v16174_v40 = vpack.c.bf16 %v797_v29, %v796_v28  ;;  %v16206_v43 = vpack.c.bf16 %v829_v33, %v828_v32  ;;  %v887_v29 = vld [vmem:[%s22493_s2 + $0xba8] sm:$0xff]  ;;  %v16254_v32 = vpack.c.bf16 %v885_v16, %v884_v15  ;;  %v508_v33 = vld [vmem:[%s17039_s25 + $0x150] sm:$0xf] }
  0x97   : > { %16189 = vmatpush3.bf16.msra.mxu1 %v16188_v44  ;;  %1417 = vmatprep.mubr.f32.mxu0 %v503_v41  ;;  %v830_v41 = vld [vmem:[%s22493_s2 + $0x9e0] sm:$0xff]  ;;  %v877_v12 = vld [vmem:[%s22493_s2 + $0xb58] sm:$0xff] }
  0x98   : > { %16159 = vmatprep.subr.bf16.mxu0 %v16158_v48  ;;  %1492 = vmatprep.mubr.f32.mxu1 %v505_v52  ;;  %v782_v44 = vld [vmem:[%s22493_s2 + $0x860] sm:$0xff]  ;;  %v815_v48 = vld [vmem:[%s22493_s2 + $0x968] sm:$0xff]  ;;  %v16178_v52 = vpack.c.bf16 %v799_v38, %v798_v37  ;;  %v16210_v55 = vpack.c.bf16 %v831_v42, %v830_v41  ;;  %v16226_v42 = vpack.c.bf16 %v855_v25, %v854_v24  ;;  %v864_v25 = vld [vmem:[%s22493_s2 + $0xaf0] sm:$0xff] }
  0x99   : > { %1418 = vmatmul.mubr.f32.gmra.mrb[14].mxu0 %v502_v56  ;;  %16191 = vmatprep.subr.bf16.mxu1 %v16190_v53  ;;  %v832_v53 = vld [vmem:[%s22493_s2 + $0x9f0] sm:$0xff]  ;;  %v16212_v63 = vpack.c.bf16 %v815_v48, %v814_v47  ;;  %v886_v28 = vld [vmem:[%s22493_s2 + $0xba0] sm:$0xff]  ;;  %v871_v38 = vld [vmem:[%s22493_s2 + $0xb28] sm:$0xff] }
  0x9a   : > { %16161 = vmatpush3.bf16.msra.mxu0 %v16160_v57  ;;  %1493 = vmatmul.mubr.f32.gmra.mrb[14].mxu1 %v504_v58  ;;  %v784_v56 = vld [vmem:[%s22493_s2 + $0x870] sm:$0xff]  ;;  %v785_v57 = vld [vmem:[%s22493_s2 + $0x878] sm:$0xff]  ;;  %v16180_v58 = vpack.c.bf16 %v783_v45, %v782_v44  ;;  %v16214_v3 = vpack.c.bf16 %v833_v54, %v832_v53  ;;  %v870_v37 = vld [vmem:[%s22493_s2 + $0xb20] sm:$0xff] }
  0x9b   : > { %16193 = vmatpush3.bf16.msra.mxu1 %v16192_v59  ;;  %16163 = vmatprep.subr.bf16.mxu0 %v16162_v60  ;;  %v816_v59 = vld [vmem:[%s22493_s2 + $0x970] sm:$0xff]  ;;  %v817_v60 = vld [vmem:[%s22493_s2 + $0x978] sm:$0xff]  ;;  %v487_v45 = vld [vmem:[%s17039_s25 + $0xa8] sm:$0xff] }
  0x9c   : > { %16195 = vmatprep.subr.bf16.mxu1 %v16194_v0  ;;  %1562 = vmatprep.mubr.f32.mxu0 %v483_v6  ;;  %v16182_v0 = vpack.c.bf16 %v801_v50, %v800_v49  ;;  %v16184_v6 = vpack.c.bf16 %v785_v57, %v784_v56  ;;  %v889_v44 = vld [vmem:[%s22493_s2 + $0xbb8] sm:$0xff]  ;;  %v840_v48 = vld [vmem:[%s22493_s2 + $0xa30] sm:$0xff]  ;;  %v858_v53 = vld [vmem:[%s22493_s2 + $0xac0] sm:$0xff] }
  0x9d   : > { %1637 = vmatprep.mubr.f32.mxu1 %v485_v8  ;;  %v867_v8 = vld [vmem:[%s22493_s2 + $0xb08] sm:$0xff]  ;;  %v489_v47 = vld [vmem:[%s17039_s25 + $0xb8] sm:$0xff]  ;;  %v890_v57 = vld [vmem:[%s22493_s2 + $0xbc0] sm:$0xff] }
  0x9e   : > { %16165 = vmatpush3.bf16.msra.mxu0 %v16164_v7  ;;  %v866_v7 = vld [vmem:[%s22493_s2 + $0xb00] sm:$0xff]  ;;  %v841_v49 = vld [vmem:[%s22493_s2 + $0xa38] sm:$0xff]  ;;  %v859_v54 = vld [vmem:[%s22493_s2 + $0xac8] sm:$0xff] }
  0x9f   : > { %16197 = vmatpush3.bf16.msra.mxu1 %v16196_v9  ;;  %16167 = vmatprep.subr.bf16.mxu0 %v16166_v10  ;;  %v16216_v9 = vpack.c.bf16 %v817_v60, %v816_v59  ;;  %v16218_v10 = vpack.c.bf16 %v851_v62, %v850_v61  ;;  %v842_v60 = vld [vmem:[%s22493_s2 + $0xa40] sm:$0xff]  ;;  %v843_v61 = vld [vmem:[%s22493_s2 + $0xa48] sm:$0xff]  ;;  %v16232_v62 = vpack.c.bf16 %v841_v49, %v840_v48 }
  0xa0   : > { %16199 = vmatprep.subr.bf16.mxu1 %v16198_v14  ;;  %v16250_v14 = vpack.c.bf16 %v883_v2, %v882_v1  ;;  %v860_v1 = vld [vmem:[%s22493_s2 + $0xad0] sm:$0xff]  ;;  %v861_v2 = vld [vmem:[%s22493_s2 + $0xad8] sm:$0xff]  ;;  %v879_v24 = vld [vmem:[%s22493_s2 + $0xb68] sm:$0xff] }
  0xa1   : > { %v16238_v16 = vpack.c.bf16 %v861_v2, %v860_v1 }
  0xa2   : > { %16169 = vmatpush3.bf16.msra.mxu0 %v16168_v20  ;;  %v16220_v20 = vpack.c.bf16 %v835_v5, %v834_v4  ;;  %v16234_v4 = vpack.c.bf16 %v859_v54, %v858_v53  ;;  %v892_v5 = vld [vmem:[%s22493_s2 + $0xbd0] sm:$0xff] }
  0xa3   : > { %16201 = vmatpush3.bf16.msra.mxu1 %v16200_v21  ;;  %16171 = vmatprep.subr.bf16.mxu0 %v16170_v22  ;;  %v507_v21 = vld [vmem:[%s17039_s25 + $0x148] sm:$0xf]  ;;  %v868_v22 = vld [vmem:[%s22493_s2 + $0xb10] sm:$0xff] }
  0xa4   : > { %16203 = vmatprep.subr.bf16.mxu1 %v16202_v26  ;;  %v16252_v26 = vpack.c.bf16 %v867_v8, %v866_v7  ;;  %v16256_v41 = vpack.c.bf16 %v869_v23, %v868_v22  ;;  %v844_v8 = vld [vmem:[%s22493_s2 + $0xa50] sm:$0xff]  ;;  %v878_v23 = vld [vmem:[%s22493_s2 + $0xb60] sm:$0xff] }
  0xa6   : > { %16173 = vmatpush3.bf16.msra.mxu0 %v16172_v34  ;;  %v838_v34 = vld [vmem:[%s22493_s2 + $0xa20] sm:$0xff] }
  0xa7   : > { %16205 = vmatpush3.bf16.msra.mxu1 %v16204_v39  ;;  %16175 = vmatprep.subr.bf16.mxu0 %v16174_v40  ;;  %v856_v39 = vld [vmem:[%s22493_s2 + $0xab0] sm:$0xff]  ;;  %v857_v40 = vld [vmem:[%s22493_s2 + $0xab8] sm:$0xff]  ;;  %v16228_v50 = vpack.c.bf16 %v839_v35, %v838_v34 }
  0xa8   : > { %16207 = vmatprep.subr.bf16.mxu1 %v16206_v43  ;;  %v888_v43 = vld [vmem:[%s22493_s2 + $0xbb0] sm:$0xff]  ;;  %v16230_v56 = vpack.c.bf16 %v857_v40, %v856_v39 }
  0xa9   : > { %v16262_v59 = vpack.c.bf16 %v889_v44, %v888_v43  ;;  %v880_v35 = vld [vmem:[%s22493_s2 + $0xb70] sm:$0xff]  ;;  %v511_v44 = vld [vmem:[%s17039_s25 + $0x168] sm:$0xf] }
  0xaa   : > { %16177 = vmatpush3.bf16.msra.mxu0 %v16176_v46  ;;  %v16258_v46 = vpack.c.bf16 %v887_v29, %v886_v28  ;;  %v896_v29 = vld [vmem:[%s22493_s2 + $0xbf0] sm:$0xff] }
  0xab   : > { %16209 = vmatpush3.bf16.msra.mxu1 %v16208_v51  ;;  %16179 = vmatprep.subr.bf16.mxu0 %v16178_v52  ;;  %v872_v51 = vld [vmem:[%s22493_s2 + $0xb30] sm:$0xff]  ;;  %v873_v52 = vld [vmem:[%s22493_s2 + $0xb38] sm:$0xff] }
  0xac   : > { %16211 = vmatprep.subr.bf16.mxu1 %v16210_v55  ;;  %v16260_v55 = vpack.c.bf16 %v871_v38, %v870_v37  ;;  %v16276_v37 = vpack.c.bf16 %v879_v24, %v878_v23  ;;  %v488_v43 = vld [vmem:[%s17039_s25 + $0xb0] sm:$0xff] }
  0xae   : > { %16181 = vmatpush3.bf16.msra.mxu0 %v16180_v58  ;;  %v891_v58 = vld [vmem:[%s22493_s2 + $0xbc8] sm:$0xff] }
  0xaf   : > { %16213 = vmatpush3.bf16.msra.mxu1 %v16212_v63  ;;  %16183 = vmatprep.subr.bf16.mxu0 %v16182_v0  ;;  %v874_v63 = vld [vmem:[%s22493_s2 + $0xb40] sm:$0xff]  ;;  %v875_v0 = vld [vmem:[%s22493_s2 + $0xb48] sm:$0xff]  ;;  %v16266_v7 = vpack.c.bf16 %v891_v58, %v890_v57 }
  0xb0   : > { %16215 = vmatprep.subr.bf16.mxu1 %v16214_v3  ;;  %v16264_v3 = vpack.c.bf16 %v873_v52, %v872_v51  ;;  %v16268_v15 = vpack.c.bf16 %v875_v0, %v874_v63 }
  0xb2   : > { %16185 = vmatpush3.bf16.msra.mxu0 %v16184_v6  ;;  %v893_v6 = vld [vmem:[%s22493_s2 + $0xbd8] sm:$0xff] }
  0xb3   : > { %16217 = vmatpush3.bf16.msra.mxu1 %v16216_v9  ;;  %16219 = vmatprep.subr.bf16.mxu0 %v16218_v10  ;;  %v845_v9 = vld [vmem:[%s22493_s2 + $0xa58] sm:$0xff]  ;;  %v16236_v10 = vpack.c.bf16 %v843_v61, %v842_v60  ;;  %v16270_v19 = vpack.c.bf16 %v893_v6, %v892_v5  ;;  %v1798_v6 = vld [vmem:[%s22494_s3] sm:$0x77] }
  0xb4   : > { %16251 = vmatprep.subr.bf16.mxu1 %v16250_v14  ;;  %v863_v14 = vld [vmem:[%s22493_s2 + $0xae8] sm:$0xff]  ;;  %v16240_v22 = vpack.c.bf16 %v845_v9, %v844_v8 }
  0xb5   : > { %1563 = vmatmul.mubr.f32.vlgmr.msra.gmra.mrb[16].mxu0 %v482_v13  ;;  %v862_v13 = vld [vmem:[%s22493_s2 + $0xae0] sm:$0xff] }
  0xb6   : > { %16221 = vmatpush3.bf16.msra.mxu0 %v16220_v20  ;;  %1638 = vmatmul.mubr.f32.vlgmr.msra.gmra.mrb[16].mxu1 %v484_v17  ;;  %v894_v17 = vld [vmem:[%s22493_s2 + $0xbe0] sm:$0xff]  ;;  %v16242_v28 = vpack.c.bf16 %v863_v14, %v862_v13 }
  0xb7   : > { %16253 = vmatpush3.bf16.msra.mxu1 %v16252_v26  ;;  %1567 = vmatprep.mubr.f32.mxu0 %v507_v21  ;;  %v846_v20 = vld [vmem:[%s22493_s2 + $0xa60] sm:$0xff]  ;;  %v847_v21 = vld [vmem:[%s22493_s2 + $0xa68] sm:$0xff]  ;;  %v865_v26 = vld [vmem:[%s22493_s2 + $0xaf8] sm:$0xff] }
  0xb8   : > { %16223 = vmatprep.subr.bf16.mxu0 %v16222_v31  ;;  %1642 = vmatprep.mubr.f32.mxu1 %v509_v27  ;;  %v16272_v27 = vpack.c.bf16 %v877_v12, %v876_v11  ;;  %v16274_v31 = vpack.c.bf16 %v895_v18, %v894_v17  ;;  %v16244_v34 = vpack.c.bf16 %v847_v21, %v846_v20  ;;  %v16757_v17 = vmov 0.0   ;;  %v18111_v20 = vld [vmem:[%s22494_s3 + $0x18] sm:$0x77] }
  0xb9   : > { %1568 = vmatmul.mubr.f32.gmra.mrb[18].mxu0 %v506_v30  ;;  %16255 = vmatprep.subr.bf16.mxu1 %v16254_v32  ;;  %v897_v30 = vld [vmem:[%s22493_s2 + $0xbf8] sm:$0xff]  ;;  %v848_v32 = vld [vmem:[%s22493_s2 + $0xa70] sm:$0xff]  ;;  %v16246_v38 = vpack.c.bf16 %v865_v26, %v864_v25 }
  0xba   : > { %16225 = vmatpush3.bf16.msra.mxu0 %v16224_v36  ;;  %1643 = vmatmul.mubr.f32.gmra.mrb[18].mxu1 %v508_v33  ;;  %v849_v33 = vld [vmem:[%s22493_s2 + $0xa78] sm:$0xff]  ;;  %v16278_v39 = vpack.c.bf16 %v897_v30, %v896_v29 }
  0xbb   : > { %16257 = vmatpush3.bf16.msra.mxu1 %v16256_v41  ;;  %16227 = vmatprep.subr.bf16.mxu0 %v16226_v42  ;;  %v881_v36 = vld [vmem:[%s22493_s2 + $0xb78] sm:$0xff]  ;;  %v16248_v40 = vpack.c.bf16 %v849_v33, %v848_v32  ;;  %v486_v42 = vld [vmem:[%s17039_s25 + $0xa0] sm:$0xff] }
  0xbc   : > { %16259 = vmatprep.subr.bf16.mxu1 %v16258_v46  ;;  %1712 = vmatprep.mubr.f32.mxu0 %v487_v45  ;;  %v16280_v41 = vpack.c.bf16 %v881_v36, %v880_v35  ;;  %v513_v45 = vld [vmem:[%s17039_s25 + $0x178] sm:$0xf]  ;;  %v510_v46 = vld [vmem:[%s17039_s25 + $0x160] sm:$0xf] }
  0xbd   : > { %1787 = vmatprep.mubr.f32.mxu1 %v489_v47  ;;  %v512_v47 = vld [vmem:[%s17039_s25 + $0x170] sm:$0xf] }
  0xbe   : > { %16229 = vmatpush3.bf16.msra.mxu0 %v16228_v50 }
  0xbf   : > { %16261 = vmatpush3.bf16.msra.mxu1 %v16260_v55  ;;  %16231 = vmatprep.subr.bf16.mxu0 %v16230_v56 }
  0xc0   : > { %16263 = vmatprep.subr.bf16.mxu1 %v16262_v59 }
  0xc2   : > { %16233 = vmatpush3.bf16.msra.mxu0 %v16232_v62 }
  0xc3   : > { %16265 = vmatpush3.bf16.msra.mxu1 %v16264_v3  ;;  %16235 = vmatprep.subr.bf16.mxu0 %v16234_v4 }
  0xc4   : > { %16267 = vmatprep.subr.bf16.mxu1 %v16266_v7  ;;  %v1799_v7 = vld [vmem:[%s22494_s3 + $0x8] sm:$0x77] }
  0xc5   : > { %v1899_v11 = vcombine.high %v1799_v7, %v1799_v7 }
  0xc6   : > { %16237 = vmatpush3.bf16.msra.mxu0 %v16236_v10  ;;  %v1898_v10 = vcombine.high %v1798_v6, %v1798_v6 }
  0xc7   : > { %16269 = vmatpush3.bf16.msra.mxu1 %v16268_v15  ;;  %16239 = vmatprep.subr.bf16.mxu0 %v16238_v16 }
  0xc8   : > { %16271 = vmatprep.subr.bf16.mxu1 %v16270_v19  ;;  %v18106_v19 = vld [vmem:[%s22494_s3 + $0x10] sm:$0x77] }
  0xc9   : > { %v1900_v21 = vcombine.high %v18106_v19, %v18106_v19 }
  0xca   : > { %16241 = vmatpush3.bf16.msra.mxu0 %v16240_v22  ;;  %v1901_v22 = vcombine.high %v18111_v20, %v18111_v20 }
  0xcb   : > { %16273 = vmatpush3.bf16.msra.mxu1 %v16272_v27  ;;  %16243 = vmatprep.subr.bf16.mxu0 %v16242_v28 }
  0xcc   : > { %16275 = vmatprep.subr.bf16.mxu1 %v16274_v31 }
  0xce   : > { %16245 = vmatpush3.bf16.msra.mxu0 %v16244_v34 }
  0xcf   : > { %16277 = vmatpush3.bf16.msra.mxu1 %v16276_v37  ;;  %16247 = vmatprep.subr.bf16.mxu0 %v16246_v38 }
  0xd0   : > { %16279 = vmatprep.subr.bf16.mxu1 %v16278_v39 }
  0xd2   : > { %16249 = vmatpush3.bf16.msra.mxu0 %v16248_v40 }
  0xd3   : > { %16281 = vmatpush3.bf16.msra.mxu1 %v16280_v41  ;;  %13582 = vmatprep.subr.msk.mxu0 %vm1913_vm0, %v1898_v10 }
  0xd4   : > { %13586 = vmatprep.subr.msk.mxu1 %vm1913_vm0, %v1899_v11 }
  0xd5   : > { %1713 = vmatmul.mubr.f32.vlgmr.msra.gmra.mrb[20].mxu0 %v486_v42 }
  0xd6   : > { %1788 = vmatmul.mubr.f32.vlgmr.msra.gmra.mrb[20].mxu1 %v488_v43  ;;  %1717 = vmatprep.mubr.f32.mxu0 %v511_v44 }
  0xd7   : > { %1792 = vmatprep.mubr.f32.mxu1 %v513_v45  ;;  %13583 = vmatpush1.msk.msra.mxu0 %vm1913_vm0, %v1798_v6 }
  0xd8   : > { %13587 = vmatpush1.msk.msra.mxu1 %vm1913_vm0, %v1799_v7  ;;  %13590 = vmatprep.subr.msk.mxu0 %vm1913_vm0, %v1900_v21 }
  0xd9   : > { %1718 = vmatmul.mubr.f32.gmra.mrb[22].mxu0 %v510_v46  ;;  %13594 = vmatprep.subr.msk.mxu1 %vm1913_vm0, %v1901_v22 }
  0xda   : > { %1793 = vmatmul.mubr.f32.gmra.mrb[22].mxu1 %v512_v47  ;;  %2010 = vmatprep.mubr.f32.mxu0 %v16757_v17 }
  0xdb   : > { %2087 = vmatprep.mubr.f32.mxu1 %v16757_v17 }
 0x108   : > { %v15210_v48 = vpop.f32.mrb[0].mxu0 }
 0x109   : > { %v15248_v49 = vpop.f32.mrb[0].mxu1  ;;  %v15211_v50 = vpop.f32.mrb[1].mxu0 }
 0x10a   : > { %v15212_v51 = vadd.f32 %v15211_v50, %v15210_v48  ;;  %v15249_v52 = vpop.f32.mrb[1].mxu1 }
 0x10b   : > { %v15250_v53 = vadd.f32 %v15249_v52, %v15248_v49 }
 0x10c   : > { %v15213_v55 = vpop.f32.mrb[2].mxu0 }
 0x10d   : > { %v1040_v54 = vadd.f32 %v15250_v53, %v15212_v51  ;;  %v15251_v56 = vpop.f32.mrb[2].mxu1  ;;  %v15214_v57 = vpop.f32.mrb[3].mxu0 }
 0x10e   : > { %v15215_v58 = vadd.f32 %v15214_v57, %v15213_v55  ;;  %v15252_v59 = vpop.f32.mrb[3].mxu1 }
 0x10f   : > { %v15253_v60 = vadd.f32 %v15252_v59, %v15251_v56 }
 0x111   : > { %v1045_v61 = vadd.f32 %v15253_v60, %v15215_v58 }
 0x128   : > { %v15286_v62 = vpop.f32.mrb[4].mxu0 }
 0x129   : > { %v15287_v63 = vpop.f32.mrb[5].mxu0  ;;  %v15324_v0 = vpop.f32.mrb[4].mxu1 }
 0x12a   : > { %v15288_v1 = vadd.f32 %v15287_v63, %v15286_v62  ;;  %v15325_v2 = vpop.f32.mrb[5].mxu1 }
 0x12b   : > { %v15326_v3 = vadd.f32 %v15325_v2, %v15324_v0 }
 0x12c   : > { %v1115_v4 = vadd.f32 %v15288_v1, %v1040_v54  ;;  %v15289_v5 = vpop.f32.mrb[6].mxu0 }
 0x12d   : > { %v15290_v8 = vpop.f32.mrb[7].mxu0  ;;  %v15327_v9 = vpop.f32.mrb[6].mxu1 }
 0x12e   : > { %v1190_v12 = vadd.f32 %v15326_v3, %v1115_v4  ;;  %v15291_v13 = vadd.f32 %v15290_v8, %v15289_v5  ;;  %v15328_v14 = vpop.f32.mrb[7].mxu1 }
 0x12f   : > { %v15329_v15 = vadd.f32 %v15328_v14, %v15327_v9 }
 0x130   : > { %v1120_v16 = vadd.f32 %v15291_v13, %v1045_v61 }
 0x132   : > { %v1195_v18 = vadd.f32 %v15329_v15, %v1120_v16  ;;  %v1802_v15 = vld [vmem:[%s22494_s3 + $0x20] sm:$0x77]  ;;  %v1803_v16 = vld [vmem:[%s22494_s3 + $0x28] sm:$0x77] }
 0x148   : > { %v15362_v23 = vpop.f32.mrb[8].mxu0 }
 0x149   : > { %v15363_v24 = vpop.f32.mrb[9].mxu0  ;;  %v15400_v25 = vpop.f32.mrb[8].mxu1 }
 0x14a   : > { %v15364_v26 = vadd.f32 %v15363_v24, %v15362_v23  ;;  %v15401_v27 = vpop.f32.mrb[9].mxu1 }
 0x14b   : > { %v15402_v28 = vadd.f32 %v15401_v27, %v15400_v25  ;;  %v1903_v27 = vcombine.high %v1803_v16, %v1803_v16 }
 0x14c   : > { %v1265_v29 = vadd.f32 %v15364_v26, %v1190_v12  ;;  %v15365_v30 = vpop.f32.mrb[10].mxu0  ;;  %v1902_v26 = vcombine.high %v1802_v15, %v1802_v15 }
 0x14d   : > { %v15366_v31 = vpop.f32.mrb[11].mxu0  ;;  %v15403_v32 = vpop.f32.mrb[10].mxu1 }
 0x14e   : > { %v1340_v33 = vadd.f32 %v15402_v28, %v1265_v29  ;;  %v15367_v34 = vadd.f32 %v15366_v31, %v15365_v30  ;;  %v15404_v35 = vpop.f32.mrb[11].mxu1  ;;  %v1804_v30 = vld [vmem:[%s22494_s3 + $0x30] sm:$0x77]  ;;  %v1805_v31 = vld [vmem:[%s22494_s3 + $0x38] sm:$0x77] }
 0x14f   : > { %v15405_v36 = vadd.f32 %v15404_v35, %v15403_v32  ;;  %v1810_v32 = vlaneseq }
 0x150   : > { %v1270_v37 = vadd.f32 %v15367_v34, %v1195_v18 }
 0x152   : > { %v1345_v38 = vadd.f32 %v15405_v36, %v1270_v37  ;;  %v1806_v36 = vld [vmem:[%s22495_s4] sm:$0xff] }
 0x168   : > { %v15438_v39 = vpop.f32.mrb[12].mxu0 }
 0x169   : > { %v15439_v40 = vpop.f32.mrb[13].mxu0  ;;  %v15476_v41 = vpop.f32.mrb[12].mxu1 }
 0x16a   : > { %v15440_v42 = vadd.f32 %v15439_v40, %v15438_v39  ;;  %v15477_v43 = vpop.f32.mrb[13].mxu1 }
 0x16b   : > { %v15478_v44 = vadd.f32 %v15477_v43, %v15476_v41 }
 0x16c   : > { %v1415_v45 = vadd.f32 %v15440_v42, %v1340_v33  ;;  %v15441_v46 = vpop.f32.mrb[14].mxu0  ;;  %v1811_v33 = vshrl.u32 %v1810_v32, 7 }
 0x16d   : > { %v15442_v47 = vpop.f32.mrb[15].mxu0  ;;  %v15479_v48 = vpop.f32.mrb[14].mxu1 }
 0x16e   : > { %v1490_v49 = vadd.f32 %v15478_v44, %v1415_v45  ;;  %v15443_v50 = vadd.f32 %v15442_v47, %v15441_v46  ;;  %v15480_v51 = vpop.f32.mrb[15].mxu1  ;;  %v18175_v34 = vsub.s32 0, %v1811_v33  ;;  %v18177_v35 = vsub.s32 2, %v1811_v33 }
 0x16f   : > { %v15481_v52 = vadd.f32 %v15480_v51, %v15479_v48  ;;  %v18182_v37 = vsub.s32 1, %v1811_v33 }
 0x170   : > { %v1420_v53 = vadd.f32 %v15443_v50, %v1345_v38  ;;  %v18184_v38 = vsub.s32 3, %v1811_v33  ;;  %v1813_v39 = vrot.slane %v1806_v36, %v18175_v34  ;;  %v1821_v40 = vrot.slane %v1806_v36, %v18177_v35 }
 0x171   : > { %v1817_v41 = vrot.slane %v1806_v36, %v18182_v37  ;;  %v18198_v50 = vsub.s32 6, %v1811_v33 }
 0x172   : > { %v1495_v54 = vadd.f32 %v15481_v52, %v1420_v53  ;;  %v1825_v42 = vrot.slane %v1806_v36, %v18184_v38  ;;  %v18200_v53 = vsub.s32 5, %v1811_v33 }
 0x188   : > { %v15514_v55 = vpop.f32.mrb[16].mxu0 }
 0x189   : > { %v15515_v56 = vpop.f32.mrb[17].mxu0  ;;  %v15552_v57 = vpop.f32.mrb[16].mxu1 }
 0x18a   : > { %v15516_v58 = vadd.f32 %v15515_v56, %v15514_v55  ;;  %v15553_v59 = vpop.f32.mrb[17].mxu1 }
 0x18b   : > { %v15554_v60 = vadd.f32 %v15553_v59, %v15552_v57 }
 0x18c   : > { %v1565_v61 = vadd.f32 %v15516_v58, %v1490_v49  ;;  %v15517_v62 = vpop.f32.mrb[18].mxu0  ;;  %v18196_v49 = vsub.s32 4, %v1811_v33 }
 0x18d   : > { %v15518_v63 = vpop.f32.mrb[19].mxu0  ;;  %v15555_v0 = vpop.f32.mrb[18].mxu1 }
 0x18e   : > { %v1640_v1 = vadd.f32 %v15554_v60, %v1565_v61  ;;  %v15519_v2 = vadd.f32 %v15518_v63, %v15517_v62  ;;  %v15556_v3 = vpop.f32.mrb[19].mxu1  ;;  %v1829_v61 = vrot.slane %v1806_v36, %v18196_v49  ;;  %v1837_v62 = vrot.slane %v1806_v36, %v18198_v50 }
 0x18f   : > { %v15557_v4 = vadd.f32 %v15556_v3, %v15555_v0 }
 0x190   : > { %v1570_v5 = vadd.f32 %v15519_v2, %v1495_v54  ;;  %v18202_v54 = vsub.s32 7, %v1811_v33 }
 0x192   : > { %v1645_v6 = vadd.f32 %v15557_v4, %v1570_v5  ;;  %v1841_v2 = vrot.slane %v1806_v36, %v18202_v54  ;;  %v3253_v5 = vld [vmem:[%s22497_s6 + $0xa8] sm:$0xff] }
 0x1a8   : > { %v15590_v7 = vpop.f32.mrb[20].mxu0 }
 0x1a9   : > { %v15591_v8 = vpop.f32.mrb[21].mxu0  ;;  %v15628_v9 = vpop.f32.mrb[20].mxu1 }
 0x1aa   : > { %v15592_v10 = vadd.f32 %v15591_v8, %v15590_v7  ;;  %v15629_v11 = vpop.f32.mrb[21].mxu1 }
 0x1ab   : > { %v15630_v12 = vadd.f32 %v15629_v11, %v15628_v9 }
 0x1ac   : > { %v1715_v13 = vadd.f32 %v15592_v10, %v1640_v1  ;;  %v15593_v14 = vpop.f32.mrb[22].mxu0  ;;  %v1833_v1 = vrot.slane %v1806_v36, %v18200_v53 }
 0x1ad   : > { %v15594_v18 = vpop.f32.mrb[23].mxu0  ;;  %v15631_v21 = vpop.f32.mrb[22].mxu1 }
 0x1ae   : > { %v1790_v22 = vadd.f32 %v15630_v12, %v1715_v13  ;;  %v15595_v23 = vadd.f32 %v15594_v18, %v15593_v14  ;;  %v15632_v24 = vpop.f32.mrb[23].mxu1  ;;  %v18224_v14 = vld [vmem:[%s22495_s4 + $0x8] sm:$0xff]  ;;  %v18239_v18 = vld [vmem:[%s22496_s5] sm:$0x7] }
 0x1af   : > { %v15633_v25 = vadd.f32 %v15632_v24, %v15631_v21 }
 0x1b0   : > { %v1720_v28 = vadd.f32 %v15595_v23, %v1645_v6  ;;  %13584 = vmatmul.mubr.msk.f32.vlgmr.msra.gmra.mrb[24].mxu0 %vm1906_vm1, %v1790_v22  ;;  %13588 = vmatmul.mubr.msk.f32.vlgmr.msra.gmra.mrb[24].mxu1 %vm1906_vm1, %v1790_v22  ;;  %v1845_v23 = vrot.slane %v18224_v14, %v18175_v34 }
 0x1b1   : > { %2016 = vmatprep.mubr.f32.mxu0 %v16757_v17  ;;  %2093 = vmatprep.mubr.f32.mxu1 %v16757_v17 }
 0x1b2   : > { %v1795_v29 = vadd.f32 %v15633_v25, %v1720_v28  ;;  %13591 = vmatpush1.msk.msra.mxu0 %vm1913_vm0, %v18106_v19  ;;  %13595 = vmatpush1.msk.msra.mxu1 %vm1913_vm0, %v18111_v20  ;;  %v1904_v19 = vcombine.high %v1804_v30, %v1804_v30  ;;  %v1905_v20 = vcombine.high %v1805_v31, %v1805_v31 }
 0x1b3   : > { %13598 = vmatprep.subr.msk.mxu0 %vm1913_vm0, %v1902_v26  ;;  %13602 = vmatprep.subr.msk.mxu1 %vm1913_vm0, %v1903_v27  ;;  %v1853_v28 = vrot.slane %v18224_v14, %v18177_v35 }
 0x1b4   : > { %13585 = vmatmul.mubr.msk.f32.gmra.mrb[26].mxu0 %vm1906_vm1, %v1795_v29  ;;  %13589 = vmatmul.mubr.msk.f32.gmra.mrb[26].mxu1 %vm1906_vm1, %v1795_v29 }
 0x1b5   : > { %2164 = vmatprep.mubr.f32.mxu0 %v16757_v17  ;;  %2241 = vmatprep.mubr.f32.mxu1 %v16757_v17 }
 0x1b8   : > { %13592 = vmatmul.mubr.msk.f32.vlgmr.msra.gmra.mrb[28].mxu0 %vm1906_vm1, %v1790_v22  ;;  %13596 = vmatmul.mubr.msk.f32.vlgmr.msra.gmra.mrb[28].mxu1 %vm1906_vm1, %v1790_v22 }
 0x1b9   : > { %2170 = vmatprep.mubr.f32.mxu0 %v16757_v17  ;;  %2247 = vmatprep.mubr.f32.mxu1 %v16757_v17 }
 0x1ba   : > { %13599 = vmatpush1.msk.msra.mxu0 %vm1913_vm0, %v1802_v15  ;;  %13603 = vmatpush1.msk.msra.mxu1 %vm1913_vm0, %v1803_v16 }
 0x1bb   : > { %13606 = vmatprep.subr.msk.mxu0 %vm1913_vm0, %v1904_v19  ;;  %13610 = vmatprep.subr.msk.mxu1 %vm1913_vm0, %v1905_v20  ;;  %v1857_v19 = vrot.slane %v18224_v14, %v18184_v38 }
 0x1bc   : > { %13593 = vmatmul.mubr.msk.f32.gmra.mrb[30].mxu0 %vm1906_vm1, %v1795_v29  ;;  %13597 = vmatmul.mubr.msk.f32.gmra.mrb[30].mxu1 %vm1906_vm1, %v1795_v29 }
 0x1bd   : > { %2318 = vmatprep.mubr.f32.mxu0 %v16757_v17  ;;  %2395 = vmatprep.mubr.f32.mxu1 %v16757_v17 }
 0x1c0   : > { %13600 = vmatmul.mubr.msk.f32.vlgmr.msra.gmra.mrb[32].mxu0 %vm1906_vm1, %v1790_v22  ;;  %13604 = vmatmul.mubr.msk.f32.vlgmr.msra.gmra.mrb[32].mxu1 %vm1906_vm1, %v1790_v22 }
 0x1c1   : > { %2324 = vmatprep.mubr.f32.mxu0 %v16757_v17  ;;  %2401 = vmatprep.mubr.f32.mxu1 %v16757_v17 }
 0x1c2   : > { %13607 = vmatpush1.msk.msra.mxu0 %vm1913_vm0, %v1804_v30  ;;  %13611 = vmatpush1.msk.msra.mxu1 %vm1913_vm0, %v1805_v31 }
 0x1c4   : > { %13601 = vmatmul.mubr.msk.f32.gmra.mrb[34].mxu0 %vm1906_vm1, %v1795_v29  ;;  %13605 = vmatmul.mubr.msk.f32.gmra.mrb[34].mxu1 %vm1906_vm1, %v1795_v29 }
 0x1c5   : > { %2472 = vmatprep.mubr.f32.mxu0 %v16757_v17  ;;  %2549 = vmatprep.mubr.f32.mxu1 %v16757_v17 }
 0x1c8   : > { %13608 = vmatmul.mubr.msk.f32.vlgmr.msra.gmra.mrb[36].mxu0 %vm1906_vm1, %v1790_v22  ;;  %13612 = vmatmul.mubr.msk.f32.vlgmr.msra.gmra.mrb[36].mxu1 %vm1906_vm1, %v1790_v22 }
 0x1c9   : > { %2478 = vmatprep.mubr.f32.mxu0 %v16757_v17  ;;  %2555 = vmatprep.mubr.f32.mxu1 %v16757_v17 }
 0x1cc   : > { %13609 = vmatmul.mubr.msk.f32.gmra.mrb[38].mxu0 %vm1906_vm1, %v1795_v29  ;;  %13613 = vmatmul.mubr.msk.f32.gmra.mrb[38].mxu1 %vm1906_vm1, %v1795_v29  ;;  %v1849_v29 = vrot.slane %v18224_v14, %v18182_v37 }
 0x1cd   : > { %2712 = vmatprep.mubr.f32.mxu0 %v16757_v17  ;;  %2783 = vmatprep.mubr.f32.mxu1 %v16757_v17 }
 0x283   : > { %v2012_v43 = vpop.f32.mrb[24].mxu0  ;;  %v2089_v44 = vpop.f32.mrb[24].mxu1 }
 0x284   : > { %v2013_v45 = vadd.f32 %v2012_v43, %v1813_v39  ;;  %v2090_v46 = vadd.f32 %v2089_v44, %v1821_v40  ;;  %v2014_v47 = vpop.f32.mrb[25].mxu0  ;;  %v2091_v48 = vpop.f32.mrb[25].mxu1 }
 0x285   : > { %v2015_v51 = vadd.f32 %v2014_v47, %v1817_v41  ;;  %v2092_v52 = vadd.f32 %v2091_v48, %v1825_v42 }
 0x286   : > { %2562 = vst [vmem:[%s18194_s19] sm:$0xff] %v2013_v45  ;;  %2564 = vst [vmem:[%s18194_s19 + $0x10] sm:$0xff] %v2090_v46 }
 0x287   : > { %2563 = vst [vmem:[%s18194_s19 + $0x8] sm:$0xff] %v2015_v51  ;;  %2565 = vst [vmem:[%s18194_s19 + $0x18] sm:$0xff] %v2092_v52  ;;  %v2018_v55 = vpop.f32.mrb[26].mxu0  ;;  %v2095_v56 = vpop.f32.mrb[26].mxu1 }
 0x288   : > { %v2019_v57 = vadd.f32 %v2018_v55, %v1813_v39  ;;  %v2096_v58 = vadd.f32 %v2095_v56, %v1821_v40  ;;  %v2020_v59 = vpop.f32.mrb[27].mxu0  ;;  %v2097_v60 = vpop.f32.mrb[27].mxu1 }
 0x289   : > { %v2021_v63 = vadd.f32 %v2020_v59, %v1817_v41  ;;  %v2098_v0 = vadd.f32 %v2097_v60, %v1825_v42  ;;  %v1865_v59 = vrot.slane %v18224_v14, %v18200_v53 }
 0x28a   : > { %2578 = vst [vmem:[%s18194_s19 + $0x80] sm:$0xf] %v2019_v57  ;;  %v16285_v3 = vpack.c.bf16 %v2019_v57, %v2013_v45  ;;  %2580 = vst [vmem:[%s18194_s19 + $0x90] sm:$0xf] %v2096_v58  ;;  %v16291_v4 = vpack.c.bf16 %v2096_v58, %v2090_v46  ;;  %v1869_v58 = vrot.slane %v18224_v14, %v18198_v50 }
 0x28b   : > { %2579 = vst [vmem:[%s18194_s19 + $0x88] sm:$0xf] %v2021_v63  ;;  %v16282_v6 = vpack.c.bf16 %v2021_v63, %v2015_v51  ;;  %2581 = vst [vmem:[%s18194_s19 + $0x98] sm:$0xf] %v2098_v0  ;;  %v16288_v7 = vpack.c.bf16 %v2098_v0, %v2092_v52  ;;  %v2166_v8 = vpop.f32.mrb[28].mxu0  ;;  %v2243_v9 = vpop.f32.mrb[28].mxu1  ;;  %v1861_v51 = vrot.slane %v18224_v14, %v18196_v49 }
 0x28c   : > { %v2167_v10 = vadd.f32 %v2166_v8, %v1829_v61  ;;  %v2244_v11 = vadd.f32 %v2243_v9, %v1837_v62  ;;  %v2168_v12 = vpop.f32.mrb[29].mxu0  ;;  %v2245_v13 = vpop.f32.mrb[29].mxu1 }
 0x28d   : > { %v2169_v15 = vadd.f32 %v2168_v12, %v1833_v1  ;;  %v2246_v16 = vadd.f32 %v2245_v13, %v1841_v2  ;;  %16284 = vmatprep.subr.msk.bf16.mxu0 %vm18215_vm4, %v16282_v6  ;;  %16290 = vmatprep.subr.msk.bf16.mxu1 %vm18215_vm4, %v16288_v7 }
 0x28e   : > { %2566 = vst [vmem:[%s18194_s19 + $0x20] sm:$0xff] %v2167_v10  ;;  %2568 = vst [vmem:[%s18194_s19 + $0x30] sm:$0xff] %v2244_v11  ;;  %16287 = vmatpush1.bf16.msk.msra.mxu0 %vm18215_vm4, %v16285_v3  ;;  %16293 = vmatpush1.bf16.msk.msra.mxu1 %vm18215_vm4, %v16291_v4 }
 0x28f   : > { %2567 = vst [vmem:[%s18194_s19 + $0x28] sm:$0xff] %v2169_v15  ;;  %2569 = vst [vmem:[%s18194_s19 + $0x38] sm:$0xff] %v2246_v16  ;;  %v2172_v21 = vpop.f32.mrb[30].mxu0  ;;  %v2249_v22 = vpop.f32.mrb[30].mxu1 }
 0x290   : > { %v2173_v24 = vadd.f32 %v2172_v21, %v1829_v61  ;;  %v2250_v25 = vadd.f32 %v2249_v22, %v1837_v62  ;;  %v2174_v26 = vpop.f32.mrb[31].mxu0  ;;  %v2251_v27 = vpop.f32.mrb[31].mxu1  ;;  %v1873_v62 = vrot.slane %v18224_v14, %v18202_v54  ;;  %v3232_v14 = vld [vmem:[%s22497_s6] sm:$0xff] }
 0x291   : > { %v2175_v30 = vadd.f32 %v2174_v26, %v1833_v1  ;;  %v2252_v31 = vadd.f32 %v2251_v27, %v1841_v2  ;;  %13616 = vmatmul.mubr.msk.f32.vlgmr.msra.gmra.mrb[40].mxu0 %vm2595_vm5, %v18239_v18  ;;  %13619 = vmatmul.mubr.msk.f32.vlgmr.msra.gmra.mrb[40].mxu1 %vm2595_vm5, %v18239_v18 }
 0x292   : > { %2582 = vst [vmem:[%s18194_s19 + $0xa0] sm:$0xf] %v2173_v24  ;;  %v16297_v20 = vpack.c.bf16 %v2173_v24, %v2167_v10  ;;  %2584 = vst [vmem:[%s18194_s19 + $0xb0] sm:$0xf] %v2250_v25  ;;  %v16303_v32 = vpack.c.bf16 %v2250_v25, %v2244_v11  ;;  %2854 = vmatprep.mubr.f32.mxu0 %v16757_v17  ;;  %2925 = vmatprep.mubr.f32.mxu1 %v16757_v17  ;;  %v3233_v24 = vld [vmem:[%s22497_s6 + $0x8] sm:$0xff] }
 0x293   : > { %2583 = vst [vmem:[%s18194_s19 + $0xa8] sm:$0xf] %v2175_v30  ;;  %v16294_v33 = vpack.c.bf16 %v2175_v30, %v2169_v15  ;;  %2585 = vst [vmem:[%s18194_s19 + $0xb8] sm:$0xf] %v2252_v31  ;;  %v16300_v36 = vpack.c.bf16 %v2252_v31, %v2246_v16  ;;  %v2320_v39 = vpop.f32.mrb[32].mxu0  ;;  %v2397_v40 = vpop.f32.mrb[32].mxu1 }
 0x294   : > { %v2321_v41 = vadd.f32 %v2320_v39, %v1845_v23  ;;  %v2398_v42 = vadd.f32 %v2397_v40, %v1853_v28  ;;  %v2322_v43 = vpop.f32.mrb[33].mxu0  ;;  %v2399_v44 = vpop.f32.mrb[33].mxu1  ;;  %v3237_v25 = vld [vmem:[%s22497_s6 + $0x28] sm:$0xff] }
 0x295   : > { %v2323_v45 = vadd.f32 %v2322_v43, %v1849_v29  ;;  %v2400_v46 = vadd.f32 %v2399_v44, %v1857_v19  ;;  %16296 = vmatprep.subr.msk.bf16.mxu0 %vm18215_vm4, %v16294_v33  ;;  %16302 = vmatprep.subr.msk.bf16.mxu1 %vm18215_vm4, %v16300_v36  ;;  %v3244_v33 = vld [vmem:[%s22497_s6 + $0x60] sm:$0xff]  ;;  %v3241_v36 = vld [vmem:[%s22497_s6 + $0x48] sm:$0xff]  ;;  %v13640_v40 = vcombine.low %v3233_v24, %v3237_v25 }
 0x296   : > { %2570 = vst [vmem:[%s18194_s19 + $0x40] sm:$0xff] %v2321_v41  ;;  %2572 = vst [vmem:[%s18194_s19 + $0x50] sm:$0xff] %v2398_v42  ;;  %16299 = vmatpush1.bf16.msk.msra.mxu0 %vm18215_vm4, %v16297_v20  ;;  %16305 = vmatpush1.bf16.msk.msra.mxu1 %vm18215_vm4, %v16303_v32  ;;  %v13641_v20 = vcombine.high %v3233_v24, %v3237_v25  ;;  %v3240_v32 = vld [vmem:[%s22497_s6 + $0x40] sm:$0xff] }
 0x297   : > { %2571 = vst [vmem:[%s18194_s19 + $0x48] sm:$0xff] %v2323_v45  ;;  %2573 = vst [vmem:[%s18194_s19 + $0x58] sm:$0xff] %v2400_v46  ;;  %v2326_v47 = vpop.f32.mrb[34].mxu0  ;;  %v2403_v48 = vpop.f32.mrb[34].mxu1  ;;  %v3248_v43 = vld [vmem:[%s22497_s6 + $0x80] sm:$0xff] }
 0x298   : > { %v2327_v52 = vadd.f32 %v2326_v47, %v1845_v23  ;;  %v2404_v55 = vadd.f32 %v2403_v48, %v1853_v28  ;;  %v2328_v56 = vpop.f32.mrb[35].mxu0  ;;  %v2405_v57 = vpop.f32.mrb[35].mxu1  ;;  %v3236_v23 = vld [vmem:[%s22497_s6 + $0x20] sm:$0xff] }
 0x299   : > { %v2329_v60 = vadd.f32 %v2328_v56, %v1849_v29  ;;  %v2406_v61 = vadd.f32 %v2405_v57, %v1857_v19  ;;  %13622 = vmatmul.mubr.msk.f32.vlgmr.msra.gmra.mrb[42].mxu0 %vm2595_vm5, %v18239_v18  ;;  %13625 = vmatmul.mubr.msk.f32.vlgmr.msra.gmra.mrb[42].mxu1 %vm2595_vm5, %v18239_v18  ;;  %v13639_v19 = vcombine.high %v3232_v14, %v3236_v23  ;;  %v3252_v44 = vld [vmem:[%s22497_s6 + $0xa0] sm:$0xff]  ;;  %v3261_v56 = vld [vmem:[%s22497_s6 + $0xe8] sm:$0xff] }
 0x29a   : > { %2586 = vst [vmem:[%s18194_s19 + $0xc0] sm:$0xf] %v2327_v52  ;;  %v16309_v63 = vpack.c.bf16 %v2327_v52, %v2321_v41  ;;  %2588 = vst [vmem:[%s18194_s19 + $0xd0] sm:$0xf] %v2404_v55  ;;  %v16315_v0 = vpack.c.bf16 %v2404_v55, %v2398_v42  ;;  %2996 = vmatprep.mubr.f32.mxu0 %v16757_v17  ;;  %3067 = vmatprep.mubr.f32.mxu1 %v16757_v17  ;;  %v3256_v52 = vld [vmem:[%s22497_s6 + $0xc0] sm:$0xff] }
 0x29b   : > { %2587 = vst [vmem:[%s18194_s19 + $0xc8] sm:$0xf] %v2329_v60  ;;  %v16306_v1 = vpack.c.bf16 %v2329_v60, %v2323_v45  ;;  %2589 = vst [vmem:[%s18194_s19 + $0xd8] sm:$0xf] %v2406_v61  ;;  %v16312_v2 = vpack.c.bf16 %v2406_v61, %v2400_v46  ;;  %v2474_v3 = vpop.f32.mrb[36].mxu0  ;;  %v2551_v4 = vpop.f32.mrb[36].mxu1  ;;  %v13638_v39 = vcombine.low %v3232_v14, %v3236_v23 }
 0x29c   : > { %v2475_v6 = vadd.f32 %v2474_v3, %v1861_v51  ;;  %v2552_v7 = vadd.f32 %v2551_v4, %v1869_v58  ;;  %v2476_v8 = vpop.f32.mrb[37].mxu0  ;;  %v2553_v9 = vpop.f32.mrb[37].mxu1  ;;  %v13647_v41 = vcombine.high %v3240_v32, %v3244_v33  ;;  %v3249_v45 = vld [vmem:[%s22497_s6 + $0x88] sm:$0xff]  ;;  %v13646_v46 = vcombine.low %v3240_v32, %v3244_v33  ;;  %v3260_v55 = vld [vmem:[%s22497_s6 + $0xe0] sm:$0xff] }
 0x29d   : > { %v2477_v10 = vadd.f32 %v2476_v8, %v1865_v59  ;;  %v2554_v11 = vadd.f32 %v2553_v9, %v1873_v62  ;;  %16308 = vmatprep.subr.msk.bf16.mxu0 %vm18215_vm4, %v16306_v1  ;;  %16314 = vmatprep.subr.msk.bf16.mxu1 %vm18215_vm4, %v16312_v2  ;;  %v13655_v48 = vcombine.high %v3248_v43, %v3252_v44  ;;  %v3264_v61 = vld [vmem:[%s22497_s6 + $0x100] sm:$0xff]  ;;  %v3273_v8 = vld [vmem:[%s22497_s6 + $0x148] sm:$0xff] }
 0x29e   : > { %2574 = vst [vmem:[%s18194_s19 + $0x60] sm:$0xff] %v2475_v6  ;;  %2576 = vst [vmem:[%s18194_s19 + $0x70] sm:$0xff] %v2552_v7  ;;  %16311 = vmatpush1.bf16.msk.msra.mxu0 %vm18215_vm4, %v16309_v63  ;;  %16317 = vmatpush1.bf16.msk.msra.mxu1 %vm18215_vm4, %v16315_v0  ;;  %v13654_v57 = vcombine.low %v3248_v43, %v3252_v44  ;;  %v3265_v63 = vld [vmem:[%s22497_s6 + $0x108] sm:$0xff]  ;;  %v13662_v1 = vcombine.low %v3256_v52, %v3260_v55  ;;  %v3280_v14 = vld [vmem:[%s22497_s6 + $0x180] sm:$0xff] }
 0x29f   : > { %2575 = vst [vmem:[%s18194_s19 + $0x68] sm:$0xff] %v2477_v10  ;;  %2577 = vst [vmem:[%s18194_s19 + $0x78] sm:$0xff] %v2554_v11  ;;  %v2480_v12 = vpop.f32.mrb[38].mxu0  ;;  %v2557_v13 = vpop.f32.mrb[38].mxu1  ;;  %v3269_v0 = vld [vmem:[%s22497_s6 + $0x128] sm:$0xff]  ;;  %v3296_v32 = vld [vmem:[%s22497_s6 + $0x200] sm:$0xff] }
 0x2a0   : > { %v2481_v15 = vadd.f32 %v2480_v12, %v1861_v51  ;;  %v2558_v16 = vadd.f32 %v2557_v13, %v1869_v58  ;;  %v2482_v21 = vpop.f32.mrb[39].mxu0  ;;  %v2559_v22 = vpop.f32.mrb[39].mxu1  ;;  %v13657_v51 = vcombine.high %v3249_v45, %v3253_v5  ;;  %v13656_v58 = vcombine.low %v3249_v45, %v3253_v5  ;;  %v3277_v9 = vld [vmem:[%s22497_s6 + $0x168] sm:$0xff]  ;;  %v3300_v33 = vld [vmem:[%s22497_s6 + $0x220] sm:$0xff] }
 0x2a1   : > { %v2483_v26 = vadd.f32 %v2482_v21, %v1865_v59  ;;  %v2560_v27 = vadd.f32 %v2559_v22, %v1873_v62  ;;  %13628 = vmatmul.mubr.msk.f32.vlgmr.msra.gmra.mrb[44].mxu0 %vm2595_vm5, %v18239_v18  ;;  %13631 = vmatmul.mubr.msk.f32.vlgmr.msra.gmra.mrb[44].mxu1 %vm2595_vm5, %v18239_v18  ;;  %v13663_v59 = vcombine.high %v3256_v52, %v3260_v55  ;;  %v3268_v62 = vld [vmem:[%s22497_s6 + $0x120] sm:$0xff]  ;;  %v3285_v21 = vld [vmem:[%s22497_s6 + $0x1a8] sm:$0xff] }
 0x2a2   : > { %2590 = vst [vmem:[%s18194_s19 + $0xe0] sm:$0xf] %v2481_v15  ;;  %v16321_v28 = vpack.c.bf16 %v2481_v15, %v2475_v6  ;;  %2592 = vst [vmem:[%s18194_s19 + $0xf0] sm:$0xf] %v2558_v16  ;;  %v16327_v29 = vpack.c.bf16 %v2558_v16, %v2552_v7  ;;  %3138 = vmatprep.mubr.f32.mxu0 %v16757_v17  ;;  %3209 = vmatprep.mubr.f32.mxu1 %v16757_v17  ;;  %v3245_v17 = vld [vmem:[%s22497_s6 + $0x68] sm:$0xff]  ;;  %v3272_v6 = vld [vmem:[%s22497_s6 + $0x140] sm:$0xff] }
 0x2a3   : > { %2591 = vst [vmem:[%s18194_s19 + $0xe8] sm:$0xf] %v2483_v26  ;;  %v16318_v30 = vpack.c.bf16 %v2483_v26, %v2477_v10  ;;  %2593 = vst [vmem:[%s18194_s19 + $0xf8] sm:$0xf] %v2560_v27  ;;  %v16324_v31 = vpack.c.bf16 %v2560_v27, %v2554_v11  ;;  %v13649_v42 = vcombine.high %v3241_v36, %v3245_v17  ;;  %v3276_v7 = vld [vmem:[%s22497_s6 + $0x160] sm:$0xff]  ;;  %v3281_v16 = vld [vmem:[%s22497_s6 + $0x188] sm:$0xff] }
 0x2a4   : > { %v13648_v47 = vcombine.low %v3241_v36, %v3245_v17  ;;  %v13671_v3 = vcombine.high %v3264_v61, %v3268_v62  ;;  %v13673_v4 = vcombine.high %v3265_v63, %v3269_v0  ;;  %v13670_v10 = vcombine.low %v3264_v61, %v3268_v62  ;;  %v3284_v15 = vld [vmem:[%s22497_s6 + $0x1a0] sm:$0xff]  ;;  %v3297_v36 = vld [vmem:[%s22497_s6 + $0x208] sm:$0xff]  ;;  %s15174_s19 = sshll.u32 %s16852_s29, 4  ;;  %s16760_s29 = smov [#allocation2]  }
 0x2a5   : > { %16320 = vmatprep.subr.msk.bf16.mxu0 %vm18215_vm4, %v16318_v30  ;;  %16326 = vmatprep.subr.msk.bf16.mxu1 %vm18215_vm4, %v16324_v31  ;;  %v13672_v11 = vcombine.low %v3265_v63, %v3269_v0  ;;  %v13679_v12 = vcombine.high %v3272_v6, %v3276_v7  ;;  %v13681_v13 = vcombine.high %v3273_v8, %v3277_v9  ;;  %v3288_v26 = vld [vmem:[%s22497_s6 + $0x1c0] sm:$0xff]  ;;  %v3301_v17 = vld [vmem:[%s22497_s6 + $0x228] sm:$0xff]  ;;  %s22449_s15 = scalar_lea.hbm %s22504_s13, %s15174_s19  ;;  %s16697_s0 = sshll.u32 %s16760_s29, 4  ;;  %s16698_s0 = int_to_ptr.vmem [resolvable:$false] %s16697_s0 }
 0x2a6   : > { %16323 = vmatpush1.bf16.msk.msra.mxu0 %vm18215_vm4, %v16321_v28  ;;  %16329 = vmatpush1.bf16.msk.msra.mxu1 %vm18215_vm4, %v16327_v29  ;;  %v13678_v22 = vcombine.low %v3272_v6, %v3276_v7  ;;  %v13680_v23 = vcombine.low %v3273_v8, %v3277_v9  ;;  %v13687_v24 = vcombine.high %v3280_v14, %v3284_v15  ;;  %v3292_v27 = vld [vmem:[%s22497_s6 + $0x1e0] sm:$0xff]  ;;  %v3289_v28 = vld [vmem:[%s22497_s6 + $0x1c8] sm:$0xff]  ;;  %s16699_s16 = scalar_lea.vmem %s16698_s0, 32  ;;  %p16700_p0 = scmp.lt.s32.totalorder %s22451_s24, %s16698_s0 }
 0x2a7   : > { %9418 = vmatprep.subr.bf16.mxu0 %v13639_v19  ;;  %9746 = vmatprep.subr.bf16.mxu1 %v13641_v20  ;;  %v13689_v25 = vcombine.high %v3281_v16, %v3285_v21  ;;  %v3293_v29 = vld [vmem:[%s22497_s6 + $0x1e8] sm:$0xff]  ;;  %v13686_v30 = vcombine.low %v3280_v14, %v3284_v15  ;;  %v13688_v31 = vcombine.low %v3281_v16, %v3285_v21  ;;  %v3304_v43 = vld [vmem:[%s22497_s6 + $0x240] sm:$0xff] }
 0x2a8   : > { %v13695_v19 = vcombine.high %v3288_v26, %v3292_v27  ;;  %v13697_v20 = vcombine.high %v3289_v28, %v3293_v29  ;;  %v3308_v44 = vld [vmem:[%s22497_s6 + $0x260] sm:$0xff]  ;;  %v3305_v45 = vld [vmem:[%s22497_s6 + $0x248] sm:$0xff] }
 0x2a9   : > { %13634 = vmatmul.mubr.msk.f32.vlgmr.msra.gmra.mrb[46].mxu0 %vm2595_vm5, %v18239_v18  ;;  %13637 = vmatmul.mubr.msk.f32.vlgmr.msra.gmra.mrb[46].mxu1 %vm2595_vm5, %v18239_v18  ;;  %v3257_v18 = vld [vmem:[%s22497_s6 + $0xc8] sm:$0xff]  ;;  %v3312_v52 = vld [vmem:[%s22497_s6 + $0x280] sm:$0xff] }
 0x2aa   : > { %9419 = vmatpush1.bf16.msra.mxu0 %v13638_v39  ;;  %9747 = vmatpush1.bf16.msra.mxu1 %v13640_v40  ;;  %v13665_v60 = vcombine.high %v3257_v18, %v3261_v56  ;;  %v13664_v2 = vcombine.low %v3257_v18, %v3261_v56  ;;  %v13694_v39 = vcombine.low %v3288_v26, %v3292_v27  ;;  %v3309_v5 = vld [vmem:[%s22497_s6 + $0x268] sm:$0xff]  ;;  %v3316_v55 = vld [vmem:[%s22497_s6 + $0x2a0] sm:$0xff] }
 0x2ab   : > { %9420 = vmatprep.subr.bf16.mxu0 %v13647_v41  ;;  %9748 = vmatprep.subr.bf16.mxu1 %v13649_v42  ;;  %v13696_v40 = vcombine.low %v3289_v28, %v3293_v29  ;;  %v13703_v41 = vcombine.high %v3296_v32, %v3300_v33  ;;  %v13705_v42 = vcombine.high %v3297_v36, %v3301_v17  ;;  %v3313_v18 = vld [vmem:[%s22497_s6 + $0x288] sm:$0xff]  ;;  %v3320_v61 = vld [vmem:[%s22497_s6 + $0x2c0] sm:$0xff] }
 0x2ac   : > { %v3317_v56 = vld [vmem:[%s22497_s6 + $0x2a8] sm:$0xff]  ;;  %v3324_v62 = vld [vmem:[%s22497_s6 + $0x2e0] sm:$0xff] }
 0x2ad   : > { %v3321_v63 = vld [vmem:[%s22497_s6 + $0x2c8] sm:$0xff]  ;;  %v3328_v6 = vld [vmem:[%s22497_s6 + $0x300] sm:$0xff] }
 0x2ae   : > { %9421 = vmatpush1.bf16.msra.mxu0 %v13646_v46  ;;  %9749 = vmatpush1.bf16.msra.mxu1 %v13648_v47  ;;  %v13702_v46 = vcombine.low %v3296_v32, %v3300_v33  ;;  %v13704_v47 = vcombine.low %v3297_v36, %v3301_v17  ;;  %v3325_v0 = vld [vmem:[%s22497_s6 + $0x2e8] sm:$0xff]  ;;  %v3332_v7 = vld [vmem:[%s22497_s6 + $0x320] sm:$0xff] }
 0x2af   : > { %9422 = vmatprep.subr.bf16.mxu0 %v13655_v48  ;;  %9750 = vmatprep.subr.bf16.mxu1 %v13657_v51  ;;  %v13711_v48 = vcombine.high %v3304_v43, %v3308_v44  ;;  %v13713_v51 = vcombine.high %v3305_v45, %v3309_v5  ;;  %v3329_v8 = vld [vmem:[%s22497_s6 + $0x308] sm:$0xff]  ;;  %v3336_v14 = vld [vmem:[%s22497_s6 + $0x340] sm:$0xff] }
 0x2b0   : > { %v3333_v9 = vld [vmem:[%s22497_s6 + $0x328] sm:$0xff]  ;;  %v3340_v15 = vld [vmem:[%s22497_s6 + $0x360] sm:$0xff] }
 0x2b1   : > { %v3337_v16 = vld [vmem:[%s22497_s6 + $0x348] sm:$0xff]  ;;  %v3344_v26 = vld [vmem:[%s22497_s6 + $0x380] sm:$0xff] }
 0x2b2   : > { %9423 = vmatpush1.bf16.msra.mxu0 %v13654_v57  ;;  %9751 = vmatpush1.bf16.msra.mxu1 %v13656_v58  ;;  %v13710_v57 = vcombine.low %v3304_v43, %v3308_v44  ;;  %v13712_v58 = vcombine.low %v3305_v45, %v3309_v5  ;;  %v3341_v21 = vld [vmem:[%s22497_s6 + $0x368] sm:$0xff]  ;;  %v3348_v27 = vld [vmem:[%s22497_s6 + $0x3a0] sm:$0xff] }
 0x2b3   : > { %9424 = vmatprep.subr.bf16.mxu0 %v13663_v59  ;;  %9752 = vmatprep.subr.bf16.mxu1 %v13665_v60  ;;  %v13719_v59 = vcombine.high %v3312_v52, %v3316_v55  ;;  %v13721_v60 = vcombine.high %v3313_v18, %v3317_v56  ;;  %v3345_v28 = vld [vmem:[%s22497_s6 + $0x388] sm:$0xff]  ;;  %v13750_v32 = vcombine.low %v3344_v26, %v3348_v27  ;;  %v3352_v36 = vld [vmem:[%s22497_s6 + $0x3c0] sm:$0xff] }
 0x2b4   : > { %v3349_v29 = vld [vmem:[%s22497_s6 + $0x3a8] sm:$0xff]  ;;  %v3356_v17 = vld [vmem:[%s22497_s6 + $0x3e0] sm:$0xff] }
 0x2b5   : > { %v13752_v33 = vcombine.low %v3345_v28, %v3349_v29  ;;  %v3360_v45 = vld [vmem:[%s22497_s6 + $0x400] sm:$0xff] }
 0x2b6   : > { %9425 = vmatpush1.bf16.msra.mxu0 %v13662_v1  ;;  %9753 = vmatpush1.bf16.msra.mxu1 %v13664_v2  ;;  %v13718_v1 = vcombine.low %v3312_v52, %v3316_v55  ;;  %v13720_v2 = vcombine.low %v3313_v18, %v3317_v56  ;;  %v3364_v5 = vld [vmem:[%s22497_s6 + $0x420] sm:$0xff] }
 0x2b7   : > { %9426 = vmatprep.subr.bf16.mxu0 %v13671_v3  ;;  %9754 = vmatprep.subr.bf16.mxu1 %v13673_v4  ;;  %v13727_v3 = vcombine.high %v3320_v61, %v3324_v62  ;;  %v13729_v4 = vcombine.high %v3321_v63, %v3325_v0  ;;  %v3368_v18 = vld [vmem:[%s22497_s6 + $0x440] sm:$0xff] }
 0x2ba   : > { %9427 = vmatpush1.bf16.msra.mxu0 %v13670_v10  ;;  %9755 = vmatpush1.bf16.msra.mxu1 %v13672_v11  ;;  %v13726_v10 = vcombine.low %v3320_v61, %v3324_v62  ;;  %v13728_v11 = vcombine.low %v3321_v63, %v3325_v0 }
 0x2bb   : > { %9428 = vmatprep.subr.bf16.mxu0 %v13679_v12  ;;  %9756 = vmatprep.subr.bf16.mxu1 %v13681_v13  ;;  %v13735_v12 = vcombine.high %v3328_v6, %v3332_v7  ;;  %v13737_v13 = vcombine.high %v3329_v8, %v3333_v9 }
 0x2be   : > { %9429 = vmatpush1.bf16.msra.mxu0 %v13678_v22  ;;  %9757 = vmatpush1.bf16.msra.mxu1 %v13680_v23  ;;  %v13734_v22 = vcombine.low %v3328_v6, %v3332_v7  ;;  %v13736_v23 = vcombine.low %v3329_v8, %v3333_v9  ;;  %v3377_v6 = vld [vmem:[%s22497_s6 + $0x488] sm:$0xff] }
 0x2bf   : > { %9430 = vmatprep.subr.bf16.mxu0 %v13687_v24  ;;  %9758 = vmatprep.subr.bf16.mxu1 %v13689_v25  ;;  %v13743_v24 = vcombine.high %v3336_v14, %v3340_v15  ;;  %v13745_v25 = vcombine.high %v3337_v16, %v3341_v21  ;;  %v3381_v7 = vld [vmem:[%s22497_s6 + $0x4a8] sm:$0xff] }
 0x2c2   : > { %9431 = vmatpush1.bf16.msra.mxu0 %v13686_v30  ;;  %9759 = vmatpush1.bf16.msra.mxu1 %v13688_v31  ;;  %v13742_v30 = vcombine.low %v3336_v14, %v3340_v15  ;;  %v13744_v31 = vcombine.low %v3337_v16, %v3341_v21  ;;  %v3388_v14 = vld [vmem:[%s22497_s6 + $0x4e0] sm:$0xff]  ;;  %v3385_v15 = vld [vmem:[%s22497_s6 + $0x4c8] sm:$0xff] }
 0x2c3   : > { %9432 = vmatprep.subr.bf16.mxu0 %v13695_v19  ;;  %9760 = vmatprep.subr.bf16.mxu1 %v13697_v20  ;;  %v13751_v19 = vcombine.high %v3344_v26, %v3348_v27  ;;  %v13753_v20 = vcombine.high %v3345_v28, %v3349_v29  ;;  %v3389_v16 = vld [vmem:[%s22497_s6 + $0x4e8] sm:$0xff]  ;;  %v3392_v27 = vld [vmem:[%s22497_s6 + $0x500] sm:$0xff] }
 0x2c4   : > { %v13793_v26 = vcombine.high %v3385_v15, %v3389_v16  ;;  %v3396_v28 = vld [vmem:[%s22497_s6 + $0x520] sm:$0xff]  ;;  %v3393_v29 = vld [vmem:[%s22497_s6 + $0x508] sm:$0xff] }
 0x2c6   : > { %9433 = vmatpush1.bf16.msra.mxu0 %v13694_v39  ;;  %9761 = vmatpush1.bf16.msra.mxu1 %v13696_v40  ;;  %v3353_v39 = vld [vmem:[%s22497_s6 + $0x3c8] sm:$0xff]  ;;  %v13759_v40 = vcombine.high %v3352_v36, %v3356_v17 }
 0x2c7   : > { %9434 = vmatprep.subr.bf16.mxu0 %v13703_v41  ;;  %9762 = vmatprep.subr.bf16.mxu1 %v13705_v42  ;;  %v3357_v41 = vld [vmem:[%s22497_s6 + $0x3e8] sm:$0xff]  ;;  %v13758_v42 = vcombine.low %v3352_v36, %v3356_v17  ;;  %v3404_v36 = vld [vmem:[%s22497_s6 + $0x560] sm:$0xff] }
 0x2c8   : > { %v13760_v43 = vcombine.low %v3353_v39, %v3357_v41  ;;  %v13761_v44 = vcombine.high %v3353_v39, %v3357_v41  ;;  %v3401_v17 = vld [vmem:[%s22497_s6 + $0x548] sm:$0xff] }
 0x2c9   : > { %v3405_v39 = vld [vmem:[%s22497_s6 + $0x568] sm:$0xff] }
 0x2ca   : > { %9435 = vmatpush1.bf16.msra.mxu0 %v13702_v46  ;;  %9763 = vmatpush1.bf16.msra.mxu1 %v13704_v47  ;;  %v3361_v46 = vld [vmem:[%s22497_s6 + $0x408] sm:$0xff]  ;;  %v13767_v47 = vcombine.high %v3360_v45, %v3364_v5 }
 0x2cb   : > { %9436 = vmatprep.subr.bf16.mxu0 %v13711_v48  ;;  %9764 = vmatprep.subr.bf16.mxu1 %v13713_v51  ;;  %v3365_v48 = vld [vmem:[%s22497_s6 + $0x428] sm:$0xff]  ;;  %v13766_v51 = vcombine.low %v3360_v45, %v3364_v5  ;;  %v3408_v45 = vld [vmem:[%s22497_s6 + $0x580] sm:$0xff] }
 0x2cc   : > { %v13768_v52 = vcombine.low %v3361_v46, %v3365_v48  ;;  %v13769_v55 = vcombine.high %v3361_v46, %v3365_v48  ;;  %v3412_v46 = vld [vmem:[%s22497_s6 + $0x5a0] sm:$0xff]  ;;  %v3413_v48 = vld [vmem:[%s22497_s6 + $0x5a8] sm:$0xff] }
 0x2ce   : > { %9437 = vmatpush1.bf16.msra.mxu0 %v13710_v57  ;;  %9765 = vmatpush1.bf16.msra.mxu1 %v13712_v58  ;;  %v3372_v57 = vld [vmem:[%s22497_s6 + $0x460] sm:$0xff]  ;;  %v3369_v58 = vld [vmem:[%s22497_s6 + $0x448] sm:$0xff] }
 0x2cf   : > { %9438 = vmatprep.subr.bf16.mxu0 %v13719_v59  ;;  %9766 = vmatprep.subr.bf16.mxu1 %v13721_v60  ;;  %v3373_v59 = vld [vmem:[%s22497_s6 + $0x468] sm:$0xff]  ;;  %v13774_v9 = vcombine.low %v3368_v18, %v3372_v57 }
 0x2d2   : > { %9439 = vmatpush1.bf16.msra.mxu0 %v13718_v1  ;;  %9767 = vmatpush1.bf16.msra.mxu1 %v13720_v2  ;;  %v13775_v1 = vcombine.high %v3368_v18, %v3372_v57  ;;  %v13777_v2 = vcombine.high %v3369_v58, %v3373_v59  ;;  %v13808_v18 = vcombine.low %v3401_v17, %v3405_v39 }
 0x2d3   : > { %9440 = vmatprep.subr.bf16.mxu0 %v13727_v3  ;;  %9768 = vmatprep.subr.bf16.mxu1 %v13729_v4  ;;  %v3376_v3 = vld [vmem:[%s22497_s6 + $0x480] sm:$0xff]  ;;  %v13815_v57 = vcombine.high %v3408_v45, %v3412_v46 }
 0x2d4   : > { %v3380_v4 = vld [vmem:[%s22497_s6 + $0x4a0] sm:$0xff] }
 0x2d6   : > { %9441 = vmatpush1.bf16.msra.mxu0 %v13726_v10  ;;  %9769 = vmatpush1.bf16.msra.mxu1 %v13728_v11  ;;  %v13776_v10 = vcombine.low %v3369_v58, %v3373_v59  ;;  %v13783_v11 = vcombine.high %v3376_v3, %v3380_v4  ;;  %v3416_v59 = vld [vmem:[%s22497_s6 + $0x5c0] sm:$0xff] }
 0x2d7   : > { %9442 = vmatprep.subr.bf16.mxu0 %v13735_v12  ;;  %9770 = vmatprep.subr.bf16.mxu1 %v13737_v13  ;;  %v13785_v12 = vcombine.high %v3377_v6, %v3381_v7  ;;  %v3384_v13 = vld [vmem:[%s22497_s6 + $0x4c0] sm:$0xff] }
 0x2da   : > { %9443 = vmatpush1.bf16.msra.mxu0 %v13734_v22  ;;  %9771 = vmatpush1.bf16.msra.mxu1 %v13736_v23  ;;  %v13782_v23 = vcombine.low %v3376_v3, %v3380_v4 }
 0x2db   : > { %9444 = vmatprep.subr.bf16.mxu0 %v13743_v24  ;;  %9772 = vmatprep.subr.bf16.mxu1 %v13745_v25  ;;  %v13784_v24 = vcombine.low %v3377_v6, %v3381_v7  ;;  %v13791_v25 = vcombine.high %v3384_v13, %v3388_v14  ;;  %v13814_v6 = vcombine.low %v3408_v45, %v3412_v46  ;;  %v3448_v45 = vld [vmem:[%s22497_s6 + $0x6c0] sm:$0xff] }
 0x2dc   : > { %v3452_v46 = vld [vmem:[%s22497_s6 + $0x6e0] sm:$0xff] }
 0x2de   : > { %9445 = vmatpush1.bf16.msra.mxu0 %v13742_v30  ;;  %9773 = vmatpush1.bf16.msra.mxu1 %v13744_v31  ;;  %v3397_v30 = vld [vmem:[%s22497_s6 + $0x528] sm:$0xff]  ;;  %v13790_v31 = vcombine.low %v3384_v13, %v3388_v14  ;;  %v3428_v14 = vld [vmem:[%s22497_s6 + $0x620] sm:$0xff] }
 0x2df   : > { %9446 = vmatprep.subr.bf16.mxu0 %v13751_v19  ;;  %9774 = vmatprep.subr.bf16.mxu1 %v13753_v20  ;;  %v13792_v19 = vcombine.low %v3385_v15, %v3389_v16  ;;  %v13799_v20 = vcombine.high %v3392_v27, %v3396_v28  ;;  %v13800_v41 = vcombine.low %v3393_v29, %v3397_v30  ;;  %v3425_v15 = vld [vmem:[%s22497_s6 + $0x608] sm:$0xff] }
 0x2e0   : > { %v3429_v16 = vld [vmem:[%s22497_s6 + $0x628] sm:$0xff] }
 0x2e2   : > { %9447 = vmatpush1.bf16.msra.mxu0 %v13750_v32  ;;  %9775 = vmatpush1.bf16.msra.mxu1 %v13752_v33  ;;  %v13801_v32 = vcombine.high %v3393_v29, %v3397_v30  ;;  %v3400_v33 = vld [vmem:[%s22497_s6 + $0x540] sm:$0xff]  ;;  %v3433_v29 = vld [vmem:[%s22497_s6 + $0x648] sm:$0xff] }
 0x2e3   : > { %9448 = vmatprep.subr.bf16.mxu0 %v13759_v40  ;;  %9776 = vmatprep.subr.bf16.mxu1 %v13761_v44  ;;  %v13798_v40 = vcombine.low %v3392_v27, %v3396_v28  ;;  %v13809_v44 = vcombine.high %v3401_v17, %v3405_v39  ;;  %v3432_v27 = vld [vmem:[%s22497_s6 + $0x640] sm:$0xff]  ;;  %v3437_v30 = vld [vmem:[%s22497_s6 + $0x668] sm:$0xff] }
 0x2e4   : > { %v3436_v28 = vld [vmem:[%s22497_s6 + $0x660] sm:$0xff]  ;;  %v3441_v17 = vld [vmem:[%s22497_s6 + $0x688] sm:$0xff] }
 0x2e5   : > { %v3445_v39 = vld [vmem:[%s22497_s6 + $0x6a8] sm:$0xff] }
 0x2e6   : > { %9449 = vmatpush1.bf16.msra.mxu0 %v13758_v42  ;;  %9777 = vmatpush1.bf16.msra.mxu1 %v13760_v43  ;;  %v13807_v43 = vcombine.high %v3400_v33, %v3404_v36 }
 0x2e7   : > { %9459 = vmatprep.subr.bf16.mxu0 %v13767_v47  ;;  %9787 = vmatprep.subr.bf16.mxu1 %v13769_v55  ;;  %v3409_v47 = vld [vmem:[%s22497_s6 + $0x588] sm:$0xff]  ;;  %v13806_v55 = vcombine.low %v3400_v33, %v3404_v36  ;;  %v3440_v33 = vld [vmem:[%s22497_s6 + $0x680] sm:$0xff] }
 0x2e8   : > { %v13817_v58 = vcombine.high %v3409_v47, %v3413_v48  ;;  %v13816_v7 = vcombine.low %v3409_v47, %v3413_v48  ;;  %v3444_v36 = vld [vmem:[%s22497_s6 + $0x6a0] sm:$0xff]  ;;  %v3449_v47 = vld [vmem:[%s22497_s6 + $0x6c8] sm:$0xff] }
 0x2e9   : > { %v3453_v48 = vld [vmem:[%s22497_s6 + $0x6e8] sm:$0xff] }
 0x364   : > { %v2714_v56 = vpop.f32.mrb[40].mxu0  ;;  %v18541_v60 = vpop.f32.mrb[40].mxu1 }
 0x365   : > { %v2716_v61 = vpop.f32.mrb[41].mxu0  ;;  %v2787_v62 = vpop.f32.mrb[41].mxu1  ;;  %v18545_v0 = vpack.c.bf16 %v2714_v56, %v2714_v56 }
 0x366   : > { %v18543_v63 = vpack.c.bf16 %v2716_v61, %v2716_v61  ;;  %v18561_v8 = vpack.c.bf16 %v2787_v62, %v2787_v62  ;;  %v3420_v62 = vld [vmem:[%s22497_s6 + $0x5e0] sm:$0xff] }
 0x368   : > { %9450 = vmatprep.mubr.bf16.mxu0 %v18543_v63  ;;  %9778 = vmatprep.mubr.bf16.mxu1 %v18543_v63 }
 0x369   : > { %9451 = vmatmul.mubr.bf16.vlgmr.msra.gmra.mrb[48].mxu0 %v18545_v0  ;;  %9779 = vmatmul.mubr.bf16.vlgmr.msra.gmra.mrb[48].mxu1 %v18545_v0 }
 0x36a   : > { %9460 = vmatpush1.bf16.msra.mxu0 %v13766_v51  ;;  %9788 = vmatpush1.bf16.msra.mxu1 %v13768_v52 }
 0x36b   : > { %9461 = vmatprep.subr.bf16.mxu0 %v13775_v1  ;;  %9789 = vmatprep.subr.bf16.mxu1 %v13777_v2  ;;  %v3417_v1 = vld [vmem:[%s22497_s6 + $0x5c8] sm:$0xff] }
 0x36c   : > { %9491 = vmatprep.mubr.bf16.mxu0 %v18561_v8  ;;  %9819 = vmatprep.mubr.bf16.mxu1 %v18561_v8  ;;  %v18579_v21 = vpop.f32.mrb[42].mxu0  ;;  %v18607_v42 = vpop.f32.mrb[42].mxu1  ;;  %v3421_v2 = vld [vmem:[%s22497_s6 + $0x5e8] sm:$0xff] }
 0x36d   : > { %v18581_v22 = vpop.f32.mrb[43].mxu0  ;;  %v18612_v5 = vpop.f32.mrb[43].mxu1 }
 0x36e   : > { %9462 = vmatpush1.bf16.msra.mxu0 %v13774_v9  ;;  %9790 = vmatpush1.bf16.msra.mxu1 %v13776_v10  ;;  %v13823_v10 = vcombine.high %v3416_v59, %v3420_v62 }
 0x36f   : > { %9463 = vmatprep.subr.bf16.mxu0 %v13783_v11  ;;  %9791 = vmatprep.subr.bf16.mxu1 %v13785_v12  ;;  %v13825_v11 = vcombine.high %v3417_v1, %v3421_v2  ;;  %v3424_v12 = vld [vmem:[%s22497_s6 + $0x600] sm:$0xff] }
 0x372   : > { %9464 = vmatpush1.bf16.msra.mxu0 %v13782_v23  ;;  %9792 = vmatpush1.bf16.msra.mxu1 %v13784_v24  ;;  %v13822_v23 = vcombine.low %v3416_v59, %v3420_v62  ;;  %v13824_v24 = vcombine.low %v3417_v1, %v3421_v2  ;;  %v3456_v59 = vld [vmem:[%s22497_s6 + $0x700] sm:$0xff]  ;;  %v3457_v1 = vld [vmem:[%s22497_s6 + $0x708] sm:$0xff] }
 0x373   : > { %9465 = vmatprep.subr.bf16.mxu0 %v13791_v25  ;;  %9793 = vmatprep.subr.bf16.mxu1 %v13793_v26  ;;  %v13831_v25 = vcombine.high %v3424_v12, %v3428_v14  ;;  %v13833_v26 = vcombine.high %v3425_v15, %v3429_v16  ;;  %v3460_v62 = vld [vmem:[%s22497_s6 + $0x720] sm:$0xff]  ;;  %v3461_v2 = vld [vmem:[%s22497_s6 + $0x728] sm:$0xff] }
 0x374   : > { %v18623_v51 = vpop.f32.mrb[44].mxu0  ;;  %v18627_v56 = vpop.f32.mrb[44].mxu1 }
 0x375   : > { %v18625_v52 = vpop.f32.mrb[45].mxu0  ;;  %v18632_v61 = vpop.f32.mrb[45].mxu1 }
 0x376   : > { %9466 = vmatpush1.bf16.msra.mxu0 %v13790_v31  ;;  %9794 = vmatpush1.bf16.msra.mxu1 %v13792_v19  ;;  %v13830_v31 = vcombine.low %v3424_v12, %v3428_v14  ;;  %v13832_v19 = vcombine.low %v3425_v15, %v3429_v16  ;;  %v3464_v12 = vld [vmem:[%s22497_s6 + $0x740] sm:$0xff]  ;;  %v3465_v15 = vld [vmem:[%s22497_s6 + $0x748] sm:$0xff] }
 0x377   : > { %9467 = vmatprep.subr.bf16.mxu0 %v13799_v20  ;;  %9795 = vmatprep.subr.bf16.mxu1 %v13801_v32  ;;  %v13839_v20 = vcombine.high %v3432_v27, %v3436_v28  ;;  %v13841_v32 = vcombine.high %v3433_v29, %v3437_v30  ;;  %v3468_v14 = vld [vmem:[%s22497_s6 + $0x760] sm:$0xff]  ;;  %v3469_v16 = vld [vmem:[%s22497_s6 + $0x768] sm:$0xff] }
 0x37a   : > { %9468 = vmatpush1.bf16.msra.mxu0 %v13798_v40  ;;  %9796 = vmatpush1.bf16.msra.mxu1 %v13800_v41  ;;  %v13838_v40 = vcombine.low %v3432_v27, %v3436_v28  ;;  %v13840_v41 = vcombine.low %v3433_v29, %v3437_v30  ;;  %v3472_v27 = vld [vmem:[%s22497_s6 + $0x780] sm:$0xff]  ;;  %v3473_v29 = vld [vmem:[%s22497_s6 + $0x788] sm:$0xff] }
 0x37b   : > { %9469 = vmatprep.subr.bf16.mxu0 %v13807_v43  ;;  %9797 = vmatprep.subr.bf16.mxu1 %v13809_v44  ;;  %v13847_v43 = vcombine.high %v3440_v33, %v3444_v36  ;;  %v13849_v44 = vcombine.high %v3441_v17, %v3445_v39  ;;  %v3476_v28 = vld [vmem:[%s22497_s6 + $0x7a0] sm:$0xff]  ;;  %v3477_v30 = vld [vmem:[%s22497_s6 + $0x7a8] sm:$0xff] }
 0x37c   : > { %v18643_v3 = vpop.f32.mrb[46].mxu0  ;;  %v18647_v9 = vpop.f32.mrb[46].mxu1 }
 0x37d   : > { %v18645_v4 = vpop.f32.mrb[47].mxu0  ;;  %v18652_v13 = vpop.f32.mrb[47].mxu1 }
 0x37e   : > { %9470 = vmatpush1.bf16.msra.mxu0 %v13806_v55  ;;  %9798 = vmatpush1.bf16.msra.mxu1 %v13808_v18  ;;  %v13846_v55 = vcombine.low %v3440_v33, %v3444_v36  ;;  %v13848_v18 = vcombine.low %v3441_v17, %v3445_v39  ;;  %v3480_v33 = vld [vmem:[%s22497_s6 + $0x7c0] sm:$0xff]  ;;  %v3481_v17 = vld [vmem:[%s22497_s6 + $0x7c8] sm:$0xff] }
 0x37f   : > { %9471 = vmatprep.subr.bf16.mxu0 %v13815_v57  ;;  %9799 = vmatprep.subr.bf16.mxu1 %v13817_v58  ;;  %v13855_v57 = vcombine.high %v3448_v45, %v3452_v46  ;;  %v13857_v58 = vcombine.high %v3449_v47, %v3453_v48  ;;  %v3484_v36 = vld [vmem:[%s22497_s6 + $0x7e0] sm:$0xff]  ;;  %v3485_v39 = vld [vmem:[%s22497_s6 + $0x7e8] sm:$0xff] }
 0x382   : > { %9472 = vmatpush1.bf16.msra.mxu0 %v13814_v6  ;;  %9800 = vmatpush1.bf16.msra.mxu1 %v13816_v7  ;;  %v13854_v6 = vcombine.low %v3448_v45, %v3452_v46  ;;  %v13856_v7 = vcombine.low %v3449_v47, %v3453_v48  ;;  %v3488_v45 = vld [vmem:[%s22497_s6 + $0x800] sm:$0xff]  ;;  %v3489_v47 = vld [vmem:[%s22497_s6 + $0x808] sm:$0xff] }
 0x383   : > { %9473 = vmatprep.subr.bf16.mxu0 %v13823_v10  ;;  %9801 = vmatprep.subr.bf16.mxu1 %v13825_v11  ;;  %v13863_v10 = vcombine.high %v3456_v59, %v3460_v62  ;;  %v13865_v11 = vcombine.high %v3457_v1, %v3461_v2  ;;  %v3492_v46 = vld [vmem:[%s22497_s6 + $0x820] sm:$0xff]  ;;  %v3493_v48 = vld [vmem:[%s22497_s6 + $0x828] sm:$0xff] }
 0x386   : > { %9474 = vmatpush1.bf16.msra.mxu0 %v13822_v23  ;;  %9802 = vmatpush1.bf16.msra.mxu1 %v13824_v24  ;;  %v13862_v23 = vcombine.low %v3456_v59, %v3460_v62  ;;  %v13864_v24 = vcombine.low %v3457_v1, %v3461_v2  ;;  %v3496_v59 = vld [vmem:[%s22497_s6 + $0x840] sm:$0xff]  ;;  %v3497_v1 = vld [vmem:[%s22497_s6 + $0x848] sm:$0xff] }
 0x387   : > { %9475 = vmatprep.subr.bf16.mxu0 %v13831_v25  ;;  %9803 = vmatprep.subr.bf16.mxu1 %v13833_v26  ;;  %v13871_v25 = vcombine.high %v3464_v12, %v3468_v14  ;;  %v13873_v26 = vcombine.high %v3465_v15, %v3469_v16  ;;  %v3500_v62 = vld [vmem:[%s22497_s6 + $0x860] sm:$0xff]  ;;  %v3501_v2 = vld [vmem:[%s22497_s6 + $0x868] sm:$0xff] }
 0x38a   : > { %9476 = vmatpush1.bf16.msra.mxu0 %v13830_v31  ;;  %9804 = vmatpush1.bf16.msra.mxu1 %v13832_v19  ;;  %v13870_v31 = vcombine.low %v3464_v12, %v3468_v14  ;;  %v13872_v19 = vcombine.low %v3465_v15, %v3469_v16  ;;  %v13905_v12 = vcombine.high %v3497_v1, %v3501_v2  ;;  %v3504_v14 = vld [vmem:[%s22497_s6 + $0x880] sm:$0xff]  ;;  %v3509_v16 = vld [vmem:[%s22497_s6 + $0x8a8] sm:$0xff] }
 0x38b   : > { %9477 = vmatprep.subr.bf16.mxu0 %v13839_v20  ;;  %9805 = vmatprep.subr.bf16.mxu1 %v13841_v32  ;;  %v13879_v20 = vcombine.high %v3472_v27, %v3476_v28  ;;  %v13881_v32 = vcombine.high %v3473_v29, %v3477_v30  ;;  %v3508_v15 = vld [vmem:[%s22497_s6 + $0x8a0] sm:$0xff] }
 0x38e   : > { %9478 = vmatpush1.bf16.msra.mxu0 %v13838_v40  ;;  %9806 = vmatpush1.bf16.msra.mxu1 %v13840_v41  ;;  %v13878_v40 = vcombine.low %v3472_v27, %v3476_v28  ;;  %v13880_v41 = vcombine.low %v3473_v29, %v3477_v30  ;;  %v3512_v28 = vld [vmem:[%s22497_s6 + $0x8c0] sm:$0xff]  ;;  %v3513_v29 = vld [vmem:[%s22497_s6 + $0x8c8] sm:$0xff] }
 0x38f   : > { %9479 = vmatprep.subr.bf16.mxu0 %v13847_v43  ;;  %9807 = vmatprep.subr.bf16.mxu1 %v13849_v44  ;;  %v13887_v43 = vcombine.high %v3480_v33, %v3484_v36  ;;  %v13889_v44 = vcombine.high %v3481_v17, %v3485_v39  ;;  %v3517_v30 = vld [vmem:[%s22497_s6 + $0x8e8] sm:$0xff] }
 0x392   : > { %9480 = vmatpush1.bf16.msra.mxu0 %v13846_v55  ;;  %9808 = vmatpush1.bf16.msra.mxu1 %v13848_v18  ;;  %v13886_v55 = vcombine.low %v3480_v33, %v3484_v36  ;;  %v13888_v18 = vcombine.low %v3481_v17, %v3485_v39  ;;  %v3520_v33 = vld [vmem:[%s22497_s6 + $0x900] sm:$0xff]  ;;  %v3521_v17 = vld [vmem:[%s22497_s6 + $0x908] sm:$0xff] }
 0x393   : > { %9481 = vmatprep.subr.bf16.mxu0 %v13855_v57  ;;  %9809 = vmatprep.subr.bf16.mxu1 %v13857_v58  ;;  %v13895_v57 = vcombine.high %v3488_v45, %v3492_v46  ;;  %v13897_v58 = vcombine.high %v3489_v47, %v3493_v48  ;;  %v3524_v36 = vld [vmem:[%s22497_s6 + $0x920] sm:$0xff]  ;;  %v3525_v39 = vld [vmem:[%s22497_s6 + $0x928] sm:$0xff] }
 0x396   : > { %9482 = vmatpush1.bf16.msra.mxu0 %v13854_v6  ;;  %9810 = vmatpush1.bf16.msra.mxu1 %v13856_v7  ;;  %v18773_v6 = vpack.c.bf16 %v18541_v60, %v18541_v60  ;;  %v13894_v7 = vcombine.low %v3488_v45, %v3492_v46  ;;  %v3505_v60 = vld [vmem:[%s22497_s6 + $0x888] sm:$0xff]  ;;  %v3528_v45 = vld [vmem:[%s22497_s6 + $0x940] sm:$0xff] }
 0x397   : > { %9483 = vmatprep.subr.bf16.mxu0 %v13863_v10  ;;  %9811 = vmatprep.subr.bf16.mxu1 %v13865_v11  ;;  %v13896_v10 = vcombine.low %v3489_v47, %v3493_v48  ;;  %v13903_v11 = vcombine.high %v3496_v59, %v3500_v62  ;;  %v13913_v27 = vcombine.high %v3505_v60, %v3509_v16  ;;  %v3532_v46 = vld [vmem:[%s22497_s6 + $0x960] sm:$0xff]  ;;  %v3529_v47 = vld [vmem:[%s22497_s6 + $0x948] sm:$0xff] }
 0x398   : > { %v3533_v48 = vld [vmem:[%s22497_s6 + $0x968] sm:$0xff] }
 0x39a   : > { %9484 = vmatpush1.bf16.msra.mxu0 %v13862_v23  ;;  %9812 = vmatpush1.bf16.msra.mxu1 %v13864_v24  ;;  %v18789_v23 = vpack.c.bf16 %v18581_v22, %v18581_v22  ;;  %v13902_v24 = vcombine.low %v3496_v59, %v3500_v62  ;;  %v3516_v22 = vld [vmem:[%s22497_s6 + $0x8e0] sm:$0xff] }
 0x39b   : > { %9485 = vmatprep.subr.bf16.mxu0 %v13871_v25  ;;  %9813 = vmatprep.subr.bf16.mxu1 %v13873_v26  ;;  %v13904_v25 = vcombine.low %v3497_v1, %v3501_v2  ;;  %v13911_v26 = vcombine.high %v3504_v14, %v3508_v15  ;;  %v3536_v59 = vld [vmem:[%s22497_s6 + $0x980] sm:$0xff]  ;;  %v3537_v1 = vld [vmem:[%s22497_s6 + $0x988] sm:$0xff] }
 0x39c   : > { %v3540_v62 = vld [vmem:[%s22497_s6 + $0x9a0] sm:$0xff]  ;;  %v3541_v2 = vld [vmem:[%s22497_s6 + $0x9a8] sm:$0xff] }
 0x39e   : > { %9486 = vmatpush1.bf16.msra.mxu0 %v13870_v31  ;;  %9814 = vmatpush1.bf16.msra.mxu1 %v13872_v19  ;;  %v13910_v31 = vcombine.low %v3504_v14, %v3508_v15  ;;  %v13912_v19 = vcombine.low %v3505_v60, %v3509_v16  ;;  %v3544_v14 = vld [vmem:[%s22497_s6 + $0x9c0] sm:$0xff]  ;;  %v3545_v60 = vld [vmem:[%s22497_s6 + $0x9c8] sm:$0xff] }
 0x39f   : > { %9487 = vmatprep.subr.bf16.mxu0 %v13879_v20  ;;  %9815 = vmatprep.subr.bf16.mxu1 %v13881_v32  ;;  %v13919_v20 = vcombine.high %v3512_v28, %v3516_v22  ;;  %v13921_v32 = vcombine.high %v3513_v29, %v3517_v30  ;;  %v3548_v15 = vld [vmem:[%s22497_s6 + $0x9e0] sm:$0xff]  ;;  %v3549_v16 = vld [vmem:[%s22497_s6 + $0x9e8] sm:$0xff] }
 0x3a2   : > { %9488 = vmatpush1.bf16.msra.mxu0 %v13878_v40  ;;  %9816 = vmatpush1.bf16.msra.mxu1 %v13880_v41  ;;  %v13918_v40 = vcombine.low %v3512_v28, %v3516_v22  ;;  %v13920_v41 = vcombine.low %v3513_v29, %v3517_v30  ;;  %v3552_v28 = vld [vmem:[%s22497_s6 + $0xa00] sm:$0xff]  ;;  %v3553_v29 = vld [vmem:[%s22497_s6 + $0xa08] sm:$0xff] }
 0x3a3   : > { %9489 = vmatprep.subr.bf16.mxu0 %v13887_v43  ;;  %9817 = vmatprep.subr.bf16.mxu1 %v13889_v44  ;;  %v13927_v43 = vcombine.high %v3520_v33, %v3524_v36  ;;  %v13929_v44 = vcombine.high %v3521_v17, %v3525_v39  ;;  %v3556_v22 = vld [vmem:[%s22497_s6 + $0xa20] sm:$0xff]  ;;  %v3557_v30 = vld [vmem:[%s22497_s6 + $0xa28] sm:$0xff] }
 0x3a6   : > { %9490 = vmatpush1.bf16.msra.mxu0 %v13886_v55  ;;  %9818 = vmatpush1.bf16.msra.mxu1 %v13888_v18  ;;  %v13926_v55 = vcombine.low %v3520_v33, %v3524_v36  ;;  %v13928_v18 = vcombine.low %v3521_v17, %v3525_v39  ;;  %v3560_v33 = vld [vmem:[%s22497_s6 + $0xa40] sm:$0xff]  ;;  %v3561_v17 = vld [vmem:[%s22497_s6 + $0xa48] sm:$0xff] }
 0x3a7   : > { %9500 = vmatprep.subr.bf16.mxu0 %v13895_v57  ;;  %9828 = vmatprep.subr.bf16.mxu1 %v13897_v58  ;;  %v13935_v57 = vcombine.high %v3528_v45, %v3532_v46  ;;  %v13937_v58 = vcombine.high %v3529_v47, %v3533_v48  ;;  %v3564_v36 = vld [vmem:[%s22497_s6 + $0xa60] sm:$0xff]  ;;  %v3565_v39 = vld [vmem:[%s22497_s6 + $0xa68] sm:$0xff] }
 0x3a9   : > { %9492 = vmatmul.mubr.bf16.vlgmr.msra.gmra.mrb[48].mxu0 %v18773_v6  ;;  %9820 = vmatmul.mubr.bf16.vlgmr.msra.gmra.mrb[48].mxu1 %v18773_v6 }
 0x3aa   : > { %9501 = vmatpush1.bf16.msra.mxu0 %v13894_v7  ;;  %9829 = vmatpush1.bf16.msra.mxu1 %v13896_v10  ;;  %v13934_v7 = vcombine.low %v3528_v45, %v3532_v46  ;;  %v13936_v10 = vcombine.low %v3529_v47, %v3533_v48  ;;  %v3568_v45 = vld [vmem:[%s22497_s6 + $0xa80] sm:$0xff]  ;;  %v3569_v47 = vld [vmem:[%s22497_s6 + $0xa88] sm:$0xff] }
 0x3ab   : > { %9502 = vmatprep.subr.bf16.mxu0 %v13903_v11  ;;  %9830 = vmatprep.subr.bf16.mxu1 %v13905_v12  ;;  %v13943_v11 = vcombine.high %v3536_v59, %v3540_v62  ;;  %v13945_v12 = vcombine.high %v3537_v1, %v3541_v2  ;;  %v3572_v46 = vld [vmem:[%s22497_s6 + $0xaa0] sm:$0xff]  ;;  %v3573_v48 = vld [vmem:[%s22497_s6 + $0xaa8] sm:$0xff] }
 0x3ac   : > { %9532 = vmatprep.mubr.bf16.mxu0 %v18789_v23  ;;  %9860 = vmatprep.mubr.bf16.mxu1 %v18789_v23 }
 0x3ae   : > { %9503 = vmatpush1.bf16.msra.mxu0 %v13902_v24  ;;  %9831 = vmatpush1.bf16.msra.mxu1 %v13904_v25  ;;  %v13942_v24 = vcombine.low %v3536_v59, %v3540_v62  ;;  %v13944_v25 = vcombine.low %v3537_v1, %v3541_v2  ;;  %v3576_v59 = vld [vmem:[%s22497_s6 + $0xac0] sm:$0xff]  ;;  %v3577_v1 = vld [vmem:[%s22497_s6 + $0xac8] sm:$0xff] }
 0x3af   : > { %9504 = vmatprep.subr.bf16.mxu0 %v13911_v26  ;;  %9832 = vmatprep.subr.bf16.mxu1 %v13913_v27  ;;  %v13951_v26 = vcombine.high %v3544_v14, %v3548_v15  ;;  %v13953_v27 = vcombine.high %v3545_v60, %v3549_v16  ;;  %v3580_v62 = vld [vmem:[%s22497_s6 + $0xae0] sm:$0xff]  ;;  %v3581_v2 = vld [vmem:[%s22497_s6 + $0xae8] sm:$0xff] }
 0x3b2   : > { %9505 = vmatpush1.bf16.msra.mxu0 %v13910_v31  ;;  %9833 = vmatpush1.bf16.msra.mxu1 %v13912_v19  ;;  %v13950_v31 = vcombine.low %v3544_v14, %v3548_v15  ;;  %v13952_v19 = vcombine.low %v3545_v60, %v3549_v16  ;;  %v3584_v14 = vld [vmem:[%s22497_s6 + $0xb00] sm:$0xff]  ;;  %v3585_v60 = vld [vmem:[%s22497_s6 + $0xb08] sm:$0xff] }
 0x3b3   : > { %9506 = vmatprep.subr.bf16.mxu0 %v13919_v20  ;;  %9834 = vmatprep.subr.bf16.mxu1 %v13921_v32  ;;  %v13959_v20 = vcombine.high %v3552_v28, %v3556_v22  ;;  %v13961_v32 = vcombine.high %v3553_v29, %v3557_v30  ;;  %v3588_v15 = vld [vmem:[%s22497_s6 + $0xb20] sm:$0xff]  ;;  %v3589_v16 = vld [vmem:[%s22497_s6 + $0xb28] sm:$0xff] }
 0x3b6   : > { %9507 = vmatpush1.bf16.msra.mxu0 %v13918_v40  ;;  %9835 = vmatpush1.bf16.msra.mxu1 %v13920_v41  ;;  %v13958_v40 = vcombine.low %v3552_v28, %v3556_v22  ;;  %v13960_v41 = vcombine.low %v3553_v29, %v3557_v30  ;;  %v3592_v28 = vld [vmem:[%s22497_s6 + $0xb40] sm:$0xff]  ;;  %v3593_v29 = vld [vmem:[%s22497_s6 + $0xb48] sm:$0xff] }
 0x3b7   : > { %9508 = vmatprep.subr.bf16.mxu0 %v13927_v43  ;;  %9836 = vmatprep.subr.bf16.mxu1 %v13929_v44  ;;  %v13967_v43 = vcombine.high %v3560_v33, %v3564_v36  ;;  %v13969_v44 = vcombine.high %v3561_v17, %v3565_v39  ;;  %v3596_v22 = vld [vmem:[%s22497_s6 + $0xb60] sm:$0xff]  ;;  %v3597_v30 = vld [vmem:[%s22497_s6 + $0xb68] sm:$0xff] }
 0x3ba   : > { %9509 = vmatpush1.bf16.msra.mxu0 %v13926_v55  ;;  %9837 = vmatpush1.bf16.msra.mxu1 %v13928_v18  ;;  %v13966_v55 = vcombine.low %v3560_v33, %v3564_v36  ;;  %v13968_v18 = vcombine.low %v3561_v17, %v3565_v39  ;;  %v3600_v33 = vld [vmem:[%s22497_s6 + $0xb80] sm:$0xff]  ;;  %v3601_v17 = vld [vmem:[%s22497_s6 + $0xb88] sm:$0xff] }
 0x3bb   : > { %9510 = vmatprep.subr.bf16.mxu0 %v13935_v57  ;;  %9838 = vmatprep.subr.bf16.mxu1 %v13937_v58  ;;  %v13975_v57 = vcombine.high %v3568_v45, %v3572_v46  ;;  %v13977_v58 = vcombine.high %v3569_v47, %v3573_v48  ;;  %v3604_v36 = vld [vmem:[%s22497_s6 + $0xba0] sm:$0xff]  ;;  %v3605_v39 = vld [vmem:[%s22497_s6 + $0xba8] sm:$0xff] }
 0x3be   : > { %9511 = vmatpush1.bf16.msra.mxu0 %v13934_v7  ;;  %9839 = vmatpush1.bf16.msra.mxu1 %v13936_v10  ;;  %v13974_v7 = vcombine.low %v3568_v45, %v3572_v46  ;;  %v13976_v10 = vcombine.low %v3569_v47, %v3573_v48  ;;  %v3608_v45 = vld [vmem:[%s22497_s6 + $0xbc0] sm:$0xff]  ;;  %v3609_v47 = vld [vmem:[%s22497_s6 + $0xbc8] sm:$0xff] }
 0x3bf   : > { %9512 = vmatprep.subr.bf16.mxu0 %v13943_v11  ;;  %9840 = vmatprep.subr.bf16.mxu1 %v13945_v12  ;;  %v13983_v11 = vcombine.high %v3576_v59, %v3580_v62  ;;  %v13985_v12 = vcombine.high %v3577_v1, %v3581_v2  ;;  %v3612_v46 = vld [vmem:[%s22497_s6 + $0xbe0] sm:$0xff]  ;;  %v3613_v48 = vld [vmem:[%s22497_s6 + $0xbe8] sm:$0xff] }
 0x3c2   : > { %9513 = vmatpush1.bf16.msra.mxu0 %v13942_v24  ;;  %9841 = vmatpush1.bf16.msra.mxu1 %v13944_v25  ;;  %v13982_v24 = vcombine.low %v3576_v59, %v3580_v62  ;;  %v13984_v25 = vcombine.low %v3577_v1, %v3581_v2  ;;  %v3616_v59 = vld [vmem:[%s22497_s6 + $0xc00] sm:$0xff]  ;;  %v3617_v1 = vld [vmem:[%s22497_s6 + $0xc08] sm:$0xff] }
 0x3c3   : > { %9514 = vmatprep.subr.bf16.mxu0 %v13951_v26  ;;  %9842 = vmatprep.subr.bf16.mxu1 %v13953_v27  ;;  %v13991_v26 = vcombine.high %v3584_v14, %v3588_v15  ;;  %v13993_v27 = vcombine.high %v3585_v60, %v3589_v16  ;;  %v3620_v62 = vld [vmem:[%s22497_s6 + $0xc20] sm:$0xff]  ;;  %v3621_v2 = vld [vmem:[%s22497_s6 + $0xc28] sm:$0xff] }
 0x3c6   : > { %9515 = vmatpush1.bf16.msra.mxu0 %v13950_v31  ;;  %9843 = vmatpush1.bf16.msra.mxu1 %v13952_v19  ;;  %v13990_v31 = vcombine.low %v3584_v14, %v3588_v15  ;;  %v13992_v19 = vcombine.low %v3585_v60, %v3589_v16  ;;  %v3624_v14 = vld [vmem:[%s22497_s6 + $0xc40] sm:$0xff]  ;;  %v3625_v60 = vld [vmem:[%s22497_s6 + $0xc48] sm:$0xff] }
 0x3c7   : > { %9516 = vmatprep.subr.bf16.mxu0 %v13959_v20  ;;  %9844 = vmatprep.subr.bf16.mxu1 %v13961_v32  ;;  %v13999_v20 = vcombine.high %v3592_v28, %v3596_v22  ;;  %v14001_v32 = vcombine.high %v3593_v29, %v3597_v30  ;;  %v3628_v15 = vld [vmem:[%s22497_s6 + $0xc60] sm:$0xff]  ;;  %v3629_v16 = vld [vmem:[%s22497_s6 + $0xc68] sm:$0xff] }
 0x3ca   : > { %9517 = vmatpush1.bf16.msra.mxu0 %v13958_v40  ;;  %9845 = vmatpush1.bf16.msra.mxu1 %v13960_v41  ;;  %v13998_v40 = vcombine.low %v3592_v28, %v3596_v22  ;;  %v14000_v41 = vcombine.low %v3593_v29, %v3597_v30  ;;  %v14033_v28 = vcombine.high %v3625_v60, %v3629_v16  ;;  %v3632_v22 = vld [vmem:[%s22497_s6 + $0xc80] sm:$0xff]  ;;  %v3637_v30 = vld [vmem:[%s22497_s6 + $0xca8] sm:$0xff] }
 0x3cb   : > { %9518 = vmatprep.subr.bf16.mxu0 %v13967_v43  ;;  %9846 = vmatprep.subr.bf16.mxu1 %v13969_v44  ;;  %v14007_v43 = vcombine.high %v3600_v33, %v3604_v36  ;;  %v14009_v44 = vcombine.high %v3601_v17, %v3605_v39  ;;  %v3636_v29 = vld [vmem:[%s22497_s6 + $0xca0] sm:$0xff] }
 0x3ce   : > { %9519 = vmatpush1.bf16.msra.mxu0 %v13966_v55  ;;  %9847 = vmatpush1.bf16.msra.mxu1 %v13968_v18  ;;  %v14006_v55 = vcombine.low %v3600_v33, %v3604_v36  ;;  %v14008_v18 = vcombine.low %v3601_v17, %v3605_v39  ;;  %v3640_v36 = vld [vmem:[%s22497_s6 + $0xcc0] sm:$0xff]  ;;  %v3641_v17 = vld [vmem:[%s22497_s6 + $0xcc8] sm:$0xff] }
 0x3cf   : > { %9520 = vmatprep.subr.bf16.mxu0 %v13975_v57  ;;  %9848 = vmatprep.subr.bf16.mxu1 %v13977_v58  ;;  %v14015_v57 = vcombine.high %v3608_v45, %v3612_v46  ;;  %v14017_v58 = vcombine.high %v3609_v47, %v3613_v48  ;;  %v3645_v39 = vld [vmem:[%s22497_s6 + $0xce8] sm:$0xff] }
 0x3d2   : > { %9521 = vmatpush1.bf16.msra.mxu0 %v13974_v7  ;;  %9849 = vmatpush1.bf16.msra.mxu1 %v13976_v10  ;;  %v14014_v7 = vcombine.low %v3608_v45, %v3612_v46  ;;  %v14016_v10 = vcombine.low %v3609_v47, %v3613_v48  ;;  %v3648_v45 = vld [vmem:[%s22497_s6 + $0xd00] sm:$0xff]  ;;  %v3649_v47 = vld [vmem:[%s22497_s6 + $0xd08] sm:$0xff] }
 0x3d3   : > { %9522 = vmatprep.subr.bf16.mxu0 %v13983_v11  ;;  %9850 = vmatprep.subr.bf16.mxu1 %v13985_v12  ;;  %v14023_v11 = vcombine.high %v3616_v59, %v3620_v62  ;;  %v14025_v12 = vcombine.high %v3617_v1, %v3621_v2  ;;  %v3652_v46 = vld [vmem:[%s22497_s6 + $0xd20] sm:$0xff]  ;;  %v3653_v48 = vld [vmem:[%s22497_s6 + $0xd28] sm:$0xff] }
 0x3d6   : > { %9523 = vmatpush1.bf16.msra.mxu0 %v13982_v24  ;;  %9851 = vmatpush1.bf16.msra.mxu1 %v13984_v25  ;;  %v18977_v24 = vpack.c.bf16 %v18579_v21, %v18579_v21  ;;  %v14022_v25 = vcombine.low %v3616_v59, %v3620_v62  ;;  %v3633_v21 = vld [vmem:[%s22497_s6 + $0xc88] sm:$0xff]  ;;  %v3656_v59 = vld [vmem:[%s22497_s6 + $0xd40] sm:$0xff] }
 0x3d7   : > { %9524 = vmatprep.subr.bf16.mxu0 %v13991_v26  ;;  %9852 = vmatprep.subr.bf16.mxu1 %v13993_v27  ;;  %v14024_v26 = vcombine.low %v3617_v1, %v3621_v2  ;;  %v14031_v27 = vcombine.high %v3624_v14, %v3628_v15  ;;  %v14041_v33 = vcombine.high %v3633_v21, %v3637_v30  ;;  %v3660_v62 = vld [vmem:[%s22497_s6 + $0xd60] sm:$0xff]  ;;  %v3657_v1 = vld [vmem:[%s22497_s6 + $0xd48] sm:$0xff] }
 0x3d8   : > { %v3661_v2 = vld [vmem:[%s22497_s6 + $0xd68] sm:$0xff] }
 0x3da   : > { %9525 = vmatpush1.bf16.msra.mxu0 %v13990_v31  ;;  %9853 = vmatpush1.bf16.msra.mxu1 %v13992_v19  ;;  %v18993_v31 = vpack.c.bf16 %v18612_v5, %v18612_v5  ;;  %v14030_v19 = vcombine.low %v3624_v14, %v3628_v15  ;;  %v3644_v5 = vld [vmem:[%s22497_s6 + $0xce0] sm:$0xff] }
 0x3db   : > { %9526 = vmatprep.subr.bf16.mxu0 %v13999_v20  ;;  %9854 = vmatprep.subr.bf16.mxu1 %v14001_v32  ;;  %v14032_v20 = vcombine.low %v3625_v60, %v3629_v16  ;;  %v14039_v32 = vcombine.high %v3632_v22, %v3636_v29  ;;  %v3664_v14 = vld [vmem:[%s22497_s6 + $0xd80] sm:$0xff]  ;;  %v3665_v60 = vld [vmem:[%s22497_s6 + $0xd88] sm:$0xff] }
 0x3dc   : > { %v3668_v15 = vld [vmem:[%s22497_s6 + $0xda0] sm:$0xff]  ;;  %v3669_v16 = vld [vmem:[%s22497_s6 + $0xda8] sm:$0xff] }
 0x3de   : > { %9527 = vmatpush1.bf16.msra.mxu0 %v13998_v40  ;;  %9855 = vmatpush1.bf16.msra.mxu1 %v14000_v41  ;;  %v14038_v40 = vcombine.low %v3632_v22, %v3636_v29  ;;  %v14040_v41 = vcombine.low %v3633_v21, %v3637_v30  ;;  %v3672_v22 = vld [vmem:[%s22497_s6 + $0xdc0] sm:$0xff]  ;;  %v3673_v21 = vld [vmem:[%s22497_s6 + $0xdc8] sm:$0xff] }
 0x3df   : > { %9528 = vmatprep.subr.bf16.mxu0 %v14007_v43  ;;  %9856 = vmatprep.subr.bf16.mxu1 %v14009_v44  ;;  %v14047_v43 = vcombine.high %v3640_v36, %v3644_v5  ;;  %v14049_v44 = vcombine.high %v3641_v17, %v3645_v39  ;;  %v3676_v29 = vld [vmem:[%s22497_s6 + $0xde0] sm:$0xff]  ;;  %v3677_v30 = vld [vmem:[%s22497_s6 + $0xde8] sm:$0xff] }
 0x3e2   : > { %9529 = vmatpush1.bf16.msra.mxu0 %v14006_v55  ;;  %9857 = vmatpush1.bf16.msra.mxu1 %v14008_v18  ;;  %v14046_v55 = vcombine.low %v3640_v36, %v3644_v5  ;;  %v14048_v18 = vcombine.low %v3641_v17, %v3645_v39  ;;  %v3680_v36 = vld [vmem:[%s22497_s6 + $0xe00] sm:$0xff]  ;;  %v3681_v17 = vld [vmem:[%s22497_s6 + $0xe08] sm:$0xff] }
 0x3e3   : > { %9530 = vmatprep.subr.bf16.mxu0 %v14015_v57  ;;  %9858 = vmatprep.subr.bf16.mxu1 %v14017_v58  ;;  %v14055_v57 = vcombine.high %v3648_v45, %v3652_v46  ;;  %v14057_v58 = vcombine.high %v3649_v47, %v3653_v48  ;;  %v3684_v5 = vld [vmem:[%s22497_s6 + $0xe20] sm:$0xff]  ;;  %v3685_v39 = vld [vmem:[%s22497_s6 + $0xe28] sm:$0xff] }
 0x3e6   : > { %9531 = vmatpush1.bf16.msra.mxu0 %v14014_v7  ;;  %9859 = vmatpush1.bf16.msra.mxu1 %v14016_v10  ;;  %v14054_v7 = vcombine.low %v3648_v45, %v3652_v46  ;;  %v14056_v10 = vcombine.low %v3649_v47, %v3653_v48  ;;  %v3688_v45 = vld [vmem:[%s22497_s6 + $0xe40] sm:$0xff]  ;;  %v3689_v47 = vld [vmem:[%s22497_s6 + $0xe48] sm:$0xff] }
 0x3e7   : > { %9541 = vmatprep.subr.bf16.mxu0 %v14023_v11  ;;  %9869 = vmatprep.subr.bf16.mxu1 %v14025_v12  ;;  %v14063_v11 = vcombine.high %v3656_v59, %v3660_v62  ;;  %v14065_v12 = vcombine.high %v3657_v1, %v3661_v2  ;;  %v3692_v46 = vld [vmem:[%s22497_s6 + $0xe60] sm:$0xff]  ;;  %v3693_v48 = vld [vmem:[%s22497_s6 + $0xe68] sm:$0xff] }
 0x3e9   : > { %9533 = vmatmul.mubr.bf16.vlgmr.msra.gmra.mrb[48].mxu0 %v18977_v24  ;;  %9861 = vmatmul.mubr.bf16.vlgmr.msra.gmra.mrb[48].mxu1 %v18977_v24 }
 0x3ea   : > { %9542 = vmatpush1.bf16.msra.mxu0 %v14022_v25  ;;  %9870 = vmatpush1.bf16.msra.mxu1 %v14024_v26  ;;  %v14062_v25 = vcombine.low %v3656_v59, %v3660_v62  ;;  %v14064_v26 = vcombine.low %v3657_v1, %v3661_v2  ;;  %v3696_v59 = vld [vmem:[%s22497_s6 + $0xe80] sm:$0xff]  ;;  %v3697_v1 = vld [vmem:[%s22497_s6 + $0xe88] sm:$0xff] }
 0x3eb   : > { %9543 = vmatprep.subr.bf16.mxu0 %v14031_v27  ;;  %9871 = vmatprep.subr.bf16.mxu1 %v14033_v28  ;;  %v14071_v27 = vcombine.high %v3664_v14, %v3668_v15  ;;  %v14073_v28 = vcombine.high %v3665_v60, %v3669_v16  ;;  %v3700_v62 = vld [vmem:[%s22497_s6 + $0xea0] sm:$0xff]  ;;  %v3701_v2 = vld [vmem:[%s22497_s6 + $0xea8] sm:$0xff] }
 0x3ec   : > { %9573 = vmatprep.mubr.bf16.mxu0 %v18993_v31  ;;  %9901 = vmatprep.mubr.bf16.mxu1 %v18993_v31 }
 0x3ee   : > { %9544 = vmatpush1.bf16.msra.mxu0 %v14030_v19  ;;  %9872 = vmatpush1.bf16.msra.mxu1 %v14032_v20  ;;  %v14070_v19 = vcombine.low %v3664_v14, %v3668_v15  ;;  %v14072_v20 = vcombine.low %v3665_v60, %v3669_v16  ;;  %v3704_v14 = vld [vmem:[%s22497_s6 + $0xec0] sm:$0xff]  ;;  %v3705_v60 = vld [vmem:[%s22497_s6 + $0xec8] sm:$0xff] }
 0x3ef   : > { %9545 = vmatprep.subr.bf16.mxu0 %v14039_v32  ;;  %9873 = vmatprep.subr.bf16.mxu1 %v14041_v33  ;;  %v14079_v32 = vcombine.high %v3672_v22, %v3676_v29  ;;  %v14081_v33 = vcombine.high %v3673_v21, %v3677_v30  ;;  %v3708_v15 = vld [vmem:[%s22497_s6 + $0xee0] sm:$0xff]  ;;  %v3709_v16 = vld [vmem:[%s22497_s6 + $0xee8] sm:$0xff] }
 0x3f2   : > { %9546 = vmatpush1.bf16.msra.mxu0 %v14038_v40  ;;  %9874 = vmatpush1.bf16.msra.mxu1 %v14040_v41  ;;  %v14078_v40 = vcombine.low %v3672_v22, %v3676_v29  ;;  %v14080_v41 = vcombine.low %v3673_v21, %v3677_v30  ;;  %v3712_v22 = vld [vmem:[%s22497_s6 + $0xf00] sm:$0xff]  ;;  %v3713_v21 = vld [vmem:[%s22497_s6 + $0xf08] sm:$0xff] }
 0x3f3   : > { %9547 = vmatprep.subr.bf16.mxu0 %v14047_v43  ;;  %9875 = vmatprep.subr.bf16.mxu1 %v14049_v44  ;;  %v14087_v43 = vcombine.high %v3680_v36, %v3684_v5  ;;  %v14089_v44 = vcombine.high %v3681_v17, %v3685_v39  ;;  %v3716_v29 = vld [vmem:[%s22497_s6 + $0xf20] sm:$0xff]  ;;  %v3717_v30 = vld [vmem:[%s22497_s6 + $0xf28] sm:$0xff] }
 0x3f6   : > { %9548 = vmatpush1.bf16.msra.mxu0 %v14046_v55  ;;  %9876 = vmatpush1.bf16.msra.mxu1 %v14048_v18  ;;  %v14086_v55 = vcombine.low %v3680_v36, %v3684_v5  ;;  %v14088_v18 = vcombine.low %v3681_v17, %v3685_v39  ;;  %v3720_v36 = vld [vmem:[%s22497_s6 + $0xf40] sm:$0xff]  ;;  %v3721_v17 = vld [vmem:[%s22497_s6 + $0xf48] sm:$0xff] }
 0x3f7   : > { %9549 = vmatprep.subr.bf16.mxu0 %v14055_v57  ;;  %9877 = vmatprep.subr.bf16.mxu1 %v14057_v58  ;;  %v14095_v57 = vcombine.high %v3688_v45, %v3692_v46  ;;  %v14097_v58 = vcombine.high %v3689_v47, %v3693_v48  ;;  %v3724_v5 = vld [vmem:[%s22497_s6 + $0xf60] sm:$0xff]  ;;  %v3725_v39 = vld [vmem:[%s22497_s6 + $0xf68] sm:$0xff] }
 0x3fa   : > { %9550 = vmatpush1.bf16.msra.mxu0 %v14054_v7  ;;  %9878 = vmatpush1.bf16.msra.mxu1 %v14056_v10  ;;  %v14094_v7 = vcombine.low %v3688_v45, %v3692_v46  ;;  %v14096_v10 = vcombine.low %v3689_v47, %v3693_v48  ;;  %v3728_v45 = vld [vmem:[%s22497_s6 + $0xf80] sm:$0xff]  ;;  %v3729_v47 = vld [vmem:[%s22497_s6 + $0xf88] sm:$0xff] }
 0x3fb   : > { %9551 = vmatprep.subr.bf16.mxu0 %v14063_v11  ;;  %9879 = vmatprep.subr.bf16.mxu1 %v14065_v12  ;;  %v14103_v11 = vcombine.high %v3696_v59, %v3700_v62  ;;  %v14105_v12 = vcombine.high %v3697_v1, %v3701_v2  ;;  %v3732_v46 = vld [vmem:[%s22497_s6 + $0xfa0] sm:$0xff]  ;;  %v3733_v48 = vld [vmem:[%s22497_s6 + $0xfa8] sm:$0xff] }
 0x3fe   : > { %9552 = vmatpush1.bf16.msra.mxu0 %v14062_v25  ;;  %9880 = vmatpush1.bf16.msra.mxu1 %v14064_v26  ;;  %v14102_v25 = vcombine.low %v3696_v59, %v3700_v62  ;;  %v14104_v26 = vcombine.low %v3697_v1, %v3701_v2  ;;  %v3736_v59 = vld [vmem:[%s22497_s6 + $0xfc0] sm:$0xff]  ;;  %v3737_v1 = vld [vmem:[%s22497_s6 + $0xfc8] sm:$0xff] }
 0x3ff   : > { %9553 = vmatprep.subr.bf16.mxu0 %v14071_v27  ;;  %9881 = vmatprep.subr.bf16.mxu1 %v14073_v28  ;;  %v14111_v27 = vcombine.high %v3704_v14, %v3708_v15  ;;  %v14113_v28 = vcombine.high %v3705_v60, %v3709_v16  ;;  %v3740_v62 = vld [vmem:[%s22497_s6 + $0xfe0] sm:$0xff]  ;;  %v3741_v2 = vld [vmem:[%s22497_s6 + $0xfe8] sm:$0xff] }
 0x402   : > { %9554 = vmatpush1.bf16.msra.mxu0 %v14070_v19  ;;  %9882 = vmatpush1.bf16.msra.mxu1 %v14072_v20  ;;  %v14110_v19 = vcombine.low %v3704_v14, %v3708_v15  ;;  %v14112_v20 = vcombine.low %v3705_v60, %v3709_v16  ;;  %v3744_v14 = vld [vmem:[%s22497_s6 + $0x1000] sm:$0xff]  ;;  %v3745_v60 = vld [vmem:[%s22497_s6 + $0x1008] sm:$0xff] }
 0x403   : > { %9555 = vmatprep.subr.bf16.mxu0 %v14079_v32  ;;  %9883 = vmatprep.subr.bf16.mxu1 %v14081_v33  ;;  %v14119_v32 = vcombine.high %v3712_v22, %v3716_v29  ;;  %v14121_v33 = vcombine.high %v3713_v21, %v3717_v30  ;;  %v3748_v15 = vld [vmem:[%s22497_s6 + $0x1020] sm:$0xff]  ;;  %v3749_v16 = vld [vmem:[%s22497_s6 + $0x1028] sm:$0xff] }
 0x406   : > { %9556 = vmatpush1.bf16.msra.mxu0 %v14078_v40  ;;  %9884 = vmatpush1.bf16.msra.mxu1 %v14080_v41  ;;  %v14118_v40 = vcombine.low %v3712_v22, %v3716_v29  ;;  %v14120_v41 = vcombine.low %v3713_v21, %v3717_v30  ;;  %v3752_v22 = vld [vmem:[%s22497_s6 + $0x1040] sm:$0xff]  ;;  %v3753_v21 = vld [vmem:[%s22497_s6 + $0x1048] sm:$0xff] }
 0x407   : > { %9557 = vmatprep.subr.bf16.mxu0 %v14087_v43  ;;  %9885 = vmatprep.subr.bf16.mxu1 %v14089_v44  ;;  %v14127_v43 = vcombine.high %v3720_v36, %v3724_v5  ;;  %v14129_v44 = vcombine.high %v3721_v17, %v3725_v39  ;;  %v3756_v29 = vld [vmem:[%s22497_s6 + $0x1060] sm:$0xff]  ;;  %v3757_v30 = vld [vmem:[%s22497_s6 + $0x1068] sm:$0xff] }
 0x40a   : > { %9558 = vmatpush1.bf16.msra.mxu0 %v14086_v55  ;;  %9886 = vmatpush1.bf16.msra.mxu1 %v14088_v18  ;;  %v14126_v55 = vcombine.low %v3720_v36, %v3724_v5  ;;  %v14128_v18 = vcombine.low %v3721_v17, %v3725_v39  ;;  %v14159_v36 = vcombine.high %v3752_v22, %v3756_v29  ;;  %v3760_v17 = vld [vmem:[%s22497_s6 + $0x1080] sm:$0xff] }
 0x40b   : > { %9559 = vmatprep.subr.bf16.mxu0 %v14095_v57  ;;  %9887 = vmatprep.subr.bf16.mxu1 %v14097_v58  ;;  %v14135_v57 = vcombine.high %v3728_v45, %v3732_v46  ;;  %v14137_v58 = vcombine.high %v3729_v47, %v3733_v48  ;;  %v14161_v5 = vcombine.high %v3753_v21, %v3757_v30  ;;  %v3764_v39 = vld [vmem:[%s22497_s6 + $0x10a0] sm:$0xff] }
 0x40e   : > { %9560 = vmatpush1.bf16.msra.mxu0 %v14094_v7  ;;  %9888 = vmatpush1.bf16.msra.mxu1 %v14096_v10  ;;  %v14134_v7 = vcombine.low %v3728_v45, %v3732_v46  ;;  %v14136_v10 = vcombine.low %v3729_v47, %v3733_v48  ;;  %v3768_v45 = vld [vmem:[%s22497_s6 + $0x10c0] sm:$0xff]  ;;  %v3769_v47 = vld [vmem:[%s22497_s6 + $0x10c8] sm:$0xff] }
 0x40f   : > { %9561 = vmatprep.subr.bf16.mxu0 %v14103_v11  ;;  %9889 = vmatprep.subr.bf16.mxu1 %v14105_v12  ;;  %v14143_v11 = vcombine.high %v3736_v59, %v3740_v62  ;;  %v14145_v12 = vcombine.high %v3737_v1, %v3741_v2  ;;  %v3772_v46 = vld [vmem:[%s22497_s6 + $0x10e0] sm:$0xff]  ;;  %v3773_v48 = vld [vmem:[%s22497_s6 + $0x10e8] sm:$0xff] }
 0x412   : > { %9562 = vmatpush1.bf16.msra.mxu0 %v14102_v25  ;;  %9890 = vmatpush1.bf16.msra.mxu1 %v14104_v26  ;;  %v14142_v25 = vcombine.low %v3736_v59, %v3740_v62  ;;  %v14144_v26 = vcombine.low %v3737_v1, %v3741_v2  ;;  %v3776_v59 = vld [vmem:[%s22497_s6 + $0x1100] sm:$0xff]  ;;  %v3777_v1 = vld [vmem:[%s22497_s6 + $0x1108] sm:$0xff] }
 0x413   : > { %9563 = vmatprep.subr.bf16.mxu0 %v14111_v27  ;;  %9891 = vmatprep.subr.bf16.mxu1 %v14113_v28  ;;  %v14151_v27 = vcombine.high %v3744_v14, %v3748_v15  ;;  %v14153_v28 = vcombine.high %v3745_v60, %v3749_v16  ;;  %v3780_v62 = vld [vmem:[%s22497_s6 + $0x1120] sm:$0xff]  ;;  %v3781_v2 = vld [vmem:[%s22497_s6 + $0x1128] sm:$0xff] }
 0x416   : > { %9564 = vmatpush1.bf16.msra.mxu0 %v14110_v19  ;;  %9892 = vmatpush1.bf16.msra.mxu1 %v14112_v20  ;;  %v14150_v19 = vcombine.low %v3744_v14, %v3748_v15  ;;  %v19181_v20 = vpack.c.bf16 %v18607_v42, %v18607_v42  ;;  %v3761_v42 = vld [vmem:[%s22497_s6 + $0x1088] sm:$0xff]  ;;  %v3784_v14 = vld [vmem:[%s22497_s6 + $0x1140] sm:$0xff] }
 0x417   : > { %9565 = vmatprep.subr.bf16.mxu0 %v14119_v32  ;;  %9893 = vmatprep.subr.bf16.mxu1 %v14121_v33  ;;  %v14152_v32 = vcombine.low %v3745_v60, %v3749_v16  ;;  %v19185_v33 = vpack.c.bf16 %v18625_v52, %v18625_v52  ;;  %v3765_v52 = vld [vmem:[%s22497_s6 + $0x10a8] sm:$0xff]  ;;  %v3788_v15 = vld [vmem:[%s22497_s6 + $0x1160] sm:$0xff] }
 0x418   : > { %v3785_v60 = vld [vmem:[%s22497_s6 + $0x1148] sm:$0xff] }
 0x419   : > { %v3789_v16 = vld [vmem:[%s22497_s6 + $0x1168] sm:$0xff] }
 0x41a   : > { %9566 = vmatpush1.bf16.msra.mxu0 %v14118_v40  ;;  %9894 = vmatpush1.bf16.msra.mxu1 %v14120_v41  ;;  %v14158_v40 = vcombine.low %v3752_v22, %v3756_v29  ;;  %v14160_v41 = vcombine.low %v3753_v21, %v3757_v30  ;;  %v3792_v22 = vld [vmem:[%s22497_s6 + $0x1180] sm:$0xff]  ;;  %v3793_v21 = vld [vmem:[%s22497_s6 + $0x1188] sm:$0xff] }
 0x41b   : > { %9567 = vmatprep.subr.bf16.mxu0 %v14127_v43  ;;  %9895 = vmatprep.subr.bf16.mxu1 %v14129_v44  ;;  %v14167_v43 = vcombine.high %v3760_v17, %v3764_v39  ;;  %v14169_v44 = vcombine.high %v3761_v42, %v3765_v52  ;;  %v3796_v29 = vld [vmem:[%s22497_s6 + $0x11a0] sm:$0xff]  ;;  %v3797_v30 = vld [vmem:[%s22497_s6 + $0x11a8] sm:$0xff] }
 0x41e   : > { %9568 = vmatpush1.bf16.msra.mxu0 %v14126_v55  ;;  %9896 = vmatpush1.bf16.msra.mxu1 %v14128_v18  ;;  %v14166_v55 = vcombine.low %v3760_v17, %v3764_v39  ;;  %v14168_v18 = vcombine.low %v3761_v42, %v3765_v52  ;;  %v3800_v17 = vld [vmem:[%s22497_s6 + $0x11c0] sm:$0xff]  ;;  %v3801_v42 = vld [vmem:[%s22497_s6 + $0x11c8] sm:$0xff] }
 0x41f   : > { %9569 = vmatprep.subr.bf16.mxu0 %v14135_v57  ;;  %9897 = vmatprep.subr.bf16.mxu1 %v14137_v58  ;;  %v14175_v57 = vcombine.high %v3768_v45, %v3772_v46  ;;  %v14177_v58 = vcombine.high %v3769_v47, %v3773_v48  ;;  %v3804_v39 = vld [vmem:[%s22497_s6 + $0x11e0] sm:$0xff]  ;;  %v3805_v52 = vld [vmem:[%s22497_s6 + $0x11e8] sm:$0xff] }
 0x422   : > { %9570 = vmatpush1.bf16.msra.mxu0 %v14134_v7  ;;  %9898 = vmatpush1.bf16.msra.mxu1 %v14136_v10  ;;  %v14174_v7 = vcombine.low %v3768_v45, %v3772_v46  ;;  %v14176_v10 = vcombine.low %v3769_v47, %v3773_v48  ;;  %v3808_v45 = vld [vmem:[%s22497_s6 + $0x1200] sm:$0xff]  ;;  %v3809_v47 = vld [vmem:[%s22497_s6 + $0x1208] sm:$0xff] }
 0x423   : > { %9571 = vmatprep.subr.bf16.mxu0 %v14143_v11  ;;  %9899 = vmatprep.subr.bf16.mxu1 %v14145_v12  ;;  %v14183_v11 = vcombine.high %v3776_v59, %v3780_v62  ;;  %v14185_v12 = vcombine.high %v3777_v1, %v3781_v2  ;;  %v3812_v46 = vld [vmem:[%s22497_s6 + $0x1220] sm:$0xff]  ;;  %v3813_v48 = vld [vmem:[%s22497_s6 + $0x1228] sm:$0xff] }
 0x426   : > { %9572 = vmatpush1.bf16.msra.mxu0 %v14142_v25  ;;  %9900 = vmatpush1.bf16.msra.mxu1 %v14144_v26  ;;  %v14182_v25 = vcombine.low %v3776_v59, %v3780_v62  ;;  %v14184_v26 = vcombine.low %v3777_v1, %v3781_v2  ;;  %v3816_v59 = vld [vmem:[%s22497_s6 + $0x1240] sm:$0xff]  ;;  %v3817_v1 = vld [vmem:[%s22497_s6 + $0x1248] sm:$0xff] }
 0x427   : > { %9582 = vmatprep.subr.bf16.mxu0 %v14151_v27  ;;  %9910 = vmatprep.subr.bf16.mxu1 %v14153_v28  ;;  %v14191_v27 = vcombine.high %v3784_v14, %v3788_v15  ;;  %v14193_v28 = vcombine.high %v3785_v60, %v3789_v16  ;;  %v3820_v62 = vld [vmem:[%s22497_s6 + $0x1260] sm:$0xff]  ;;  %v3821_v2 = vld [vmem:[%s22497_s6 + $0x1268] sm:$0xff] }
 0x429   : > { %9574 = vmatmul.mubr.bf16.vlgmr.msra.gmra.mrb[48].mxu0 %v19181_v20  ;;  %9902 = vmatmul.mubr.bf16.vlgmr.msra.gmra.mrb[48].mxu1 %v19181_v20 }
 0x42a   : > { %9583 = vmatpush1.bf16.msra.mxu0 %v14150_v19  ;;  %9614 = vmatprep.mubr.bf16.mxu0 %v19185_v33  ;;  %v14190_v19 = vcombine.low %v3784_v14, %v3788_v15  ;;  %v3824_v14 = vld [vmem:[%s22497_s6 + $0x1280] sm:$0xff] }
 0x42b   : > { %9911 = vmatpush1.bf16.msra.mxu1 %v14152_v32  ;;  %9942 = vmatprep.mubr.bf16.mxu1 %v19185_v33  ;;  %v14192_v32 = vcombine.low %v3785_v60, %v3789_v16  ;;  %v3828_v15 = vld [vmem:[%s22497_s6 + $0x12a0] sm:$0xff]  ;;  %v3825_v60 = vld [vmem:[%s22497_s6 + $0x1288] sm:$0xff] }
 0x42c   : > { %9584 = vmatprep.subr.bf16.mxu0 %v14159_v36  ;;  %9912 = vmatprep.subr.bf16.mxu1 %v14161_v5  ;;  %v14199_v36 = vcombine.high %v3792_v22, %v3796_v29  ;;  %v14201_v5 = vcombine.high %v3793_v21, %v3797_v30  ;;  %v3829_v16 = vld [vmem:[%s22497_s6 + $0x12a8] sm:$0xff] }
 0x42e   : > { %9585 = vmatpush1.bf16.msra.mxu0 %v14158_v40  ;;  %v14198_v40 = vcombine.low %v3792_v22, %v3796_v29  ;;  %v3832_v22 = vld [vmem:[%s22497_s6 + $0x12c0] sm:$0xff] }
 0x42f   : > { %9913 = vmatpush1.bf16.msra.mxu1 %v14160_v41  ;;  %9586 = vmatprep.subr.bf16.mxu0 %v14167_v43  ;;  %v14200_v41 = vcombine.low %v3793_v21, %v3797_v30  ;;  %v14207_v43 = vcombine.high %v3800_v17, %v3804_v39  ;;  %v3836_v29 = vld [vmem:[%s22497_s6 + $0x12e0] sm:$0xff]  ;;  %v3833_v21 = vld [vmem:[%s22497_s6 + $0x12c8] sm:$0xff] }
 0x430   : > { %9914 = vmatprep.subr.bf16.mxu1 %v14169_v44  ;;  %v14209_v44 = vcombine.high %v3801_v42, %v3805_v52  ;;  %v3837_v30 = vld [vmem:[%s22497_s6 + $0x12e8] sm:$0xff] }
 0x432   : > { %9587 = vmatpush1.bf16.msra.mxu0 %v14166_v55  ;;  %v14206_v55 = vcombine.low %v3800_v17, %v3804_v39  ;;  %v3840_v17 = vld [vmem:[%s22497_s6 + $0x1300] sm:$0xff] }
 0x433   : > { %9915 = vmatpush1.bf16.msra.mxu1 %v14168_v18  ;;  %9588 = vmatprep.subr.bf16.mxu0 %v14175_v57  ;;  %v14208_v18 = vcombine.low %v3801_v42, %v3805_v52  ;;  %v14215_v57 = vcombine.high %v3808_v45, %v3812_v46  ;;  %v3844_v39 = vld [vmem:[%s22497_s6 + $0x1320] sm:$0xff]  ;;  %v3841_v42 = vld [vmem:[%s22497_s6 + $0x1308] sm:$0xff] }
 0x434   : > { %9916 = vmatprep.subr.bf16.mxu1 %v14177_v58  ;;  %v14217_v58 = vcombine.high %v3809_v47, %v3813_v48  ;;  %v3845_v52 = vld [vmem:[%s22497_s6 + $0x1328] sm:$0xff] }
 0x436   : > { %9589 = vmatpush1.bf16.msra.mxu0 %v14174_v7  ;;  %v14214_v7 = vcombine.low %v3808_v45, %v3812_v46  ;;  %v3848_v45 = vld [vmem:[%s22497_s6 + $0x1340] sm:$0xff] }
 0x437   : > { %9917 = vmatpush1.bf16.msra.mxu1 %v14176_v10  ;;  %9590 = vmatprep.subr.bf16.mxu0 %v14183_v11  ;;  %v14216_v10 = vcombine.low %v3809_v47, %v3813_v48  ;;  %v14223_v11 = vcombine.high %v3816_v59, %v3820_v62  ;;  %v3852_v46 = vld [vmem:[%s22497_s6 + $0x1360] sm:$0xff]  ;;  %v3849_v47 = vld [vmem:[%s22497_s6 + $0x1348] sm:$0xff] }
 0x438   : > { %9918 = vmatprep.subr.bf16.mxu1 %v14185_v12  ;;  %v14225_v12 = vcombine.high %v3817_v1, %v3821_v2  ;;  %v3853_v48 = vld [vmem:[%s22497_s6 + $0x1368] sm:$0xff] }
 0x43a   : > { %9591 = vmatpush1.bf16.msra.mxu0 %v14182_v25  ;;  %v14222_v25 = vcombine.low %v3816_v59, %v3820_v62  ;;  %v3856_v59 = vld [vmem:[%s22497_s6 + $0x1380] sm:$0xff] }
 0x43b   : > { %9919 = vmatpush1.bf16.msra.mxu1 %v14184_v26  ;;  %9592 = vmatprep.subr.bf16.mxu0 %v14191_v27  ;;  %v14224_v26 = vcombine.low %v3817_v1, %v3821_v2  ;;  %v14231_v27 = vcombine.high %v3824_v14, %v3828_v15  ;;  %v3860_v62 = vld [vmem:[%s22497_s6 + $0x13a0] sm:$0xff]  ;;  %v3857_v1 = vld [vmem:[%s22497_s6 + $0x1388] sm:$0xff] }
 0x43c   : > { %9920 = vmatprep.subr.bf16.mxu1 %v14193_v28  ;;  %v14233_v28 = vcombine.high %v3825_v60, %v3829_v16  ;;  %v3861_v2 = vld [vmem:[%s22497_s6 + $0x13a8] sm:$0xff] }
 0x43e   : > { %9593 = vmatpush1.bf16.msra.mxu0 %v14190_v19  ;;  %v14230_v19 = vcombine.low %v3824_v14, %v3828_v15  ;;  %v3864_v14 = vld [vmem:[%s22497_s6 + $0x13c0] sm:$0xff] }
 0x43f   : > { %9921 = vmatpush1.bf16.msra.mxu1 %v14192_v32  ;;  %9594 = vmatprep.subr.bf16.mxu0 %v14199_v36  ;;  %v14232_v32 = vcombine.low %v3825_v60, %v3829_v16  ;;  %v14239_v36 = vcombine.high %v3832_v22, %v3836_v29  ;;  %v3868_v15 = vld [vmem:[%s22497_s6 + $0x13e0] sm:$0xff]  ;;  %v3865_v60 = vld [vmem:[%s22497_s6 + $0x13c8] sm:$0xff] }
 0x440   : > { %9922 = vmatprep.subr.bf16.mxu1 %v14201_v5  ;;  %v14241_v5 = vcombine.high %v3833_v21, %v3837_v30  ;;  %v3869_v16 = vld [vmem:[%s22497_s6 + $0x13e8] sm:$0xff] }
 0x442   : > { %9595 = vmatpush1.bf16.msra.mxu0 %v14198_v40  ;;  %v14238_v40 = vcombine.low %v3832_v22, %v3836_v29  ;;  %v3872_v22 = vld [vmem:[%s22497_s6 + $0x1400] sm:$0xff] }
 0x443   : > { %9923 = vmatpush1.bf16.msra.mxu1 %v14200_v41  ;;  %9596 = vmatprep.subr.bf16.mxu0 %v14207_v43  ;;  %v14240_v41 = vcombine.low %v3833_v21, %v3837_v30  ;;  %v14247_v43 = vcombine.high %v3840_v17, %v3844_v39  ;;  %v3876_v29 = vld [vmem:[%s22497_s6 + $0x1420] sm:$0xff]  ;;  %v3873_v21 = vld [vmem:[%s22497_s6 + $0x1408] sm:$0xff] }
 0x444   : > { %9924 = vmatprep.subr.bf16.mxu1 %v14209_v44  ;;  %v14249_v44 = vcombine.high %v3841_v42, %v3845_v52  ;;  %v3877_v30 = vld [vmem:[%s22497_s6 + $0x1428] sm:$0xff] }
 0x446   : > { %9597 = vmatpush1.bf16.msra.mxu0 %v14206_v55  ;;  %v14246_v55 = vcombine.low %v3840_v17, %v3844_v39  ;;  %v3880_v17 = vld [vmem:[%s22497_s6 + $0x1440] sm:$0xff] }
 0x447   : > { %9925 = vmatpush1.bf16.msra.mxu1 %v14208_v18  ;;  %9598 = vmatprep.subr.bf16.mxu0 %v14215_v57  ;;  %v14248_v18 = vcombine.low %v3841_v42, %v3845_v52  ;;  %v14255_v57 = vcombine.high %v3848_v45, %v3852_v46  ;;  %v3884_v39 = vld [vmem:[%s22497_s6 + $0x1460] sm:$0xff]  ;;  %v14278_v42 = vcombine.low %v3872_v22, %v3876_v29  ;;  %v3881_v52 = vld [vmem:[%s22497_s6 + $0x1448] sm:$0xff] }
 0x448   : > { %9926 = vmatprep.subr.bf16.mxu1 %v14217_v58  ;;  %v14257_v58 = vcombine.high %v3849_v47, %v3853_v48 }
 0x44a   : > { %9599 = vmatpush1.bf16.msra.mxu0 %v14214_v7  ;;  %v14254_v7 = vcombine.low %v3848_v45, %v3852_v46  ;;  %v3888_v45 = vld [vmem:[%s22497_s6 + $0x1480] sm:$0xff] }
 0x44b   : > { %9927 = vmatpush1.bf16.msra.mxu1 %v14216_v10  ;;  %9600 = vmatprep.subr.bf16.mxu0 %v14223_v11  ;;  %v14256_v10 = vcombine.low %v3849_v47, %v3853_v48  ;;  %v14263_v11 = vcombine.high %v3856_v59, %v3860_v62  ;;  %v3892_v46 = vld [vmem:[%s22497_s6 + $0x14a0] sm:$0xff]  ;;  %v19395_v47 = vpack.c.bf16 %v18632_v61, %v18632_v61  ;;  %v3889_v48 = vld [vmem:[%s22497_s6 + $0x1488] sm:$0xff] }
 0x44c   : > { %9928 = vmatprep.subr.bf16.mxu1 %v14225_v12  ;;  %v14265_v12 = vcombine.high %v3857_v1, %v3861_v2 }
 0x44e   : > { %9601 = vmatpush1.bf16.msra.mxu0 %v14222_v25  ;;  %v14262_v25 = vcombine.low %v3856_v59, %v3860_v62  ;;  %v3896_v59 = vld [vmem:[%s22497_s6 + $0x14c0] sm:$0xff] }
 0x44f   : > { %9929 = vmatpush1.bf16.msra.mxu1 %v14224_v26  ;;  %9602 = vmatprep.subr.bf16.mxu0 %v14231_v27  ;;  %v14264_v26 = vcombine.low %v3857_v1, %v3861_v2  ;;  %v14271_v27 = vcombine.high %v3864_v14, %v3868_v15  ;;  %v3900_v62 = vld [vmem:[%s22497_s6 + $0x14e0] sm:$0xff]  ;;  %v3897_v1 = vld [vmem:[%s22497_s6 + $0x14c8] sm:$0xff] }
 0x450   : > { %9930 = vmatprep.subr.bf16.mxu1 %v14233_v28  ;;  %v14273_v28 = vcombine.high %v3865_v60, %v3869_v16  ;;  %v3901_v2 = vld [vmem:[%s22497_s6 + $0x14e8] sm:$0xff] }
 0x452   : > { %9603 = vmatpush1.bf16.msra.mxu0 %v14230_v19  ;;  %v14270_v19 = vcombine.low %v3864_v14, %v3868_v15  ;;  %v3904_v14 = vld [vmem:[%s22497_s6 + $0x1500] sm:$0xff] }
 0x453   : > { %9931 = vmatpush1.bf16.msra.mxu1 %v14232_v32  ;;  %9604 = vmatprep.subr.bf16.mxu0 %v14239_v36  ;;  %v14272_v32 = vcombine.low %v3865_v60, %v3869_v16  ;;  %v14279_v36 = vcombine.high %v3872_v22, %v3876_v29  ;;  %v3908_v15 = vld [vmem:[%s22497_s6 + $0x1520] sm:$0xff]  ;;  %v3905_v60 = vld [vmem:[%s22497_s6 + $0x1508] sm:$0xff] }
 0x454   : > { %9932 = vmatprep.subr.bf16.mxu1 %v14241_v5  ;;  %v14281_v5 = vcombine.high %v3873_v21, %v3877_v30  ;;  %v3909_v16 = vld [vmem:[%s22497_s6 + $0x1528] sm:$0xff]  ;;  %v3912_v22 = vld [vmem:[%s22497_s6 + $0x1540] sm:$0xff] }
 0x455   : > { %v3916_v29 = vld [vmem:[%s22497_s6 + $0x1560] sm:$0xff] }
 0x456   : > { %9605 = vmatpush1.bf16.msra.mxu0 %v14238_v40  ;;  %v3885_v40 = vld [vmem:[%s22497_s6 + $0x1468] sm:$0xff] }
 0x457   : > { %9933 = vmatpush1.bf16.msra.mxu1 %v14240_v41  ;;  %9606 = vmatprep.subr.bf16.mxu0 %v14247_v43  ;;  %v19385_v41 = vpack.c.bf16 %v18623_v51, %v18623_v51  ;;  %v14280_v43 = vcombine.low %v3873_v21, %v3877_v30  ;;  %v14289_v51 = vcombine.high %v3881_v52, %v3885_v40  ;;  %v3913_v21 = vld [vmem:[%s22497_s6 + $0x1548] sm:$0xff] }
 0x458   : > { %9934 = vmatprep.subr.bf16.mxu1 %v14249_v44  ;;  %v14287_v44 = vcombine.high %v3880_v17, %v3884_v39  ;;  %v14288_v61 = vcombine.low %v3881_v52, %v3885_v40  ;;  %v3917_v30 = vld [vmem:[%s22497_s6 + $0x1568] sm:$0xff]  ;;  %v14318_v40 = vcombine.low %v3912_v22, %v3916_v29 }
 0x459   : > { %v3925_v52 = vld [vmem:[%s22497_s6 + $0x15a8] sm:$0xff] }
 0x45a   : > { %9607 = vmatpush1.bf16.msra.mxu0 %v14246_v55  ;;  %v3893_v55 = vld [vmem:[%s22497_s6 + $0x14a8] sm:$0xff] }
 0x45b   : > { %9935 = vmatpush1.bf16.msra.mxu1 %v14248_v18  ;;  %9608 = vmatprep.subr.bf16.mxu0 %v14255_v57  ;;  %v14286_v18 = vcombine.low %v3880_v17, %v3884_v39  ;;  %v14295_v57 = vcombine.high %v3888_v45, %v3892_v46  ;;  %v3920_v17 = vld [vmem:[%s22497_s6 + $0x1580] sm:$0xff] }
 0x45c   : > { %9936 = vmatprep.subr.bf16.mxu1 %v14257_v58  ;;  %v14297_v58 = vcombine.high %v3889_v48, %v3893_v55  ;;  %v3924_v39 = vld [vmem:[%s22497_s6 + $0x15a0] sm:$0xff] }
 0x45e   : > { %9609 = vmatpush1.bf16.msra.mxu0 %v14254_v7  ;;  %v14294_v7 = vcombine.low %v3888_v45, %v3892_v46  ;;  %v3928_v46 = vld [vmem:[%s22497_s6 + $0x15c0] sm:$0xff] }
 0x45f   : > { %9937 = vmatpush1.bf16.msra.mxu1 %v14256_v10  ;;  %9610 = vmatprep.subr.bf16.mxu0 %v14263_v11  ;;  %v14296_v10 = vcombine.low %v3889_v48, %v3893_v55  ;;  %v14303_v11 = vcombine.high %v3896_v59, %v3900_v62  ;;  %v3929_v48 = vld [vmem:[%s22497_s6 + $0x15c8] sm:$0xff] }
 0x460   : > { %9938 = vmatprep.subr.bf16.mxu1 %v14265_v12  ;;  %v14305_v12 = vcombine.high %v3897_v1, %v3901_v2  ;;  %v3933_v55 = vld [vmem:[%s22497_s6 + $0x15e8] sm:$0xff] }
 0x462   : > { %9611 = vmatpush1.bf16.msra.mxu0 %v14262_v25  ;;  %v14302_v25 = vcombine.low %v3896_v59, %v3900_v62  ;;  %v3936_v59 = vld [vmem:[%s22497_s6 + $0x1600] sm:$0xff] }
 0x463   : > { %9939 = vmatpush1.bf16.msra.mxu1 %v14264_v26  ;;  %9612 = vmatprep.subr.bf16.mxu0 %v14271_v27  ;;  %v14304_v26 = vcombine.low %v3897_v1, %v3901_v2  ;;  %v14311_v27 = vcombine.high %v3904_v14, %v3908_v15  ;;  %v3940_v62 = vld [vmem:[%s22497_s6 + $0x1620] sm:$0xff]  ;;  %v3937_v1 = vld [vmem:[%s22497_s6 + $0x1608] sm:$0xff] }
 0x464   : > { %9940 = vmatprep.subr.bf16.mxu1 %v14273_v28  ;;  %v14313_v28 = vcombine.high %v3905_v60, %v3909_v16  ;;  %v3941_v2 = vld [vmem:[%s22497_s6 + $0x1628] sm:$0xff] }
 0x466   : > { %9613 = vmatpush1.bf16.msra.mxu0 %v14270_v19  ;;  %v14310_v19 = vcombine.low %v3904_v14, %v3908_v15  ;;  %v3944_v14 = vld [vmem:[%s22497_s6 + $0x1640] sm:$0xff] }
 0x467   : > { %9941 = vmatpush1.bf16.msra.mxu1 %v14272_v32  ;;  %9623 = vmatprep.subr.bf16.mxu0 %v14279_v36  ;;  %v14312_v32 = vcombine.low %v3905_v60, %v3909_v16  ;;  %v14319_v36 = vcombine.high %v3912_v22, %v3916_v29  ;;  %v3948_v15 = vld [vmem:[%s22497_s6 + $0x1660] sm:$0xff]  ;;  %v3945_v60 = vld [vmem:[%s22497_s6 + $0x1648] sm:$0xff] }
 0x468   : > { %9951 = vmatprep.subr.bf16.mxu1 %v14281_v5  ;;  %v14321_v5 = vcombine.high %v3913_v21, %v3917_v30  ;;  %v3949_v16 = vld [vmem:[%s22497_s6 + $0x1668] sm:$0xff]  ;;  %v3952_v22 = vld [vmem:[%s22497_s6 + $0x1680] sm:$0xff] }
 0x469   : > { %9615 = vmatmul.mubr.bf16.vlgmr.msra.gmra.mrb[48].mxu0 %v19385_v41  ;;  %v3956_v29 = vld [vmem:[%s22497_s6 + $0x16a0] sm:$0xff] }
 0x46a   : > { %9943 = vmatmul.mubr.bf16.vlgmr.msra.gmra.mrb[48].mxu1 %v19385_v41  ;;  %9624 = vmatpush1.bf16.msra.mxu0 %v14278_v42  ;;  %v3921_v42 = vld [vmem:[%s22497_s6 + $0x1588] sm:$0xff] }
 0x46b   : > { %9655 = vmatprep.mubr.bf16.mxu0 %v19395_v47  ;;  %9952 = vmatpush1.bf16.msra.mxu1 %v14280_v43  ;;  %v14320_v43 = vcombine.low %v3913_v21, %v3917_v30  ;;  %v14329_v45 = vcombine.high %v3921_v42, %v3925_v52  ;;  %v3953_v21 = vld [vmem:[%s22497_s6 + $0x1688] sm:$0xff] }
 0x46c   : > { %9983 = vmatprep.mubr.bf16.mxu1 %v19395_v47  ;;  %9625 = vmatprep.subr.bf16.mxu0 %v14287_v44  ;;  %v14327_v44 = vcombine.high %v3920_v17, %v3924_v39  ;;  %v3957_v30 = vld [vmem:[%s22497_s6 + $0x16a8] sm:$0xff] }
 0x46d   : > { %9953 = vmatprep.subr.bf16.mxu1 %v14289_v51  ;;  %v3932_v51 = vld [vmem:[%s22497_s6 + $0x15e0] sm:$0xff] }
 0x46e   : > { %9626 = vmatpush1.bf16.msra.mxu0 %v14286_v18  ;;  %v14326_v18 = vcombine.low %v3920_v17, %v3924_v39  ;;  %v3960_v17 = vld [vmem:[%s22497_s6 + $0x16c0] sm:$0xff] }
 0x46f   : > { %9954 = vmatpush1.bf16.msra.mxu1 %v14288_v61  ;;  %9627 = vmatprep.subr.bf16.mxu0 %v14295_v57  ;;  %v14328_v61 = vcombine.low %v3921_v42, %v3925_v52  ;;  %v14335_v57 = vcombine.high %v3928_v46, %v3932_v51  ;;  %v3964_v39 = vld [vmem:[%s22497_s6 + $0x16e0] sm:$0xff]  ;;  %v3961_v42 = vld [vmem:[%s22497_s6 + $0x16c8] sm:$0xff] }
 0x470   : > { %9955 = vmatprep.subr.bf16.mxu1 %v14297_v58  ;;  %v14337_v58 = vcombine.high %v3929_v48, %v3933_v55  ;;  %v3965_v52 = vld [vmem:[%s22497_s6 + $0x16e8] sm:$0xff] }
 0x472   : > { %9628 = vmatpush1.bf16.msra.mxu0 %v14294_v7  ;;  %v14334_v7 = vcombine.low %v3928_v46, %v3932_v51  ;;  %v3968_v46 = vld [vmem:[%s22497_s6 + $0x1700] sm:$0xff] }
 0x473   : > { %9956 = vmatpush1.bf16.msra.mxu1 %v14296_v10  ;;  %9629 = vmatprep.subr.bf16.mxu0 %v14303_v11  ;;  %v14336_v10 = vcombine.low %v3929_v48, %v3933_v55  ;;  %v14343_v11 = vcombine.high %v3936_v59, %v3940_v62  ;;  %v3972_v51 = vld [vmem:[%s22497_s6 + $0x1720] sm:$0xff]  ;;  %v3969_v48 = vld [vmem:[%s22497_s6 + $0x1708] sm:$0xff] }
 0x474   : > { %9957 = vmatprep.subr.bf16.mxu1 %v14305_v12  ;;  %v14345_v12 = vcombine.high %v3937_v1, %v3941_v2  ;;  %v3973_v55 = vld [vmem:[%s22497_s6 + $0x1728] sm:$0xff] }
 0x476   : > { %9630 = vmatpush1.bf16.msra.mxu0 %v14302_v25  ;;  %v14342_v25 = vcombine.low %v3936_v59, %v3940_v62  ;;  %v3976_v59 = vld [vmem:[%s22497_s6 + $0x1740] sm:$0xff] }
 0x477   : > { %9958 = vmatpush1.bf16.msra.mxu1 %v14304_v26  ;;  %9631 = vmatprep.subr.bf16.mxu0 %v14311_v27  ;;  %v14344_v26 = vcombine.low %v3937_v1, %v3941_v2  ;;  %v14351_v27 = vcombine.high %v3944_v14, %v3948_v15  ;;  %v3980_v62 = vld [vmem:[%s22497_s6 + $0x1760] sm:$0xff]  ;;  %v3977_v1 = vld [vmem:[%s22497_s6 + $0x1748] sm:$0xff] }
 0x478   : > { %9959 = vmatprep.subr.bf16.mxu1 %v14313_v28  ;;  %v14353_v28 = vcombine.high %v3945_v60, %v3949_v16  ;;  %v3981_v2 = vld [vmem:[%s22497_s6 + $0x1768] sm:$0xff] }
 0x47a   : > { %9632 = vmatpush1.bf16.msra.mxu0 %v14310_v19  ;;  %v14350_v19 = vcombine.low %v3944_v14, %v3948_v15  ;;  %v3984_v14 = vld [vmem:[%s22497_s6 + $0x1780] sm:$0xff] }
 0x47b   : > { %9960 = vmatpush1.bf16.msra.mxu1 %v14312_v32  ;;  %9633 = vmatprep.subr.bf16.mxu0 %v14319_v36  ;;  %v14352_v32 = vcombine.low %v3945_v60, %v3949_v16  ;;  %v14359_v36 = vcombine.high %v3952_v22, %v3956_v29  ;;  %v3988_v15 = vld [vmem:[%s22497_s6 + $0x17a0] sm:$0xff]  ;;  %v3985_v60 = vld [vmem:[%s22497_s6 + $0x1788] sm:$0xff] }
 0x47c   : > { %9961 = vmatprep.subr.bf16.mxu1 %v14321_v5  ;;  %v14361_v5 = vcombine.high %v3953_v21, %v3957_v30  ;;  %v3989_v16 = vld [vmem:[%s22497_s6 + $0x17a8] sm:$0xff] }
 0x47e   : > { %9634 = vmatpush1.bf16.msra.mxu0 %v14318_v40  ;;  %v14358_v40 = vcombine.low %v3952_v22, %v3956_v29  ;;  %v3992_v22 = vld [vmem:[%s22497_s6 + $0x17c0] sm:$0xff] }
 0x47f   : > { %9962 = vmatpush1.bf16.msra.mxu1 %v14320_v43  ;;  %9635 = vmatprep.subr.bf16.mxu0 %v14327_v44  ;;  %v14360_v43 = vcombine.low %v3953_v21, %v3957_v30  ;;  %v14367_v44 = vcombine.high %v3960_v17, %v3964_v39  ;;  %v3996_v29 = vld [vmem:[%s22497_s6 + $0x17e0] sm:$0xff]  ;;  %v3993_v21 = vld [vmem:[%s22497_s6 + $0x17c8] sm:$0xff] }
 0x480   : > { %9963 = vmatprep.subr.bf16.mxu1 %v14329_v45  ;;  %v14369_v45 = vcombine.high %v3961_v42, %v3965_v52  ;;  %v3997_v30 = vld [vmem:[%s22497_s6 + $0x17e8] sm:$0xff] }
 0x482   : > { %9636 = vmatpush1.bf16.msra.mxu0 %v14326_v18  ;;  %v14366_v18 = vcombine.low %v3960_v17, %v3964_v39  ;;  %v4000_v17 = vld [vmem:[%s22497_s6 + $0x1800] sm:$0xff] }
 0x483   : > { %9964 = vmatpush1.bf16.msra.mxu1 %v14328_v61  ;;  %9637 = vmatprep.subr.bf16.mxu0 %v14335_v57  ;;  %v14368_v61 = vcombine.low %v3961_v42, %v3965_v52  ;;  %v14375_v57 = vcombine.high %v3968_v46, %v3972_v51  ;;  %v4004_v39 = vld [vmem:[%s22497_s6 + $0x1820] sm:$0xff]  ;;  %v4001_v42 = vld [vmem:[%s22497_s6 + $0x1808] sm:$0xff] }
 0x484   : > { %9965 = vmatprep.subr.bf16.mxu1 %v14337_v58  ;;  %v14377_v58 = vcombine.high %v3969_v48, %v3973_v55  ;;  %v4005_v52 = vld [vmem:[%s22497_s6 + $0x1828] sm:$0xff] }
 0x486   : > { %9638 = vmatpush1.bf16.msra.mxu0 %v14334_v7  ;;  %v14374_v7 = vcombine.low %v3968_v46, %v3972_v51  ;;  %v4008_v46 = vld [vmem:[%s22497_s6 + $0x1840] sm:$0xff] }
 0x487   : > { %9966 = vmatpush1.bf16.msra.mxu1 %v14336_v10  ;;  %9639 = vmatprep.subr.bf16.mxu0 %v14343_v11  ;;  %v14376_v10 = vcombine.low %v3969_v48, %v3973_v55  ;;  %v14383_v11 = vcombine.high %v3976_v59, %v3980_v62  ;;  %v4012_v51 = vld [vmem:[%s22497_s6 + $0x1860] sm:$0xff]  ;;  %v14406_v48 = vcombine.low %v4000_v17, %v4004_v39  ;;  %v4009_v55 = vld [vmem:[%s22497_s6 + $0x1848] sm:$0xff] }
 0x488   : > { %9967 = vmatprep.subr.bf16.mxu1 %v14345_v12  ;;  %v14385_v12 = vcombine.high %v3977_v1, %v3981_v2 }
 0x48a   : > { %9640 = vmatpush1.bf16.msra.mxu0 %v14342_v25  ;;  %v14382_v25 = vcombine.low %v3976_v59, %v3980_v62  ;;  %v4016_v59 = vld [vmem:[%s22497_s6 + $0x1880] sm:$0xff] }
 0x48b   : > { %9968 = vmatpush1.bf16.msra.mxu1 %v14344_v26  ;;  %9641 = vmatprep.subr.bf16.mxu0 %v14351_v27  ;;  %v14384_v26 = vcombine.low %v3977_v1, %v3981_v2  ;;  %v14391_v27 = vcombine.high %v3984_v14, %v3988_v15  ;;  %v4020_v62 = vld [vmem:[%s22497_s6 + $0x18a0] sm:$0xff]  ;;  %v19599_v1 = vpack.c.bf16 %v18645_v4, %v18645_v4  ;;  %v4017_v2 = vld [vmem:[%s22497_s6 + $0x1888] sm:$0xff] }
 0x48c   : > { %9969 = vmatprep.subr.bf16.mxu1 %v14353_v28  ;;  %v14393_v28 = vcombine.high %v3985_v60, %v3989_v16 }
 0x48e   : > { %9642 = vmatpush1.bf16.msra.mxu0 %v14350_v19  ;;  %v14390_v19 = vcombine.low %v3984_v14, %v3988_v15  ;;  %v4024_v14 = vld [vmem:[%s22497_s6 + $0x18c0] sm:$0xff] }
 0x48f   : > { %9970 = vmatpush1.bf16.msra.mxu1 %v14352_v32  ;;  %9643 = vmatprep.subr.bf16.mxu0 %v14359_v36  ;;  %v14392_v32 = vcombine.low %v3985_v60, %v3989_v16  ;;  %v14399_v36 = vcombine.high %v3992_v22, %v3996_v29  ;;  %v4028_v15 = vld [vmem:[%s22497_s6 + $0x18e0] sm:$0xff]  ;;  %v4025_v60 = vld [vmem:[%s22497_s6 + $0x18c8] sm:$0xff] }
 0x490   : > { %9971 = vmatprep.subr.bf16.mxu1 %v14361_v5  ;;  %v14401_v5 = vcombine.high %v3993_v21, %v3997_v30  ;;  %v4029_v16 = vld [vmem:[%s22497_s6 + $0x18e8] sm:$0xff] }
 0x492   : > { %9644 = vmatpush1.bf16.msra.mxu0 %v14358_v40  ;;  %v14398_v40 = vcombine.low %v3992_v22, %v3996_v29  ;;  %v4032_v22 = vld [vmem:[%s22497_s6 + $0x1900] sm:$0xff] }
 0x493   : > { %9972 = vmatpush1.bf16.msra.mxu1 %v14360_v43  ;;  %9645 = vmatprep.subr.bf16.mxu0 %v14367_v44  ;;  %v14400_v43 = vcombine.low %v3993_v21, %v3997_v30  ;;  %v14407_v44 = vcombine.high %v4000_v17, %v4004_v39  ;;  %v4036_v29 = vld [vmem:[%s22497_s6 + $0x1920] sm:$0xff]  ;;  %v4033_v21 = vld [vmem:[%s22497_s6 + $0x1908] sm:$0xff] }
 0x494   : > { %9973 = vmatprep.subr.bf16.mxu1 %v14369_v45  ;;  %v14409_v45 = vcombine.high %v4001_v42, %v4005_v52  ;;  %v4037_v30 = vld [vmem:[%s22497_s6 + $0x1928] sm:$0xff]  ;;  %v4040_v17 = vld [vmem:[%s22497_s6 + $0x1940] sm:$0xff] }
 0x495   : > { %v4044_v39 = vld [vmem:[%s22497_s6 + $0x1960] sm:$0xff] }
 0x496   : > { %9646 = vmatpush1.bf16.msra.mxu0 %v14366_v18  ;;  %v4013_v18 = vld [vmem:[%s22497_s6 + $0x1868] sm:$0xff] }
 0x497   : > { %9974 = vmatpush1.bf16.msra.mxu1 %v14368_v61  ;;  %9647 = vmatprep.subr.bf16.mxu0 %v14375_v57  ;;  %v19589_v61 = vpack.c.bf16 %v18627_v56, %v18627_v56  ;;  %v14408_v57 = vcombine.low %v4001_v42, %v4005_v52  ;;  %v14417_v56 = vcombine.high %v4009_v55, %v4013_v18  ;;  %v4041_v42 = vld [vmem:[%s22497_s6 + $0x1948] sm:$0xff] }
 0x498   : > { %9975 = vmatprep.subr.bf16.mxu1 %v14377_v58  ;;  %v14415_v58 = vcombine.high %v4008_v46, %v4012_v51  ;;  %v14416_v4 = vcombine.low %v4009_v55, %v4013_v18  ;;  %v4045_v52 = vld [vmem:[%s22497_s6 + $0x1968] sm:$0xff]  ;;  %v14446_v18 = vcombine.low %v4040_v17, %v4044_v39 }
 0x499   : > { %v4053_v55 = vld [vmem:[%s22497_s6 + $0x19a8] sm:$0xff] }
 0x49a   : > { %9648 = vmatpush1.bf16.msra.mxu0 %v14374_v7  ;;  %v4021_v7 = vld [vmem:[%s22497_s6 + $0x18a8] sm:$0xff] }
 0x49b   : > { %9976 = vmatpush1.bf16.msra.mxu1 %v14376_v10  ;;  %9649 = vmatprep.subr.bf16.mxu0 %v14383_v11  ;;  %v14414_v10 = vcombine.low %v4008_v46, %v4012_v51  ;;  %v14423_v11 = vcombine.high %v4016_v59, %v4020_v62  ;;  %v4048_v46 = vld [vmem:[%s22497_s6 + $0x1980] sm:$0xff] }
 0x49c   : > { %9977 = vmatprep.subr.bf16.mxu1 %v14385_v12  ;;  %v14425_v12 = vcombine.high %v4017_v2, %v4021_v7  ;;  %v4052_v51 = vld [vmem:[%s22497_s6 + $0x19a0] sm:$0xff] }
 0x49e   : > { %9650 = vmatpush1.bf16.msra.mxu0 %v14382_v25  ;;  %v14422_v25 = vcombine.low %v4016_v59, %v4020_v62  ;;  %v4056_v62 = vld [vmem:[%s22497_s6 + $0x19c0] sm:$0xff] }
 0x49f   : > { %9978 = vmatpush1.bf16.msra.mxu1 %v14384_v26  ;;  %9651 = vmatprep.subr.bf16.mxu0 %v14391_v27  ;;  %v14424_v26 = vcombine.low %v4017_v2, %v4021_v7  ;;  %v14431_v27 = vcombine.high %v4024_v14, %v4028_v15  ;;  %v4057_v2 = vld [vmem:[%s22497_s6 + $0x19c8] sm:$0xff] }
 0x4a0   : > { %9979 = vmatprep.subr.bf16.mxu1 %v14393_v28  ;;  %v14433_v28 = vcombine.high %v4025_v60, %v4029_v16  ;;  %v4061_v7 = vld [vmem:[%s22497_s6 + $0x19e8] sm:$0xff] }
 0x4a2   : > { %9652 = vmatpush1.bf16.msra.mxu0 %v14390_v19  ;;  %v14430_v19 = vcombine.low %v4024_v14, %v4028_v15  ;;  %v4064_v14 = vld [vmem:[%s22497_s6 + $0x1a00] sm:$0xff] }
 0x4a3   : > { %9980 = vmatpush1.bf16.msra.mxu1 %v14392_v32  ;;  %9653 = vmatprep.subr.bf16.mxu0 %v14399_v36  ;;  %v14432_v32 = vcombine.low %v4025_v60, %v4029_v16  ;;  %v14439_v36 = vcombine.high %v4032_v22, %v4036_v29  ;;  %v4068_v15 = vld [vmem:[%s22497_s6 + $0x1a20] sm:$0xff]  ;;  %v4065_v60 = vld [vmem:[%s22497_s6 + $0x1a08] sm:$0xff] }
 0x4a4   : > { %9981 = vmatprep.subr.bf16.mxu1 %v14401_v5  ;;  %v14441_v5 = vcombine.high %v4033_v21, %v4037_v30  ;;  %v4069_v16 = vld [vmem:[%s22497_s6 + $0x1a28] sm:$0xff] }
 0x4a6   : > { %9654 = vmatpush1.bf16.msra.mxu0 %v14398_v40  ;;  %v14438_v40 = vcombine.low %v4032_v22, %v4036_v29  ;;  %v4072_v22 = vld [vmem:[%s22497_s6 + $0x1a40] sm:$0xff] }
 0x4a7   : > { %9982 = vmatpush1.bf16.msra.mxu1 %v14400_v43  ;;  %9664 = vmatprep.subr.bf16.mxu0 %v14407_v44  ;;  %v14440_v43 = vcombine.low %v4033_v21, %v4037_v30  ;;  %v14447_v44 = vcombine.high %v4040_v17, %v4044_v39  ;;  %v4076_v29 = vld [vmem:[%s22497_s6 + $0x1a60] sm:$0xff]  ;;  %v4073_v21 = vld [vmem:[%s22497_s6 + $0x1a48] sm:$0xff] }
 0x4a8   : > { %9992 = vmatprep.subr.bf16.mxu1 %v14409_v45  ;;  %v14449_v45 = vcombine.high %v4041_v42, %v4045_v52  ;;  %v4077_v30 = vld [vmem:[%s22497_s6 + $0x1a68] sm:$0xff]  ;;  %v4080_v17 = vld [vmem:[%s22497_s6 + $0x1a80] sm:$0xff] }
 0x4a9   : > { %9656 = vmatmul.mubr.bf16.vlgmr.msra.gmra.mrb[48].mxu0 %v19589_v61  ;;  %v4084_v39 = vld [vmem:[%s22497_s6 + $0x1aa0] sm:$0xff] }
 0x4aa   : > { %9984 = vmatmul.mubr.bf16.vlgmr.msra.gmra.mrb[48].mxu1 %v19589_v61  ;;  %9665 = vmatpush1.bf16.msra.mxu0 %v14406_v48  ;;  %v4049_v48 = vld [vmem:[%s22497_s6 + $0x1988] sm:$0xff] }
 0x4ab   : > { %9696 = vmatprep.mubr.bf16.mxu0 %v19599_v1  ;;  %9993 = vmatpush1.bf16.msra.mxu1 %v14408_v57  ;;  %v14448_v57 = vcombine.low %v4041_v42, %v4045_v52  ;;  %v14457_v59 = vcombine.high %v4049_v48, %v4053_v55  ;;  %v4081_v42 = vld [vmem:[%s22497_s6 + $0x1a88] sm:$0xff] }
 0x4ac   : > { %10024 = vmatprep.mubr.bf16.mxu1 %v19599_v1  ;;  %9666 = vmatprep.subr.bf16.mxu0 %v14415_v58  ;;  %v14455_v58 = vcombine.high %v4048_v46, %v4052_v51  ;;  %v4085_v52 = vld [vmem:[%s22497_s6 + $0x1aa8] sm:$0xff] }
 0x4ad   : > { %9994 = vmatprep.subr.bf16.mxu1 %v14417_v56  ;;  %v4060_v56 = vld [vmem:[%s22497_s6 + $0x19e0] sm:$0xff] }
 0x4ae   : > { %9667 = vmatpush1.bf16.msra.mxu0 %v14414_v10  ;;  %v14454_v10 = vcombine.low %v4048_v46, %v4052_v51  ;;  %v4088_v46 = vld [vmem:[%s22497_s6 + $0x1ac0] sm:$0xff] }
 0x4af   : > { %9995 = vmatpush1.bf16.msra.mxu1 %v14416_v4  ;;  %9668 = vmatprep.subr.bf16.mxu0 %v14423_v11  ;;  %v14456_v4 = vcombine.low %v4049_v48, %v4053_v55  ;;  %v14463_v11 = vcombine.high %v4056_v62, %v4060_v56  ;;  %v4092_v51 = vld [vmem:[%s22497_s6 + $0x1ae0] sm:$0xff]  ;;  %v4089_v48 = vld [vmem:[%s22497_s6 + $0x1ac8] sm:$0xff] }
 0x4b0   : > { %9996 = vmatprep.subr.bf16.mxu1 %v14425_v12  ;;  %v14465_v12 = vcombine.high %v4057_v2, %v4061_v7  ;;  %v4093_v55 = vld [vmem:[%s22497_s6 + $0x1ae8] sm:$0xff] }
 0x4b2   : > { %9669 = vmatpush1.bf16.msra.mxu0 %v14422_v25  ;;  %v14462_v25 = vcombine.low %v4056_v62, %v4060_v56  ;;  %v4096_v62 = vld [vmem:[%s22497_s6 + $0x1b00] sm:$0xff] }
 0x4b3   : > { %9997 = vmatpush1.bf16.msra.mxu1 %v14424_v26  ;;  %9670 = vmatprep.subr.bf16.mxu0 %v14431_v27  ;;  %v14464_v26 = vcombine.low %v4057_v2, %v4061_v7  ;;  %v14471_v27 = vcombine.high %v4064_v14, %v4068_v15  ;;  %v4100_v56 = vld [vmem:[%s22497_s6 + $0x1b20] sm:$0xff]  ;;  %v4097_v2 = vld [vmem:[%s22497_s6 + $0x1b08] sm:$0xff] }
 0x4b4   : > { %9998 = vmatprep.subr.bf16.mxu1 %v14433_v28  ;;  %v14473_v28 = vcombine.high %v4065_v60, %v4069_v16  ;;  %v4101_v7 = vld [vmem:[%s22497_s6 + $0x1b28] sm:$0xff] }
 0x4b6   : > { %9671 = vmatpush1.bf16.msra.mxu0 %v14430_v19  ;;  %v14470_v19 = vcombine.low %v4064_v14, %v4068_v15  ;;  %v4104_v14 = vld [vmem:[%s22497_s6 + $0x1b40] sm:$0xff] }
 0x4b7   : > { %9999 = vmatpush1.bf16.msra.mxu1 %v14432_v32  ;;  %9672 = vmatprep.subr.bf16.mxu0 %v14439_v36  ;;  %v14472_v32 = vcombine.low %v4065_v60, %v4069_v16  ;;  %v14479_v36 = vcombine.high %v4072_v22, %v4076_v29  ;;  %v4108_v15 = vld [vmem:[%s22497_s6 + $0x1b60] sm:$0xff]  ;;  %v4105_v60 = vld [vmem:[%s22497_s6 + $0x1b48] sm:$0xff] }
 0x4b8   : > { %10000 = vmatprep.subr.bf16.mxu1 %v14441_v5  ;;  %v14481_v5 = vcombine.high %v4073_v21, %v4077_v30  ;;  %v4109_v16 = vld [vmem:[%s22497_s6 + $0x1b68] sm:$0xff] }
 0x4ba   : > { %9673 = vmatpush1.bf16.msra.mxu0 %v14438_v40  ;;  %v14478_v40 = vcombine.low %v4072_v22, %v4076_v29  ;;  %v4112_v22 = vld [vmem:[%s22497_s6 + $0x1b80] sm:$0xff] }
 0x4bb   : > { %10001 = vmatpush1.bf16.msra.mxu1 %v14440_v43  ;;  %9674 = vmatprep.subr.bf16.mxu0 %v14447_v44  ;;  %v14480_v43 = vcombine.low %v4073_v21, %v4077_v30  ;;  %v14487_v44 = vcombine.high %v4080_v17, %v4084_v39  ;;  %v4116_v29 = vld [vmem:[%s22497_s6 + $0x1ba0] sm:$0xff]  ;;  %v4113_v21 = vld [vmem:[%s22497_s6 + $0x1b88] sm:$0xff] }
 0x4bc   : > { %10002 = vmatprep.subr.bf16.mxu1 %v14449_v45  ;;  %v14489_v45 = vcombine.high %v4081_v42, %v4085_v52  ;;  %v4117_v30 = vld [vmem:[%s22497_s6 + $0x1ba8] sm:$0xff] }
 0x4be   : > { %9675 = vmatpush1.bf16.msra.mxu0 %v14446_v18  ;;  %v14486_v18 = vcombine.low %v4080_v17, %v4084_v39  ;;  %v4120_v17 = vld [vmem:[%s22497_s6 + $0x1bc0] sm:$0xff] }
 0x4bf   : > { %10003 = vmatpush1.bf16.msra.mxu1 %v14448_v57  ;;  %9676 = vmatprep.subr.bf16.mxu0 %v14455_v58  ;;  %v14488_v57 = vcombine.low %v4081_v42, %v4085_v52  ;;  %v14495_v58 = vcombine.high %v4088_v46, %v4092_v51  ;;  %v4124_v39 = vld [vmem:[%s22497_s6 + $0x1be0] sm:$0xff]  ;;  %v4121_v42 = vld [vmem:[%s22497_s6 + $0x1bc8] sm:$0xff] }
 0x4c0   : > { %10004 = vmatprep.subr.bf16.mxu1 %v14457_v59  ;;  %v14497_v59 = vcombine.high %v4089_v48, %v4093_v55  ;;  %v4125_v52 = vld [vmem:[%s22497_s6 + $0x1be8] sm:$0xff] }
 0x4c2   : > { %9677 = vmatpush1.bf16.msra.mxu0 %v14454_v10  ;;  %v14494_v10 = vcombine.low %v4088_v46, %v4092_v51  ;;  %v4128_v46 = vld [vmem:[%s22497_s6 + $0x1c00] sm:$0xff] }
 0x4c3   : > { %10005 = vmatpush1.bf16.msra.mxu1 %v14456_v4  ;;  %9678 = vmatprep.subr.bf16.mxu0 %v14463_v11  ;;  %v14496_v4 = vcombine.low %v4089_v48, %v4093_v55  ;;  %v14503_v11 = vcombine.high %v4096_v62, %v4100_v56  ;;  %v4132_v51 = vld [vmem:[%s22497_s6 + $0x1c20] sm:$0xff]  ;;  %v4129_v48 = vld [vmem:[%s22497_s6 + $0x1c08] sm:$0xff] }
 0x4c4   : > { %10006 = vmatprep.subr.bf16.mxu1 %v14465_v12  ;;  %v14505_v12 = vcombine.high %v4097_v2, %v4101_v7  ;;  %v4133_v55 = vld [vmem:[%s22497_s6 + $0x1c28] sm:$0xff] }
 0x4c6   : > { %9679 = vmatpush1.bf16.msra.mxu0 %v14462_v25  ;;  %v14502_v25 = vcombine.low %v4096_v62, %v4100_v56  ;;  %v4136_v62 = vld [vmem:[%s22497_s6 + $0x1c40] sm:$0xff] }
 0x4c7   : > { %10007 = vmatpush1.bf16.msra.mxu1 %v14464_v26  ;;  %9680 = vmatprep.subr.bf16.mxu0 %v14471_v27  ;;  %v14504_v26 = vcombine.low %v4097_v2, %v4101_v7  ;;  %v14511_v27 = vcombine.high %v4104_v14, %v4108_v15  ;;  %v4140_v56 = vld [vmem:[%s22497_s6 + $0x1c60] sm:$0xff]  ;;  %v14534_v2 = vcombine.low %v4128_v46, %v4132_v51  ;;  %v4137_v7 = vld [vmem:[%s22497_s6 + $0x1c48] sm:$0xff] }
 0x4c8   : > { %10008 = vmatprep.subr.bf16.mxu1 %v14473_v28  ;;  %v14513_v28 = vcombine.high %v4105_v60, %v4109_v16 }
 0x4ca   : > { %9681 = vmatpush1.bf16.msra.mxu0 %v14470_v19  ;;  %v14510_v19 = vcombine.low %v4104_v14, %v4108_v15  ;;  %v4144_v14 = vld [vmem:[%s22497_s6 + $0x1c80] sm:$0xff] }
 0x4cb   : > { %10009 = vmatpush1.bf16.msra.mxu1 %v14472_v32  ;;  %9682 = vmatprep.subr.bf16.mxu0 %v14479_v36  ;;  %v14512_v32 = vcombine.low %v4105_v60, %v4109_v16  ;;  %v14519_v36 = vcombine.high %v4112_v22, %v4116_v29  ;;  %v4148_v15 = vld [vmem:[%s22497_s6 + $0x1ca0] sm:$0xff]  ;;  %v19803_v60 = vpack.c.bf16 %v18652_v13, %v18652_v13  ;;  %v4145_v16 = vld [vmem:[%s22497_s6 + $0x1c88] sm:$0xff] }
 0x4cc   : > { %10010 = vmatprep.subr.bf16.mxu1 %v14481_v5  ;;  %v14521_v5 = vcombine.high %v4113_v21, %v4117_v30 }
 0x4ce   : > { %9683 = vmatpush1.bf16.msra.mxu0 %v14478_v40  ;;  %v14518_v40 = vcombine.low %v4112_v22, %v4116_v29  ;;  %v4152_v22 = vld [vmem:[%s22497_s6 + $0x1cc0] sm:$0xff] }
 0x4cf   : > { %10011 = vmatpush1.bf16.msra.mxu1 %v14480_v43  ;;  %9684 = vmatprep.subr.bf16.mxu0 %v14487_v44  ;;  %v14520_v43 = vcombine.low %v4113_v21, %v4117_v30  ;;  %v14527_v44 = vcombine.high %v4120_v17, %v4124_v39  ;;  %v4156_v29 = vld [vmem:[%s22497_s6 + $0x1ce0] sm:$0xff]  ;;  %v4153_v21 = vld [vmem:[%s22497_s6 + $0x1cc8] sm:$0xff] }
 0x4d0   : > { %10012 = vmatprep.subr.bf16.mxu1 %v14489_v45  ;;  %v14529_v45 = vcombine.high %v4121_v42, %v4125_v52  ;;  %v4157_v30 = vld [vmem:[%s22497_s6 + $0x1ce8] sm:$0xff] }
 0x4d2   : > { %9685 = vmatpush1.bf16.msra.mxu0 %v14486_v18  ;;  %v14526_v18 = vcombine.low %v4120_v17, %v4124_v39  ;;  %v4160_v17 = vld [vmem:[%s22497_s6 + $0x1d00] sm:$0xff] }
 0x4d3   : > { %10013 = vmatpush1.bf16.msra.mxu1 %v14488_v57  ;;  %9686 = vmatprep.subr.bf16.mxu0 %v14495_v58  ;;  %v14528_v57 = vcombine.low %v4121_v42, %v4125_v52  ;;  %v14535_v58 = vcombine.high %v4128_v46, %v4132_v51  ;;  %v4164_v39 = vld [vmem:[%s22497_s6 + $0x1d20] sm:$0xff]  ;;  %v4161_v42 = vld [vmem:[%s22497_s6 + $0x1d08] sm:$0xff] }
 0x4d4   : > { %10014 = vmatprep.subr.bf16.mxu1 %v14497_v59  ;;  %v14537_v59 = vcombine.high %v4129_v48, %v4133_v55  ;;  %v4165_v52 = vld [vmem:[%s22497_s6 + $0x1d28] sm:$0xff]  ;;  %v4168_v46 = vld [vmem:[%s22497_s6 + $0x1d40] sm:$0xff] }
 0x4d5   : > { %v4172_v51 = vld [vmem:[%s22497_s6 + $0x1d60] sm:$0xff] }
 0x4d6   : > { %9687 = vmatpush1.bf16.msra.mxu0 %v14494_v10  ;;  %v4141_v10 = vld [vmem:[%s22497_s6 + $0x1c68] sm:$0xff] }
 0x4d7   : > { %10015 = vmatpush1.bf16.msra.mxu1 %v14496_v4  ;;  %9688 = vmatprep.subr.bf16.mxu0 %v14503_v11  ;;  %v19793_v4 = vpack.c.bf16 %v18643_v3, %v18643_v3  ;;  %v14536_v11 = vcombine.low %v4129_v48, %v4133_v55  ;;  %v14545_v3 = vcombine.high %v4137_v7, %v4141_v10  ;;  %v4169_v48 = vld [vmem:[%s22497_s6 + $0x1d48] sm:$0xff] }
 0x4d8   : > { %10016 = vmatprep.subr.bf16.mxu1 %v14505_v12  ;;  %v14543_v12 = vcombine.high %v4136_v62, %v4140_v56  ;;  %v14544_v13 = vcombine.low %v4137_v7, %v4141_v10  ;;  %v4173_v55 = vld [vmem:[%s22497_s6 + $0x1d68] sm:$0xff]  ;;  %v14574_v10 = vcombine.low %v4168_v46, %v4172_v51 }
 0x4d9   : > { %v4181_v7 = vld [vmem:[%s22497_s6 + $0x1da8] sm:$0xff] }
 0x4da   : > { %9689 = vmatpush1.bf16.msra.mxu0 %v14502_v25  ;;  %v4149_v25 = vld [vmem:[%s22497_s6 + $0x1ca8] sm:$0xff] }
 0x4db   : > { %10017 = vmatpush1.bf16.msra.mxu1 %v14504_v26  ;;  %9690 = vmatprep.subr.bf16.mxu0 %v14511_v27  ;;  %v14542_v26 = vcombine.low %v4136_v62, %v4140_v56  ;;  %v14551_v27 = vcombine.high %v4144_v14, %v4148_v15  ;;  %v4176_v62 = vld [vmem:[%s22497_s6 + $0x1d80] sm:$0xff] }
 0x4dc   : > { %10018 = vmatprep.subr.bf16.mxu1 %v14513_v28  ;;  %v14553_v28 = vcombine.high %v4145_v16, %v4149_v25  ;;  %v4180_v56 = vld [vmem:[%s22497_s6 + $0x1da0] sm:$0xff] }
 0x4de   : > { %9691 = vmatpush1.bf16.msra.mxu0 %v14510_v19  ;;  %v14550_v19 = vcombine.low %v4144_v14, %v4148_v15  ;;  %v4184_v15 = vld [vmem:[%s22497_s6 + $0x1dc0] sm:$0xff] }
 0x4df   : > { %10019 = vmatpush1.bf16.msra.mxu1 %v14512_v32  ;;  %9692 = vmatprep.subr.bf16.mxu0 %v14519_v36  ;;  %v14552_v32 = vcombine.low %v4145_v16, %v4149_v25  ;;  %v14559_v36 = vcombine.high %v4152_v22, %v4156_v29  ;;  %v4185_v16 = vld [vmem:[%s22497_s6 + $0x1dc8] sm:$0xff] }
 0x4e0   : > { %10020 = vmatprep.subr.bf16.mxu1 %v14521_v5  ;;  %v14561_v5 = vcombine.high %v4153_v21, %v4157_v30  ;;  %v4189_v25 = vld [vmem:[%s22497_s6 + $0x1de8] sm:$0xff] }
 0x4e2   : > { %9693 = vmatpush1.bf16.msra.mxu0 %v14518_v40  ;;  %v14558_v40 = vcombine.low %v4152_v22, %v4156_v29  ;;  %v4192_v22 = vld [vmem:[%s22497_s6 + $0x1e00] sm:$0xff] }
 0x4e3   : > { %10021 = vmatpush1.bf16.msra.mxu1 %v14520_v43  ;;  %9694 = vmatprep.subr.bf16.mxu0 %v14527_v44  ;;  %v14560_v43 = vcombine.low %v4153_v21, %v4157_v30  ;;  %v14567_v44 = vcombine.high %v4160_v17, %v4164_v39  ;;  %v4196_v29 = vld [vmem:[%s22497_s6 + $0x1e20] sm:$0xff]  ;;  %v4193_v21 = vld [vmem:[%s22497_s6 + $0x1e08] sm:$0xff] }
 0x4e4   : > { %10022 = vmatprep.subr.bf16.mxu1 %v14529_v45  ;;  %v14569_v45 = vcombine.high %v4161_v42, %v4165_v52  ;;  %v4197_v30 = vld [vmem:[%s22497_s6 + $0x1e28] sm:$0xff] }
 0x4e6   : > { %9695 = vmatpush1.bf16.msra.mxu0 %v14526_v18  ;;  %v14566_v18 = vcombine.low %v4160_v17, %v4164_v39  ;;  %v4200_v17 = vld [vmem:[%s22497_s6 + $0x1e40] sm:$0xff] }
 0x4e7   : > { %10023 = vmatpush1.bf16.msra.mxu1 %v14528_v57  ;;  %9705 = vmatprep.subr.bf16.mxu0 %v14535_v58  ;;  %v14568_v57 = vcombine.low %v4161_v42, %v4165_v52  ;;  %v14575_v58 = vcombine.high %v4168_v46, %v4172_v51  ;;  %v4204_v39 = vld [vmem:[%s22497_s6 + $0x1e60] sm:$0xff]  ;;  %v4201_v42 = vld [vmem:[%s22497_s6 + $0x1e48] sm:$0xff] }
 0x4e8   : > { %10033 = vmatprep.subr.bf16.mxu1 %v14537_v59  ;;  %v14577_v59 = vcombine.high %v4169_v48, %v4173_v55  ;;  %v4205_v52 = vld [vmem:[%s22497_s6 + $0x1e68] sm:$0xff]  ;;  %v4208_v46 = vld [vmem:[%s22497_s6 + $0x1e80] sm:$0xff] }
 0x4e9   : > { %9697 = vmatmul.mubr.bf16.vlgmr.msra.gmra.mrb[48].mxu0 %v19793_v4  ;;  %v4212_v51 = vld [vmem:[%s22497_s6 + $0x1ea0] sm:$0xff] }
 0x4ea   : > { %10025 = vmatmul.mubr.bf16.vlgmr.msra.gmra.mrb[48].mxu1 %v19793_v4  ;;  %9706 = vmatpush1.bf16.msra.mxu0 %v14534_v2  ;;  %v4177_v2 = vld [vmem:[%s22497_s6 + $0x1d88] sm:$0xff] }
 0x4eb   : > { %9737 = vmatprep.mubr.bf16.mxu0 %v19803_v60  ;;  %10034 = vmatpush1.bf16.msra.mxu1 %v14536_v11  ;;  %v14576_v11 = vcombine.low %v4169_v48, %v4173_v55  ;;  %v14585_v14 = vcombine.high %v4177_v2, %v4181_v7  ;;  %v4209_v48 = vld [vmem:[%s22497_s6 + $0x1e88] sm:$0xff] }
 0x4ec   : > { %10065 = vmatprep.mubr.bf16.mxu1 %v19803_v60  ;;  %9707 = vmatprep.subr.bf16.mxu0 %v14543_v12  ;;  %v14583_v12 = vcombine.high %v4176_v62, %v4180_v56  ;;  %v4213_v55 = vld [vmem:[%s22497_s6 + $0x1ea8] sm:$0xff] }
 0x4ed   : > { %10035 = vmatprep.subr.bf16.mxu1 %v14545_v3  ;;  %v4188_v3 = vld [vmem:[%s22497_s6 + $0x1de0] sm:$0xff] }
 0x4ee   : > { %9708 = vmatpush1.bf16.msra.mxu0 %v14542_v26  ;;  %v14582_v26 = vcombine.low %v4176_v62, %v4180_v56  ;;  %v4216_v62 = vld [vmem:[%s22497_s6 + $0x1ec0] sm:$0xff] }
 0x4ef   : > { %10036 = vmatpush1.bf16.msra.mxu1 %v14544_v13  ;;  %9709 = vmatprep.subr.bf16.mxu0 %v14551_v27  ;;  %v14584_v13 = vcombine.low %v4177_v2, %v4181_v7  ;;  %v14591_v27 = vcombine.high %v4184_v15, %v4188_v3  ;;  %v4220_v56 = vld [vmem:[%s22497_s6 + $0x1ee0] sm:$0xff]  ;;  %v4217_v2 = vld [vmem:[%s22497_s6 + $0x1ec8] sm:$0xff] }
 0x4f0   : > { %10037 = vmatprep.subr.bf16.mxu1 %v14553_v28  ;;  %v14593_v28 = vcombine.high %v4185_v16, %v4189_v25  ;;  %v4221_v7 = vld [vmem:[%s22497_s6 + $0x1ee8] sm:$0xff] }
 0x4f2   : > { %9710 = vmatpush1.bf16.msra.mxu0 %v14550_v19  ;;  %v14590_v19 = vcombine.low %v4184_v15, %v4188_v3  ;;  %v4224_v15 = vld [vmem:[%s22497_s6 + $0x1f00] sm:$0xff] }
 0x4f3   : > { %10038 = vmatpush1.bf16.msra.mxu1 %v14552_v32  ;;  %9711 = vmatprep.subr.bf16.mxu0 %v14559_v36  ;;  %v14592_v32 = vcombine.low %v4185_v16, %v4189_v25  ;;  %v14599_v36 = vcombine.high %v4192_v22, %v4196_v29  ;;  %v4228_v3 = vld [vmem:[%s22497_s6 + $0x1f20] sm:$0xff]  ;;  %v4225_v16 = vld [vmem:[%s22497_s6 + $0x1f08] sm:$0xff] }
 0x4f4   : > { %10039 = vmatprep.subr.bf16.mxu1 %v14561_v5  ;;  %v14601_v5 = vcombine.high %v4193_v21, %v4197_v30  ;;  %v4229_v25 = vld [vmem:[%s22497_s6 + $0x1f28] sm:$0xff] }
 0x4f6   : > { %9712 = vmatpush1.bf16.msra.mxu0 %v14558_v40  ;;  %v14598_v40 = vcombine.low %v4192_v22, %v4196_v29  ;;  %v4232_v22 = vld [vmem:[%s22497_s6 + $0x1f40] sm:$0xff] }
 0x4f7   : > { %10040 = vmatpush1.bf16.msra.mxu1 %v14560_v43  ;;  %9713 = vmatprep.subr.bf16.mxu0 %v14567_v44  ;;  %v14600_v43 = vcombine.low %v4193_v21, %v4197_v30  ;;  %v14607_v44 = vcombine.high %v4200_v17, %v4204_v39  ;;  %v4236_v29 = vld [vmem:[%s22497_s6 + $0x1f60] sm:$0xff]  ;;  %v4233_v21 = vld [vmem:[%s22497_s6 + $0x1f48] sm:$0xff] }
 0x4f8   : > { %10041 = vmatprep.subr.bf16.mxu1 %v14569_v45  ;;  %v14609_v45 = vcombine.high %v4201_v42, %v4205_v52  ;;  %v4237_v30 = vld [vmem:[%s22497_s6 + $0x1f68] sm:$0xff] }
 0x4fa   : > { %9714 = vmatpush1.bf16.msra.mxu0 %v14566_v18  ;;  %v14606_v18 = vcombine.low %v4200_v17, %v4204_v39  ;;  %v4240_v17 = vld [vmem:[%s22497_s6 + $0x1f80] sm:$0xff] }
 0x4fb   : > { %10042 = vmatpush1.bf16.msra.mxu1 %v14568_v57  ;;  %9715 = vmatprep.subr.bf16.mxu0 %v14575_v58  ;;  %v14608_v57 = vcombine.low %v4201_v42, %v4205_v52  ;;  %v14615_v58 = vcombine.high %v4208_v46, %v4212_v51  ;;  %v4244_v39 = vld [vmem:[%s22497_s6 + $0x1fa0] sm:$0xff]  ;;  %v4241_v42 = vld [vmem:[%s22497_s6 + $0x1f88] sm:$0xff] }
 0x4fc   : > { %10043 = vmatprep.subr.bf16.mxu1 %v14577_v59  ;;  %v14617_v59 = vcombine.high %v4209_v48, %v4213_v55  ;;  %v4245_v52 = vld [vmem:[%s22497_s6 + $0x1fa8] sm:$0xff] }
 0x4fe   : > { %9716 = vmatpush1.bf16.msra.mxu0 %v14574_v10  ;;  %v14614_v10 = vcombine.low %v4208_v46, %v4212_v51  ;;  %v4248_v46 = vld [vmem:[%s22497_s6 + $0x1fc0] sm:$0xff] }
 0x4ff   : > { %10044 = vmatpush1.bf16.msra.mxu1 %v14576_v11  ;;  %9717 = vmatprep.subr.bf16.mxu0 %v14583_v12  ;;  %v14616_v11 = vcombine.low %v4209_v48, %v4213_v55  ;;  %v14623_v12 = vcombine.high %v4216_v62, %v4220_v56  ;;  %v4252_v51 = vld [vmem:[%s22497_s6 + $0x1fe0] sm:$0xff]  ;;  %v4249_v48 = vld [vmem:[%s22497_s6 + $0x1fc8] sm:$0xff] }
 0x500   : > { %10045 = vmatprep.subr.bf16.mxu1 %v14585_v14  ;;  %v14625_v14 = vcombine.high %v4217_v2, %v4221_v7  ;;  %v4253_v55 = vld [vmem:[%s22497_s6 + $0x1fe8] sm:$0xff] }
 0x502   : > { %9718 = vmatpush1.bf16.msra.mxu0 %v14582_v26  ;;  %v14622_v26 = vcombine.low %v4216_v62, %v4220_v56  ;;  %v3234_v62 = vld [vmem:[%s22497_s6 + $0x10] sm:$0xff] }
 0x503   : > { %10046 = vmatpush1.bf16.msra.mxu1 %v14584_v13  ;;  %9719 = vmatprep.subr.bf16.mxu0 %v14591_v27  ;;  %v14624_v13 = vcombine.low %v4217_v2, %v4221_v7  ;;  %v14631_v27 = vcombine.high %v4224_v15, %v4228_v3  ;;  %v3238_v56 = vld [vmem:[%s22497_s6 + $0x30] sm:$0xff]  ;;  %v3235_v2 = vld [vmem:[%s22497_s6 + $0x18] sm:$0xff] }
 0x504   : > { %10047 = vmatprep.subr.bf16.mxu1 %v14593_v28  ;;  %v14633_v28 = vcombine.high %v4225_v16, %v4229_v25  ;;  %v3239_v7 = vld [vmem:[%s22497_s6 + $0x38] sm:$0xff] }
 0x506   : > { %9720 = vmatpush1.bf16.msra.mxu0 %v14590_v19  ;;  %v14630_v19 = vcombine.low %v4224_v15, %v4228_v3  ;;  %v3242_v15 = vld [vmem:[%s22497_s6 + $0x50] sm:$0xff] }
 0x507   : > { %10048 = vmatpush1.bf16.msra.mxu1 %v14592_v32  ;;  %9721 = vmatprep.subr.bf16.mxu0 %v14599_v36  ;;  %v14632_v32 = vcombine.low %v4225_v16, %v4229_v25  ;;  %v14639_v36 = vcombine.high %v4232_v22, %v4236_v29  ;;  %v3246_v3 = vld [vmem:[%s22497_s6 + $0x70] sm:$0xff]  ;;  %v13642_v16 = vcombine.low %v3234_v62, %v3238_v56  ;;  %v3243_v25 = vld [vmem:[%s22497_s6 + $0x58] sm:$0xff] }
 0x508   : > { %10049 = vmatprep.subr.bf16.mxu1 %v14601_v5  ;;  %v14641_v5 = vcombine.high %v4233_v21, %v4237_v30 }
 0x50a   : > { %9722 = vmatpush1.bf16.msra.mxu0 %v14598_v40  ;;  %v14638_v40 = vcombine.low %v4232_v22, %v4236_v29  ;;  %v3250_v22 = vld [vmem:[%s22497_s6 + $0x90] sm:$0xff] }
 0x50b   : > { %10050 = vmatpush1.bf16.msra.mxu1 %v14600_v43  ;;  %9723 = vmatprep.subr.bf16.mxu0 %v14607_v44  ;;  %v14640_v43 = vcombine.low %v4233_v21, %v4237_v30  ;;  %v14647_v44 = vcombine.high %v4240_v17, %v4244_v39  ;;  %v3254_v29 = vld [vmem:[%s22497_s6 + $0xb0] sm:$0xff]  ;;  %v3255_v30 = vld [vmem:[%s22497_s6 + $0xb8] sm:$0xff] }
 0x50c   : > { %10051 = vmatprep.subr.bf16.mxu1 %v14609_v45  ;;  %v14649_v45 = vcombine.high %v4241_v42, %v4245_v52 }
 0x50e   : > { %9724 = vmatpush1.bf16.msra.mxu0 %v14606_v18  ;;  %v14646_v18 = vcombine.low %v4240_v17, %v4244_v39  ;;  %v3258_v17 = vld [vmem:[%s22497_s6 + $0xd0] sm:$0xff] }
 0x50f   : > { %10052 = vmatpush1.bf16.msra.mxu1 %v14608_v57  ;;  %9725 = vmatprep.subr.bf16.mxu0 %v14615_v58  ;;  %v14648_v57 = vcombine.low %v4241_v42, %v4245_v52  ;;  %v14655_v58 = vcombine.high %v4248_v46, %v4252_v51  ;;  %v3262_v39 = vld [vmem:[%s22497_s6 + $0xf0] sm:$0xff]  ;;  %v3259_v42 = vld [vmem:[%s22497_s6 + $0xd8] sm:$0xff] }
 0x510   : > { %10053 = vmatprep.subr.bf16.mxu1 %v14617_v59  ;;  %v14657_v59 = vcombine.high %v4249_v48, %v4253_v55  ;;  %v3263_v52 = vld [vmem:[%s22497_s6 + $0xf8] sm:$0xff] }
 0x512   : > { %9726 = vmatpush1.bf16.msra.mxu0 %v14614_v10  ;;  %v14654_v10 = vcombine.low %v4248_v46, %v4252_v51  ;;  %v3270_v46 = vld [vmem:[%s22497_s6 + $0x130] sm:$0xff]  ;;  %v3267_v51 = vld [vmem:[%s22497_s6 + $0x118] sm:$0xff] }
 0x513   : > { %10054 = vmatpush1.bf16.msra.mxu1 %v14616_v11  ;;  %9727 = vmatprep.subr.bf16.mxu0 %v14623_v12  ;;  %v14656_v11 = vcombine.low %v4249_v48, %v4253_v55  ;;  %v13643_v12 = vcombine.high %v3234_v62, %v3238_v56  ;;  %v3271_v48 = vld [vmem:[%s22497_s6 + $0x138] sm:$0xff]  ;;  %v13666_v55 = vcombine.low %v3258_v17, %v3262_v39  ;;  %v3278_v62 = vld [vmem:[%s22497_s6 + $0x170] sm:$0xff] }
 0x514   : > { %10055 = vmatprep.subr.bf16.mxu1 %v14625_v14  ;;  %v13645_v14 = vcombine.high %v3235_v2, %v3239_v7  ;;  %v3275_v56 = vld [vmem:[%s22497_s6 + $0x158] sm:$0xff] }
 0x516   : > { %9728 = vmatpush1.bf16.msra.mxu0 %v14622_v26  ;;  %v3247_v26 = vld [vmem:[%s22497_s6 + $0x78] sm:$0xff] }
 0x517   : > { %10056 = vmatpush1.bf16.msra.mxu1 %v14624_v13  ;;  %9729 = vmatprep.subr.bf16.mxu0 %v14631_v27  ;;  %v19997_v13 = vpack.c.bf16 %v18647_v9, %v18647_v9  ;;  %v13644_v27 = vcombine.low %v3235_v2, %v3239_v7  ;;  %v13653_v21 = vcombine.high %v3243_v25, %v3247_v26  ;;  %v3251_v9 = vld [vmem:[%s22497_s6 + $0x98] sm:$0xff] }
 0x518   : > { %10057 = vmatprep.subr.bf16.mxu1 %v14633_v28  ;;  %v13651_v28 = vcombine.high %v3242_v15, %v3246_v3  ;;  %v3279_v2 = vld [vmem:[%s22497_s6 + $0x178] sm:$0xff] }
 0x51a   : > { %9730 = vmatpush1.bf16.msra.mxu0 %v14630_v19  ;;  %v13650_v19 = vcombine.low %v3242_v15, %v3246_v3  ;;  %v3286_v15 = vld [vmem:[%s22497_s6 + $0x1b0] sm:$0xff]  ;;  %v3283_v3 = vld [vmem:[%s22497_s6 + $0x198] sm:$0xff] }
 0x51b   : > { %10058 = vmatpush1.bf16.msra.mxu1 %v14632_v32  ;;  %9731 = vmatprep.subr.bf16.mxu0 %v14639_v36  ;;  %v13652_v32 = vcombine.low %v3243_v25, %v3247_v26  ;;  %v13659_v36 = vcombine.high %v3250_v22, %v3254_v29  ;;  %v13684_v26 = vcombine.low %v3275_v56, %v3279_v2 }
 0x51c   : > { %10059 = vmatprep.subr.bf16.mxu1 %v14641_v5  ;;  %v13661_v5 = vcombine.high %v3251_v9, %v3255_v30 }
 0x51e   : > { %9732 = vmatpush1.bf16.msra.mxu0 %v14638_v40  ;;  %v13660_v40 = vcombine.low %v3251_v9, %v3255_v30  ;;  %v3295_v9 = vld [vmem:[%s22497_s6 + $0x1f8] sm:$0xff] }
 0x51f   : > { %10060 = vmatpush1.bf16.msra.mxu1 %v14640_v43  ;;  %9733 = vmatprep.subr.bf16.mxu0 %v14647_v44  ;;  %v13667_v43 = vcombine.high %v3258_v17, %v3262_v39  ;;  %v13669_v44 = vcombine.high %v3259_v42, %v3263_v52  ;;  %v3302_v17 = vld [vmem:[%s22497_s6 + $0x230] sm:$0xff]  ;;  %v3299_v39 = vld [vmem:[%s22497_s6 + $0x218] sm:$0xff] }
 0x520   : > { %10061 = vmatprep.subr.bf16.mxu1 %v14649_v45  ;;  %v3266_v45 = vld [vmem:[%s22497_s6 + $0x110] sm:$0xff] }
 0x521   : > { %v13674_v7 = vcombine.low %v3266_v45, %v3270_v46 }
 0x522   : > { %9734 = vmatpush1.bf16.msra.mxu0 %v14646_v18  ;;  %v13668_v18 = vcombine.low %v3259_v42, %v3263_v52  ;;  %v3303_v42 = vld [vmem:[%s22497_s6 + $0x238] sm:$0xff] }
 0x523   : > { %10062 = vmatpush1.bf16.msra.mxu1 %v14648_v57  ;;  %9735 = vmatprep.subr.bf16.mxu0 %v14655_v58  ;;  %v13675_v57 = vcombine.high %v3266_v45, %v3270_v46  ;;  %v13677_v58 = vcombine.high %v3267_v51, %v3271_v48  ;;  %v3310_v45 = vld [vmem:[%s22497_s6 + $0x270] sm:$0xff]  ;;  %v3307_v46 = vld [vmem:[%s22497_s6 + $0x258] sm:$0xff] }
 0x524   : > { %10063 = vmatprep.subr.bf16.mxu1 %v14657_v59  ;;  %v3274_v59 = vld [vmem:[%s22497_s6 + $0x150] sm:$0xff] }
 0x525   : > { %v13682_v25 = vcombine.low %v3274_v59, %v3278_v62 }
 0x526   : > { %9736 = vmatpush1.bf16.msra.mxu0 %v14654_v10  ;;  %v13676_v10 = vcombine.low %v3267_v51, %v3271_v48  ;;  %v3311_v51 = vld [vmem:[%s22497_s6 + $0x278] sm:$0xff] }
 0x527   : > { %10064 = vmatpush1.bf16.msra.mxu1 %v14656_v11  ;;  %10074 = vmatprep.subr.bf16.mxu0 %v13643_v12  ;;  %v13683_v11 = vcombine.high %v3274_v59, %v3278_v62  ;;  %v13685_v12 = vcombine.high %v3275_v56, %v3279_v2  ;;  %v3318_v59 = vld [vmem:[%s22497_s6 + $0x2b0] sm:$0xff]  ;;  %v3315_v62 = vld [vmem:[%s22497_s6 + $0x298] sm:$0xff] }
 0x528   : > { %10402 = vmatprep.subr.bf16.mxu1 %v13645_v14  ;;  %v3282_v14 = vld [vmem:[%s22497_s6 + $0x190] sm:$0xff]  ;;  %v3319_v56 = vld [vmem:[%s22497_s6 + $0x2b8] sm:$0xff] }
 0x529   : > { %9738 = vmatmul.mubr.bf16.vlgmr.msra.gmra.mrb[48].mxu0 %v19997_v13  ;;  %v13690_v30 = vcombine.low %v3282_v14, %v3286_v15 }
 0x52a   : > { %10066 = vmatmul.mubr.bf16.vlgmr.msra.gmra.mrb[48].mxu1 %v19997_v13  ;;  %10075 = vmatpush1.bf16.msra.mxu0 %v13642_v16  ;;  %v3287_v16 = vld [vmem:[%s22497_s6 + $0x1b8] sm:$0xff] }
 0x52b   : > { %10106 = vmatprep.mubr.bf16.mxu0 %v18543_v63  ;;  %10403 = vmatpush1.bf16.msra.mxu1 %v13644_v27  ;;  %v13691_v27 = vcombine.high %v3282_v14, %v3286_v15  ;;  %v3326_v14 = vld [vmem:[%s22497_s6 + $0x2f0] sm:$0xff]  ;;  %v3323_v15 = vld [vmem:[%s22497_s6 + $0x2d8] sm:$0xff] }
 0x52c   : > { %10434 = vmatprep.mubr.bf16.mxu1 %v18543_v63  ;;  %10076 = vmatprep.subr.bf16.mxu0 %v13651_v28  ;;  %v13658_v63 = vcombine.low %v3250_v22, %v3254_v29  ;;  %v13693_v28 = vcombine.high %v3283_v3, %v3287_v16  ;;  %v3290_v22 = vld [vmem:[%s22497_s6 + $0x1d0] sm:$0xff] }
 0x52d   : > { %10404 = vmatprep.subr.bf16.mxu1 %v13653_v21  ;;  %v3294_v29 = vld [vmem:[%s22497_s6 + $0x1f0] sm:$0xff]  ;;  %v3291_v21 = vld [vmem:[%s22497_s6 + $0x1d8] sm:$0xff] }
 0x52e   : > { %10077 = vmatpush1.bf16.msra.mxu0 %v13650_v19  ;;  %v13692_v19 = vcombine.low %v3283_v3, %v3287_v16  ;;  %v13698_v52 = vcombine.low %v3290_v22, %v3294_v29  ;;  %v3327_v3 = vld [vmem:[%s22497_s6 + $0x2f8] sm:$0xff] }
 0x52f   : > { %10405 = vmatpush1.bf16.msra.mxu1 %v13652_v32  ;;  %10078 = vmatprep.subr.bf16.mxu0 %v13659_v36  ;;  %v13699_v32 = vcombine.high %v3290_v22, %v3294_v29  ;;  %v13701_v36 = vcombine.high %v3291_v21, %v3295_v9  ;;  %v3334_v22 = vld [vmem:[%s22497_s6 + $0x330] sm:$0xff]  ;;  %v3331_v29 = vld [vmem:[%s22497_s6 + $0x318] sm:$0xff] }
 0x530   : > { %10406 = vmatprep.subr.bf16.mxu1 %v13661_v5  ;;  %v3298_v5 = vld [vmem:[%s22497_s6 + $0x210] sm:$0xff] }
 0x531   : > { %v13706_v48 = vcombine.low %v3298_v5, %v3302_v17 }
 0x532   : > { %10079 = vmatpush1.bf16.msra.mxu0 %v13658_v63  ;;  %v13700_v63 = vcombine.low %v3291_v21, %v3295_v9  ;;  %v3335_v21 = vld [vmem:[%s22497_s6 + $0x338] sm:$0xff] }
 0x533   : > { %10407 = vmatpush1.bf16.msra.mxu1 %v13660_v40  ;;  %10080 = vmatprep.subr.bf16.mxu0 %v13667_v43  ;;  %v13707_v40 = vcombine.high %v3298_v5, %v3302_v17  ;;  %v13709_v43 = vcombine.high %v3299_v39, %v3303_v42  ;;  %v3342_v5 = vld [vmem:[%s22497_s6 + $0x370] sm:$0xff]  ;;  %v3339_v17 = vld [vmem:[%s22497_s6 + $0x358] sm:$0xff] }
 0x534   : > { %10408 = vmatprep.subr.bf16.mxu1 %v13669_v44  ;;  %v3306_v44 = vld [vmem:[%s22497_s6 + $0x250] sm:$0xff] }
 0x535   : > { %v13714_v2 = vcombine.low %v3306_v44, %v3310_v45 }
 0x536   : > { %10081 = vmatpush1.bf16.msra.mxu0 %v13666_v55  ;;  %v13708_v55 = vcombine.low %v3299_v39, %v3303_v42  ;;  %v3343_v39 = vld [vmem:[%s22497_s6 + $0x378] sm:$0xff] }
 0x537   : > { %10409 = vmatpush1.bf16.msra.mxu1 %v13668_v18  ;;  %10082 = vmatprep.subr.bf16.mxu0 %v13675_v57  ;;  %v13715_v18 = vcombine.high %v3306_v44, %v3310_v45  ;;  %v13717_v57 = vcombine.high %v3307_v46, %v3311_v51  ;;  %v3350_v44 = vld [vmem:[%s22497_s6 + $0x3b0] sm:$0xff]  ;;  %v3347_v45 = vld [vmem:[%s22497_s6 + $0x398] sm:$0xff] }
 0x538   : > { %10410 = vmatprep.subr.bf16.mxu1 %v13677_v58  ;;  %v3314_v58 = vld [vmem:[%s22497_s6 + $0x290] sm:$0xff] }
 0x539   : > { %v13722_v16 = vcombine.low %v3314_v58, %v3318_v59 }
 0x53a   : > { %10083 = vmatpush1.bf16.msra.mxu0 %v13674_v7  ;;  %v13716_v7 = vcombine.low %v3307_v46, %v3311_v51  ;;  %v3351_v46 = vld [vmem:[%s22497_s6 + $0x3b8] sm:$0xff] }
 0x53b   : > { %10411 = vmatpush1.bf16.msra.mxu1 %v13676_v10  ;;  %10084 = vmatprep.subr.bf16.mxu0 %v13683_v11  ;;  %v13723_v10 = vcombine.high %v3314_v58, %v3318_v59  ;;  %v13725_v11 = vcombine.high %v3315_v62, %v3319_v56  ;;  %v3358_v58 = vld [vmem:[%s22497_s6 + $0x3f0] sm:$0xff]  ;;  %v3355_v59 = vld [vmem:[%s22497_s6 + $0x3d8] sm:$0xff] }
 0x53c   : > { %10412 = vmatprep.subr.bf16.mxu1 %v13685_v12  ;;  %v3322_v12 = vld [vmem:[%s22497_s6 + $0x2d0] sm:$0xff] }
 0x53d   : > { %v13730_v9 = vcombine.low %v3322_v12, %v3326_v14 }
 0x53e   : > { %10085 = vmatpush1.bf16.msra.mxu0 %v13682_v25  ;;  %v13724_v25 = vcombine.low %v3315_v62, %v3319_v56  ;;  %v3359_v62 = vld [vmem:[%s22497_s6 + $0x3f8] sm:$0xff] }
 0x53f   : > { %10413 = vmatpush1.bf16.msra.mxu1 %v13684_v26  ;;  %10086 = vmatprep.subr.bf16.mxu0 %v13691_v27  ;;  %v13731_v26 = vcombine.high %v3322_v12, %v3326_v14  ;;  %v13733_v27 = vcombine.high %v3323_v15, %v3327_v3  ;;  %v3366_v12 = vld [vmem:[%s22497_s6 + $0x430] sm:$0xff]  ;;  %v3363_v14 = vld [vmem:[%s22497_s6 + $0x418] sm:$0xff] }
 0x540   : > { %10414 = vmatprep.subr.bf16.mxu1 %v13693_v28  ;;  %v3330_v28 = vld [vmem:[%s22497_s6 + $0x310] sm:$0xff] }
 0x541   : > { %v13738_v42 = vcombine.low %v3330_v28, %v3334_v22 }
 0x542   : > { %10087 = vmatpush1.bf16.msra.mxu0 %v13690_v30  ;;  %v13732_v30 = vcombine.low %v3323_v15, %v3327_v3  ;;  %v3367_v15 = vld [vmem:[%s22497_s6 + $0x438] sm:$0xff] }
 0x543   : > { %10415 = vmatpush1.bf16.msra.mxu1 %v13692_v19  ;;  %10088 = vmatprep.subr.bf16.mxu0 %v13699_v32  ;;  %v13739_v19 = vcombine.high %v3330_v28, %v3334_v22  ;;  %v13741_v32 = vcombine.high %v3331_v29, %v3335_v21  ;;  %v3374_v28 = vld [vmem:[%s22497_s6 + $0x470] sm:$0xff] }
 0x544   : > { %10416 = vmatprep.subr.bf16.mxu1 %v13701_v36  ;;  %v3338_v36 = vld [vmem:[%s22497_s6 + $0x350] sm:$0xff] }
 0x545   : > { %v13746_v51 = vcombine.low %v3338_v36, %v3342_v5 }
 0x546   : > { %10089 = vmatpush1.bf16.msra.mxu0 %v13698_v52  ;;  %v13740_v52 = vcombine.low %v3331_v29, %v3335_v21  ;;  %v3371_v29 = vld [vmem:[%s22497_s6 + $0x458] sm:$0xff] }
 0x547   : > { %10417 = vmatpush1.bf16.msra.mxu1 %v13700_v63  ;;  %10090 = vmatprep.subr.bf16.mxu0 %v13707_v40  ;;  %v13747_v63 = vcombine.high %v3338_v36, %v3342_v5  ;;  %v13749_v40 = vcombine.high %v3339_v17, %v3343_v39  ;;  %v3375_v21 = vld [vmem:[%s22497_s6 + $0x478] sm:$0xff] }
 0x548   : > { %10418 = vmatprep.subr.bf16.mxu1 %v13709_v43  ;;  %v3346_v43 = vld [vmem:[%s22497_s6 + $0x390] sm:$0xff]  ;;  %v13781_v36 = vcombine.high %v3371_v29, %v3375_v21  ;;  %v3379_v5 = vld [vmem:[%s22497_s6 + $0x498] sm:$0xff] }
 0x549   : > { %v13754_v56 = vcombine.low %v3346_v43, %v3350_v44 }
 0x54a   : > { %10091 = vmatpush1.bf16.msra.mxu0 %v13706_v48  ;;  %v13748_v48 = vcombine.low %v3339_v17, %v3343_v39  ;;  %v3383_v17 = vld [vmem:[%s22497_s6 + $0x4b8] sm:$0xff] }
 0x54b   : > { %10419 = vmatpush1.bf16.msra.mxu1 %v13708_v55  ;;  %10092 = vmatprep.subr.bf16.mxu0 %v13715_v18  ;;  %v13755_v55 = vcombine.high %v3346_v43, %v3350_v44  ;;  %v13757_v18 = vcombine.high %v3347_v45, %v3351_v46  ;;  %v3390_v43 = vld [vmem:[%s22497_s6 + $0x4f0] sm:$0xff]  ;;  %v3391_v44 = vld [vmem:[%s22497_s6 + $0x4f8] sm:$0xff] }
 0x54c   : > { %10420 = vmatprep.subr.bf16.mxu1 %v13717_v57  ;;  %v3354_v57 = vld [vmem:[%s22497_s6 + $0x3d0] sm:$0xff] }
 0x54d   : > { %v13762_v3 = vcombine.low %v3354_v57, %v3358_v58 }
 0x54e   : > { %10093 = vmatpush1.bf16.msra.mxu0 %v13714_v2  ;;  %v13756_v2 = vcombine.low %v3347_v45, %v3351_v46  ;;  %v13788_v45 = vcombine.low %v3379_v5, %v3383_v17 }
 0x54f   : > { %10421 = vmatpush1.bf16.msra.mxu1 %v13716_v7  ;;  %10094 = vmatprep.subr.bf16.mxu0 %v13723_v10  ;;  %v13763_v7 = vcombine.high %v3354_v57, %v3358_v58  ;;  %v13765_v10 = vcombine.high %v3355_v59, %v3359_v62  ;;  %v3399_v57 = vld [vmem:[%s22497_s6 + $0x538] sm:$0xff] }
 0x550   : > { %10422 = vmatprep.subr.bf16.mxu1 %v13725_v11  ;;  %v3362_v11 = vld [vmem:[%s22497_s6 + $0x410] sm:$0xff] }
 0x551   : > { %v13770_v22 = vcombine.low %v3362_v11, %v3366_v12 }
 0x552   : > { %10095 = vmatpush1.bf16.msra.mxu0 %v13722_v16  ;;  %v13764_v16 = vcombine.low %v3355_v59, %v3359_v62 }
 0x553   : > { %10423 = vmatpush1.bf16.msra.mxu1 %v13724_v25  ;;  %10096 = vmatprep.subr.bf16.mxu0 %v13731_v26  ;;  %v13771_v25 = vcombine.high %v3362_v11, %v3366_v12  ;;  %v13773_v26 = vcombine.high %v3363_v14, %v3367_v15  ;;  %v3407_v11 = vld [vmem:[%s22497_s6 + $0x578] sm:$0xff] }
 0x554   : > { %10424 = vmatprep.subr.bf16.mxu1 %v13733_v27  ;;  %v3370_v27 = vld [vmem:[%s22497_s6 + $0x450] sm:$0xff] }
 0x555   : > { %v13778_v39 = vcombine.low %v3370_v27, %v3374_v28 }
 0x556   : > { %10097 = vmatpush1.bf16.msra.mxu0 %v13730_v9  ;;  %v13772_v9 = vcombine.low %v3363_v14, %v3367_v15 }
 0x557   : > { %10425 = vmatpush1.bf16.msra.mxu1 %v13732_v30  ;;  %10098 = vmatprep.subr.bf16.mxu0 %v13739_v19  ;;  %v13779_v30 = vcombine.high %v3370_v27, %v3374_v28  ;;  %v3378_v19 = vld [vmem:[%s22497_s6 + $0x490] sm:$0xff]  ;;  %v3415_v27 = vld [vmem:[%s22497_s6 + $0x5b8] sm:$0xff] }
 0x558   : > { %10426 = vmatprep.subr.bf16.mxu1 %v13741_v32  ;;  %v3382_v32 = vld [vmem:[%s22497_s6 + $0x4b0] sm:$0xff] }
 0x55a   : > { %10099 = vmatpush1.bf16.msra.mxu0 %v13738_v42  ;;  %v13780_v42 = vcombine.low %v3371_v29, %v3375_v21 }
 0x55b   : > { %10427 = vmatpush1.bf16.msra.mxu1 %v13740_v52  ;;  %10100 = vmatprep.subr.bf16.mxu0 %v13747_v63  ;;  %v13787_v52 = vcombine.high %v3378_v19, %v3382_v32  ;;  %v13789_v63 = vcombine.high %v3379_v5, %v3383_v17 }
 0x55c   : > { %10428 = vmatprep.subr.bf16.mxu1 %v13749_v40  ;;  %v3386_v40 = vld [vmem:[%s22497_s6 + $0x4d0] sm:$0xff] }
 0x55d   : > { %v13795_v46 = vcombine.high %v3386_v40, %v3390_v43  ;;  %v13794_v58 = vcombine.low %v3386_v40, %v3390_v43  ;;  %v3431_v40 = vld [vmem:[%s22497_s6 + $0x638] sm:$0xff] }
 0x55e   : > { %10101 = vmatpush1.bf16.msra.mxu0 %v13746_v51 }
 0x55f   : > { %10429 = vmatpush1.bf16.msra.mxu1 %v13748_v48  ;;  %10102 = vmatprep.subr.bf16.mxu0 %v13755_v55  ;;  %v3394_v48 = vld [vmem:[%s22497_s6 + $0x510] sm:$0xff] }
 0x560   : > { %10430 = vmatprep.subr.bf16.mxu1 %v13757_v18  ;;  %v3398_v55 = vld [vmem:[%s22497_s6 + $0x530] sm:$0xff]  ;;  %v3395_v18 = vld [vmem:[%s22497_s6 + $0x518] sm:$0xff] }
 0x561   : > { %v13803_v62 = vcombine.high %v3394_v48, %v3398_v55  ;;  %v13802_v12 = vcombine.low %v3394_v48, %v3398_v55  ;;  %v13804_v14 = vcombine.low %v3395_v18, %v3399_v57  ;;  %v3439_v48 = vld [vmem:[%s22497_s6 + $0x678] sm:$0xff] }
 0x562   : > { %10103 = vmatpush1.bf16.msra.mxu0 %v13754_v56  ;;  %v13805_v56 = vcombine.high %v3395_v18, %v3399_v57 }
 0x563   : > { %10431 = vmatpush1.bf16.msra.mxu1 %v13756_v2  ;;  %10104 = vmatprep.subr.bf16.mxu0 %v13763_v7  ;;  %v3402_v2 = vld [vmem:[%s22497_s6 + $0x550] sm:$0xff] }
 0x564   : > { %10432 = vmatprep.subr.bf16.mxu1 %v13765_v10  ;;  %v3406_v7 = vld [vmem:[%s22497_s6 + $0x570] sm:$0xff]  ;;  %v3403_v10 = vld [vmem:[%s22497_s6 + $0x558] sm:$0xff] }
 0x565   : > { %v13811_v15 = vcombine.high %v3402_v2, %v3406_v7  ;;  %v13810_v28 = vcombine.low %v3402_v2, %v3406_v7  ;;  %v3447_v2 = vld [vmem:[%s22497_s6 + $0x6b8] sm:$0xff] }
 0x566   : > { %10105 = vmatpush1.bf16.msra.mxu0 %v13762_v3  ;;  %v13813_v3 = vcombine.high %v3403_v10, %v3407_v11 }
 0x567   : > { %10433 = vmatpush1.bf16.msra.mxu1 %v13764_v16  ;;  %10115 = vmatprep.subr.bf16.mxu0 %v13771_v25  ;;  %v3410_v16 = vld [vmem:[%s22497_s6 + $0x590] sm:$0xff] }
 0x568   : > { %10443 = vmatprep.subr.bf16.mxu1 %v13773_v26  ;;  %v3414_v25 = vld [vmem:[%s22497_s6 + $0x5b0] sm:$0xff]  ;;  %v3411_v26 = vld [vmem:[%s22497_s6 + $0x598] sm:$0xff] }
 0x569   : > { %10107 = vmatmul.mubr.bf16.vlgmr.msra.gmra.mrb[52].mxu0 %v18545_v0  ;;  %v13819_v29 = vcombine.high %v3410_v16, %v3414_v25  ;;  %v13821_v21 = vcombine.high %v3411_v26, %v3415_v27  ;;  %v13820_v5 = vcombine.low %v3411_v26, %v3415_v27 }
 0x56a   : > { %10435 = vmatmul.mubr.bf16.vlgmr.msra.gmra.mrb[52].mxu1 %v18545_v0  ;;  %10116 = vmatpush1.bf16.msra.mxu0 %v13770_v22  ;;  %v3387_v0 = vld [vmem:[%s22497_s6 + $0x4d8] sm:$0xff]  ;;  %v13812_v22 = vcombine.low %v3403_v10, %v3407_v11 }
 0x56b   : > { %10147 = vmatprep.mubr.bf16.mxu0 %v18561_v8  ;;  %10444 = vmatpush1.bf16.msra.mxu1 %v13772_v9  ;;  %v13797_v51 = vcombine.high %v3387_v0, %v3391_v44  ;;  %v13796_v59 = vcombine.low %v3387_v0, %v3391_v44  ;;  %v3418_v9 = vld [vmem:[%s22497_s6 + $0x5d0] sm:$0xff] }
 0x56c   : > { %10475 = vmatprep.mubr.bf16.mxu1 %v18561_v8  ;;  %10117 = vmatprep.subr.bf16.mxu0 %v13779_v30  ;;  %v13786_v8 = vcombine.low %v3378_v19, %v3382_v32  ;;  %v3422_v30 = vld [vmem:[%s22497_s6 + $0x5f0] sm:$0xff]  ;;  %v3419_v19 = vld [vmem:[%s22497_s6 + $0x5d8] sm:$0xff] }
 0x56d   : > { %10445 = vmatprep.subr.bf16.mxu1 %v13781_v36  ;;  %v3423_v32 = vld [vmem:[%s22497_s6 + $0x5f8] sm:$0xff]  ;;  %v13818_v36 = vcombine.low %v3410_v16, %v3414_v25  ;;  %v13827_v17 = vcombine.high %v3418_v9, %v3422_v30  ;;  %v13826_v43 = vcombine.low %v3418_v9, %v3422_v30 }
 0x56e   : > { %10118 = vmatpush1.bf16.msra.mxu0 %v13778_v39  ;;  %v13829_v39 = vcombine.high %v3419_v19, %v3423_v32  ;;  %v13828_v0 = vcombine.low %v3419_v19, %v3423_v32  ;;  %v3455_v16 = vld [vmem:[%s22497_s6 + $0x6f8] sm:$0xff] }
 0x56f   : > { %10446 = vmatpush1.bf16.msra.mxu1 %v13780_v42  ;;  %10119 = vmatprep.subr.bf16.mxu0 %v13787_v52  ;;  %v3426_v42 = vld [vmem:[%s22497_s6 + $0x610] sm:$0xff]  ;;  %v3463_v9 = vld [vmem:[%s22497_s6 + $0x738] sm:$0xff] }
 0x570   : > { %10447 = vmatprep.subr.bf16.mxu1 %v13789_v63  ;;  %v3430_v52 = vld [vmem:[%s22497_s6 + $0x630] sm:$0xff]  ;;  %v3427_v63 = vld [vmem:[%s22497_s6 + $0x618] sm:$0xff] }
 0x571   : > { %v13835_v44 = vcombine.high %v3426_v42, %v3430_v52  ;;  %v13834_v55 = vcombine.low %v3426_v42, %v3430_v52  ;;  %v13836_v18 = vcombine.low %v3427_v63, %v3431_v40  ;;  %v3471_v42 = vld [vmem:[%s22497_s6 + $0x778] sm:$0xff] }
 0x572   : > { %10120 = vmatpush1.bf16.msra.mxu0 %v13786_v8  ;;  %v13837_v8 = vcombine.high %v3427_v63, %v3431_v40 }
 0x573   : > { %10448 = vmatpush1.bf16.msra.mxu1 %v13788_v45  ;;  %10121 = vmatprep.subr.bf16.mxu0 %v13795_v46  ;;  %v3434_v45 = vld [vmem:[%s22497_s6 + $0x650] sm:$0xff] }
 0x574   : > { %10449 = vmatprep.subr.bf16.mxu1 %v13797_v51  ;;  %v3438_v46 = vld [vmem:[%s22497_s6 + $0x670] sm:$0xff]  ;;  %v3435_v51 = vld [vmem:[%s22497_s6 + $0x658] sm:$0xff] }
 0x575   : > { %v13843_v57 = vcombine.high %v3434_v45, %v3438_v46  ;;  %v13842_v7 = vcombine.low %v3434_v45, %v3438_v46  ;;  %v13844_v10 = vcombine.low %v3435_v51, %v3439_v48  ;;  %v3479_v45 = vld [vmem:[%s22497_s6 + $0x7b8] sm:$0xff] }
 0x576   : > { %10122 = vmatpush1.bf16.msra.mxu0 %v13794_v58  ;;  %v13845_v58 = vcombine.high %v3435_v51, %v3439_v48 }
 0x577   : > { %10450 = vmatpush1.bf16.msra.mxu1 %v13796_v59  ;;  %10123 = vmatprep.subr.bf16.mxu0 %v13803_v62  ;;  %v3442_v59 = vld [vmem:[%s22497_s6 + $0x690] sm:$0xff] }
 0x578   : > { %10451 = vmatprep.subr.bf16.mxu1 %v13805_v56  ;;  %v3446_v62 = vld [vmem:[%s22497_s6 + $0x6b0] sm:$0xff]  ;;  %v3443_v56 = vld [vmem:[%s22497_s6 + $0x698] sm:$0xff] }
 0x579   : > { %v13851_v11 = vcombine.high %v3442_v59, %v3446_v62  ;;  %v13850_v25 = vcombine.low %v3442_v59, %v3446_v62  ;;  %v13852_v26 = vcombine.low %v3443_v56, %v3447_v2  ;;  %v3487_v59 = vld [vmem:[%s22497_s6 + $0x7f8] sm:$0xff] }
 0x57a   : > { %10124 = vmatpush1.bf16.msra.mxu0 %v13802_v12  ;;  %v13853_v12 = vcombine.high %v3443_v56, %v3447_v2 }
 0x57b   : > { %10452 = vmatpush1.bf16.msra.mxu1 %v13804_v14  ;;  %10125 = vmatprep.subr.bf16.mxu0 %v13811_v15  ;;  %v3450_v14 = vld [vmem:[%s22497_s6 + $0x6d0] sm:$0xff] }
 0x57c   : > { %10453 = vmatprep.subr.bf16.mxu1 %v13813_v3  ;;  %v3454_v15 = vld [vmem:[%s22497_s6 + $0x6f0] sm:$0xff]  ;;  %v3451_v3 = vld [vmem:[%s22497_s6 + $0x6d8] sm:$0xff] }
 0x57d   : > { %v13859_v27 = vcombine.high %v3450_v14, %v3454_v15  ;;  %v13858_v30 = vcombine.low %v3450_v14, %v3454_v15  ;;  %v13860_v19 = vcombine.low %v3451_v3, %v3455_v16  ;;  %v3495_v14 = vld [vmem:[%s22497_s6 + $0x838] sm:$0xff] }
 0x57e   : > { %10126 = vmatpush1.bf16.msra.mxu0 %v13810_v28  ;;  %v13861_v28 = vcombine.high %v3451_v3, %v3455_v16 }
 0x57f   : > { %10454 = vmatpush1.bf16.msra.mxu1 %v13812_v22  ;;  %10127 = vmatprep.subr.bf16.mxu0 %v13819_v29  ;;  %v3458_v22 = vld [vmem:[%s22497_s6 + $0x710] sm:$0xff] }
 0x580   : > { %10455 = vmatprep.subr.bf16.mxu1 %v13821_v21  ;;  %v3462_v29 = vld [vmem:[%s22497_s6 + $0x730] sm:$0xff]  ;;  %v3459_v21 = vld [vmem:[%s22497_s6 + $0x718] sm:$0xff] }
 0x581   : > { %v13867_v32 = vcombine.high %v3458_v22, %v3462_v29  ;;  %v13866_v52 = vcombine.low %v3458_v22, %v3462_v29  ;;  %v13868_v63 = vcombine.low %v3459_v21, %v3463_v9  ;;  %v3499_v22 = vld [vmem:[%s22497_s6 + $0x858] sm:$0xff] }
 0x582   : > { %10128 = vmatpush1.bf16.msra.mxu0 %v13818_v36  ;;  %v13869_v36 = vcombine.high %v3459_v21, %v3463_v9  ;;  %v3503_v29 = vld [vmem:[%s22497_s6 + $0x878] sm:$0xff] }
 0x583   : > { %10456 = vmatpush1.bf16.msra.mxu1 %v13820_v5  ;;  %10129 = vmatprep.subr.bf16.mxu0 %v13827_v17  ;;  %v3466_v5 = vld [vmem:[%s22497_s6 + $0x750] sm:$0xff] }
 0x584   : > { %10457 = vmatprep.subr.bf16.mxu1 %v13829_v39  ;;  %v3470_v17 = vld [vmem:[%s22497_s6 + $0x770] sm:$0xff]  ;;  %v3467_v39 = vld [vmem:[%s22497_s6 + $0x758] sm:$0xff] }
 0x585   : > { %v13875_v40 = vcombine.high %v3466_v5, %v3470_v17  ;;  %v13874_v46 = vcombine.low %v3466_v5, %v3470_v17  ;;  %v13876_v51 = vcombine.low %v3467_v39, %v3471_v42  ;;  %v3511_v5 = vld [vmem:[%s22497_s6 + $0x8b8] sm:$0xff] }
 0x586   : > { %10130 = vmatpush1.bf16.msra.mxu0 %v13826_v43  ;;  %v13877_v43 = vcombine.high %v3467_v39, %v3471_v42  ;;  %v13908_v39 = vcombine.low %v3499_v22, %v3503_v29 }
 0x587   : > { %10458 = vmatpush1.bf16.msra.mxu1 %v13828_v0  ;;  %10131 = vmatprep.subr.bf16.mxu0 %v13835_v44  ;;  %v3474_v0 = vld [vmem:[%s22497_s6 + $0x790] sm:$0xff] }
 0x588   : > { %10459 = vmatprep.subr.bf16.mxu1 %v13837_v8  ;;  %v3478_v44 = vld [vmem:[%s22497_s6 + $0x7b0] sm:$0xff]  ;;  %v3475_v8 = vld [vmem:[%s22497_s6 + $0x798] sm:$0xff] }
 0x589   : > { %v13883_v48 = vcombine.high %v3474_v0, %v3478_v44  ;;  %v13882_v62 = vcombine.low %v3474_v0, %v3478_v44  ;;  %v13884_v56 = vcombine.low %v3475_v8, %v3479_v45 }
 0x58a   : > { %10132 = vmatpush1.bf16.msra.mxu0 %v13834_v55  ;;  %v13885_v55 = vcombine.high %v3475_v8, %v3479_v45  ;;  %v3522_v45 = vld [vmem:[%s22497_s6 + $0x910] sm:$0xff] }
 0x58b   : > { %10460 = vmatpush1.bf16.msra.mxu1 %v13836_v18  ;;  %10133 = vmatprep.subr.bf16.mxu0 %v13843_v57  ;;  %v3482_v18 = vld [vmem:[%s22497_s6 + $0x7d0] sm:$0xff] }
 0x58c   : > { %10461 = vmatprep.subr.bf16.mxu1 %v13845_v58  ;;  %v3486_v57 = vld [vmem:[%s22497_s6 + $0x7f0] sm:$0xff]  ;;  %v3483_v58 = vld [vmem:[%s22497_s6 + $0x7d8] sm:$0xff] }
 0x58d   : > { %v13891_v2 = vcombine.high %v3482_v18, %v3486_v57  ;;  %v13890_v15 = vcombine.low %v3482_v18, %v3486_v57  ;;  %v13892_v3 = vcombine.low %v3483_v58, %v3487_v59 }
 0x58e   : > { %10134 = vmatpush1.bf16.msra.mxu0 %v13842_v7  ;;  %v13893_v7 = vcombine.high %v3483_v58, %v3487_v59  ;;  %v3530_v59 = vld [vmem:[%s22497_s6 + $0x950] sm:$0xff] }
 0x58f   : > { %10462 = vmatpush1.bf16.msra.mxu1 %v13844_v10  ;;  %10135 = vmatprep.subr.bf16.mxu0 %v13851_v11  ;;  %v3490_v10 = vld [vmem:[%s22497_s6 + $0x810] sm:$0xff] }
 0x590   : > { %10463 = vmatprep.subr.bf16.mxu1 %v13853_v12  ;;  %v3494_v11 = vld [vmem:[%s22497_s6 + $0x830] sm:$0xff]  ;;  %v3491_v12 = vld [vmem:[%s22497_s6 + $0x818] sm:$0xff] }
 0x591   : > { %v13899_v16 = vcombine.high %v3490_v10, %v3494_v11  ;;  %v13900_v21 = vcombine.low %v3491_v12, %v3495_v14 }
 0x592   : > { %10136 = vmatpush1.bf16.msra.mxu0 %v13850_v25  ;;  %v13901_v25 = vcombine.high %v3491_v12, %v3495_v14  ;;  %v3538_v14 = vld [vmem:[%s22497_s6 + $0x990] sm:$0xff] }
 0x593   : > { %10464 = vmatpush1.bf16.msra.mxu1 %v13852_v26  ;;  %10137 = vmatprep.subr.bf16.mxu0 %v13859_v27  ;;  %v3498_v26 = vld [vmem:[%s22497_s6 + $0x850] sm:$0xff] }
 0x594   : > { %10465 = vmatprep.subr.bf16.mxu1 %v13861_v28  ;;  %v3502_v27 = vld [vmem:[%s22497_s6 + $0x870] sm:$0xff]  ;;  %v13898_v28 = vcombine.low %v3490_v10, %v3494_v11 }
 0x595   : > { %v13907_v9 = vcombine.high %v3498_v26, %v3502_v27  ;;  %v13906_v17 = vcombine.low %v3498_v26, %v3502_v27 }
 0x596   : > { %10138 = vmatpush1.bf16.msra.mxu0 %v13858_v30  ;;  %v3506_v30 = vld [vmem:[%s22497_s6 + $0x890] sm:$0xff] }
 0x597   : > { %10466 = vmatpush1.bf16.msra.mxu1 %v13860_v19  ;;  %10139 = vmatprep.subr.bf16.mxu0 %v13867_v32  ;;  %v3510_v19 = vld [vmem:[%s22497_s6 + $0x8b0] sm:$0xff]  ;;  %v13909_v32 = vcombine.high %v3499_v22, %v3503_v29 }
 0x598   : > { %10467 = vmatprep.subr.bf16.mxu1 %v13869_v36  ;;  %v3507_v36 = vld [vmem:[%s22497_s6 + $0x898] sm:$0xff]  ;;  %v13915_v42 = vcombine.high %v3506_v30, %v3510_v19  ;;  %v3546_v22 = vld [vmem:[%s22497_s6 + $0x9d0] sm:$0xff] }
 0x599   : > { %v13916_v0 = vcombine.low %v3507_v36, %v3511_v5  ;;  %v3550_v29 = vld [vmem:[%s22497_s6 + $0x9f0] sm:$0xff] }
 0x59a   : > { %10140 = vmatpush1.bf16.msra.mxu0 %v13866_v52  ;;  %v13917_v52 = vcombine.high %v3507_v36, %v3511_v5  ;;  %v3554_v5 = vld [vmem:[%s22497_s6 + $0xa10] sm:$0xff] }
 0x59b   : > { %10468 = vmatpush1.bf16.msra.mxu1 %v13868_v63  ;;  %10141 = vmatprep.subr.bf16.mxu0 %v13875_v40  ;;  %v3514_v63 = vld [vmem:[%s22497_s6 + $0x8d0] sm:$0xff] }
 0x59c   : > { %10469 = vmatprep.subr.bf16.mxu1 %v13877_v43  ;;  %v3518_v40 = vld [vmem:[%s22497_s6 + $0x8f0] sm:$0xff]  ;;  %v3519_v43 = vld [vmem:[%s22497_s6 + $0x8f8] sm:$0xff] }
 0x59d   : > { %v13923_v44 = vcombine.high %v3514_v63, %v3518_v40 }
 0x59e   : > { %10142 = vmatpush1.bf16.msra.mxu0 %v13874_v46  ;;  %v3526_v46 = vld [vmem:[%s22497_s6 + $0x930] sm:$0xff] }
 0x59f   : > { %10470 = vmatpush1.bf16.msra.mxu1 %v13876_v51  ;;  %10143 = vmatprep.subr.bf16.mxu0 %v13883_v48  ;;  %v3523_v51 = vld [vmem:[%s22497_s6 + $0x918] sm:$0xff]  ;;  %v13931_v57 = vcombine.high %v3522_v45, %v3526_v46 }
 0x5a0   : > { %10471 = vmatprep.subr.bf16.mxu1 %v13885_v55  ;;  %v3527_v48 = vld [vmem:[%s22497_s6 + $0x938] sm:$0xff]  ;;  %v13922_v55 = vcombine.low %v3514_v63, %v3518_v40 }
 0x5a1   : > { %v13933_v58 = vcombine.high %v3523_v51, %v3527_v48  ;;  %v13932_v10 = vcombine.low %v3523_v51, %v3527_v48  ;;  %v3570_v48 = vld [vmem:[%s22497_s6 + $0xa90] sm:$0xff] }
 0x5a2   : > { %10144 = vmatpush1.bf16.msra.mxu0 %v13882_v62  ;;  %v3534_v62 = vld [vmem:[%s22497_s6 + $0x970] sm:$0xff] }
 0x5a3   : > { %10472 = vmatpush1.bf16.msra.mxu1 %v13884_v56  ;;  %10145 = vmatprep.subr.bf16.mxu0 %v13891_v2  ;;  %v3531_v56 = vld [vmem:[%s22497_s6 + $0x958] sm:$0xff]  ;;  %v13939_v11 = vcombine.high %v3530_v59, %v3534_v62 }
 0x5a4   : > { %10473 = vmatprep.subr.bf16.mxu1 %v13893_v7  ;;  %v3535_v2 = vld [vmem:[%s22497_s6 + $0x978] sm:$0xff]  ;;  %v13930_v7 = vcombine.low %v3522_v45, %v3526_v46 }
 0x5a5   : > { %v13941_v12 = vcombine.high %v3531_v56, %v3535_v2  ;;  %v13940_v26 = vcombine.low %v3531_v56, %v3535_v2  ;;  %v3578_v2 = vld [vmem:[%s22497_s6 + $0xad0] sm:$0xff] }
 0x5a6   : > { %10146 = vmatpush1.bf16.msra.mxu0 %v13890_v15  ;;  %v3542_v15 = vld [vmem:[%s22497_s6 + $0x9b0] sm:$0xff] }
 0x5a7   : > { %10474 = vmatpush1.bf16.msra.mxu1 %v13892_v3  ;;  %10156 = vmatprep.subr.bf16.mxu0 %v13899_v16  ;;  %v3539_v3 = vld [vmem:[%s22497_s6 + $0x998] sm:$0xff]  ;;  %v13947_v27 = vcombine.high %v3538_v14, %v3542_v15 }
 0x5a8   : > { %10484 = vmatprep.subr.bf16.mxu1 %v13901_v25  ;;  %v3543_v16 = vld [vmem:[%s22497_s6 + $0x9b8] sm:$0xff]  ;;  %v13938_v25 = vcombine.low %v3530_v59, %v3534_v62 }
 0x5a9   : > { %10148 = vmatmul.mubr.bf16.vlgmr.msra.gmra.mrb[52].mxu0 %v18773_v6 }
 0x5aa   : > { %10476 = vmatmul.mubr.bf16.vlgmr.msra.gmra.mrb[52].mxu1 %v18773_v6  ;;  %10157 = vmatpush1.bf16.msra.mxu0 %v13898_v28  ;;  %v3515_v6 = vld [vmem:[%s22497_s6 + $0x8d8] sm:$0xff]  ;;  %v13949_v28 = vcombine.high %v3539_v3, %v3543_v16 }
 0x5ab   : > { %10188 = vmatprep.mubr.bf16.mxu0 %v18789_v23  ;;  %10485 = vmatpush1.bf16.msra.mxu1 %v13900_v21  ;;  %v13925_v8 = vcombine.high %v3515_v6, %v3519_v43  ;;  %v13924_v18 = vcombine.low %v3515_v6, %v3519_v43  ;;  %v3547_v21 = vld [vmem:[%s22497_s6 + $0x9d8] sm:$0xff]  ;;  %v3562_v43 = vld [vmem:[%s22497_s6 + $0xa50] sm:$0xff] }
 0x5ac   : > { %10516 = vmatprep.mubr.bf16.mxu1 %v18789_v23  ;;  %10158 = vmatprep.subr.bf16.mxu0 %v13907_v9  ;;  %v13914_v23 = vcombine.low %v3506_v30, %v3510_v19  ;;  %v3551_v9 = vld [vmem:[%s22497_s6 + $0x9f8] sm:$0xff]  ;;  %v13946_v30 = vcombine.low %v3538_v14, %v3542_v15  ;;  %v13948_v19 = vcombine.low %v3539_v3, %v3543_v16  ;;  %v3586_v16 = vld [vmem:[%s22497_s6 + $0xb10] sm:$0xff] }
 0x5ad   : > { %10486 = vmatprep.subr.bf16.mxu1 %v13909_v32  ;;  %v13955_v32 = vcombine.high %v3546_v22, %v3550_v29  ;;  %v13957_v36 = vcombine.high %v3547_v21, %v3551_v9  ;;  %v13956_v63 = vcombine.low %v3547_v21, %v3551_v9  ;;  %v3594_v9 = vld [vmem:[%s22497_s6 + $0xb50] sm:$0xff] }
 0x5ae   : > { %10159 = vmatpush1.bf16.msra.mxu0 %v13906_v17  ;;  %v3558_v17 = vld [vmem:[%s22497_s6 + $0xa30] sm:$0xff] }
 0x5af   : > { %10487 = vmatpush1.bf16.msra.mxu1 %v13908_v39  ;;  %10160 = vmatprep.subr.bf16.mxu0 %v13915_v42  ;;  %v3555_v39 = vld [vmem:[%s22497_s6 + $0xa18] sm:$0xff]  ;;  %v13963_v40 = vcombine.high %v3554_v5, %v3558_v17 }
 0x5b0   : > { %10488 = vmatprep.subr.bf16.mxu1 %v13917_v52  ;;  %v3559_v42 = vld [vmem:[%s22497_s6 + $0xa38] sm:$0xff]  ;;  %v13954_v52 = vcombine.low %v3546_v22, %v3550_v29 }
 0x5b1   : > { %v13965_v6 = vcombine.high %v3555_v39, %v3559_v42  ;;  %v13964_v45 = vcombine.low %v3555_v39, %v3559_v42  ;;  %v3602_v42 = vld [vmem:[%s22497_s6 + $0xb90] sm:$0xff] }
 0x5b2   : > { %10161 = vmatpush1.bf16.msra.mxu0 %v13914_v23  ;;  %v3566_v23 = vld [vmem:[%s22497_s6 + $0xa70] sm:$0xff] }
 0x5b3   : > { %10489 = vmatpush1.bf16.msra.mxu1 %v13916_v0  ;;  %10162 = vmatprep.subr.bf16.mxu0 %v13923_v44  ;;  %v3563_v0 = vld [vmem:[%s22497_s6 + $0xa58] sm:$0xff]  ;;  %v13971_v46 = vcombine.high %v3562_v43, %v3566_v23 }
 0x5b4   : > { %10490 = vmatprep.subr.bf16.mxu1 %v13925_v8  ;;  %v3567_v44 = vld [vmem:[%s22497_s6 + $0xa78] sm:$0xff]  ;;  %v13962_v8 = vcombine.low %v3554_v5, %v3558_v17 }
 0x5b5   : > { %v13973_v51 = vcombine.high %v3563_v0, %v3567_v44  ;;  %v13972_v59 = vcombine.low %v3563_v0, %v3567_v44  ;;  %v3610_v44 = vld [vmem:[%s22497_s6 + $0xbd0] sm:$0xff] }
 0x5b6   : > { %10163 = vmatpush1.bf16.msra.mxu0 %v13922_v55  ;;  %v3574_v55 = vld [vmem:[%s22497_s6 + $0xab0] sm:$0xff] }
 0x5b7   : > { %10491 = vmatpush1.bf16.msra.mxu1 %v13924_v18  ;;  %10164 = vmatprep.subr.bf16.mxu0 %v13931_v57  ;;  %v3571_v18 = vld [vmem:[%s22497_s6 + $0xa98] sm:$0xff]  ;;  %v13979_v62 = vcombine.high %v3570_v48, %v3574_v55 }
 0x5b8   : > { %10492 = vmatprep.subr.bf16.mxu1 %v13933_v58  ;;  %v3575_v57 = vld [vmem:[%s22497_s6 + $0xab8] sm:$0xff]  ;;  %v13970_v58 = vcombine.low %v3562_v43, %v3566_v23 }
 0x5b9   : > { %v13981_v56 = vcombine.high %v3571_v18, %v3575_v57  ;;  %v13980_v14 = vcombine.low %v3571_v18, %v3575_v57  ;;  %v3618_v57 = vld [vmem:[%s22497_s6 + $0xc10] sm:$0xff] }
 0x5ba   : > { %10165 = vmatpush1.bf16.msra.mxu0 %v13930_v7  ;;  %v3582_v7 = vld [vmem:[%s22497_s6 + $0xaf0] sm:$0xff] }
 0x5bb   : > { %10493 = vmatpush1.bf16.msra.mxu1 %v13932_v10  ;;  %10166 = vmatprep.subr.bf16.mxu0 %v13939_v11  ;;  %v3579_v10 = vld [vmem:[%s22497_s6 + $0xad8] sm:$0xff]  ;;  %v13987_v15 = vcombine.high %v3578_v2, %v3582_v7 }
 0x5bc   : > { %10494 = vmatprep.subr.bf16.mxu1 %v13941_v12  ;;  %v3583_v11 = vld [vmem:[%s22497_s6 + $0xaf8] sm:$0xff]  ;;  %v13978_v12 = vcombine.low %v3570_v48, %v3574_v55 }
 0x5bd   : > { %v13989_v3 = vcombine.high %v3579_v10, %v3583_v11  ;;  %v13988_v22 = vcombine.low %v3579_v10, %v3583_v11  ;;  %v3626_v11 = vld [vmem:[%s22497_s6 + $0xc50] sm:$0xff] }
 0x5be   : > { %10167 = vmatpush1.bf16.msra.mxu0 %v13938_v25  ;;  %v3590_v25 = vld [vmem:[%s22497_s6 + $0xb30] sm:$0xff] }
 0x5bf   : > { %10495 = vmatpush1.bf16.msra.mxu1 %v13940_v26  ;;  %10168 = vmatprep.subr.bf16.mxu0 %v13947_v27  ;;  %v3587_v26 = vld [vmem:[%s22497_s6 + $0xb18] sm:$0xff]  ;;  %v13995_v29 = vcombine.high %v3586_v16, %v3590_v25 }
 0x5c0   : > { %10496 = vmatprep.subr.bf16.mxu1 %v13949_v28  ;;  %v3591_v27 = vld [vmem:[%s22497_s6 + $0xb38] sm:$0xff]  ;;  %v13986_v28 = vcombine.low %v3578_v2, %v3582_v7 }
 0x5c1   : > { %v13997_v21 = vcombine.high %v3587_v26, %v3591_v27  ;;  %v13996_v5 = vcombine.low %v3587_v26, %v3591_v27  ;;  %v3634_v26 = vld [vmem:[%s22497_s6 + $0xc90] sm:$0xff] }
 0x5c2   : > { %10169 = vmatpush1.bf16.msra.mxu0 %v13946_v30  ;;  %v3598_v30 = vld [vmem:[%s22497_s6 + $0xb70] sm:$0xff] }
 0x5c3   : > { %10497 = vmatpush1.bf16.msra.mxu1 %v13948_v19  ;;  %10170 = vmatprep.subr.bf16.mxu0 %v13955_v32  ;;  %v3595_v19 = vld [vmem:[%s22497_s6 + $0xb58] sm:$0xff]  ;;  %v14003_v17 = vcombine.high %v3594_v9, %v3598_v30  ;;  %v3638_v27 = vld [vmem:[%s22497_s6 + $0xcb0] sm:$0xff] }
 0x5c4   : > { %10498 = vmatprep.subr.bf16.mxu1 %v13957_v36  ;;  %v3599_v32 = vld [vmem:[%s22497_s6 + $0xb78] sm:$0xff]  ;;  %v13994_v36 = vcombine.low %v3586_v16, %v3590_v25 }
 0x5c5   : > { %v14005_v39 = vcombine.high %v3595_v19, %v3599_v32  ;;  %v14004_v43 = vcombine.low %v3595_v19, %v3599_v32  ;;  %v3642_v32 = vld [vmem:[%s22497_s6 + $0xcd0] sm:$0xff] }
 0x5c6   : > { %10171 = vmatpush1.bf16.msra.mxu0 %v13954_v52  ;;  %v3606_v52 = vld [vmem:[%s22497_s6 + $0xbb0] sm:$0xff] }
 0x5c7   : > { %10499 = vmatpush1.bf16.msra.mxu1 %v13956_v63  ;;  %10172 = vmatprep.subr.bf16.mxu0 %v13963_v40  ;;  %v3603_v63 = vld [vmem:[%s22497_s6 + $0xb98] sm:$0xff]  ;;  %v14011_v23 = vcombine.high %v3602_v42, %v3606_v52 }
 0x5c8   : > { %10500 = vmatprep.subr.bf16.mxu1 %v13965_v6  ;;  %v3607_v40 = vld [vmem:[%s22497_s6 + $0xbb8] sm:$0xff]  ;;  %v14002_v6 = vcombine.low %v3594_v9, %v3598_v30  ;;  %v14043_v30 = vcombine.high %v3634_v26, %v3638_v27 }
 0x5c9   : > { %v14013_v0 = vcombine.high %v3603_v63, %v3607_v40  ;;  %v14012_v48 = vcombine.low %v3603_v63, %v3607_v40  ;;  %v3654_v63 = vld [vmem:[%s22497_s6 + $0xd30] sm:$0xff]  ;;  %v3651_v40 = vld [vmem:[%s22497_s6 + $0xd18] sm:$0xff] }
 0x5ca   : > { %10173 = vmatpush1.bf16.msra.mxu0 %v13962_v8  ;;  %v3614_v8 = vld [vmem:[%s22497_s6 + $0xbf0] sm:$0xff] }
 0x5cb   : > { %10501 = vmatpush1.bf16.msra.mxu1 %v13964_v45  ;;  %10174 = vmatprep.subr.bf16.mxu0 %v13971_v46  ;;  %v3611_v45 = vld [vmem:[%s22497_s6 + $0xbd8] sm:$0xff]  ;;  %v14019_v55 = vcombine.high %v3610_v44, %v3614_v8 }
 0x5cc   : > { %10502 = vmatprep.subr.bf16.mxu1 %v13973_v51  ;;  %v3615_v46 = vld [vmem:[%s22497_s6 + $0xbf8] sm:$0xff]  ;;  %v14010_v51 = vcombine.low %v3602_v42, %v3606_v52  ;;  %v3650_v52 = vld [vmem:[%s22497_s6 + $0xd10] sm:$0xff] }
 0x5cd   : > { %v14021_v18 = vcombine.high %v3611_v45, %v3615_v46  ;;  %v14020_v2 = vcombine.low %v3611_v45, %v3615_v46  ;;  %v3662_v45 = vld [vmem:[%s22497_s6 + $0xd70] sm:$0xff]  ;;  %v3659_v46 = vld [vmem:[%s22497_s6 + $0xd58] sm:$0xff] }
 0x5ce   : > { %10175 = vmatpush1.bf16.msra.mxu0 %v13970_v58  ;;  %v3622_v58 = vld [vmem:[%s22497_s6 + $0xc30] sm:$0xff] }
 0x5cf   : > { %10503 = vmatpush1.bf16.msra.mxu1 %v13972_v59  ;;  %10176 = vmatprep.subr.bf16.mxu0 %v13979_v62  ;;  %v3619_v59 = vld [vmem:[%s22497_s6 + $0xc18] sm:$0xff]  ;;  %v14027_v7 = vcombine.high %v3618_v57, %v3622_v58 }
 0x5d0   : > { %10504 = vmatprep.subr.bf16.mxu1 %v13981_v56  ;;  %v3623_v62 = vld [vmem:[%s22497_s6 + $0xc38] sm:$0xff]  ;;  %v14018_v56 = vcombine.low %v3610_v44, %v3614_v8  ;;  %v3658_v8 = vld [vmem:[%s22497_s6 + $0xd50] sm:$0xff] }
 0x5d1   : > { %v14029_v10 = vcombine.high %v3619_v59, %v3623_v62  ;;  %v14028_v16 = vcombine.low %v3619_v59, %v3623_v62  ;;  %v3670_v59 = vld [vmem:[%s22497_s6 + $0xdb0] sm:$0xff]  ;;  %v3667_v62 = vld [vmem:[%s22497_s6 + $0xd98] sm:$0xff] }
 0x5d2   : > { %10177 = vmatpush1.bf16.msra.mxu0 %v13978_v12  ;;  %v3630_v12 = vld [vmem:[%s22497_s6 + $0xc70] sm:$0xff] }
 0x5d3   : > { %10505 = vmatpush1.bf16.msra.mxu1 %v13980_v14  ;;  %10178 = vmatprep.subr.bf16.mxu0 %v13987_v15  ;;  %v14026_v14 = vcombine.low %v3618_v57, %v3622_v58  ;;  %v3627_v15 = vld [vmem:[%s22497_s6 + $0xc58] sm:$0xff]  ;;  %v14035_v25 = vcombine.high %v3626_v11, %v3630_v12  ;;  %v3666_v58 = vld [vmem:[%s22497_s6 + $0xd90] sm:$0xff] }
 0x5d4   : > { %10506 = vmatprep.subr.bf16.mxu1 %v13989_v3  ;;  %v3631_v3 = vld [vmem:[%s22497_s6 + $0xc78] sm:$0xff] }
 0x5d5   : > { %v14036_v9 = vcombine.low %v3627_v15, %v3631_v3 }
 0x5d6   : > { %10179 = vmatpush1.bf16.msra.mxu0 %v13986_v28  ;;  %v14037_v28 = vcombine.high %v3627_v15, %v3631_v3  ;;  %v3678_v15 = vld [vmem:[%s22497_s6 + $0xdf0] sm:$0xff] }
 0x5d7   : > { %10507 = vmatpush1.bf16.msra.mxu1 %v13988_v22  ;;  %10180 = vmatprep.subr.bf16.mxu0 %v13995_v29  ;;  %v3635_v22 = vld [vmem:[%s22497_s6 + $0xc98] sm:$0xff] }
 0x5d8   : > { %10508 = vmatprep.subr.bf16.mxu1 %v13997_v21  ;;  %v3639_v29 = vld [vmem:[%s22497_s6 + $0xcb8] sm:$0xff]  ;;  %v14034_v21 = vcombine.low %v3626_v11, %v3630_v12 }
 0x5d9   : > { %v14045_v19 = vcombine.high %v3635_v22, %v3639_v29 }
 0x5da   : > { %10181 = vmatpush1.bf16.msra.mxu0 %v13994_v36  ;;  %v3646_v36 = vld [vmem:[%s22497_s6 + $0xcf0] sm:$0xff] }
 0x5db   : > { %10509 = vmatpush1.bf16.msra.mxu1 %v13996_v5  ;;  %10182 = vmatprep.subr.bf16.mxu0 %v14003_v17  ;;  %v3647_v5 = vld [vmem:[%s22497_s6 + $0xcf8] sm:$0xff]  ;;  %v14044_v17 = vcombine.low %v3635_v22, %v3639_v29  ;;  %v14074_v22 = vcombine.low %v3666_v58, %v3670_v59 }
 0x5dc   : > { %10510 = vmatprep.subr.bf16.mxu1 %v14005_v39  ;;  %v14051_v39 = vcombine.high %v3642_v32, %v3646_v36 }
 0x5de   : > { %10183 = vmatpush1.bf16.msra.mxu0 %v14002_v6  ;;  %v3655_v6 = vld [vmem:[%s22497_s6 + $0xd38] sm:$0xff] }
 0x5df   : > { %10511 = vmatpush1.bf16.msra.mxu1 %v14004_v43  ;;  %10184 = vmatprep.subr.bf16.mxu0 %v14011_v23  ;;  %v14050_v43 = vcombine.low %v3642_v32, %v3646_v36  ;;  %v14061_v44 = vcombine.high %v3651_v40, %v3655_v6  ;;  %v3682_v36 = vld [vmem:[%s22497_s6 + $0xe10] sm:$0xff] }
 0x5e0   : > { %10512 = vmatprep.subr.bf16.mxu1 %v14013_v0  ;;  %v14059_v0 = vcombine.high %v3650_v52, %v3654_v63 }
 0x5e2   : > { %10185 = vmatpush1.bf16.msra.mxu0 %v14010_v51  ;;  %v3663_v51 = vld [vmem:[%s22497_s6 + $0xd78] sm:$0xff] }
 0x5e3   : > { %10513 = vmatpush1.bf16.msra.mxu1 %v14012_v48  ;;  %10186 = vmatprep.subr.bf16.mxu0 %v14019_v55  ;;  %v14058_v48 = vcombine.low %v3650_v52, %v3654_v63  ;;  %v14060_v55 = vcombine.low %v3651_v40, %v3655_v6  ;;  %v14069_v57 = vcombine.high %v3659_v46, %v3663_v51  ;;  %v3690_v63 = vld [vmem:[%s22497_s6 + $0xe50] sm:$0xff]  ;;  %v3691_v6 = vld [vmem:[%s22497_s6 + $0xe58] sm:$0xff] }
 0x5e4   : > { %10514 = vmatprep.subr.bf16.mxu1 %v14021_v18  ;;  %v14067_v18 = vcombine.high %v3658_v8, %v3662_v45  ;;  %v3694_v40 = vld [vmem:[%s22497_s6 + $0xe70] sm:$0xff] }
 0x5e6   : > { %10187 = vmatpush1.bf16.msra.mxu0 %v14018_v56  ;;  %v3671_v56 = vld [vmem:[%s22497_s6 + $0xdb8] sm:$0xff] }
 0x5e7   : > { %10515 = vmatpush1.bf16.msra.mxu1 %v14020_v2  ;;  %10197 = vmatprep.subr.bf16.mxu0 %v14027_v7  ;;  %v14066_v2 = vcombine.low %v3658_v8, %v3662_v45  ;;  %v14068_v7 = vcombine.low %v3659_v46, %v3663_v51  ;;  %v14077_v12 = vcombine.high %v3667_v62, %v3671_v56  ;;  %v3698_v45 = vld [vmem:[%s22497_s6 + $0xe90] sm:$0xff]  ;;  %v3699_v51 = vld [vmem:[%s22497_s6 + $0xe98] sm:$0xff] }
 0x5e8   : > { %10525 = vmatprep.subr.bf16.mxu1 %v14029_v10  ;;  %v14075_v10 = vcombine.high %v3666_v58, %v3670_v59  ;;  %v3702_v46 = vld [vmem:[%s22497_s6 + $0xeb0] sm:$0xff] }
 0x5e9   : > { %10189 = vmatmul.mubr.bf16.vlgmr.msra.gmra.mrb[52].mxu0 %v18977_v24  ;;  %v3706_v59 = vld [vmem:[%s22497_s6 + $0xed0] sm:$0xff] }
 0x5ea   : > { %10517 = vmatmul.mubr.bf16.vlgmr.msra.gmra.mrb[52].mxu1 %v18977_v24  ;;  %10198 = vmatpush1.bf16.msra.mxu0 %v14026_v14  ;;  %v3643_v24 = vld [vmem:[%s22497_s6 + $0xcd8] sm:$0xff]  ;;  %v3674_v14 = vld [vmem:[%s22497_s6 + $0xdd0] sm:$0xff] }
 0x5eb   : > { %10229 = vmatprep.mubr.bf16.mxu0 %v18993_v31  ;;  %10526 = vmatpush1.bf16.msra.mxu1 %v14028_v16  ;;  %v14053_v42 = vcombine.high %v3643_v24, %v3647_v5  ;;  %v14052_v23 = vcombine.low %v3643_v24, %v3647_v5  ;;  %v3686_v24 = vld [vmem:[%s22497_s6 + $0xe30] sm:$0xff]  ;;  %v3683_v5 = vld [vmem:[%s22497_s6 + $0xe18] sm:$0xff] }
 0x5ec   : > { %10557 = vmatprep.mubr.bf16.mxu1 %v18993_v31  ;;  %10199 = vmatprep.subr.bf16.mxu0 %v14035_v25  ;;  %v14042_v31 = vcombine.low %v3634_v26, %v3638_v27  ;;  %v3675_v25 = vld [vmem:[%s22497_s6 + $0xdd8] sm:$0xff] }
 0x5ed   : > { %10527 = vmatprep.subr.bf16.mxu1 %v14037_v28  ;;  %v3679_v26 = vld [vmem:[%s22497_s6 + $0xdf8] sm:$0xff] }
 0x5ee   : > { %10200 = vmatpush1.bf16.msra.mxu0 %v14034_v21  ;;  %v14085_v32 = vcombine.high %v3675_v25, %v3679_v26 }
 0x5ef   : > { %10528 = vmatpush1.bf16.msra.mxu1 %v14036_v9  ;;  %10201 = vmatprep.subr.bf16.mxu0 %v14043_v30  ;;  %v14076_v9 = vcombine.low %v3667_v62, %v3671_v56  ;;  %v14083_v30 = vcombine.high %v3674_v14, %v3678_v15  ;;  %v3710_v62 = vld [vmem:[%s22497_s6 + $0xef0] sm:$0xff]  ;;  %v3707_v56 = vld [vmem:[%s22497_s6 + $0xed8] sm:$0xff] }
 0x5f0   : > { %10529 = vmatprep.subr.bf16.mxu1 %v14045_v19 }
 0x5f2   : > { %10202 = vmatpush1.bf16.msra.mxu0 %v14042_v31  ;;  %v3687_v31 = vld [vmem:[%s22497_s6 + $0xe38] sm:$0xff] }
 0x5f3   : > { %10530 = vmatpush1.bf16.msra.mxu1 %v14044_v17  ;;  %10203 = vmatprep.subr.bf16.mxu0 %v14051_v39  ;;  %v14082_v17 = vcombine.low %v3674_v14, %v3678_v15  ;;  %v14084_v39 = vcombine.low %v3675_v25, %v3679_v26  ;;  %v14093_v52 = vcombine.high %v3683_v5, %v3687_v31  ;;  %v3714_v15 = vld [vmem:[%s22497_s6 + $0xf10] sm:$0xff]  ;;  %v3715_v26 = vld [vmem:[%s22497_s6 + $0xf18] sm:$0xff] }
 0x5f4   : > { %10531 = vmatprep.subr.bf16.mxu1 %v14053_v42  ;;  %v14091_v42 = vcombine.high %v3682_v36, %v3686_v24  ;;  %v3718_v25 = vld [vmem:[%s22497_s6 + $0xf30] sm:$0xff] }
 0x5f6   : > { %10204 = vmatpush1.bf16.msra.mxu0 %v14050_v43  ;;  %v3695_v43 = vld [vmem:[%s22497_s6 + $0xe78] sm:$0xff] }
 0x5f7   : > { %10532 = vmatpush1.bf16.msra.mxu1 %v14052_v23  ;;  %10205 = vmatprep.subr.bf16.mxu0 %v14059_v0  ;;  %v14090_v23 = vcombine.low %v3682_v36, %v3686_v24  ;;  %v14092_v0 = vcombine.low %v3683_v5, %v3687_v31  ;;  %v14101_v8 = vcombine.high %v3691_v6, %v3695_v43  ;;  %v3727_v36 = vld [vmem:[%s22497_s6 + $0xf78] sm:$0xff] }
 0x5f8   : > { %10533 = vmatprep.subr.bf16.mxu1 %v14061_v44  ;;  %v14099_v44 = vcombine.high %v3690_v63, %v3694_v40  ;;  %v14122_v24 = vcombine.low %v3714_v15, %v3718_v25 }
 0x5fa   : > { %10206 = vmatpush1.bf16.msra.mxu0 %v14058_v48  ;;  %v3703_v48 = vld [vmem:[%s22497_s6 + $0xeb8] sm:$0xff] }
 0x5fb   : > { %10534 = vmatpush1.bf16.msra.mxu1 %v14060_v55  ;;  %10207 = vmatprep.subr.bf16.mxu0 %v14067_v18  ;;  %v14098_v55 = vcombine.low %v3690_v63, %v3694_v40  ;;  %v14100_v18 = vcombine.low %v3691_v6, %v3695_v43  ;;  %v14109_v58 = vcombine.high %v3699_v51, %v3703_v48  ;;  %v3735_v63 = vld [vmem:[%s22497_s6 + $0xfb8] sm:$0xff] }
 0x5fc   : > { %v20651_v11 = vpop.f32.mrb[48].mxu0  ;;  %10535 = vmatprep.subr.bf16.mxu1 %v14069_v57  ;;  %v14107_v57 = vcombine.high %v3698_v45, %v3702_v46 }
 0x5fd   : > { %v20659_v3 = vpop.f32.mrb[48].mxu1  ;;  %v20661_v16 = vpop.f32.mrb[49].mxu0 }
 0x5fe   : > { %v20669_v27 = vpop.f32.mrb[49].mxu1  ;;  %v9743_v28 = vpop.f32.mrb[50].mxu0  ;;  %10208 = vmatpush1.bf16.msra.mxu0 %v14066_v2  ;;  %v3711_v2 = vld [vmem:[%s22497_s6 + $0xef8] sm:$0xff] }
 0x5ff   : > { %v10071_v29 = vpop.f32.mrb[50].mxu1  ;;  %10536 = vmatpush1.bf16.msra.mxu1 %v14068_v7  ;;  %v9744_v21 = vpop.f32.mrb[51].mxu0  ;;  %10209 = vmatprep.subr.bf16.mxu0 %v14075_v10  ;;  %v14106_v7 = vcombine.low %v3698_v45, %v3702_v46  ;;  %v14108_v10 = vcombine.low %v3699_v51, %v3703_v48  ;;  %v14117_v14 = vcombine.high %v3707_v56, %v3711_v2  ;;  %v3719_v28 = vld [vmem:[%s22497_s6 + $0xf38] sm:$0xff] }
 0x600   : > { %v10072_v19 = vpop.f32.mrb[51].mxu1  ;;  %10537 = vmatprep.subr.bf16.mxu1 %v14077_v12  ;;  %v14115_v12 = vcombine.high %v3706_v59, %v3710_v62  ;;  %v14116_v29 = vcombine.low %v3707_v56, %v3711_v2  ;;  %v14123_v21 = vcombine.high %v3714_v15, %v3718_v25  ;;  %v14124_v5 = vcombine.low %v3715_v26, %v3719_v28  ;;  %v3743_v45 = vld [vmem:[%s22497_s6 + $0xff8] sm:$0xff] }
 0x601   : > { %v3726_v19 = vld [vmem:[%s22497_s6 + $0xf70] sm:$0xff]  ;;  %v3755_v15 = vld [vmem:[%s22497_s6 + $0x1058] sm:$0xff] }
 0x602   : > { %10210 = vmatpush1.bf16.msra.mxu0 %v14074_v22  ;;  %v14114_v22 = vcombine.low %v3706_v59, %v3710_v62  ;;  %v3751_v59 = vld [vmem:[%s22497_s6 + $0x1038] sm:$0xff] }
 0x603   : > { %10538 = vmatpush1.bf16.msra.mxu1 %v14076_v9  ;;  %10211 = vmatprep.subr.bf16.mxu0 %v14083_v30  ;;  %v14125_v9 = vcombine.high %v3715_v26, %v3719_v28  ;;  %v3722_v30 = vld [vmem:[%s22497_s6 + $0xf50] sm:$0xff]  ;;  %v3759_v25 = vld [vmem:[%s22497_s6 + $0x1078] sm:$0xff] }
 0x604   : > { %10539 = vmatprep.subr.bf16.mxu1 %v14085_v32  ;;  %v3723_v32 = vld [vmem:[%s22497_s6 + $0xf58] sm:$0xff]  ;;  %v14131_v31 = vcombine.high %v3722_v30, %v3726_v19  ;;  %v14130_v40 = vcombine.low %v3722_v30, %v3726_v19 }
 0x605   : > { %v14132_v6 = vcombine.low %v3723_v32, %v3727_v36  ;;  %v3767_v30 = vld [vmem:[%s22497_s6 + $0x10b8] sm:$0xff] }
 0x606   : > { %10212 = vmatpush1.bf16.msra.mxu0 %v14082_v17  ;;  %v14133_v17 = vcombine.high %v3723_v32, %v3727_v36  ;;  %v14164_v32 = vcombine.low %v3755_v15, %v3759_v25 }
 0x607   : > { %10540 = vmatpush1.bf16.msra.mxu1 %v14084_v39  ;;  %10213 = vmatprep.subr.bf16.mxu0 %v14091_v42  ;;  %v3730_v39 = vld [vmem:[%s22497_s6 + $0xf90] sm:$0xff] }
 0x608   : > { %10541 = vmatprep.subr.bf16.mxu1 %v14093_v52  ;;  %v3734_v42 = vld [vmem:[%s22497_s6 + $0xfb0] sm:$0xff]  ;;  %v3731_v52 = vld [vmem:[%s22497_s6 + $0xf98] sm:$0xff] }
 0x609   : > { %v14139_v43 = vcombine.high %v3730_v39, %v3734_v42  ;;  %v14138_v46 = vcombine.low %v3730_v39, %v3734_v42  ;;  %v14140_v51 = vcombine.low %v3731_v52, %v3735_v63 }
 0x60a   : > { %10214 = vmatpush1.bf16.msra.mxu0 %v14090_v23  ;;  %v14141_v23 = vcombine.high %v3731_v52, %v3735_v63  ;;  %v3778_v63 = vld [vmem:[%s22497_s6 + $0x1110] sm:$0xff] }
 0x60b   : > { %10542 = vmatpush1.bf16.msra.mxu1 %v14092_v0  ;;  %10215 = vmatprep.subr.bf16.mxu0 %v14099_v44  ;;  %v3738_v0 = vld [vmem:[%s22497_s6 + $0xfd0] sm:$0xff] }
 0x60c   : > { %10543 = vmatprep.subr.bf16.mxu1 %v14101_v8  ;;  %v3742_v44 = vld [vmem:[%s22497_s6 + $0xff0] sm:$0xff]  ;;  %v3739_v8 = vld [vmem:[%s22497_s6 + $0xfd8] sm:$0xff] }
 0x60d   : > { %v14147_v48 = vcombine.high %v3738_v0, %v3742_v44  ;;  %v14146_v62 = vcombine.low %v3738_v0, %v3742_v44  ;;  %v14148_v56 = vcombine.low %v3739_v8, %v3743_v45 }
 0x60e   : > { %10216 = vmatpush1.bf16.msra.mxu0 %v14098_v55  ;;  %v14149_v55 = vcombine.high %v3739_v8, %v3743_v45  ;;  %v3786_v45 = vld [vmem:[%s22497_s6 + $0x1150] sm:$0xff] }
 0x60f   : > { %10544 = vmatpush1.bf16.msra.mxu1 %v14100_v18  ;;  %10217 = vmatprep.subr.bf16.mxu0 %v14107_v57  ;;  %v3746_v18 = vld [vmem:[%s22497_s6 + $0x1010] sm:$0xff] }
 0x610   : > { %10545 = vmatprep.subr.bf16.mxu1 %v14109_v58  ;;  %v3750_v57 = vld [vmem:[%s22497_s6 + $0x1030] sm:$0xff]  ;;  %v3747_v58 = vld [vmem:[%s22497_s6 + $0x1018] sm:$0xff] }
 0x611   : > { %v14155_v2 = vcombine.high %v3746_v18, %v3750_v57  ;;  %v14156_v26 = vcombine.low %v3747_v58, %v3751_v59 }
 0x612   : > { %10218 = vmatpush1.bf16.msra.mxu0 %v14106_v7  ;;  %v14157_v7 = vcombine.high %v3747_v58, %v3751_v59  ;;  %v3794_v59 = vld [vmem:[%s22497_s6 + $0x1190] sm:$0xff] }
 0x613   : > { %10546 = vmatpush1.bf16.msra.mxu1 %v14108_v10  ;;  %10219 = vmatprep.subr.bf16.mxu0 %v14115_v12  ;;  %v3754_v10 = vld [vmem:[%s22497_s6 + $0x1050] sm:$0xff] }
 0x614   : > { %10547 = vmatprep.subr.bf16.mxu1 %v14117_v14  ;;  %v3758_v12 = vld [vmem:[%s22497_s6 + $0x1070] sm:$0xff]  ;;  %v14154_v14 = vcombine.low %v3746_v18, %v3750_v57 }
 0x615   : > { %v14163_v28 = vcombine.high %v3754_v10, %v3758_v12  ;;  %v14162_v19 = vcombine.low %v3754_v10, %v3758_v12 }
 0x616   : > { %10220 = vmatpush1.bf16.msra.mxu0 %v14114_v22  ;;  %v3762_v22 = vld [vmem:[%s22497_s6 + $0x1090] sm:$0xff] }
 0x617   : > { %10548 = vmatpush1.bf16.msra.mxu1 %v14116_v29  ;;  %10221 = vmatprep.subr.bf16.mxu0 %v14123_v21  ;;  %v3766_v29 = vld [vmem:[%s22497_s6 + $0x10b0] sm:$0xff]  ;;  %v14165_v21 = vcombine.high %v3755_v15, %v3759_v25 }
 0x618   : > { %10549 = vmatprep.subr.bf16.mxu1 %v14125_v9  ;;  %v3763_v9 = vld [vmem:[%s22497_s6 + $0x1098] sm:$0xff]  ;;  %v14171_v36 = vcombine.high %v3762_v22, %v3766_v29  ;;  %v3802_v15 = vld [vmem:[%s22497_s6 + $0x11d0] sm:$0xff] }
 0x619   : > { %v14172_v39 = vcombine.low %v3763_v9, %v3767_v30  ;;  %v3806_v25 = vld [vmem:[%s22497_s6 + $0x11f0] sm:$0xff] }
 0x61a   : > { %10222 = vmatpush1.bf16.msra.mxu0 %v14122_v24  ;;  %v14173_v24 = vcombine.high %v3763_v9, %v3767_v30  ;;  %v3810_v30 = vld [vmem:[%s22497_s6 + $0x1210] sm:$0xff] }
 0x61b   : > { %10550 = vmatpush1.bf16.msra.mxu1 %v14124_v5  ;;  %10223 = vmatprep.subr.bf16.mxu0 %v14131_v31  ;;  %v3770_v5 = vld [vmem:[%s22497_s6 + $0x10d0] sm:$0xff] }
 0x61c   : > { %10551 = vmatprep.subr.bf16.mxu1 %v14133_v17  ;;  %v3774_v31 = vld [vmem:[%s22497_s6 + $0x10f0] sm:$0xff]  ;;  %v3775_v17 = vld [vmem:[%s22497_s6 + $0x10f8] sm:$0xff] }
 0x61d   : > { %v14179_v42 = vcombine.high %v3770_v5, %v3774_v31 }
 0x61e   : > { %10224 = vmatpush1.bf16.msra.mxu0 %v14130_v40  ;;  %v3782_v40 = vld [vmem:[%s22497_s6 + $0x1130] sm:$0xff] }
 0x61f   : > { %10552 = vmatpush1.bf16.msra.mxu1 %v14132_v6  ;;  %10225 = vmatprep.subr.bf16.mxu0 %v14139_v43  ;;  %v3779_v6 = vld [vmem:[%s22497_s6 + $0x1118] sm:$0xff]  ;;  %v14187_v44 = vcombine.high %v3778_v63, %v3782_v40 }
 0x620   : > { %10553 = vmatprep.subr.bf16.mxu1 %v14141_v23  ;;  %v3783_v43 = vld [vmem:[%s22497_s6 + $0x1138] sm:$0xff]  ;;  %v14178_v23 = vcombine.low %v3770_v5, %v3774_v31 }
 0x621   : > { %v14189_v8 = vcombine.high %v3779_v6, %v3783_v43  ;;  %v14188_v18 = vcombine.low %v3779_v6, %v3783_v43  ;;  %v3826_v43 = vld [vmem:[%s22497_s6 + $0x1290] sm:$0xff] }
 0x622   : > { %10226 = vmatpush1.bf16.msra.mxu0 %v14138_v46  ;;  %v3790_v46 = vld [vmem:[%s22497_s6 + $0x1170] sm:$0xff] }
 0x623   : > { %10554 = vmatpush1.bf16.msra.mxu1 %v14140_v51  ;;  %10227 = vmatprep.subr.bf16.mxu0 %v14147_v48  ;;  %v3787_v51 = vld [vmem:[%s22497_s6 + $0x1158] sm:$0xff]  ;;  %v14195_v57 = vcombine.high %v3786_v45, %v3790_v46 }
 0x624   : > { %10555 = vmatprep.subr.bf16.mxu1 %v14149_v55  ;;  %v3791_v48 = vld [vmem:[%s22497_s6 + $0x1178] sm:$0xff]  ;;  %v14186_v55 = vcombine.low %v3778_v63, %v3782_v40 }
 0x625   : > { %v14197_v58 = vcombine.high %v3787_v51, %v3791_v48  ;;  %v14196_v10 = vcombine.low %v3787_v51, %v3791_v48  ;;  %v3834_v48 = vld [vmem:[%s22497_s6 + $0x12d0] sm:$0xff] }
 0x626   : > { %10228 = vmatpush1.bf16.msra.mxu0 %v14146_v62  ;;  %v3798_v62 = vld [vmem:[%s22497_s6 + $0x11b0] sm:$0xff] }
 0x627   : > { %10556 = vmatpush1.bf16.msra.mxu1 %v14148_v56  ;;  %10238 = vmatprep.subr.bf16.mxu0 %v14155_v2  ;;  %v3795_v56 = vld [vmem:[%s22497_s6 + $0x1198] sm:$0xff]  ;;  %v14203_v12 = vcombine.high %v3794_v59, %v3798_v62 }
 0x628   : > { %10566 = vmatprep.subr.bf16.mxu1 %v14157_v7  ;;  %v3799_v2 = vld [vmem:[%s22497_s6 + $0x11b8] sm:$0xff]  ;;  %v14194_v7 = vcombine.low %v3786_v45, %v3790_v46 }
 0x629   : > { %10230 = vmatmul.mubr.bf16.vlgmr.msra.gmra.mrb[52].mxu0 %v19181_v20 }
 0x62a   : > { %10558 = vmatmul.mubr.bf16.vlgmr.msra.gmra.mrb[52].mxu1 %v19181_v20  ;;  %10239 = vmatpush1.bf16.msra.mxu0 %v14154_v14  ;;  %v3771_v20 = vld [vmem:[%s22497_s6 + $0x10d8] sm:$0xff]  ;;  %v14205_v14 = vcombine.high %v3795_v56, %v3799_v2 }
 0x62b   : > { %10270 = vmatprep.mubr.bf16.mxu0 %v19185_v33  ;;  %10567 = vmatpush1.bf16.msra.mxu1 %v14156_v26  ;;  %v14181_v52 = vcombine.high %v3771_v20, %v3775_v17  ;;  %v14180_v0 = vcombine.low %v3771_v20, %v3775_v17  ;;  %v3803_v26 = vld [vmem:[%s22497_s6 + $0x11d8] sm:$0xff]  ;;  %v3818_v17 = vld [vmem:[%s22497_s6 + $0x1250] sm:$0xff] }
 0x62c   : > { %10598 = vmatprep.mubr.bf16.mxu1 %v19185_v33  ;;  %10240 = vmatprep.subr.bf16.mxu0 %v14163_v28  ;;  %v14170_v33 = vcombine.low %v3762_v22, %v3766_v29  ;;  %v3807_v28 = vld [vmem:[%s22497_s6 + $0x11f8] sm:$0xff]  ;;  %v14202_v22 = vcombine.low %v3794_v59, %v3798_v62  ;;  %v14204_v29 = vcombine.low %v3795_v56, %v3799_v2  ;;  %v3842_v2 = vld [vmem:[%s22497_s6 + $0x1310] sm:$0xff] }
 0x62d   : > { %10568 = vmatprep.subr.bf16.mxu1 %v14165_v21  ;;  %v14211_v21 = vcombine.high %v3802_v15, %v3806_v25  ;;  %v14213_v9 = vcombine.high %v3803_v26, %v3807_v28  ;;  %v14212_v5 = vcombine.low %v3803_v26, %v3807_v28  ;;  %v3850_v28 = vld [vmem:[%s22497_s6 + $0x1350] sm:$0xff] }
 0x62e   : > { %10241 = vmatpush1.bf16.msra.mxu0 %v14162_v19  ;;  %v3814_v19 = vld [vmem:[%s22497_s6 + $0x1230] sm:$0xff] }
 0x62f   : > { %10569 = vmatpush1.bf16.msra.mxu1 %v14164_v32  ;;  %10242 = vmatprep.subr.bf16.mxu0 %v14171_v36  ;;  %v3811_v32 = vld [vmem:[%s22497_s6 + $0x1218] sm:$0xff]  ;;  %v14219_v31 = vcombine.high %v3810_v30, %v3814_v19 }
 0x630   : > { %10570 = vmatprep.subr.bf16.mxu1 %v14173_v24  ;;  %v3815_v36 = vld [vmem:[%s22497_s6 + $0x1238] sm:$0xff]  ;;  %v14210_v24 = vcombine.low %v3802_v15, %v3806_v25 }
 0x631   : > { %v14221_v20 = vcombine.high %v3811_v32, %v3815_v36  ;;  %v14220_v63 = vcombine.low %v3811_v32, %v3815_v36  ;;  %v3858_v36 = vld [vmem:[%s22497_s6 + $0x1390] sm:$0xff] }
 0x632   : > { %10243 = vmatpush1.bf16.msra.mxu0 %v14170_v33  ;;  %v3822_v33 = vld [vmem:[%s22497_s6 + $0x1270] sm:$0xff] }
 0x633   : > { %10571 = vmatpush1.bf16.msra.mxu1 %v14172_v39  ;;  %10244 = vmatprep.subr.bf16.mxu0 %v14179_v42  ;;  %v3819_v39 = vld [vmem:[%s22497_s6 + $0x1258] sm:$0xff]  ;;  %v14227_v40 = vcombine.high %v3818_v17, %v3822_v33 }
 0x634   : > { %10572 = vmatprep.subr.bf16.mxu1 %v14181_v52  ;;  %v3823_v42 = vld [vmem:[%s22497_s6 + $0x1278] sm:$0xff]  ;;  %v14218_v52 = vcombine.low %v3810_v30, %v3814_v19 }
 0x635   : > { %v14229_v6 = vcombine.high %v3819_v39, %v3823_v42  ;;  %v14228_v45 = vcombine.low %v3819_v39, %v3823_v42  ;;  %v3866_v42 = vld [vmem:[%s22497_s6 + $0x13d0] sm:$0xff] }
 0x636   : > { %10245 = vmatpush1.bf16.msra.mxu0 %v14178_v23  ;;  %v3830_v23 = vld [vmem:[%s22497_s6 + $0x12b0] sm:$0xff] }
 0x637   : > { %10573 = vmatpush1.bf16.msra.mxu1 %v14180_v0  ;;  %10246 = vmatprep.subr.bf16.mxu0 %v14187_v44  ;;  %v3827_v0 = vld [vmem:[%s22497_s6 + $0x1298] sm:$0xff]  ;;  %v14235_v46 = vcombine.high %v3826_v43, %v3830_v23 }
 0x638   : > { %10574 = vmatprep.subr.bf16.mxu1 %v14189_v8  ;;  %v3831_v44 = vld [vmem:[%s22497_s6 + $0x12b8] sm:$0xff]  ;;  %v14226_v8 = vcombine.low %v3818_v17, %v3822_v33 }
 0x639   : > { %v14237_v51 = vcombine.high %v3827_v0, %v3831_v44  ;;  %v14236_v59 = vcombine.low %v3827_v0, %v3831_v44  ;;  %v3874_v44 = vld [vmem:[%s22497_s6 + $0x1410] sm:$0xff] }
 0x63a   : > { %10247 = vmatpush1.bf16.msra.mxu0 %v14186_v55  ;;  %v3838_v55 = vld [vmem:[%s22497_s6 + $0x12f0] sm:$0xff] }
 0x63b   : > { %10575 = vmatpush1.bf16.msra.mxu1 %v14188_v18  ;;  %10248 = vmatprep.subr.bf16.mxu0 %v14195_v57  ;;  %v3835_v18 = vld [vmem:[%s22497_s6 + $0x12d8] sm:$0xff]  ;;  %v14243_v62 = vcombine.high %v3834_v48, %v3838_v55 }
 0x63c   : > { %10576 = vmatprep.subr.bf16.mxu1 %v14197_v58  ;;  %v3839_v57 = vld [vmem:[%s22497_s6 + $0x12f8] sm:$0xff]  ;;  %v14234_v58 = vcombine.low %v3826_v43, %v3830_v23 }
 0x63d   : > { %v14245_v56 = vcombine.high %v3835_v18, %v3839_v57  ;;  %v14244_v15 = vcombine.low %v3835_v18, %v3839_v57  ;;  %v3882_v57 = vld [vmem:[%s22497_s6 + $0x1450] sm:$0xff] }
 0x63e   : > { %10249 = vmatpush1.bf16.msra.mxu0 %v14194_v7  ;;  %v3846_v7 = vld [vmem:[%s22497_s6 + $0x1330] sm:$0xff] }
 0x63f   : > { %10577 = vmatpush1.bf16.msra.mxu1 %v14196_v10  ;;  %10250 = vmatprep.subr.bf16.mxu0 %v14203_v12  ;;  %v3843_v10 = vld [vmem:[%s22497_s6 + $0x1318] sm:$0xff]  ;;  %v14251_v25 = vcombine.high %v3842_v2, %v3846_v7 }
 0x640   : > { %10578 = vmatprep.subr.bf16.mxu1 %v14205_v14  ;;  %v3847_v12 = vld [vmem:[%s22497_s6 + $0x1338] sm:$0xff]  ;;  %v14242_v14 = vcombine.low %v3834_v48, %v3838_v55 }
 0x641   : > { %v14253_v26 = vcombine.high %v3843_v10, %v3847_v12  ;;  %v14252_v30 = vcombine.low %v3843_v10, %v3847_v12  ;;  %v3890_v10 = vld [vmem:[%s22497_s6 + $0x1490] sm:$0xff] }
 0x642   : > { %10251 = vmatpush1.bf16.msra.mxu0 %v14202_v22  ;;  %v3854_v22 = vld [vmem:[%s22497_s6 + $0x1370] sm:$0xff] }
 0x643   : > { %10579 = vmatpush1.bf16.msra.mxu1 %v14204_v29  ;;  %10252 = vmatprep.subr.bf16.mxu0 %v14211_v21  ;;  %v3851_v29 = vld [vmem:[%s22497_s6 + $0x1358] sm:$0xff]  ;;  %v14259_v19 = vcombine.high %v3850_v28, %v3854_v22  ;;  %v3894_v12 = vld [vmem:[%s22497_s6 + $0x14b0] sm:$0xff] }
 0x644   : > { %10580 = vmatprep.subr.bf16.mxu1 %v14213_v9  ;;  %v3855_v21 = vld [vmem:[%s22497_s6 + $0x1378] sm:$0xff]  ;;  %v14250_v9 = vcombine.low %v3842_v2, %v3846_v7 }
 0x645   : > { %v14261_v32 = vcombine.high %v3851_v29, %v3855_v21  ;;  %v14260_v17 = vcombine.low %v3851_v29, %v3855_v21  ;;  %v3898_v21 = vld [vmem:[%s22497_s6 + $0x14d0] sm:$0xff] }
 0x646   : > { %10253 = vmatpush1.bf16.msra.mxu0 %v14210_v24  ;;  %v3862_v24 = vld [vmem:[%s22497_s6 + $0x13b0] sm:$0xff] }
 0x647   : > { %10581 = vmatpush1.bf16.msra.mxu1 %v14212_v5  ;;  %10254 = vmatprep.subr.bf16.mxu0 %v14219_v31  ;;  %v3859_v5 = vld [vmem:[%s22497_s6 + $0x1398] sm:$0xff]  ;;  %v14267_v33 = vcombine.high %v3858_v36, %v3862_v24 }
 0x648   : > { %10582 = vmatprep.subr.bf16.mxu1 %v14221_v20  ;;  %v3863_v31 = vld [vmem:[%s22497_s6 + $0x13b8] sm:$0xff]  ;;  %v14258_v20 = vcombine.low %v3850_v28, %v3854_v22  ;;  %v14299_v22 = vcombine.high %v3890_v10, %v3894_v12 }
 0x649   : > { %v14269_v39 = vcombine.high %v3859_v5, %v3863_v31  ;;  %v14268_v43 = vcombine.low %v3859_v5, %v3863_v31  ;;  %v3910_v5 = vld [vmem:[%s22497_s6 + $0x1530] sm:$0xff]  ;;  %v3907_v31 = vld [vmem:[%s22497_s6 + $0x1518] sm:$0xff] }
 0x64a   : > { %10255 = vmatpush1.bf16.msra.mxu0 %v14218_v52  ;;  %v3870_v52 = vld [vmem:[%s22497_s6 + $0x13f0] sm:$0xff] }
 0x64b   : > { %10583 = vmatpush1.bf16.msra.mxu1 %v14220_v63  ;;  %10256 = vmatprep.subr.bf16.mxu0 %v14227_v40  ;;  %v3867_v63 = vld [vmem:[%s22497_s6 + $0x13d8] sm:$0xff]  ;;  %v14275_v23 = vcombine.high %v3866_v42, %v3870_v52 }
 0x64c   : > { %10584 = vmatprep.subr.bf16.mxu1 %v14229_v6  ;;  %v3871_v40 = vld [vmem:[%s22497_s6 + $0x13f8] sm:$0xff]  ;;  %v14266_v6 = vcombine.low %v3858_v36, %v3862_v24  ;;  %v3906_v24 = vld [vmem:[%s22497_s6 + $0x1510] sm:$0xff] }
 0x64d   : > { %v14277_v0 = vcombine.high %v3867_v63, %v3871_v40  ;;  %v14276_v48 = vcombine.low %v3867_v63, %v3871_v40  ;;  %v3918_v63 = vld [vmem:[%s22497_s6 + $0x1570] sm:$0xff]  ;;  %v3915_v40 = vld [vmem:[%s22497_s6 + $0x1558] sm:$0xff] }
 0x64e   : > { %10257 = vmatpush1.bf16.msra.mxu0 %v14226_v8  ;;  %v3878_v8 = vld [vmem:[%s22497_s6 + $0x1430] sm:$0xff] }
 0x64f   : > { %10585 = vmatpush1.bf16.msra.mxu1 %v14228_v45  ;;  %10258 = vmatprep.subr.bf16.mxu0 %v14235_v46  ;;  %v3875_v45 = vld [vmem:[%s22497_s6 + $0x1418] sm:$0xff]  ;;  %v14283_v55 = vcombine.high %v3874_v44, %v3878_v8 }
 0x650   : > { %10586 = vmatprep.subr.bf16.mxu1 %v14237_v51  ;;  %v3879_v46 = vld [vmem:[%s22497_s6 + $0x1438] sm:$0xff]  ;;  %v14274_v51 = vcombine.low %v3866_v42, %v3870_v52  ;;  %v3914_v52 = vld [vmem:[%s22497_s6 + $0x1550] sm:$0xff] }
 0x651   : > { %v14285_v18 = vcombine.high %v3875_v45, %v3879_v46  ;;  %v14284_v2 = vcombine.low %v3875_v45, %v3879_v46  ;;  %v3926_v45 = vld [vmem:[%s22497_s6 + $0x15b0] sm:$0xff]  ;;  %v3923_v46 = vld [vmem:[%s22497_s6 + $0x1598] sm:$0xff] }
 0x652   : > { %10259 = vmatpush1.bf16.msra.mxu0 %v14234_v58  ;;  %v3886_v58 = vld [vmem:[%s22497_s6 + $0x1470] sm:$0xff] }
 0x653   : > { %10587 = vmatpush1.bf16.msra.mxu1 %v14236_v59  ;;  %10260 = vmatprep.subr.bf16.mxu0 %v14243_v62  ;;  %v14282_v59 = vcombine.low %v3874_v44, %v3878_v8  ;;  %v3883_v62 = vld [vmem:[%s22497_s6 + $0x1458] sm:$0xff]  ;;  %v14291_v7 = vcombine.high %v3882_v57, %v3886_v58  ;;  %v3922_v8 = vld [vmem:[%s22497_s6 + $0x1590] sm:$0xff] }
 0x654   : > { %10588 = vmatprep.subr.bf16.mxu1 %v14245_v56  ;;  %v3887_v56 = vld [vmem:[%s22497_s6 + $0x1478] sm:$0xff] }
 0x655   : > { %v14292_v28 = vcombine.low %v3883_v62, %v3887_v56 }
 0x656   : > { %10261 = vmatpush1.bf16.msra.mxu0 %v14242_v14  ;;  %v14293_v14 = vcombine.high %v3883_v62, %v3887_v56  ;;  %v3931_v62 = vld [vmem:[%s22497_s6 + $0x15d8] sm:$0xff] }
 0x657   : > { %10589 = vmatpush1.bf16.msra.mxu1 %v14244_v15  ;;  %10262 = vmatprep.subr.bf16.mxu0 %v14251_v25  ;;  %v3891_v15 = vld [vmem:[%s22497_s6 + $0x1498] sm:$0xff] }
 0x658   : > { %10590 = vmatprep.subr.bf16.mxu1 %v14253_v26  ;;  %v3895_v25 = vld [vmem:[%s22497_s6 + $0x14b8] sm:$0xff]  ;;  %v14290_v26 = vcombine.low %v3882_v57, %v3886_v58  ;;  %v3930_v58 = vld [vmem:[%s22497_s6 + $0x15d0] sm:$0xff] }
 0x659   : > { %v14301_v29 = vcombine.high %v3891_v15, %v3895_v25  ;;  %v3935_v56 = vld [vmem:[%s22497_s6 + $0x15f8] sm:$0xff] }
 0x65a   : > { %10263 = vmatpush1.bf16.msra.mxu0 %v14250_v9  ;;  %v3902_v9 = vld [vmem:[%s22497_s6 + $0x14f0] sm:$0xff] }
 0x65b   : > { %10591 = vmatpush1.bf16.msra.mxu1 %v14252_v30  ;;  %10264 = vmatprep.subr.bf16.mxu0 %v14259_v19  ;;  %v3903_v30 = vld [vmem:[%s22497_s6 + $0x14f8] sm:$0xff]  ;;  %v14300_v19 = vcombine.low %v3891_v15, %v3895_v25  ;;  %v3942_v15 = vld [vmem:[%s22497_s6 + $0x1630] sm:$0xff] }
 0x65c   : > { %10592 = vmatprep.subr.bf16.mxu1 %v14261_v32  ;;  %v14307_v32 = vcombine.high %v3898_v21, %v3902_v9  ;;  %v3939_v25 = vld [vmem:[%s22497_s6 + $0x1618] sm:$0xff] }
 0x65e   : > { %10265 = vmatpush1.bf16.msra.mxu0 %v14258_v20  ;;  %v3911_v20 = vld [vmem:[%s22497_s6 + $0x1538] sm:$0xff] }
 0x65f   : > { %10593 = vmatpush1.bf16.msra.mxu1 %v14260_v17  ;;  %10266 = vmatprep.subr.bf16.mxu0 %v14267_v33  ;;  %v14306_v17 = vcombine.low %v3898_v21, %v3902_v9  ;;  %v14317_v42 = vcombine.high %v3907_v31, %v3911_v20  ;;  %v3946_v9 = vld [vmem:[%s22497_s6 + $0x1650] sm:$0xff] }
 0x660   : > { %10594 = vmatprep.subr.bf16.mxu1 %v14269_v39  ;;  %v14315_v39 = vcombine.high %v3906_v24, %v3910_v5 }
 0x662   : > { %10267 = vmatpush1.bf16.msra.mxu0 %v14266_v6  ;;  %v3919_v6 = vld [vmem:[%s22497_s6 + $0x1578] sm:$0xff] }
 0x663   : > { %10595 = vmatpush1.bf16.msra.mxu1 %v14268_v43  ;;  %10268 = vmatprep.subr.bf16.mxu0 %v14275_v23  ;;  %v14314_v43 = vcombine.low %v3906_v24, %v3910_v5  ;;  %v14316_v23 = vcombine.low %v3907_v31, %v3911_v20  ;;  %v14325_v44 = vcombine.high %v3915_v40, %v3919_v6  ;;  %v3954_v5 = vld [vmem:[%s22497_s6 + $0x1690] sm:$0xff]  ;;  %v3955_v20 = vld [vmem:[%s22497_s6 + $0x1698] sm:$0xff] }
 0x664   : > { %10596 = vmatprep.subr.bf16.mxu1 %v14277_v0  ;;  %v14323_v0 = vcombine.high %v3914_v52, %v3918_v63  ;;  %v3958_v31 = vld [vmem:[%s22497_s6 + $0x16b0] sm:$0xff] }
 0x666   : > { %10269 = vmatpush1.bf16.msra.mxu0 %v14274_v51  ;;  %v3927_v51 = vld [vmem:[%s22497_s6 + $0x15b8] sm:$0xff] }
 0x667   : > { %10597 = vmatpush1.bf16.msra.mxu1 %v14276_v48  ;;  %10279 = vmatprep.subr.bf16.mxu0 %v14283_v55  ;;  %v14322_v48 = vcombine.low %v3914_v52, %v3918_v63  ;;  %v14324_v55 = vcombine.low %v3915_v40, %v3919_v6  ;;  %v14333_v57 = vcombine.high %v3923_v46, %v3927_v51  ;;  %v3962_v63 = vld [vmem:[%s22497_s6 + $0x16d0] sm:$0xff]  ;;  %v3963_v6 = vld [vmem:[%s22497_s6 + $0x16d8] sm:$0xff] }
 0x668   : > { %10607 = vmatprep.subr.bf16.mxu1 %v14285_v18  ;;  %v14331_v18 = vcombine.high %v3922_v8, %v3926_v45  ;;  %v3966_v40 = vld [vmem:[%s22497_s6 + $0x16f0] sm:$0xff] }
 0x669   : > { %10271 = vmatmul.mubr.bf16.vlgmr.msra.gmra.mrb[52].mxu0 %v19385_v41 }
 0x66a   : > { %10599 = vmatmul.mubr.bf16.vlgmr.msra.gmra.mrb[52].mxu1 %v19385_v41  ;;  %10280 = vmatpush1.bf16.msra.mxu0 %v14282_v59  ;;  %v3899_v41 = vld [vmem:[%s22497_s6 + $0x14d8] sm:$0xff]  ;;  %v3934_v59 = vld [vmem:[%s22497_s6 + $0x15f0] sm:$0xff] }
 0x66b   : > { %10311 = vmatprep.mubr.bf16.mxu0 %v19395_v47  ;;  %10608 = vmatpush1.bf16.msra.mxu1 %v14284_v2  ;;  %v14309_v36 = vcombine.high %v3899_v41, %v3903_v30  ;;  %v14308_v33 = vcombine.low %v3899_v41, %v3903_v30  ;;  %v14330_v2 = vcombine.low %v3922_v8, %v3926_v45  ;;  %v3950_v41 = vld [vmem:[%s22497_s6 + $0x1670] sm:$0xff]  ;;  %v3947_v30 = vld [vmem:[%s22497_s6 + $0x1658] sm:$0xff] }
 0x66c   : > { %10639 = vmatprep.mubr.bf16.mxu1 %v19395_v47  ;;  %10281 = vmatprep.subr.bf16.mxu0 %v14291_v7  ;;  %v14298_v47 = vcombine.low %v3890_v10, %v3894_v12  ;;  %v14332_v7 = vcombine.low %v3923_v46, %v3927_v51  ;;  %v14339_v10 = vcombine.high %v3930_v58, %v3934_v59  ;;  %v3970_v45 = vld [vmem:[%s22497_s6 + $0x1710] sm:$0xff]  ;;  %v3971_v51 = vld [vmem:[%s22497_s6 + $0x1718] sm:$0xff] }
 0x66d   : > { %10609 = vmatprep.subr.bf16.mxu1 %v14293_v14  ;;  %v14341_v12 = vcombine.high %v3931_v62, %v3935_v56  ;;  %v3938_v14 = vld [vmem:[%s22497_s6 + $0x1610] sm:$0xff] }
 0x66e   : > { %10282 = vmatpush1.bf16.msra.mxu0 %v14290_v26  ;;  %v3943_v26 = vld [vmem:[%s22497_s6 + $0x1638] sm:$0xff]  ;;  %v3974_v46 = vld [vmem:[%s22497_s6 + $0x1730] sm:$0xff] }
 0x66f   : > { %10610 = vmatpush1.bf16.msra.mxu1 %v14292_v28  ;;  %10283 = vmatprep.subr.bf16.mxu0 %v14299_v22  ;;  %v14338_v28 = vcombine.low %v3930_v58, %v3934_v59  ;;  %v14340_v22 = vcombine.low %v3931_v62, %v3935_v56  ;;  %v14349_v21 = vcombine.high %v3939_v25, %v3943_v26  ;;  %v3978_v59 = vld [vmem:[%s22497_s6 + $0x1750] sm:$0xff]  ;;  %v3979_v56 = vld [vmem:[%s22497_s6 + $0x1758] sm:$0xff] }
 0x670   : > { %10611 = vmatprep.subr.bf16.mxu1 %v14301_v29  ;;  %v14347_v29 = vcombine.high %v3938_v14, %v3942_v15  ;;  %v3982_v62 = vld [vmem:[%s22497_s6 + $0x1770] sm:$0xff] }
 0x672   : > { %10284 = vmatpush1.bf16.msra.mxu0 %v14298_v47  ;;  %v3951_v47 = vld [vmem:[%s22497_s6 + $0x1678] sm:$0xff] }
 0x673   : > { %10612 = vmatpush1.bf16.msra.mxu1 %v14300_v19  ;;  %10285 = vmatprep.subr.bf16.mxu0 %v14307_v32  ;;  %v14346_v19 = vcombine.low %v3938_v14, %v3942_v15  ;;  %v14348_v32 = vcombine.low %v3939_v25, %v3943_v26  ;;  %v14357_v24 = vcombine.high %v3947_v30, %v3951_v47  ;;  %v3986_v15 = vld [vmem:[%s22497_s6 + $0x1790] sm:$0xff]  ;;  %v3987_v26 = vld [vmem:[%s22497_s6 + $0x1798] sm:$0xff] }
 0x674   : > { %10613 = vmatprep.subr.bf16.mxu1 %v14309_v36  ;;  %v14355_v36 = vcombine.high %v3946_v9, %v3950_v41  ;;  %v3990_v25 = vld [vmem:[%s22497_s6 + $0x17b0] sm:$0xff] }
 0x676   : > { %10286 = vmatpush1.bf16.msra.mxu0 %v14306_v17  ;;  %v3959_v17 = vld [vmem:[%s22497_s6 + $0x16b8] sm:$0xff] }
 0x677   : > { %10614 = vmatpush1.bf16.msra.mxu1 %v14308_v33  ;;  %10287 = vmatprep.subr.bf16.mxu0 %v14315_v39  ;;  %v14354_v33 = vcombine.low %v3946_v9, %v3950_v41  ;;  %v14356_v39 = vcombine.low %v3947_v30, %v3951_v47  ;;  %v14365_v52 = vcombine.high %v3955_v20, %v3959_v17  ;;  %v3994_v41 = vld [vmem:[%s22497_s6 + $0x17d0] sm:$0xff]  ;;  %v3995_v47 = vld [vmem:[%s22497_s6 + $0x17d8] sm:$0xff] }
 0x678   : > { %10615 = vmatprep.subr.bf16.mxu1 %v14317_v42  ;;  %v14363_v42 = vcombine.high %v3954_v5, %v3958_v31  ;;  %v3998_v30 = vld [vmem:[%s22497_s6 + $0x17f0] sm:$0xff] }
 0x67a   : > { %10288 = vmatpush1.bf16.msra.mxu0 %v14314_v43  ;;  %v3967_v43 = vld [vmem:[%s22497_s6 + $0x16f8] sm:$0xff] }
 0x67b   : > { %10616 = vmatpush1.bf16.msra.mxu1 %v14316_v23  ;;  %10289 = vmatprep.subr.bf16.mxu0 %v14323_v0  ;;  %v14362_v23 = vcombine.low %v3954_v5, %v3958_v31  ;;  %v14364_v0 = vcombine.low %v3955_v20, %v3959_v17  ;;  %v14373_v8 = vcombine.high %v3963_v6, %v3967_v43  ;;  %v4002_v31 = vld [vmem:[%s22497_s6 + $0x1810] sm:$0xff]  ;;  %v4003_v17 = vld [vmem:[%s22497_s6 + $0x1818] sm:$0xff] }
 0x67c   : > { %10617 = vmatprep.subr.bf16.mxu1 %v14325_v44  ;;  %v14371_v44 = vcombine.high %v3962_v63, %v3966_v40  ;;  %v4006_v20 = vld [vmem:[%s22497_s6 + $0x1830] sm:$0xff] }
 0x67e   : > { %10290 = vmatpush1.bf16.msra.mxu0 %v14322_v48  ;;  %v3975_v48 = vld [vmem:[%s22497_s6 + $0x1738] sm:$0xff] }
 0x67f   : > { %10618 = vmatpush1.bf16.msra.mxu1 %v14324_v55  ;;  %10291 = vmatprep.subr.bf16.mxu0 %v14331_v18  ;;  %v14370_v55 = vcombine.low %v3962_v63, %v3966_v40  ;;  %v14372_v18 = vcombine.low %v3963_v6, %v3967_v43  ;;  %v14381_v58 = vcombine.high %v3971_v51, %v3975_v48  ;;  %v4010_v40 = vld [vmem:[%s22497_s6 + $0x1850] sm:$0xff] }
 0x680   : > { %10619 = vmatprep.subr.bf16.mxu1 %v14333_v57  ;;  %v14379_v57 = vcombine.high %v3970_v45, %v3974_v46  ;;  %v4014_v6 = vld [vmem:[%s22497_s6 + $0x1870] sm:$0xff]  ;;  %v14410_v43 = vcombine.low %v4002_v31, %v4006_v20 }
 0x682   : > { %10292 = vmatpush1.bf16.msra.mxu0 %v14330_v2  ;;  %v3983_v2 = vld [vmem:[%s22497_s6 + $0x1778] sm:$0xff] }
 0x683   : > { %10620 = vmatpush1.bf16.msra.mxu1 %v14332_v7  ;;  %10293 = vmatprep.subr.bf16.mxu0 %v14339_v10  ;;  %v14378_v7 = vcombine.low %v3970_v45, %v3974_v46  ;;  %v14380_v10 = vcombine.low %v3971_v51, %v3975_v48  ;;  %v14389_v14 = vcombine.high %v3979_v56, %v3983_v2  ;;  %v4018_v45 = vld [vmem:[%s22497_s6 + $0x1890] sm:$0xff]  ;;  %v4019_v48 = vld [vmem:[%s22497_s6 + $0x1898] sm:$0xff] }
 0x684   : > { %10621 = vmatprep.subr.bf16.mxu1 %v14341_v12  ;;  %v14387_v12 = vcombine.high %v3978_v59, %v3982_v62  ;;  %v4022_v46 = vld [vmem:[%s22497_s6 + $0x18b0] sm:$0xff] }
 0x686   : > { %10294 = vmatpush1.bf16.msra.mxu0 %v14338_v28  ;;  %v3991_v28 = vld [vmem:[%s22497_s6 + $0x17b8] sm:$0xff] }
 0x687   : > { %10622 = vmatpush1.bf16.msra.mxu1 %v14340_v22  ;;  %10295 = vmatprep.subr.bf16.mxu0 %v14347_v29  ;;  %v14386_v22 = vcombine.low %v3978_v59, %v3982_v62  ;;  %v14388_v29 = vcombine.low %v3979_v56, %v3983_v2  ;;  %v14397_v9 = vcombine.high %v3987_v26, %v3991_v28  ;;  %v4026_v62 = vld [vmem:[%s22497_s6 + $0x18d0] sm:$0xff]  ;;  %v4031_v2 = vld [vmem:[%s22497_s6 + $0x18f8] sm:$0xff] }
 0x688   : > { %10623 = vmatprep.subr.bf16.mxu1 %v14349_v21  ;;  %v14395_v21 = vcombine.high %v3986_v15, %v3990_v25  ;;  %v4030_v56 = vld [vmem:[%s22497_s6 + $0x18f0] sm:$0xff] }
 0x68a   : > { %10296 = vmatpush1.bf16.msra.mxu0 %v14346_v19  ;;  %v3999_v19 = vld [vmem:[%s22497_s6 + $0x17f8] sm:$0xff] }
 0x68b   : > { %10624 = vmatpush1.bf16.msra.mxu1 %v14348_v32  ;;  %10297 = vmatprep.subr.bf16.mxu0 %v14355_v36  ;;  %v14394_v32 = vcombine.low %v3986_v15, %v3990_v25  ;;  %v14396_v36 = vcombine.low %v3987_v26, %v3991_v28  ;;  %v14405_v5 = vcombine.high %v3995_v47, %v3999_v19  ;;  %v4038_v15 = vld [vmem:[%s22497_s6 + $0x1930] sm:$0xff]  ;;  %v4035_v25 = vld [vmem:[%s22497_s6 + $0x1918] sm:$0xff] }
 0x68c   : > { %10625 = vmatprep.subr.bf16.mxu1 %v14357_v24  ;;  %v14403_v24 = vcombine.high %v3994_v41, %v3998_v30  ;;  %v4039_v26 = vld [vmem:[%s22497_s6 + $0x1938] sm:$0xff]  ;;  %v14434_v28 = vcombine.low %v4026_v62, %v4030_v56 }
 0x68e   : > { %10298 = vmatpush1.bf16.msra.mxu0 %v14354_v33  ;;  %v4007_v33 = vld [vmem:[%s22497_s6 + $0x1838] sm:$0xff] }
 0x68f   : > { %10626 = vmatpush1.bf16.msra.mxu1 %v14356_v39  ;;  %10299 = vmatprep.subr.bf16.mxu0 %v14363_v42  ;;  %v14402_v39 = vcombine.low %v3994_v41, %v3998_v30  ;;  %v14404_v42 = vcombine.low %v3995_v47, %v3999_v19  ;;  %v14413_v63 = vcombine.high %v4003_v17, %v4007_v33  ;;  %v4046_v41 = vld [vmem:[%s22497_s6 + $0x1970] sm:$0xff]  ;;  %v4043_v30 = vld [vmem:[%s22497_s6 + $0x1958] sm:$0xff] }
 0x690   : > { %10627 = vmatprep.subr.bf16.mxu1 %v14365_v52  ;;  %v14411_v52 = vcombine.high %v4002_v31, %v4006_v20  ;;  %v4047_v47 = vld [vmem:[%s22497_s6 + $0x1978] sm:$0xff]  ;;  %v4054_v31 = vld [vmem:[%s22497_s6 + $0x19b0] sm:$0xff] }
 0x691   : > { %v4051_v20 = vld [vmem:[%s22497_s6 + $0x1998] sm:$0xff] }
 0x692   : > { %10300 = vmatpush1.bf16.msra.mxu0 %v14362_v23  ;;  %v4011_v23 = vld [vmem:[%s22497_s6 + $0x1858] sm:$0xff] }
 0x693   : > { %10628 = vmatpush1.bf16.msra.mxu1 %v14364_v0  ;;  %10301 = vmatprep.subr.bf16.mxu0 %v14371_v44  ;;  %v4015_v0 = vld [vmem:[%s22497_s6 + $0x1878] sm:$0xff]  ;;  %v14412_v44 = vcombine.low %v4003_v17, %v4007_v33 }
 0x694   : > { %10629 = vmatprep.subr.bf16.mxu1 %v14373_v8  ;;  %v14419_v8 = vcombine.high %v4010_v40, %v4014_v6  ;;  %v14421_v51 = vcombine.high %v4011_v23, %v4015_v0  ;;  %v4055_v17 = vld [vmem:[%s22497_s6 + $0x19b8] sm:$0xff] }
 0x696   : > { %10302 = vmatpush1.bf16.msra.mxu0 %v14370_v55  ;;  %v4023_v55 = vld [vmem:[%s22497_s6 + $0x18b8] sm:$0xff] }
 0x697   : > { %10630 = vmatpush1.bf16.msra.mxu1 %v14372_v18  ;;  %10303 = vmatprep.subr.bf16.mxu0 %v14379_v57  ;;  %v14418_v18 = vcombine.low %v4010_v40, %v4014_v6  ;;  %v14420_v57 = vcombine.low %v4011_v23, %v4015_v0  ;;  %v14429_v59 = vcombine.high %v4019_v48, %v4023_v55  ;;  %v4062_v40 = vld [vmem:[%s22497_s6 + $0x19f0] sm:$0xff]  ;;  %v4059_v6 = vld [vmem:[%s22497_s6 + $0x19d8] sm:$0xff] }
 0x698   : > { %10631 = vmatprep.subr.bf16.mxu1 %v14381_v58  ;;  %v14427_v58 = vcombine.high %v4018_v45, %v4022_v46  ;;  %v14460_v0 = vcombine.low %v4051_v20, %v4055_v17 }
 0x69a   : > { %10304 = vmatpush1.bf16.msra.mxu0 %v14378_v7  ;;  %v14428_v7 = vcombine.low %v4019_v48, %v4023_v55  ;;  %v4071_v48 = vld [vmem:[%s22497_s6 + $0x1a38] sm:$0xff] }
 0x69b   : > { %10632 = vmatpush1.bf16.msra.mxu1 %v14380_v10  ;;  %10305 = vmatprep.subr.bf16.mxu0 %v14387_v12  ;;  %v14435_v10 = vcombine.high %v4026_v62, %v4030_v56  ;;  %v4078_v62 = vld [vmem:[%s22497_s6 + $0x1a70] sm:$0xff]  ;;  %v4075_v56 = vld [vmem:[%s22497_s6 + $0x1a58] sm:$0xff] }
 0x69c   : > { %10633 = vmatprep.subr.bf16.mxu1 %v14389_v14  ;;  %v4034_v14 = vld [vmem:[%s22497_s6 + $0x1910] sm:$0xff] }
 0x69d   : > { %v14442_v19 = vcombine.low %v4034_v14, %v4038_v15 }
 0x69e   : > { %10306 = vmatpush1.bf16.msra.mxu0 %v14386_v22 }
 0x69f   : > { %10634 = vmatpush1.bf16.msra.mxu1 %v14388_v29  ;;  %10307 = vmatprep.subr.bf16.mxu0 %v14395_v21  ;;  %v14443_v29 = vcombine.high %v4034_v14, %v4038_v15  ;;  %v14445_v21 = vcombine.high %v4035_v25, %v4039_v26  ;;  %v4086_v14 = vld [vmem:[%s22497_s6 + $0x1ab0] sm:$0xff]  ;;  %v4083_v15 = vld [vmem:[%s22497_s6 + $0x1a98] sm:$0xff] }
 0x6a0   : > { %10635 = vmatprep.subr.bf16.mxu1 %v14397_v9  ;;  %v4042_v9 = vld [vmem:[%s22497_s6 + $0x1950] sm:$0xff] }
 0x6a1   : > { %v14450_v33 = vcombine.low %v4042_v9, %v4046_v41 }
 0x6a2   : > { %10308 = vmatpush1.bf16.msra.mxu0 %v14394_v32  ;;  %v14444_v32 = vcombine.low %v4035_v25, %v4039_v26  ;;  %v4087_v25 = vld [vmem:[%s22497_s6 + $0x1ab8] sm:$0xff] }
 0x6a3   : > { %10636 = vmatpush1.bf16.msra.mxu1 %v14396_v36  ;;  %10309 = vmatprep.subr.bf16.mxu0 %v14403_v24  ;;  %v14451_v36 = vcombine.high %v4042_v9, %v4046_v41  ;;  %v14453_v24 = vcombine.high %v4043_v30, %v4047_v47  ;;  %v4094_v9 = vld [vmem:[%s22497_s6 + $0x1af0] sm:$0xff]  ;;  %v4091_v41 = vld [vmem:[%s22497_s6 + $0x1ad8] sm:$0xff] }
 0x6a4   : > { %10637 = vmatprep.subr.bf16.mxu1 %v14405_v5  ;;  %v4050_v5 = vld [vmem:[%s22497_s6 + $0x1990] sm:$0xff] }
 0x6a5   : > { %v14458_v23 = vcombine.low %v4050_v5, %v4054_v31 }
 0x6a6   : > { %10310 = vmatpush1.bf16.msra.mxu0 %v14402_v39  ;;  %v14452_v39 = vcombine.low %v4043_v30, %v4047_v47  ;;  %v4095_v30 = vld [vmem:[%s22497_s6 + $0x1af8] sm:$0xff] }
 0x6a7   : > { %10638 = vmatpush1.bf16.msra.mxu1 %v14404_v42  ;;  %10320 = vmatprep.subr.bf16.mxu0 %v14411_v52  ;;  %v14459_v42 = vcombine.high %v4050_v5, %v4054_v31  ;;  %v14461_v52 = vcombine.high %v4051_v20, %v4055_v17  ;;  %v4102_v5 = vld [vmem:[%s22497_s6 + $0x1b30] sm:$0xff]  ;;  %v4099_v31 = vld [vmem:[%s22497_s6 + $0x1b18] sm:$0xff] }
 0x6a8   : > { %10648 = vmatprep.subr.bf16.mxu1 %v14413_v63  ;;  %v4058_v63 = vld [vmem:[%s22497_s6 + $0x19d0] sm:$0xff]  ;;  %v4103_v20 = vld [vmem:[%s22497_s6 + $0x1b38] sm:$0xff] }
 0x6a9   : > { %10312 = vmatmul.mubr.bf16.vlgmr.msra.gmra.mrb[52].mxu0 %v19589_v61  ;;  %v14466_v55 = vcombine.low %v4058_v63, %v4062_v40 }
 0x6aa   : > { %10640 = vmatmul.mubr.bf16.vlgmr.msra.gmra.mrb[52].mxu1 %v19589_v61  ;;  %10321 = vmatpush1.bf16.msra.mxu0 %v14410_v43  ;;  %v4027_v61 = vld [vmem:[%s22497_s6 + $0x18d8] sm:$0xff] }
 0x6ab   : > { %10352 = vmatprep.mubr.bf16.mxu0 %v19599_v1  ;;  %10649 = vmatpush1.bf16.msra.mxu1 %v14412_v44  ;;  %v14437_v12 = vcombine.high %v4027_v61, %v4031_v2  ;;  %v14436_v22 = vcombine.low %v4027_v61, %v4031_v2  ;;  %v4063_v43 = vld [vmem:[%s22497_s6 + $0x19f8] sm:$0xff]  ;;  %v14467_v44 = vcombine.high %v4058_v63, %v4062_v40  ;;  %v4110_v63 = vld [vmem:[%s22497_s6 + $0x1b70] sm:$0xff] }
 0x6ac   : > { %10680 = vmatprep.mubr.bf16.mxu1 %v19599_v1  ;;  %10322 = vmatprep.subr.bf16.mxu0 %v14419_v8  ;;  %v14426_v1 = vcombine.low %v4018_v45, %v4022_v46  ;;  %v14469_v8 = vcombine.high %v4059_v6, %v4063_v43  ;;  %v4066_v45 = vld [vmem:[%s22497_s6 + $0x1a10] sm:$0xff]  ;;  %v4079_v61 = vld [vmem:[%s22497_s6 + $0x1a78] sm:$0xff] }
 0x6ad   : > { %10650 = vmatprep.subr.bf16.mxu1 %v14421_v51  ;;  %v4070_v46 = vld [vmem:[%s22497_s6 + $0x1a30] sm:$0xff]  ;;  %v4067_v51 = vld [vmem:[%s22497_s6 + $0x1a18] sm:$0xff] }
 0x6ae   : > { %10323 = vmatpush1.bf16.msra.mxu0 %v14418_v18  ;;  %v14468_v18 = vcombine.low %v4059_v6, %v4063_v43  ;;  %v14474_v2 = vcombine.low %v4066_v45, %v4070_v46  ;;  %v4107_v40 = vld [vmem:[%s22497_s6 + $0x1b58] sm:$0xff] }
 0x6af   : > { %10651 = vmatpush1.bf16.msra.mxu1 %v14420_v57  ;;  %10324 = vmatprep.subr.bf16.mxu0 %v14427_v58  ;;  %v14475_v57 = vcombine.high %v4066_v45, %v4070_v46  ;;  %v14477_v58 = vcombine.high %v4067_v51, %v4071_v48  ;;  %v4111_v6 = vld [vmem:[%s22497_s6 + $0x1b78] sm:$0xff]  ;;  %v4118_v45 = vld [vmem:[%s22497_s6 + $0x1bb0] sm:$0xff] }
 0x6b0   : > { %10652 = vmatprep.subr.bf16.mxu1 %v14429_v59  ;;  %v4074_v59 = vld [vmem:[%s22497_s6 + $0x1a50] sm:$0xff]  ;;  %v4115_v46 = vld [vmem:[%s22497_s6 + $0x1b98] sm:$0xff] }
 0x6b1   : > { %v14482_v26 = vcombine.low %v4074_v59, %v4078_v62 }
 0x6b2   : > { %10325 = vmatpush1.bf16.msra.mxu0 %v14426_v1  ;;  %v14476_v1 = vcombine.low %v4067_v51, %v4071_v48  ;;  %v4119_v51 = vld [vmem:[%s22497_s6 + $0x1bb8] sm:$0xff] }
 0x6b3   : > { %10653 = vmatpush1.bf16.msra.mxu1 %v14428_v7  ;;  %10326 = vmatprep.subr.bf16.mxu0 %v14435_v10  ;;  %v14483_v7 = vcombine.high %v4074_v59, %v4078_v62  ;;  %v14485_v10 = vcombine.high %v4075_v56, %v4079_v61  ;;  %v4126_v59 = vld [vmem:[%s22497_s6 + $0x1bf0] sm:$0xff]  ;;  %v4123_v62 = vld [vmem:[%s22497_s6 + $0x1bd8] sm:$0xff] }
 0x6b4   : > { %10654 = vmatprep.subr.bf16.mxu1 %v14437_v12  ;;  %v4082_v12 = vld [vmem:[%s22497_s6 + $0x1a90] sm:$0xff] }
 0x6b5   : > { %v14490_v47 = vcombine.low %v4082_v12, %v4086_v14 }
 0x6b6   : > { %10327 = vmatpush1.bf16.msra.mxu0 %v14434_v28  ;;  %v14484_v28 = vcombine.low %v4075_v56, %v4079_v61  ;;  %v4127_v56 = vld [vmem:[%s22497_s6 + $0x1bf8] sm:$0xff] }
 0x6b7   : > { %10655 = vmatpush1.bf16.msra.mxu1 %v14436_v22  ;;  %10328 = vmatprep.subr.bf16.mxu0 %v14443_v29  ;;  %v14491_v22 = vcombine.high %v4082_v12, %v4086_v14  ;;  %v14493_v29 = vcombine.high %v4083_v15, %v4087_v25  ;;  %v4134_v12 = vld [vmem:[%s22497_s6 + $0x1c30] sm:$0xff]  ;;  %v4131_v14 = vld [vmem:[%s22497_s6 + $0x1c18] sm:$0xff] }
 0x6b8   : > { %10656 = vmatprep.subr.bf16.mxu1 %v14445_v21  ;;  %v4090_v21 = vld [vmem:[%s22497_s6 + $0x1ad0] sm:$0xff] }
 0x6b9   : > { %v14498_v17 = vcombine.low %v4090_v21, %v4094_v9 }
 0x6ba   : > { %10329 = vmatpush1.bf16.msra.mxu0 %v14442_v19  ;;  %v14492_v19 = vcombine.low %v4083_v15, %v4087_v25  ;;  %v4135_v15 = vld [vmem:[%s22497_s6 + $0x1c38] sm:$0xff] }
 0x6bb   : > { %10657 = vmatpush1.bf16.msra.mxu1 %v14444_v32  ;;  %10330 = vmatprep.subr.bf16.mxu0 %v14451_v36  ;;  %v14499_v32 = vcombine.high %v4090_v21, %v4094_v9  ;;  %v14501_v36 = vcombine.high %v4091_v41, %v4095_v30  ;;  %v4142_v21 = vld [vmem:[%s22497_s6 + $0x1c70] sm:$0xff] }
 0x6bc   : > { %10658 = vmatprep.subr.bf16.mxu1 %v14453_v24  ;;  %v4098_v24 = vld [vmem:[%s22497_s6 + $0x1b10] sm:$0xff] }
 0x6bd   : > { %v14506_v43 = vcombine.low %v4098_v24, %v4102_v5 }
 0x6be   : > { %10331 = vmatpush1.bf16.msra.mxu0 %v14450_v33  ;;  %v14500_v33 = vcombine.low %v4091_v41, %v4095_v30  ;;  %v4139_v41 = vld [vmem:[%s22497_s6 + $0x1c58] sm:$0xff] }
 0x6bf   : > { %10659 = vmatpush1.bf16.msra.mxu1 %v14452_v39  ;;  %10332 = vmatprep.subr.bf16.mxu0 %v14459_v42  ;;  %v14507_v39 = vcombine.high %v4098_v24, %v4102_v5  ;;  %v14509_v42 = vcombine.high %v4099_v31, %v4103_v20  ;;  %v4143_v30 = vld [vmem:[%s22497_s6 + $0x1c78] sm:$0xff] }
 0x6c0   : > { %10660 = vmatprep.subr.bf16.mxu1 %v14461_v52  ;;  %v4106_v52 = vld [vmem:[%s22497_s6 + $0x1b50] sm:$0xff]  ;;  %v14549_v24 = vcombine.high %v4139_v41, %v4143_v30  ;;  %v4147_v5 = vld [vmem:[%s22497_s6 + $0x1c98] sm:$0xff] }
 0x6c1   : > { %v14514_v48 = vcombine.low %v4106_v52, %v4110_v63 }
 0x6c2   : > { %10333 = vmatpush1.bf16.msra.mxu0 %v14458_v23  ;;  %v14508_v23 = vcombine.low %v4099_v31, %v4103_v20  ;;  %v4151_v31 = vld [vmem:[%s22497_s6 + $0x1cb8] sm:$0xff] }
 0x6c3   : > { %10661 = vmatpush1.bf16.msra.mxu1 %v14460_v0  ;;  %10334 = vmatprep.subr.bf16.mxu0 %v14467_v44  ;;  %v14515_v0 = vcombine.high %v4106_v52, %v4110_v63  ;;  %v14517_v44 = vcombine.high %v4107_v40, %v4111_v6  ;;  %v4158_v52 = vld [vmem:[%s22497_s6 + $0x1cf0] sm:$0xff]  ;;  %v4159_v63 = vld [vmem:[%s22497_s6 + $0x1cf8] sm:$0xff] }
 0x6c4   : > { %10662 = vmatprep.subr.bf16.mxu1 %v14469_v8  ;;  %v4114_v8 = vld [vmem:[%s22497_s6 + $0x1b90] sm:$0xff] }
 0x6c5   : > { %v14522_v61 = vcombine.low %v4114_v8, %v4118_v45 }
 0x6c6   : > { %10335 = vmatpush1.bf16.msra.mxu0 %v14466_v55  ;;  %v14516_v55 = vcombine.low %v4107_v40, %v4111_v6  ;;  %v14556_v40 = vcombine.low %v4147_v5, %v4151_v31 }
 0x6c7   : > { %10663 = vmatpush1.bf16.msra.mxu1 %v14468_v18  ;;  %10336 = vmatprep.subr.bf16.mxu0 %v14475_v57  ;;  %v14523_v18 = vcombine.high %v4114_v8, %v4118_v45  ;;  %v14525_v57 = vcombine.high %v4115_v46, %v4119_v51  ;;  %v4167_v8 = vld [vmem:[%s22497_s6 + $0x1d38] sm:$0xff] }
 0x6c8   : > { %10664 = vmatprep.subr.bf16.mxu1 %v14477_v58  ;;  %v4122_v58 = vld [vmem:[%s22497_s6 + $0x1bd0] sm:$0xff] }
 0x6c9   : > { %v14530_v25 = vcombine.low %v4122_v58, %v4126_v59 }
 0x6ca   : > { %10337 = vmatpush1.bf16.msra.mxu0 %v14474_v2  ;;  %v14524_v2 = vcombine.low %v4115_v46, %v4119_v51 }
 0x6cb   : > { %10665 = vmatpush1.bf16.msra.mxu1 %v14476_v1  ;;  %10338 = vmatprep.subr.bf16.mxu0 %v14483_v7  ;;  %v14531_v1 = vcombine.high %v4122_v58, %v4126_v59  ;;  %v14533_v7 = vcombine.high %v4123_v62, %v4127_v56  ;;  %v4175_v58 = vld [vmem:[%s22497_s6 + $0x1d78] sm:$0xff] }
 0x6cc   : > { %10666 = vmatprep.subr.bf16.mxu1 %v14485_v10  ;;  %v4130_v10 = vld [vmem:[%s22497_s6 + $0x1c10] sm:$0xff] }
 0x6cd   : > { %v14538_v9 = vcombine.low %v4130_v10, %v4134_v12 }
 0x6ce   : > { %10339 = vmatpush1.bf16.msra.mxu0 %v14482_v26  ;;  %v14532_v26 = vcombine.low %v4123_v62, %v4127_v56 }
 0x6cf   : > { %10667 = vmatpush1.bf16.msra.mxu1 %v14484_v28  ;;  %10340 = vmatprep.subr.bf16.mxu0 %v14491_v22  ;;  %v14539_v28 = vcombine.high %v4130_v10, %v4134_v12  ;;  %v14541_v22 = vcombine.high %v4131_v14, %v4135_v15  ;;  %v4183_v10 = vld [vmem:[%s22497_s6 + $0x1db8] sm:$0xff] }
 0x6d0   : > { %10668 = vmatprep.subr.bf16.mxu1 %v14493_v29  ;;  %v4138_v29 = vld [vmem:[%s22497_s6 + $0x1c50] sm:$0xff] }
 0x6d1   : > { %v14546_v20 = vcombine.low %v4138_v29, %v4142_v21 }
 0x6d2   : > { %10341 = vmatpush1.bf16.msra.mxu0 %v14490_v47  ;;  %v14540_v47 = vcombine.low %v4131_v14, %v4135_v15 }
 0x6d3   : > { %10669 = vmatpush1.bf16.msra.mxu1 %v14492_v19  ;;  %10342 = vmatprep.subr.bf16.mxu0 %v14499_v32  ;;  %v14547_v19 = vcombine.high %v4138_v29, %v4142_v21  ;;  %v4146_v32 = vld [vmem:[%s22497_s6 + $0x1c90] sm:$0xff]  ;;  %v4191_v29 = vld [vmem:[%s22497_s6 + $0x1df8] sm:$0xff] }
 0x6d4   : > { %10670 = vmatprep.subr.bf16.mxu1 %v14501_v36  ;;  %v4150_v36 = vld [vmem:[%s22497_s6 + $0x1cb0] sm:$0xff] }
 0x6d6   : > { %10343 = vmatpush1.bf16.msra.mxu0 %v14498_v17  ;;  %v14548_v17 = vcombine.low %v4139_v41, %v4143_v30 }
 0x6d7   : > { %10671 = vmatpush1.bf16.msra.mxu1 %v14500_v33  ;;  %10344 = vmatprep.subr.bf16.mxu0 %v14507_v39  ;;  %v14555_v33 = vcombine.high %v4146_v32, %v4150_v36  ;;  %v14557_v39 = vcombine.high %v4147_v5, %v4151_v31 }
 0x6d8   : > { %10672 = vmatprep.subr.bf16.mxu1 %v14509_v42  ;;  %v4154_v42 = vld [vmem:[%s22497_s6 + $0x1cd0] sm:$0xff] }
 0x6d9   : > { %v14563_v6 = vcombine.high %v4154_v42, %v4158_v52  ;;  %v14562_v45 = vcombine.low %v4154_v42, %v4158_v52  ;;  %v4207_v42 = vld [vmem:[%s22497_s6 + $0x1e78] sm:$0xff] }
 0x6da   : > { %10345 = vmatpush1.bf16.msra.mxu0 %v14506_v43 }
 0x6db   : > { %10673 = vmatpush1.bf16.msra.mxu1 %v14508_v23  ;;  %10346 = vmatprep.subr.bf16.mxu0 %v14515_v0  ;;  %v4162_v23 = vld [vmem:[%s22497_s6 + $0x1d10] sm:$0xff] }
 0x6dc   : > { %10674 = vmatprep.subr.bf16.mxu1 %v14517_v44  ;;  %v4166_v0 = vld [vmem:[%s22497_s6 + $0x1d30] sm:$0xff]  ;;  %v4163_v44 = vld [vmem:[%s22497_s6 + $0x1d18] sm:$0xff] }
 0x6dd   : > { %v14571_v51 = vcombine.high %v4162_v23, %v4166_v0  ;;  %v14570_v59 = vcombine.low %v4162_v23, %v4166_v0  ;;  %v14572_v62 = vcombine.low %v4163_v44, %v4167_v8  ;;  %v4215_v23 = vld [vmem:[%s22497_s6 + $0x1eb8] sm:$0xff] }
 0x6de   : > { %10347 = vmatpush1.bf16.msra.mxu0 %v14514_v48  ;;  %v14573_v48 = vcombine.high %v4163_v44, %v4167_v8 }
 0x6df   : > { %10675 = vmatpush1.bf16.msra.mxu1 %v14516_v55  ;;  %10348 = vmatprep.subr.bf16.mxu0 %v14523_v18  ;;  %v4170_v55 = vld [vmem:[%s22497_s6 + $0x1d50] sm:$0xff] }
 0x6e0   : > { %10676 = vmatprep.subr.bf16.mxu1 %v14525_v57  ;;  %v4174_v18 = vld [vmem:[%s22497_s6 + $0x1d70] sm:$0xff]  ;;  %v4171_v57 = vld [vmem:[%s22497_s6 + $0x1d58] sm:$0xff] }
 0x6e1   : > { %v14579_v56 = vcombine.high %v4170_v55, %v4174_v18  ;;  %v14578_v12 = vcombine.low %v4170_v55, %v4174_v18  ;;  %v14580_v14 = vcombine.low %v4171_v57, %v4175_v58  ;;  %v4223_v55 = vld [vmem:[%s22497_s6 + $0x1ef8] sm:$0xff] }
 0x6e2   : > { %10349 = vmatpush1.bf16.msra.mxu0 %v14522_v61  ;;  %v14581_v61 = vcombine.high %v4171_v57, %v4175_v58 }
 0x6e3   : > { %10677 = vmatpush1.bf16.msra.mxu1 %v14524_v2  ;;  %10350 = vmatprep.subr.bf16.mxu0 %v14531_v1  ;;  %v4178_v2 = vld [vmem:[%s22497_s6 + $0x1d90] sm:$0xff] }
 0x6e4   : > { %10678 = vmatprep.subr.bf16.mxu1 %v14533_v7  ;;  %v4182_v1 = vld [vmem:[%s22497_s6 + $0x1db0] sm:$0xff]  ;;  %v4179_v7 = vld [vmem:[%s22497_s6 + $0x1d98] sm:$0xff] }
 0x6e5   : > { %v14587_v15 = vcombine.high %v4178_v2, %v4182_v1  ;;  %v14586_v21 = vcombine.low %v4178_v2, %v4182_v1  ;;  %v4231_v2 = vld [vmem:[%s22497_s6 + $0x1f38] sm:$0xff] }
 0x6e6   : > { %10351 = vmatpush1.bf16.msra.mxu0 %v14530_v25  ;;  %v14589_v25 = vcombine.high %v4179_v7, %v4183_v10 }
 0x6e7   : > { %10679 = vmatpush1.bf16.msra.mxu1 %v14532_v26  ;;  %10361 = vmatprep.subr.bf16.mxu0 %v14539_v28  ;;  %v4186_v26 = vld [vmem:[%s22497_s6 + $0x1dd0] sm:$0xff] }
 0x6e8   : > { %10689 = vmatprep.subr.bf16.mxu1 %v14541_v22  ;;  %v4190_v28 = vld [vmem:[%s22497_s6 + $0x1df0] sm:$0xff]  ;;  %v4187_v22 = vld [vmem:[%s22497_s6 + $0x1dd8] sm:$0xff] }
 0x6e9   : > { %10353 = vmatmul.mubr.bf16.vlgmr.msra.gmra.mrb[52].mxu0 %v19793_v4  ;;  %v14595_v41 = vcombine.high %v4186_v26, %v4190_v28  ;;  %v14597_v30 = vcombine.high %v4187_v22, %v4191_v29  ;;  %v14596_v5 = vcombine.low %v4187_v22, %v4191_v29 }
 0x6ea   : > { %10681 = vmatmul.mubr.bf16.vlgmr.msra.gmra.mrb[52].mxu1 %v19793_v4  ;;  %10362 = vmatpush1.bf16.msra.mxu0 %v14538_v9  ;;  %v4155_v4 = vld [vmem:[%s22497_s6 + $0x1cd8] sm:$0xff]  ;;  %v14588_v9 = vcombine.low %v4179_v7, %v4183_v10 }
 0x6eb   : > { %10393 = vmatprep.mubr.bf16.mxu0 %v19803_v60  ;;  %10690 = vmatpush1.bf16.msra.mxu1 %v14540_v47  ;;  %v14565_v43 = vcombine.high %v4155_v4, %v4159_v63  ;;  %v14564_v46 = vcombine.low %v4155_v4, %v4159_v63  ;;  %v4194_v47 = vld [vmem:[%s22497_s6 + $0x1e10] sm:$0xff] }
 0x6ec   : > { %10721 = vmatprep.mubr.bf16.mxu1 %v19803_v60  ;;  %10363 = vmatprep.subr.bf16.mxu0 %v14547_v19  ;;  %v14554_v60 = vcombine.low %v4146_v32, %v4150_v36  ;;  %v4198_v19 = vld [vmem:[%s22497_s6 + $0x1e30] sm:$0xff]  ;;  %v4195_v32 = vld [vmem:[%s22497_s6 + $0x1e18] sm:$0xff] }
 0x6ed   : > { %10691 = vmatprep.subr.bf16.mxu1 %v14549_v24  ;;  %v4199_v36 = vld [vmem:[%s22497_s6 + $0x1e38] sm:$0xff]  ;;  %v14594_v24 = vcombine.low %v4186_v26, %v4190_v28  ;;  %v14603_v31 = vcombine.high %v4194_v47, %v4198_v19  ;;  %v14602_v52 = vcombine.low %v4194_v47, %v4198_v19 }
 0x6ee   : > { %10364 = vmatpush1.bf16.msra.mxu0 %v14546_v20  ;;  %v14605_v20 = vcombine.high %v4195_v32, %v4199_v36  ;;  %v14604_v4 = vcombine.low %v4195_v32, %v4199_v36  ;;  %v4239_v26 = vld [vmem:[%s22497_s6 + $0x1f78] sm:$0xff] }
 0x6ef   : > { %10692 = vmatpush1.bf16.msra.mxu1 %v14548_v17  ;;  %10365 = vmatprep.subr.bf16.mxu0 %v14555_v33  ;;  %v4202_v17 = vld [vmem:[%s22497_s6 + $0x1e50] sm:$0xff]  ;;  %v4247_v47 = vld [vmem:[%s22497_s6 + $0x1fb8] sm:$0xff] }
 0x6f0   : > { %10693 = vmatprep.subr.bf16.mxu1 %v14557_v39  ;;  %v4206_v33 = vld [vmem:[%s22497_s6 + $0x1e70] sm:$0xff]  ;;  %v4203_v39 = vld [vmem:[%s22497_s6 + $0x1e58] sm:$0xff] }
 0x6f1   : > { %v14611_v63 = vcombine.high %v4202_v17, %v4206_v33  ;;  %v14610_v0 = vcombine.low %v4202_v17, %v4206_v33  ;;  %v14612_v44 = vcombine.low %v4203_v39, %v4207_v42  ;;  %v4255_v17 = vld [vmem:[%s22497_s6 + $0x1ff8] sm:$0xff] }
 0x6f2   : > { %10366 = vmatpush1.bf16.msra.mxu0 %v14554_v60  ;;  %v14613_v60 = vcombine.high %v4203_v39, %v4207_v42 }
 0x6f3   : > { %10694 = vmatpush1.bf16.msra.mxu1 %v14556_v40  ;;  %10367 = vmatprep.subr.bf16.mxu0 %v14563_v6  ;;  %v4210_v40 = vld [vmem:[%s22497_s6 + $0x1e90] sm:$0xff] }
 0x6f4   : > { %10695 = vmatprep.subr.bf16.mxu1 %v14565_v43  ;;  %v4214_v6 = vld [vmem:[%s22497_s6 + $0x1eb0] sm:$0xff]  ;;  %v4211_v43 = vld [vmem:[%s22497_s6 + $0x1e98] sm:$0xff] }
 0x6f5   : > { %v14619_v8 = vcombine.high %v4210_v40, %v4214_v6  ;;  %v14618_v18 = vcombine.low %v4210_v40, %v4214_v6  ;;  %v14620_v57 = vcombine.low %v4211_v43, %v4215_v23  ;;  %v10737_v40 = vld [vmem:[%s22499_s8 + $0x28] sm:$0xff] }
 0x6f6   : > { %10368 = vmatpush1.bf16.msra.mxu0 %v14562_v45  ;;  %v14621_v45 = vcombine.high %v4211_v43, %v4215_v23 }
 0x6f7   : > { %10696 = vmatpush1.bf16.msra.mxu1 %v14564_v46  ;;  %10369 = vmatprep.subr.bf16.mxu0 %v14571_v51  ;;  %v4218_v46 = vld [vmem:[%s22497_s6 + $0x1ed0] sm:$0xff] }
 0x6f8   : > { %10697 = vmatprep.subr.bf16.mxu1 %v14573_v48  ;;  %v4222_v51 = vld [vmem:[%s22497_s6 + $0x1ef0] sm:$0xff]  ;;  %v4219_v48 = vld [vmem:[%s22497_s6 + $0x1ed8] sm:$0xff] }
 0x6f9   : > { %v14627_v58 = vcombine.high %v4218_v46, %v4222_v51  ;;  %v14626_v1 = vcombine.low %v4218_v46, %v4222_v51  ;;  %v14628_v7 = vcombine.low %v4219_v48, %v4223_v55  ;;  %v10745_v46 = vld [vmem:[%s22499_s8 + $0x68] sm:$0xff] }
 0x6fa   : > { %10370 = vmatpush1.bf16.msra.mxu0 %v14570_v59  ;;  %v14629_v59 = vcombine.high %v4219_v48, %v4223_v55 }
 0x6fb   : > { %10698 = vmatpush1.bf16.msra.mxu1 %v14572_v62  ;;  %10371 = vmatprep.subr.bf16.mxu0 %v14579_v56  ;;  %v4226_v62 = vld [vmem:[%s22497_s6 + $0x1f10] sm:$0xff] }
 0x6fc   : > { %10699 = vmatprep.subr.bf16.mxu1 %v14581_v61  ;;  %v4230_v56 = vld [vmem:[%s22497_s6 + $0x1f30] sm:$0xff]  ;;  %v4227_v61 = vld [vmem:[%s22497_s6 + $0x1f18] sm:$0xff] }
 0x6fd   : > { %v14635_v10 = vcombine.high %v4226_v62, %v4230_v56  ;;  %v14634_v28 = vcombine.low %v4226_v62, %v4230_v56  ;;  %v14636_v22 = vcombine.low %v4227_v61, %v4231_v2  ;;  %v10753_v62 = vld [vmem:[%s22499_s8 + $0xa8] sm:$0xff] }
 0x6fe   : > { %10372 = vmatpush1.bf16.msra.mxu0 %v14578_v12  ;;  %v14637_v12 = vcombine.high %v4227_v61, %v4231_v2 }
 0x6ff   : > { %10700 = vmatpush1.bf16.msra.mxu1 %v14580_v14  ;;  %10373 = vmatprep.subr.bf16.mxu0 %v14587_v15  ;;  %v4234_v14 = vld [vmem:[%s22497_s6 + $0x1f50] sm:$0xff] }
 0x700   : > { %10701 = vmatprep.subr.bf16.mxu1 %v14589_v25  ;;  %v4238_v15 = vld [vmem:[%s22497_s6 + $0x1f70] sm:$0xff]  ;;  %v4235_v25 = vld [vmem:[%s22497_s6 + $0x1f58] sm:$0xff] }
 0x701   : > { %v14643_v29 = vcombine.high %v4234_v14, %v4238_v15  ;;  %v14642_v19 = vcombine.low %v4234_v14, %v4238_v15  ;;  %v14644_v32 = vcombine.low %v4235_v25, %v4239_v26  ;;  %v10761_v14 = vld [vmem:[%s22499_s8 + $0xe8] sm:$0xff] }
 0x702   : > { %10374 = vmatpush1.bf16.msra.mxu0 %v14586_v21  ;;  %v14645_v21 = vcombine.high %v4235_v25, %v4239_v26 }
 0x703   : > { %10702 = vmatpush1.bf16.msra.mxu1 %v14588_v9  ;;  %10375 = vmatprep.subr.bf16.mxu0 %v14595_v41  ;;  %v4242_v9 = vld [vmem:[%s22497_s6 + $0x1f90] sm:$0xff] }
 0x704   : > { %10703 = vmatprep.subr.bf16.mxu1 %v14597_v30  ;;  %v4246_v41 = vld [vmem:[%s22497_s6 + $0x1fb0] sm:$0xff]  ;;  %v4243_v30 = vld [vmem:[%s22497_s6 + $0x1f98] sm:$0xff] }
 0x705   : > { %v14651_v36 = vcombine.high %v4242_v9, %v4246_v41  ;;  %v14650_v33 = vcombine.low %v4242_v9, %v4246_v41  ;;  %v14652_v39 = vcombine.low %v4243_v30, %v4247_v47  ;;  %v10769_v9 = vld [vmem:[%s22499_s8 + $0x128] sm:$0xff] }
 0x706   : > { %10376 = vmatpush1.bf16.msra.mxu0 %v14594_v24  ;;  %v14653_v24 = vcombine.high %v4243_v30, %v4247_v47 }
 0x707   : > { %10704 = vmatpush1.bf16.msra.mxu1 %v14596_v5  ;;  %10377 = vmatprep.subr.bf16.mxu0 %v14603_v31  ;;  %v4250_v5 = vld [vmem:[%s22497_s6 + $0x1fd0] sm:$0xff] }
 0x708   : > { %10705 = vmatprep.subr.bf16.mxu1 %v14605_v20  ;;  %v4254_v31 = vld [vmem:[%s22497_s6 + $0x1ff0] sm:$0xff]  ;;  %v4251_v20 = vld [vmem:[%s22497_s6 + $0x1fd8] sm:$0xff] }
 0x709   : > { %v14659_v42 = vcombine.high %v4250_v5, %v4254_v31  ;;  %v14658_v6 = vcombine.low %v4250_v5, %v4254_v31  ;;  %v14660_v43 = vcombine.low %v4251_v20, %v4255_v17  ;;  %v10777_v5 = vld [vmem:[%s22499_s8 + $0x168] sm:$0xff] }
 0x70a   : > { %10378 = vmatpush1.bf16.msra.mxu0 %v14602_v52  ;;  %v14661_v52 = vcombine.high %v4251_v20, %v4255_v17 }
 0x70b   : > { %10706 = vmatpush1.bf16.msra.mxu1 %v14604_v4  ;;  %10379 = vmatprep.subr.bf16.mxu0 %v14611_v63  ;;  %v10732_v4 = vld [vmem:[%s22499_s8] sm:$0xff] }
 0x70c   : > { %10707 = vmatprep.subr.bf16.mxu1 %v14613_v60  ;;  %v10736_v63 = vld [vmem:[%s22499_s8 + $0x20] sm:$0xff]  ;;  %v10733_v60 = vld [vmem:[%s22499_s8 + $0x8] sm:$0xff] }
 0x70d   : > { %v14663_v23 = vcombine.high %v10732_v4, %v10736_v63  ;;  %v14662_v51 = vcombine.low %v10732_v4, %v10736_v63  ;;  %v14664_v48 = vcombine.low %v10733_v60, %v10737_v40  ;;  %v10785_v4 = vld [vmem:[%s22499_s8 + $0x1a8] sm:$0xff] }
 0x70e   : > { %10380 = vmatpush1.bf16.msra.mxu0 %v14610_v0  ;;  %v14665_v0 = vcombine.high %v10733_v60, %v10737_v40 }
 0x70f   : > { %10708 = vmatpush1.bf16.msra.mxu1 %v14612_v44  ;;  %10381 = vmatprep.subr.bf16.mxu0 %v14619_v8  ;;  %v10740_v44 = vld [vmem:[%s22499_s8 + $0x40] sm:$0xff] }
 0x710   : > { %10709 = vmatprep.subr.bf16.mxu1 %v14621_v45  ;;  %v10744_v8 = vld [vmem:[%s22499_s8 + $0x60] sm:$0xff]  ;;  %v10741_v45 = vld [vmem:[%s22499_s8 + $0x48] sm:$0xff] }
 0x711   : > { %v14671_v55 = vcombine.high %v10740_v44, %v10744_v8  ;;  %v14670_v56 = vcombine.low %v10740_v44, %v10744_v8  ;;  %v14672_v61 = vcombine.low %v10741_v45, %v10745_v46  ;;  %v10793_v44 = vld [vmem:[%s22499_s8 + $0x1e8] sm:$0xff] }
 0x712   : > { %10382 = vmatpush1.bf16.msra.mxu0 %v14618_v18  ;;  %v14673_v18 = vcombine.high %v10741_v45, %v10745_v46 }
 0x713   : > { %10710 = vmatpush1.bf16.msra.mxu1 %v14620_v57  ;;  %10383 = vmatprep.subr.bf16.mxu0 %v14627_v58  ;;  %v10748_v57 = vld [vmem:[%s22499_s8 + $0x80] sm:$0xff] }
 0x714   : > { %10711 = vmatprep.subr.bf16.mxu1 %v14629_v59  ;;  %v10752_v58 = vld [vmem:[%s22499_s8 + $0xa0] sm:$0xff]  ;;  %v10749_v59 = vld [vmem:[%s22499_s8 + $0x88] sm:$0xff] }
 0x715   : > { %v14679_v2 = vcombine.high %v10748_v57, %v10752_v58  ;;  %v14678_v15 = vcombine.low %v10748_v57, %v10752_v58  ;;  %v14680_v25 = vcombine.low %v10749_v59, %v10753_v62  ;;  %v10739_v57 = vld [vmem:[%s22499_s8 + $0x38] sm:$0xff] }
 0x716   : > { %10384 = vmatpush1.bf16.msra.mxu0 %v14626_v1  ;;  %v14681_v1 = vcombine.high %v10749_v59, %v10753_v62  ;;  %v10730_v59 = vld [vmem:[%s459_s27] sm:$0x1]  ;;  %s16693_s27 = scalar_lea.vmem %s22451_s24, 16 }
 0x717   : > { %10712 = vmatpush1.bf16.msra.mxu1 %v14628_v7  ;;  %10385 = vmatprep.subr.bf16.mxu0 %v14635_v10  ;;  %v10756_v7 = vld [vmem:[%s22499_s8 + $0xc0] sm:$0xff]  ;;  %p16694_p11 = scmp.ne.s32.totalorder %s22451_s24, %s16693_s27  ;;  %p16701_p1 = scmp.lt.s32.totalorder %s16699_s16, %s16693_s27 }
 0x718   : > { %10713 = vmatprep.subr.bf16.mxu1 %v14637_v12  ;;  %v10760_v10 = vld [vmem:[%s22499_s8 + $0xe0] sm:$0xff]  ;;  %v16759_v12 = vmov 0  }
 0x719   : > { %v14687_v26 = vcombine.high %v10756_v7, %v10760_v10  ;;  %v14686_v41 = vcombine.low %v10756_v7, %v10760_v10  ;;  %v21673_v7 = vpack.c.bf16 %v10730_v59, %v10730_v59  ;;  %v10743_v10 = vld [vmem:[%s22499_s8 + $0x58] sm:$0xff]  ;;  %p16695_p12 = pnand %p16694_p11, %p16869_p5  ;;  %p16702_p2 = por %p16701_p1, %p16700_p0 }
 0x71a   : > { %10386 = vmatpush1.bf16.msra.mxu0 %v14634_v28 }
 0x71b   : > { %10714 = vmatpush1.bf16.msra.mxu1 %v14636_v22  ;;  %10387 = vmatprep.subr.bf16.mxu0 %v14643_v29  ;;  %v10764_v22 = vld [vmem:[%s22499_s8 + $0x100] sm:$0xff]  ;;  %p16696_p13 = pneg %p16695_p12 }
 0x71c   : > { %10715 = vmatprep.subr.bf16.mxu1 %v14645_v21  ;;  %v10768_v29 = vld [vmem:[%s22499_s8 + $0x120] sm:$0xff]  ;;  %v10765_v21 = vld [vmem:[%s22499_s8 + $0x108] sm:$0xff] }
 0x71d   : > { %v14695_v47 = vcombine.high %v10764_v22, %v10768_v29  ;;  %v14694_v31 = vcombine.low %v10764_v22, %v10768_v29  ;;  %v14696_v20 = vcombine.low %v10765_v21, %v10769_v9  ;;  %v10754_v22 = vld [vmem:[%s22499_s8 + $0xb0] sm:$0xff]  ;;  %v10751_v29 = vld [vmem:[%s22499_s8 + $0x98] sm:$0xff]  ;;  %p16703_p3 = pnand %p16702_p2, %p16696_p13 }
 0x71e   : > { %10388 = vmatpush1.bf16.msra.mxu0 %v14642_v19  ;;  %v14697_v19 = vcombine.high %v10765_v21, %v10769_v9  ;;  %v10755_v21 = vld [vmem:[%s22499_s8 + $0xb8] sm:$0xff] }
 0x71f   : > { %10716 = vmatpush1.bf16.msra.mxu1 %v14644_v32  ;;  %10389 = vmatprep.subr.bf16.mxu0 %v14651_v36  ;;  %v10772_v32 = vld [vmem:[%s22499_s8 + $0x140] sm:$0xff] }
 0x720   : > { %10717 = vmatprep.subr.bf16.mxu1 %v14653_v24  ;;  %v10776_v36 = vld [vmem:[%s22499_s8 + $0x160] sm:$0xff]  ;;  %v10773_v24 = vld [vmem:[%s22499_s8 + $0x148] sm:$0xff] }
 0x721   : > { %v14703_v17 = vcombine.high %v10772_v32, %v10776_v36  ;;  %v14702_v63 = vcombine.low %v10772_v32, %v10776_v36  ;;  %v14704_v60 = vcombine.low %v10773_v24, %v10777_v5  ;;  %v10762_v32 = vld [vmem:[%s22499_s8 + $0xf0] sm:$0xff]  ;;  %v10759_v36 = vld [vmem:[%s22499_s8 + $0xd8] sm:$0xff] }
 0x722   : > { %10390 = vmatpush1.bf16.msra.mxu0 %v14650_v33  ;;  %v14705_v33 = vcombine.high %v10773_v24, %v10777_v5  ;;  %v10763_v24 = vld [vmem:[%s22499_s8 + $0xf8] sm:$0xff] }
 0x723   : > { %10718 = vmatpush1.bf16.msra.mxu1 %v14652_v39  ;;  %10391 = vmatprep.subr.bf16.mxu0 %v14659_v42  ;;  %v10780_v39 = vld [vmem:[%s22499_s8 + $0x180] sm:$0xff] }
 0x724   : > { %10719 = vmatprep.subr.bf16.mxu1 %v14661_v52  ;;  %v10784_v42 = vld [vmem:[%s22499_s8 + $0x1a0] sm:$0xff]  ;;  %v10781_v52 = vld [vmem:[%s22499_s8 + $0x188] sm:$0xff] }
 0x725   : > { %v14711_v40 = vcombine.high %v10780_v39, %v10784_v42  ;;  %v14710_v8 = vcombine.low %v10780_v39, %v10784_v42  ;;  %v14712_v45 = vcombine.low %v10781_v52, %v10785_v4  ;;  %v10770_v39 = vld [vmem:[%s22499_s8 + $0x130] sm:$0xff]  ;;  %v10771_v42 = vld [vmem:[%s22499_s8 + $0x138] sm:$0xff] }
 0x726   : > { %10392 = vmatpush1.bf16.msra.mxu0 %v14658_v6  ;;  %v14713_v6 = vcombine.high %v10781_v52, %v10785_v4  ;;  %v14692_v4 = vcombine.low %v10759_v36, %v10763_v24 }
 0x727   : > { %10720 = vmatpush1.bf16.msra.mxu1 %v14660_v43  ;;  %11158 = vmatprep.subr.bf16.mxu0 %v14663_v23  ;;  %v10788_v43 = vld [vmem:[%s22499_s8 + $0x1c0] sm:$0xff] }
 0x728   : > { %11199 = vmatprep.subr.bf16.mxu1 %v14665_v0  ;;  %v10792_v23 = vld [vmem:[%s22499_s8 + $0x1e0] sm:$0xff]  ;;  %v10789_v0 = vld [vmem:[%s22499_s8 + $0x1c8] sm:$0xff] }
 0x729   : > { %10394 = vmatmul.mubr.bf16.vlgmr.msra.gmra.mrb[52].mxu0 %v19997_v13  ;;  %v14719_v46 = vcombine.high %v10788_v43, %v10792_v23  ;;  %v14718_v58 = vcombine.low %v10788_v43, %v10792_v23  ;;  %v14720_v62 = vcombine.low %v10789_v0, %v10793_v44  ;;  %v10775_v43 = vld [vmem:[%s22499_s8 + $0x158] sm:$0xff] }
 0x72a   : > { %10722 = vmatmul.mubr.bf16.vlgmr.msra.gmra.mrb[52].mxu1 %v19997_v13  ;;  %11159 = vmatpush1.bf16.msra.mxu0 %v14662_v51  ;;  %v10757_v13 = vld [vmem:[%s22499_s8 + $0xc8] sm:$0xff]  ;;  %v14721_v51 = vcombine.high %v10789_v0, %v10793_v44  ;;  %v10779_v23 = vld [vmem:[%s22499_s8 + $0x178] sm:$0xff] }
 0x72b   : > { %11200 = vmatpush1.bf16.msra.mxu1 %v14664_v48  ;;  %11160 = vmatprep.subr.bf16.mxu0 %v14671_v55  ;;  %v14689_v28 = vcombine.high %v10757_v13, %v10761_v14  ;;  %v14688_v30 = vcombine.low %v10757_v13, %v10761_v14  ;;  %v10734_v48 = vld [vmem:[%s22499_s8 + $0x10] sm:$0xff]  ;;  %v10747_v13 = vld [vmem:[%s22499_s8 + $0x78] sm:$0xff] }
 0x72c   : > { %11201 = vmatprep.subr.bf16.mxu1 %v14673_v18  ;;  %11190 = vmatprep.mubr.bf16.mxu0 %v16759_v12  ;;  %v10738_v55 = vld [vmem:[%s22499_s8 + $0x30] sm:$0xff]  ;;  %v10735_v18 = vld [vmem:[%s22499_s8 + $0x18] sm:$0xff] }
 0x72d   : > { %11231 = vmatprep.mubr.bf16.mxu1 %v16759_v12  ;;  %v14666_v14 = vcombine.low %v10734_v48, %v10738_v55 }
 0x72e   : > { %11161 = vmatpush1.bf16.msra.mxu0 %v14670_v56  ;;  %v14667_v56 = vcombine.high %v10734_v48, %v10738_v55  ;;  %v10783_v48 = vld [vmem:[%s22499_s8 + $0x198] sm:$0xff] }
 0x72f   : > { %11202 = vmatpush1.bf16.msra.mxu1 %v14672_v61  ;;  %11162 = vmatprep.subr.bf16.mxu0 %v14679_v2  ;;  %v14669_v61 = vcombine.high %v10735_v18, %v10739_v57  ;;  %v10742_v2 = vld [vmem:[%s22499_s8 + $0x50] sm:$0xff]  ;;  %v10787_v55 = vld [vmem:[%s22499_s8 + $0x1b8] sm:$0xff] }
 0x730   : > { %11203 = vmatprep.subr.bf16.mxu1 %v14681_v1  ;;  %v10746_v1 = vld [vmem:[%s22499_s8 + $0x70] sm:$0xff]  ;;  %v14717_v59 = vcombine.high %v10783_v48, %v10787_v55 }
 0x731   : > { %v14674_v9 = vcombine.low %v10742_v2, %v10746_v1 }
 0x732   : > { %11163 = vmatpush1.bf16.msra.mxu0 %v14678_v15  ;;  %v14668_v15 = vcombine.low %v10735_v18, %v10739_v57  ;;  %v14708_v57 = vcombine.low %v10775_v43, %v10779_v23 }
 0x733   : > { %11204 = vmatpush1.bf16.msra.mxu1 %v14680_v25  ;;  %11164 = vmatprep.subr.bf16.mxu0 %v14687_v26  ;;  %v14675_v25 = vcombine.high %v10742_v2, %v10746_v1  ;;  %v14677_v26 = vcombine.high %v10743_v10, %v10747_v13  ;;  %v10795_v2 = vld [vmem:[%s22499_s8 + $0x1f8] sm:$0xff] }
 0x734   : > { %11205 = vmatprep.subr.bf16.mxu1 %v14689_v28  ;;  %v10750_v28 = vld [vmem:[%s22499_s8 + $0x90] sm:$0xff] }
 0x735   : > { %v14682_v5 = vcombine.low %v10750_v28, %v10754_v22 }
 0x736   : > { %11165 = vmatpush1.bf16.msra.mxu0 %v14686_v41  ;;  %v14676_v41 = vcombine.low %v10743_v10, %v10747_v13  ;;  %v14716_v10 = vcombine.low %v10783_v48, %v10787_v55 }
 0x737   : > { %11206 = vmatpush1.bf16.msra.mxu1 %v14688_v30  ;;  %11166 = vmatprep.subr.bf16.mxu0 %v14695_v47  ;;  %v14683_v30 = vcombine.high %v10750_v28, %v10754_v22  ;;  %v14685_v47 = vcombine.high %v10751_v29, %v10755_v21  ;;  %v16502_v28 = vld [vmem:[%s22501_s10 + $0xc0] sm:$0xff]  }
 0x738   : > { %11207 = vmatprep.subr.bf16.mxu1 %v14697_v19  ;;  %v10758_v19 = vld [vmem:[%s22499_s8 + $0xd0] sm:$0xff]  ;;  %v16503_v22 = vld [vmem:[%s22501_s10] sm:$0xff]  }
 0x739   : > { %v14690_v52 = vcombine.low %v10758_v19, %v10762_v32 }
 0x73a   : > { %11167 = vmatpush1.bf16.msra.mxu0 %v14694_v31  ;;  %v14684_v31 = vcombine.low %v10751_v29, %v10755_v21  ;;  %v16504_v29 = vld [vmem:[%s22501_s10 + $0x80] sm:$0xff]   ;;  %v16506_v21 = vld [vmem:[%s22501_s10 + $0xc8] sm:$0xff]  }
 0x73b   : > { %11208 = vmatpush1.bf16.msra.mxu1 %v14696_v20  ;;  %11168 = vmatprep.subr.bf16.mxu0 %v14703_v17  ;;  %v14691_v20 = vcombine.high %v10758_v19, %v10762_v32  ;;  %v14693_v17 = vcombine.high %v10759_v36, %v10763_v24  ;;  %v16511_v19 = vld [vmem:[%s22501_s10 + $0x10] sm:$0xff]   ;;  %v16513_v36 = vld [vmem:[%s22501_s10 + $0x58] sm:$0xff]  }
 0x73c   : > { %11209 = vmatprep.subr.bf16.mxu1 %v14705_v33  ;;  %v10766_v33 = vld [vmem:[%s22499_s8 + $0x110] sm:$0xff]  ;;  %v16514_v24 = vld [vmem:[%s22501_s10 + $0xd8] sm:$0xff]  }
 0x73d   : > { %v14698_v0 = vcombine.low %v10766_v33, %v10770_v39  ;;  %v16512_v32 = vld [vmem:[%s22501_s10 + $0x90] sm:$0xff]  }
 0x73e   : > { %11169 = vmatpush1.bf16.msra.mxu0 %v14702_v63  ;;  %v14699_v63 = vcombine.high %v10766_v33, %v10770_v39  ;;  %v16519_v33 = vld [vmem:[%s22501_s10 + $0x20] sm:$0xff]  }
 0x73f   : > { %11210 = vmatpush1.bf16.msra.mxu1 %v14704_v60  ;;  %11170 = vmatprep.subr.bf16.mxu0 %v14711_v40  ;;  %v10774_v40 = vld [vmem:[%s22499_s8 + $0x150] sm:$0xff]  ;;  %v16520_v39 = vld [vmem:[%s22501_s10 + $0xa0] sm:$0xff]  }
 0x740   : > { %11211 = vmatprep.subr.bf16.mxu1 %v14713_v6  ;;  %v10778_v6 = vld [vmem:[%s22499_s8 + $0x170] sm:$0xff] }
 0x741   : > { %v14706_v18 = vcombine.low %v10774_v40, %v10778_v6 }
 0x742   : > { %11171 = vmatpush1.bf16.msra.mxu0 %v14710_v8  ;;  %v14707_v8 = vcombine.high %v10774_v40, %v10778_v6  ;;  %v16527_v40 = vld [vmem:[%s22501_s10 + $0x30] sm:$0xff]  }
 0x743   : > { %11212 = vmatpush1.bf16.msra.mxu1 %v14712_v45  ;;  %11172 = vmatprep.subr.bf16.mxu0 %v14719_v46  ;;  %v14709_v45 = vcombine.high %v10775_v43, %v10779_v23  ;;  %v10782_v46 = vld [vmem:[%s22499_s8 + $0x190] sm:$0xff]  ;;  %v16529_v43 = vld [vmem:[%s22501_s10 + $0x78] sm:$0xff]  }
 0x744   : > { %11213 = vmatprep.subr.bf16.mxu1 %v14721_v51  ;;  %v10786_v51 = vld [vmem:[%s22499_s8 + $0x1b0] sm:$0xff]  ;;  %v16530_v23 = vld [vmem:[%s22501_s10 + $0xf8] sm:$0xff]  }
 0x745   : > { %v14714_v1 = vcombine.low %v10782_v46, %v10786_v51  ;;  %v16528_v6 = vld [vmem:[%s22501_s10 + $0xb0] sm:$0xff]  }
 0x746   : > { %11173 = vmatpush1.bf16.msra.mxu0 %v14718_v58  ;;  %v14715_v58 = vcombine.high %v10782_v46, %v10786_v51 }
 0x747   : > { %11214 = vmatpush1.bf16.msra.mxu1 %v14720_v62  ;;  %11240 = vmatprep.subr.bf16.mxu0 %v14667_v56  ;;  %v10790_v62 = vld [vmem:[%s22499_s8 + $0x1d0] sm:$0xff] }
 0x748   : > { %11281 = vmatprep.subr.bf16.mxu1 %v14669_v61  ;;  %v10794_v56 = vld [vmem:[%s22499_s8 + $0x1f0] sm:$0xff]  ;;  %v10791_v61 = vld [vmem:[%s22499_s8 + $0x1d8] sm:$0xff] }
 0x749   : > { %11191 = vmatmul.mubr.bf16.vlgmr.msra.gmra.mrb[56].mxu0 %v21673_v7  ;;  %v14723_v13 = vcombine.high %v10790_v62, %v10794_v56 }
 0x74a   : > { %11232 = vmatmul.mubr.bf16.vlgmr.msra.gmra.mrb[56].mxu1 %v21673_v7  ;;  %11241 = vmatpush1.bf16.msra.mxu0 %v14666_v14  ;;  %v14725_v14 = vcombine.high %v10791_v61, %v10795_v2 }
 0x74b   : > { %11282 = vmatpush1.bf16.msra.mxu1 %v14668_v15  ;;  %11242 = vmatprep.subr.bf16.mxu0 %v14675_v25  ;;  %v14722_v15 = vcombine.low %v10790_v62, %v10794_v56  ;;  %v14724_v25 = vcombine.low %v10791_v61, %v10795_v2  ;;  %v21872_v62 = vld [vmem:[%s22500_s9] sm:$0xff] }
 0x74c   : > { %11283 = vmatprep.subr.bf16.mxu1 %v14677_v26  ;;  %11272 = vmatprep.mubr.bf16.mxu0 %v16759_v12  ;;  %v16501_v26 = vld [vmem:[%s22501_s10 + $0x40] sm:$0xff]   ;;  %v11121_v61 = vrot.slane %v21872_v62, %v18175_v34  ;;  %v11129_v2 = vrot.slane %v21872_v62, %v18177_v35 }
 0x74d   : > { %11313 = vmatprep.mubr.bf16.mxu1 %v16759_v12  ;;  %v10767_v12 = vld [vmem:[%s22499_s8 + $0x118] sm:$0xff]  ;;  %v21877_v56 = vld [vmem:[%s22498_s7] sm:$0xff] }
 0x74e   : > { %11243 = vmatpush1.bf16.msra.mxu0 %v14674_v9  ;;  %v14701_v60 = vcombine.high %v10767_v12, %v10771_v42  ;;  %v14700_v44 = vcombine.low %v10767_v12, %v10771_v42  ;;  %v16507_v9 = vld [vmem:[%s22501_s10 + $0x8] sm:$0xff]  }
 0x74f   : > { %11284 = vmatpush1.bf16.msra.mxu1 %v14676_v41  ;;  %11244 = vmatprep.subr.bf16.mxu0 %v14683_v30  ;;  %v16508_v41 = vld [vmem:[%s22501_s10 + $0x88] sm:$0xff]   ;;  %v16509_v30 = vld [vmem:[%s22501_s10 + $0x50] sm:$0xff]  }
 0x750   : > { %11285 = vmatprep.subr.bf16.mxu1 %v14685_v47  ;;  %v16510_v47 = vld [vmem:[%s22501_s10 + $0xd0] sm:$0xff]   ;;  %v16521_v12 = vld [vmem:[%s22501_s10 + $0x68] sm:$0xff]  }
 0x751   : > { %v16522_v42 = vld [vmem:[%s22501_s10 + $0xe8] sm:$0xff]  }
 0x752   : > { %11245 = vmatpush1.bf16.msra.mxu0 %v14682_v5  ;;  %v16515_v5 = vld [vmem:[%s22501_s10 + $0x18] sm:$0xff]  }
 0x753   : > { %11286 = vmatpush1.bf16.msra.mxu1 %v14684_v31  ;;  %11246 = vmatprep.subr.bf16.mxu0 %v14691_v20  ;;  %v16516_v31 = vld [vmem:[%s22501_s10 + $0x98] sm:$0xff]   ;;  %v16517_v20 = vld [vmem:[%s22501_s10 + $0x60] sm:$0xff]  }
 0x754   : > { %11287 = vmatprep.subr.bf16.mxu1 %v14693_v17  ;;  %v16518_v17 = vld [vmem:[%s22501_s10 + $0xe0] sm:$0xff]  }
 0x756   : > { %11247 = vmatpush1.bf16.msra.mxu0 %v14690_v52  ;;  %v16523_v52 = vld [vmem:[%s22501_s10 + $0x28] sm:$0xff]  }
 0x757   : > { %11288 = vmatpush1.bf16.msra.mxu1 %v14692_v4  ;;  %11248 = vmatprep.subr.bf16.mxu0 %v14699_v63  ;;  %v16524_v4 = vld [vmem:[%s22501_s10 + $0xa8] sm:$0xff]   ;;  %v16525_v63 = vld [vmem:[%s22501_s10 + $0x70] sm:$0xff]  }
 0x758   : > { %11289 = vmatprep.subr.bf16.mxu1 %v14701_v60  ;;  %v16526_v60 = vld [vmem:[%s22501_s10 + $0xf0] sm:$0xff]  }
 0x75a   : > { %11249 = vmatpush1.bf16.msra.mxu0 %v14698_v0  ;;  %v16531_v0 = vld [vmem:[%s22501_s10 + $0x38] sm:$0xff]  }
 0x75b   : > { %11290 = vmatpush1.bf16.msra.mxu1 %v14700_v44  ;;  %11250 = vmatprep.subr.bf16.mxu0 %v14707_v8  ;;  %v16532_v44 = vld [vmem:[%s22501_s10 + $0xb8] sm:$0xff]   ;;  %v16533_v8 = vld [vmem:[%s22501_s10 + $0x140] sm:$0xff]  }
 0x75c   : > { %11291 = vmatprep.subr.bf16.mxu1 %v14709_v45  ;;  %v16534_v45 = vld [vmem:[%s22501_s10 + $0x1c0] sm:$0xff]  }
 0x75e   : > { %11251 = vmatpush1.bf16.msra.mxu0 %v14706_v18 }
 0x75f   : > { %11292 = vmatpush1.bf16.msra.mxu1 %v14708_v57  ;;  %11252 = vmatprep.subr.bf16.mxu0 %v14715_v58 }
 0x760   : > { %11293 = vmatprep.subr.bf16.mxu1 %v14717_v59 }
 0x762   : > { %11253 = vmatpush1.bf16.msra.mxu0 %v14714_v1  ;;  %v11125_v1 = vrot.slane %v21872_v62, %v18182_v37 }
 0x763   : > { %11294 = vmatpush1.bf16.msra.mxu1 %v14716_v10  ;;  %11254 = vmatprep.subr.bf16.mxu0 %v14723_v13  ;;  %v4261_v10 = vrot.slane %v21877_v56, %v18175_v34  ;;  %v11133_v13 = vrot.slane %v21872_v62, %v18184_v38 }
 0x764   : > { %11295 = vmatprep.subr.bf16.mxu1 %v14725_v14  ;;  %v4269_v14 = vrot.slane %v21877_v56, %v18177_v35 }
 0x766   : > { %11255 = vmatpush1.bf16.msra.mxu0 %v14722_v15  ;;  %v4265_v15 = vrot.slane %v21877_v56, %v18182_v37  ;;  %v16332_v37 = vadd.f32 %v20659_v3, %v4269_v14  ;;  %v16549_v14 = vld [vmem:[%s22501_s10 + $0x160] sm:$0xff]  }
 0x767   : > { %11296 = vmatpush1.bf16.msra.mxu1 %v14724_v25  ;;  %15634 = vmatprep.subr.bf16.mxu0 %v16501_v26  ;;  %v4273_v26 = vrot.slane %v21877_v56, %v18184_v38 }
 0x768   : > { %15656 = vmatprep.subr.bf16.mxu1 %v16502_v28 }
 0x769   : > { %11273 = vmatmul.mubr.bf16.vlgmr.msra.gmra.mrb[60].mxu0 %v21673_v7 }
 0x76a   : > { %11314 = vmatmul.mubr.bf16.vlgmr.msra.gmra.mrb[60].mxu1 %v21673_v7  ;;  %v16505_v7 = vld [vmem:[%s22501_s10 + $0x48] sm:$0xff]   ;;  %15635 = vmatpush3.bf16.msra.mxu0 %v16503_v22 }
 0x76b   : > { %15657 = vmatpush3.bf16.msra.mxu1 %v16504_v29  ;;  %15636 = vmatprep.subr.bf16.mxu0 %v16505_v7 }
 0x76c   : > { %15658 = vmatprep.subr.bf16.mxu1 %v16506_v21 }
 0x76e   : > { %15637 = vmatpush3.bf16.msra.mxu0 %v16507_v9 }
 0x76f   : > { %15659 = vmatpush3.bf16.msra.mxu1 %v16508_v41  ;;  %15638 = vmatprep.subr.bf16.mxu0 %v16509_v30  ;;  %v16330_v30 = vadd.f32 %v20651_v11, %v4261_v10  ;;  %v16547_v10 = vld [vmem:[%s22501_s10 + $0x118] sm:$0xff]  }
 0x770   : > { %15660 = vmatprep.subr.bf16.mxu1 %v16510_v47 }
 0x772   : > { %15639 = vmatpush3.bf16.msra.mxu0 %v16511_v19 }
 0x773   : > { %15661 = vmatpush3.bf16.msra.mxu1 %v16512_v32  ;;  %15640 = vmatprep.subr.bf16.mxu0 %v16513_v36  ;;  %v16331_v36 = vadd.f32 %v20661_v16, %v4265_v15  ;;  %v16550_v15 = vld [vmem:[%s22501_s10 + $0x1e0] sm:$0xff]  }
 0x774   : > { %15662 = vmatprep.subr.bf16.mxu1 %v16514_v24 }
 0x776   : > { %15641 = vmatpush3.bf16.msra.mxu0 %v16515_v5 }
 0x777   : > { %15663 = vmatpush3.bf16.msra.mxu1 %v16516_v31  ;;  %15642 = vmatprep.subr.bf16.mxu0 %v16517_v20  ;;  %v16333_v31 = vadd.f32 %v20669_v27, %v4273_v26  ;;  %v16535_v27 = vld [vmem:[%s22501_s10 + $0x100] sm:$0xff]  }
 0x778   : > { %15664 = vmatprep.subr.bf16.mxu1 %v16518_v17  ;;  %v16552_v26 = vld [vmem:[%s22501_s10 + $0x1a0] sm:$0xff]  }
 0x77a   : > { %15643 = vmatpush3.bf16.msra.mxu0 %v16519_v33 }
 0x77b   : > { %15665 = vmatpush3.bf16.msra.mxu1 %v16520_v39  ;;  %15644 = vmatprep.subr.bf16.mxu0 %v16521_v12 }
 0x77c   : > { %15666 = vmatprep.subr.bf16.mxu1 %v16522_v42 }
 0x77e   : > { %15645 = vmatpush3.bf16.msra.mxu0 %v16523_v52 }
 0x77f   : > { %15667 = vmatpush3.bf16.msra.mxu1 %v16524_v4  ;;  %15646 = vmatprep.subr.bf16.mxu0 %v16525_v63 }
 0x780   : > { %15668 = vmatprep.subr.bf16.mxu1 %v16526_v60 }
 0x782   : > { %15647 = vmatpush3.bf16.msra.mxu0 %v16527_v40 }
 0x783   : > { %15669 = vmatpush3.bf16.msra.mxu1 %v16528_v6  ;;  %15648 = vmatprep.subr.bf16.mxu0 %v16529_v43 }
 0x784   : > { %15670 = vmatprep.subr.bf16.mxu1 %v16530_v23  ;;  %v16536_v23 = vld [vmem:[%s22501_s10 + $0x180] sm:$0xff]  }
 0x786   : > { %15649 = vmatpush3.bf16.msra.mxu0 %v16531_v0  ;;  %v16537_v0 = vld [vmem:[%s22501_s10 + $0x148] sm:$0xff]  }
 0x787   : > { %15671 = vmatpush3.bf16.msra.mxu1 %v16532_v44  ;;  %15678 = vmatprep.subr.bf16.mxu0 %v16533_v8  ;;  %v16538_v8 = vld [vmem:[%s22501_s10 + $0x1c8] sm:$0xff]  }
 0x788   : > { %15700 = vmatprep.subr.bf16.mxu1 %v16534_v45  ;;  %v16539_v45 = vld [vmem:[%s22501_s10 + $0x108] sm:$0xff]  }
 0x7fc   : > { %v21861_v46 = vpop.f32.mrb[52].mxu0 }
 0x7fd   : > { %v21863_v51 = vpop.f32.mrb[52].mxu1  ;;  %v21865_v48 = vpop.f32.mrb[53].mxu0 }
 0x7fe   : > { %v21867_v55 = vpop.f32.mrb[53].mxu1  ;;  %v10399_v18 = vpop.f32.mrb[54].mxu0 }
 0x7ff   : > { %v10727_v57 = vpop.f32.mrb[54].mxu1  ;;  %v10400_v58 = vpop.f32.mrb[55].mxu0  ;;  %v16540_v18 = vld [vmem:[%s22501_s10 + $0x188] sm:$0xff]  }
 0x800   : > { %v10728_v59 = vpop.f32.mrb[55].mxu1  ;;  %v16541_v57 = vld [vmem:[%s22501_s10 + $0x150] sm:$0xff]  }
 0x801   : > { %v16542_v58 = vld [vmem:[%s22501_s10 + $0x1d0] sm:$0xff]  }
 0x802   : > { %v16543_v59 = vld [vmem:[%s22501_s10 + $0x110] sm:$0xff]  }
 0x81c   : > { %v11192_v25 = vpop.f32.mrb[56].mxu0 }
 0x81d   : > { %v11193_v28 = vadd.f32 %v11192_v25, %v11121_v61  ;;  %v11233_v22 = vpop.f32.mrb[56].mxu1  ;;  %v11194_v29 = vpop.f32.mrb[57].mxu0  ;;  %v16544_v61 = vld [vmem:[%s22501_s10 + $0x190] sm:$0xff]   ;;  %v16551_v25 = vld [vmem:[%s22501_s10 + $0x120] sm:$0xff]  }
 0x81e   : > { %v11234_v7 = vadd.f32 %v11233_v22, %v11129_v2  ;;  %v11195_v21 = vadd.f32 %v11194_v29, %v11125_v1  ;;  %v11235_v9 = vpop.f32.mrb[57].mxu1  ;;  %v11196_v41 = vpop.f32.mrb[58].mxu0  ;;  %v16545_v2 = vld [vmem:[%s22501_s10 + $0x158] sm:$0xff]   ;;  %v16553_v22 = vld [vmem:[%s22501_s10 + $0x168] sm:$0xff]   ;;  %v11145_v29 = vrot.slane %v21872_v62, %v18198_v50 }
 0x81f   : > { %v11325_v47 = vrot.slane %v11193_v28, %v18175_v34  ;;  %v11236_v19 = vadd.f32 %v11235_v9, %v11133_v13  ;;  %v11197_v35 = vpop.f32.mrb[59].mxu0  ;;  %v11237_v32 = vpop.f32.mrb[58].mxu1  ;;  %v16546_v1 = vld [vmem:[%s22501_s10 + $0x1d8] sm:$0xff]   ;;  %v11137_v28 = vrot.slane %v21872_v62, %v18196_v49  ;;  %v4277_v9 = vrot.slane %v21877_v56, %v18196_v49 }
 0x820   : > { %v11333_v38 = vrot.slane %v11234_v7, %v18175_v34  ;;  %v11329_v24 = vrot.slane %v11195_v21, %v18175_v34  ;;  %v11238_v5 = vpop.f32.mrb[59].mxu1  ;;  %v16548_v13 = vld [vmem:[%s22501_s10 + $0x198] sm:$0xff]   ;;  %v11141_v7 = vrot.slane %v21872_v62, %v18200_v53  ;;  %v16554_v21 = vld [vmem:[%s22501_s10 + $0x1e8] sm:$0xff]   ;;  %v11149_v41 = vrot.slane %v21872_v62, %v18202_v54 }
 0x821   : > { %v11354_v20 = vsub.f32 %v16330_v30, %v11325_v47  ;;  %v11337_v17 = vrot.slane %v11236_v19, %v18175_v34  ;;  %v4281_v47 = vrot.slane %v21877_v56, %v18200_v53  ;;  %v16555_v35 = vld [vmem:[%s22501_s10 + $0x128] sm:$0xff]   ;;  %v4289_v32 = vrot.slane %v21877_v56, %v18202_v54  ;;  %v16557_v53 = vld [vmem:[%s22501_s10 + $0x170] sm:$0xff]  }
 0x822   : > { %v11356_v11 = vsub.f32 %v16332_v37, %v11333_v38  ;;  %v11355_v33 = vsub.f32 %v16331_v36, %v11329_v24  ;;  %v16558_v54 = vld [vmem:[%s22501_s10 + $0x1f0] sm:$0xff]  }
 0x823   : > { %v11362_v39 = vand.u32 2147483647, %v11354_v20  ;;  %v11357_v12 = vsub.f32 %v16333_v31, %v11337_v17 }
 0x824   : > { %v11364_v42 = vand.u32 2147483647, %v11356_v11  ;;  %v11363_v52 = vand.u32 2147483647, %v11355_v33 }
 0x825   : > { %v11370_v4 = vadd.f32 %v16330_v30, %v11362_v39  ;;  %v11365_v3 = vand.u32 2147483647, %v11357_v12  ;;  %v4285_v30 = vrot.slane %v21877_v56, %v18198_v50  ;;  %v16556_v50 = vld [vmem:[%s22501_s10 + $0x1a8] sm:$0xff]   ;;  %v16334_v56 = vadd.f32 %v21861_v46, %v4277_v9 }
 0x826   : > { %v11372_v63 = vadd.f32 %v16332_v37, %v11364_v42  ;;  %v11371_v16 = vadd.f32 %v16331_v36, %v11363_v52  ;;  %v16335_v39 = vadd.f32 %v21865_v48, %v4281_v47  ;;  %v16337_v46 = vadd.f32 %v21867_v55, %v4289_v32  ;;  %v16561_v48 = vld [vmem:[%s22501_s10 + $0x178] sm:$0xff]   ;;  %v16572_v9 = vld [vmem:[%s22501_s10 + $0x288] sm:$0xff]   ;;  %v16575_v47 = vld [vmem:[%s22501_s10 + $0x210] sm:$0xff]  }
 0x827   : > { %v11373_v60 = vadd.f32 %v16333_v31, %v11365_v3  ;;  %v21910_v43 = vpack.c.bf16 %v11370_v4, %v11370_v4  ;;  %v16336_v33 = vadd.f32 %v21863_v51, %v4285_v30  ;;  %v16559_v4 = vld [vmem:[%s22501_s10 + $0x130] sm:$0xff]   ;;  %v16562_v55 = vld [vmem:[%s22501_s10 + $0x1f8] sm:$0xff]  }
 0x828   : > { %v21903_v40 = vpack.c.bf16 %v11371_v16, %v11371_v16  ;;  %v21919_v44 = vpack.c.bf16 %v11372_v63, %v11372_v63  ;;  %v16560_v51 = vld [vmem:[%s22501_s10 + $0x1b0] sm:$0xff]   ;;  %v16578_v32 = vld [vmem:[%s22501_s10 + $0x2d8] sm:$0xff]  }
 0x829   : > { %v21908_v6 = vpack.c.bf16 %v11373_v60, %v11373_v60  ;;  %v16574_v30 = vld [vmem:[%s22501_s10 + $0x2d0] sm:$0xff]  }
 0x82a   : > { %11931 = vmatprep.mubr.bf16.mxu0 %v21903_v40 }
 0x82b   : > { %11971 = vmatprep.mubr.bf16.mxu1 %v21908_v6  ;;  %11932 = vmatmul.mubr.bf16.vlgmr.msra.gmra.mrb[64].mxu0 %v21910_v43 }
 0x82c   : > { %11972 = vmatmul.mubr.bf16.vlgmr.msra.gmra.mrb[64].mxu1 %v21919_v44  ;;  %15679 = vmatpush3.bf16.msra.mxu0 %v16535_v27 }
 0x82d   : > { %15701 = vmatpush3.bf16.msra.mxu1 %v16536_v23  ;;  %15680 = vmatprep.subr.bf16.mxu0 %v16537_v0 }
 0x82e   : > { %15702 = vmatprep.subr.bf16.mxu1 %v16538_v8  ;;  %v16563_v8 = vld [vmem:[%s22501_s10 + $0x138] sm:$0xff]  }
 0x830   : > { %15681 = vmatpush3.bf16.msra.mxu0 %v16539_v45 }
 0x831   : > { %15703 = vmatpush3.bf16.msra.mxu1 %v16540_v18  ;;  %15682 = vmatprep.subr.bf16.mxu0 %v16541_v57  ;;  %v16564_v57 = vld [vmem:[%s22501_s10 + $0x1b8] sm:$0xff]  }
 0x832   : > { %15704 = vmatprep.subr.bf16.mxu1 %v16542_v58  ;;  %v16565_v58 = vld [vmem:[%s22501_s10 + $0x240] sm:$0xff]  }
 0x834   : > { %15683 = vmatpush3.bf16.msra.mxu0 %v16543_v59 }
 0x835   : > { %15705 = vmatpush3.bf16.msra.mxu1 %v16544_v61  ;;  %15684 = vmatprep.subr.bf16.mxu0 %v16545_v2  ;;  %v16566_v2 = vld [vmem:[%s22501_s10 + $0x2c0] sm:$0xff]  }
 0x836   : > { %15706 = vmatprep.subr.bf16.mxu1 %v16546_v1 }
 0x838   : > { %15685 = vmatpush3.bf16.msra.mxu0 %v16547_v10 }
 0x839   : > { %15707 = vmatpush3.bf16.msra.mxu1 %v16548_v13  ;;  %15686 = vmatprep.subr.bf16.mxu0 %v16549_v14  ;;  %v16567_v13 = vld [vmem:[%s22501_s10 + $0x200] sm:$0xff]  }
 0x83a   : > { %15708 = vmatprep.subr.bf16.mxu1 %v16550_v15 }
 0x83c   : > { %15687 = vmatpush3.bf16.msra.mxu0 %v16551_v25  ;;  %v11274_v19 = vpop.f32.mrb[60].mxu0  ;;  %v16568_v25 = vld [vmem:[%s22501_s10 + $0x280] sm:$0xff]  }
 0x83d   : > { %15709 = vmatpush3.bf16.msra.mxu1 %v16552_v26  ;;  %v11275_v49 = vadd.f32 %v11274_v19, %v11137_v28  ;;  %v11315_v37 = vpop.f32.mrb[60].mxu1  ;;  %v11276_v36 = vpop.f32.mrb[61].mxu0  ;;  %15688 = vmatprep.subr.bf16.mxu0 %v16553_v22  ;;  %v16569_v28 = vld [vmem:[%s22501_s10 + $0x248] sm:$0xff]   ;;  %v12193_v22 = vshrl.u32 %v21903_v40, 16  ;;  %v16576_v19 = vld [vmem:[%s22501_s10 + $0x290] sm:$0xff]  }
 0x83e   : > { %v11316_v62 = vadd.f32 %v11315_v37, %v11145_v29  ;;  %v11277_v38 = vadd.f32 %v11276_v36, %v11141_v7  ;;  %v11317_v24 = vpop.f32.mrb[61].mxu1  ;;  %15710 = vmatprep.subr.bf16.mxu1 %v16554_v21  ;;  %v11278_v5 = vpop.f32.mrb[62].mxu0  ;;  %v16570_v29 = vld [vmem:[%s22501_s10 + $0x2c8] sm:$0xff]   ;;  %v12199_v7 = vshrl.u32 %v21908_v6, 16  ;;  %v16580_v37 = vld [vmem:[%s22501_s10 + $0x298] sm:$0xff]   ;;  %v16581_v36 = vld [vmem:[%s22501_s10 + $0x260] sm:$0xff]  }
 0x83f   : > { %v11341_v31 = vrot.slane %v11275_v49, %v18175_v34  ;;  %v11318_v20 = vadd.f32 %v11317_v24, %v11149_v41  ;;  %v11279_v17 = vpop.f32.mrb[63].mxu0  ;;  %v11319_v11 = vpop.f32.mrb[62].mxu1  ;;  %v16571_v21 = vld [vmem:[%s22501_s10 + $0x208] sm:$0xff]   ;;  %v16573_v41 = vld [vmem:[%s22501_s10 + $0x250] sm:$0xff]   ;;  %v16579_v49 = vld [vmem:[%s22501_s10 + $0x218] sm:$0xff]  }
 0x840   : > { %v11349_v12 = vrot.slane %v11316_v62, %v18175_v34  ;;  %v11345_v42 = vrot.slane %v11277_v38, %v18175_v34  ;;  %15689 = vmatpush3.bf16.msra.mxu0 %v16555_v35  ;;  %v11320_v52 = vpop.f32.mrb[63].mxu1  ;;  %v16577_v35 = vld [vmem:[%s22501_s10 + $0x258] sm:$0xff]   ;;  %v16584_v62 = vld [vmem:[%s22501_s10 + $0x2a0] sm:$0xff]   ;;  %v16585_v38 = vld [vmem:[%s22501_s10 + $0x268] sm:$0xff]  }
 0x841   : > { %v11358_v3 = vsub.f32 %v16334_v56, %v11341_v31  ;;  %v11353_v63 = vrot.slane %v11318_v20, %v18175_v34  ;;  %15711 = vmatpush3.bf16.msra.mxu1 %v16556_v50  ;;  %15690 = vmatprep.subr.bf16.mxu0 %v16557_v53  ;;  %v16582_v50 = vld [vmem:[%s22501_s10 + $0x2e0] sm:$0xff]   ;;  %v16586_v24 = vld [vmem:[%s22501_s10 + $0x2e8] sm:$0xff]   ;;  %v16590_v31 = vld [vmem:[%s22501_s10 + $0x2f0] sm:$0xff]  }
 0x842   : > { %v11360_v16 = vsub.f32 %v16336_v33, %v11349_v12  ;;  %v11359_v60 = vsub.f32 %v16335_v39, %v11345_v42  ;;  %15712 = vmatprep.subr.bf16.mxu1 %v16558_v54  ;;  %v16583_v53 = vld [vmem:[%s22501_s10 + $0x220] sm:$0xff]   ;;  %v16587_v5 = vld [vmem:[%s22501_s10 + $0x228] sm:$0xff]   ;;  %v16591_v20 = vld [vmem:[%s22501_s10 + $0x230] sm:$0xff]  }
 0x843   : > { %v11366_v27 = vand.u32 2147483647, %v11358_v3  ;;  %v11361_v23 = vsub.f32 %v16337_v46, %v11353_v63  ;;  %v16588_v54 = vld [vmem:[%s22501_s10 + $0x2a8] sm:$0xff]   ;;  %v16592_v17 = vld [vmem:[%s22501_s10 + $0x2b0] sm:$0xff]   ;;  %v16593_v11 = vld [vmem:[%s22501_s10 + $0x278] sm:$0xff]   ;;  %v12196_v63 = vshrl.u32 %v21919_v44, 16 }
 0x844   : > { %v11368_v34 = vand.u32 2147483647, %v11360_v16  ;;  %v11367_v0 = vand.u32 2147483647, %v11359_v60  ;;  %15691 = vmatpush3.bf16.msra.mxu0 %v16559_v4  ;;  %v16596_v12 = vld [vmem:[%s22501_s10 + $0x2b8] sm:$0xff]   ;;  %v16597_v42 = vld [vmem:[%s22501_s10 + $0x340] sm:$0xff]  }
 0x845   : > { %v11374_v45 = vadd.f32 %v16334_v56, %v11366_v27  ;;  %v11369_v18 = vand.u32 2147483647, %v11361_v23  ;;  %15713 = vmatpush3.bf16.msra.mxu1 %v16560_v51  ;;  %15692 = vmatprep.subr.bf16.mxu0 %v16561_v48  ;;  %v16589_v56 = vld [vmem:[%s22501_s10 + $0x270] sm:$0xff]   ;;  %v16598_v52 = vld [vmem:[%s22501_s10 + $0x3c0] sm:$0xff]   ;;  %v16601_v51 = vld [vmem:[%s22501_s10 + $0x348] sm:$0xff]  }
 0x846   : > { %v11376_v59 = vadd.f32 %v16336_v33, %v11368_v34  ;;  %15714 = vmatprep.subr.bf16.mxu1 %v16562_v55  ;;  %v11375_v61 = vadd.f32 %v16335_v39, %v11367_v0  ;;  %v16594_v33 = vld [vmem:[%s22501_s10 + $0x2f8] sm:$0xff]   ;;  %v16599_v4 = vld [vmem:[%s22501_s10 + $0x300] sm:$0xff]   ;;  %v16602_v16 = vld [vmem:[%s22501_s10 + $0x3c8] sm:$0xff]  }
 0x847   : > { %v11377_v1 = vadd.f32 %v16337_v46, %v11369_v18  ;;  %v22042_v15 = vpack.c.bf16 %v11374_v45, %v11374_v45  ;;  %v16595_v39 = vld [vmem:[%s22501_s10 + $0x238] sm:$0xff]   ;;  %v12190_v46 = vshrl.u32 %v21910_v43, 16  ;;  %v16600_v3 = vld [vmem:[%s22501_s10 + $0x380] sm:$0xff]   ;;  %v16603_v55 = vld [vmem:[%s22501_s10 + $0x308] sm:$0xff]  }
 0x848   : > { %15693 = vmatpush3.bf16.msra.mxu0 %v16563_v8  ;;  %v22035_v10 = vpack.c.bf16 %v11375_v61, %v11375_v61  ;;  %v22048_v26 = vpack.c.bf16 %v11376_v59, %v11376_v59  ;;  %v16604_v27 = vld [vmem:[%s22501_s10 + $0x388] sm:$0xff]   ;;  %v16605_v23 = vld [vmem:[%s22501_s10 + $0x350] sm:$0xff]   ;;  %v16609_v45 = vld [vmem:[%s22501_s10 + $0x358] sm:$0xff]  }
 0x849   : > { %15715 = vmatpush3.bf16.msra.mxu1 %v16564_v57  ;;  %v22040_v14 = vpack.c.bf16 %v11377_v1, %v11377_v1  ;;  %15722 = vmatprep.subr.bf16.mxu0 %v16565_v58  ;;  %v16606_v34 = vld [vmem:[%s22501_s10 + $0x3d0] sm:$0xff]   ;;  %v16610_v18 = vld [vmem:[%s22501_s10 + $0x3d8] sm:$0xff]   ;;  %v16613_v59 = vld [vmem:[%s22501_s10 + $0x360] sm:$0xff]  }
 0x84a   : > { %12011 = vmatprep.mubr.bf16.mxu0 %v22035_v10  ;;  %15744 = vmatprep.subr.bf16.mxu1 %v16566_v2  ;;  %v12205_v48 = vshrl.u32 %v22035_v10, 16  ;;  %v16607_v0 = vld [vmem:[%s22501_s10 + $0x310] sm:$0xff]   ;;  %v16611_v57 = vld [vmem:[%s22501_s10 + $0x318] sm:$0xff]   ;;  %v16614_v61 = vld [vmem:[%s22501_s10 + $0x3e0] sm:$0xff]  }
 0x84b   : > { %12051 = vmatprep.mubr.bf16.mxu1 %v22040_v14  ;;  %12012 = vmatmul.mubr.bf16.vlgmr.msra.gmra.mrb[68].mxu0 %v22042_v15  ;;  %v12211_v60 = vshrl.u32 %v22040_v14, 16  ;;  %v16608_v8 = vld [vmem:[%s22501_s10 + $0x390] sm:$0xff]   ;;  %v16612_v58 = vld [vmem:[%s22501_s10 + $0x398] sm:$0xff]   ;;  %v16615_v2 = vld [vmem:[%s22501_s10 + $0x320] sm:$0xff]  }
 0x84c   : > { %12052 = vmatmul.mubr.bf16.vlgmr.msra.gmra.mrb[68].mxu1 %v22048_v26  ;;  %15723 = vmatpush3.bf16.msra.mxu0 %v16567_v13  ;;  %v16616_v1 = vld [vmem:[%s22501_s10 + $0x3a0] sm:$0xff]   ;;  %v16617_v13 = vld [vmem:[%s22501_s10 + $0x368] sm:$0xff]  }
 0x84d   : > { %15745 = vmatpush3.bf16.msra.mxu1 %v16568_v25  ;;  %12637 = vmatprep.mubr.bf16.mxu0 %v12193_v22  ;;  %v16618_v25 = vld [vmem:[%s22501_s10 + $0x3e8] sm:$0xff]  }
 0x84e   : > { %12677 = vmatprep.mubr.bf16.mxu1 %v12199_v7  ;;  %15724 = vmatprep.subr.bf16.mxu0 %v16569_v28  ;;  %v16619_v28 = vld [vmem:[%s22501_s10 + $0x328] sm:$0xff]   ;;  %v16622_v7 = vld [vmem:[%s22501_s10 + $0x3f0] sm:$0xff]  }
 0x84f   : > { %15746 = vmatprep.subr.bf16.mxu1 %v16570_v29  ;;  %v16620_v22 = vld [vmem:[%s22501_s10 + $0x3a8] sm:$0xff]   ;;  %v16621_v29 = vld [vmem:[%s22501_s10 + $0x370] sm:$0xff]  }
 0x850   : > { %15725 = vmatpush3.bf16.msra.mxu0 %v16571_v21  ;;  %v16623_v21 = vld [vmem:[%s22501_s10 + $0x330] sm:$0xff]  }
 0x851   : > { %15747 = vmatpush3.bf16.msra.mxu1 %v16572_v9  ;;  %15726 = vmatprep.subr.bf16.mxu0 %v16573_v41  ;;  %v16624_v9 = vld [vmem:[%s22501_s10 + $0x3b0] sm:$0xff]   ;;  %v16625_v41 = vld [vmem:[%s22501_s10 + $0x378] sm:$0xff]  }
 0x852   : > { %15748 = vmatprep.subr.bf16.mxu1 %v16574_v30  ;;  %v16626_v30 = vld [vmem:[%s22501_s10 + $0x3f8] sm:$0xff]  }
 0x854   : > { %15727 = vmatpush3.bf16.msra.mxu0 %v16575_v47  ;;  %v16627_v47 = vld [vmem:[%s22501_s10 + $0x338] sm:$0xff]  }
 0x855   : > { %15749 = vmatpush3.bf16.msra.mxu1 %v16576_v19  ;;  %15728 = vmatprep.subr.bf16.mxu0 %v16577_v35  ;;  %v16628_v19 = vld [vmem:[%s22501_s10 + $0x3b8] sm:$0xff]   ;;  %v16629_v35 = vld [vmem:[%s22501_s10 + $0x440] sm:$0xff]  }
 0x856   : > { %15750 = vmatprep.subr.bf16.mxu1 %v16578_v32  ;;  %v16630_v32 = vld [vmem:[%s22501_s10 + $0x4c0] sm:$0xff]  }
 0x858   : > { %15729 = vmatpush3.bf16.msra.mxu0 %v16579_v49  ;;  %v16631_v49 = vld [vmem:[%s22501_s10 + $0x400] sm:$0xff]  }
 0x859   : > { %15751 = vmatpush3.bf16.msra.mxu1 %v16580_v37  ;;  %15730 = vmatprep.subr.bf16.mxu0 %v16581_v36  ;;  %v12202_v37 = vshrl.u32 %v22042_v15, 16  ;;  %v16632_v36 = vld [vmem:[%s22501_s10 + $0x480] sm:$0xff]  }
 0x85a   : > { %15752 = vmatprep.subr.bf16.mxu1 %v16582_v50  ;;  %v12208_v50 = vshrl.u32 %v22048_v26, 16 }
 0x85c   : > { %15731 = vmatpush3.bf16.msra.mxu0 %v16583_v53  ;;  %v16633_v53 = vld [vmem:[%s22501_s10 + $0x448] sm:$0xff]  }
 0x85d   : > { %15753 = vmatpush3.bf16.msra.mxu1 %v16584_v62  ;;  %15732 = vmatprep.subr.bf16.mxu0 %v16585_v38  ;;  %v12904_v62 = vrot.slane %v21903_v40, 1  ;;  %v16634_v38 = vld [vmem:[%s22501_s10 + $0x4c8] sm:$0xff]   ;;  %v16637_v40 = vld [vmem:[%s22501_s10 + $0x450] sm:$0xff]  }
 0x85e   : > { %15754 = vmatprep.subr.bf16.mxu1 %v16586_v24  ;;  %v12906_v24 = vrot.slane %v21908_v6, 1  ;;  %v16638_v6 = vld [vmem:[%s22501_s10 + $0x4d0] sm:$0xff]  }
 0x860   : > { %15733 = vmatpush3.bf16.msra.mxu0 %v16587_v5  ;;  %v16635_v5 = vld [vmem:[%s22501_s10 + $0x408] sm:$0xff]  }
 0x861   : > { %15755 = vmatpush3.bf16.msra.mxu1 %v16588_v54  ;;  %15734 = vmatprep.subr.bf16.mxu0 %v16589_v56  ;;  %v16636_v54 = vld [vmem:[%s22501_s10 + $0x488] sm:$0xff]   ;;  %v16639_v56 = vld [vmem:[%s22501_s10 + $0x410] sm:$0xff]  }
 0x862   : > { %15756 = vmatprep.subr.bf16.mxu1 %v16590_v31  ;;  %v16640_v31 = vld [vmem:[%s22501_s10 + $0x490] sm:$0xff]  }
 0x864   : > { %15735 = vmatpush3.bf16.msra.mxu0 %v16591_v20  ;;  %v16641_v20 = vld [vmem:[%s22501_s10 + $0x458] sm:$0xff]  }
 0x865   : > { %15757 = vmatpush3.bf16.msra.mxu1 %v16592_v17  ;;  %15736 = vmatprep.subr.bf16.mxu0 %v16593_v11  ;;  %v16642_v17 = vld [vmem:[%s22501_s10 + $0x4d8] sm:$0xff]  }
 0x866   : > { %15758 = vmatprep.subr.bf16.mxu1 %v16594_v33  ;;  %v16643_v11 = vld [vmem:[%s22501_s10 + $0x418] sm:$0xff]  }
 0x867   : > { %v16644_v33 = vld [vmem:[%s22501_s10 + $0x498] sm:$0xff]  }
 0x868   : > { %15737 = vmatpush3.bf16.msra.mxu0 %v16595_v39  ;;  %v16645_v39 = vld [vmem:[%s22501_s10 + $0x460] sm:$0xff]  }
 0x869   : > { %15759 = vmatpush3.bf16.msra.mxu1 %v16596_v12  ;;  %15766 = vmatprep.subr.bf16.mxu0 %v16597_v42  ;;  %v16646_v12 = vld [vmem:[%s22501_s10 + $0x4e0] sm:$0xff]  }
 0x86a   : > { %15788 = vmatprep.subr.bf16.mxu1 %v16598_v52  ;;  %v16647_v42 = vld [vmem:[%s22501_s10 + $0x420] sm:$0xff]  }
 0x86b   : > { %12638 = vmatmul.mubr.bf16.vlgmr.msra.gmra.mrb[72].mxu0 %v12190_v46  ;;  %v16648_v52 = vld [vmem:[%s22501_s10 + $0x4a0] sm:$0xff]   ;;  %v16650_v46 = vld [vmem:[%s22501_s10 + $0x4e8] sm:$0xff]  }
 0x86c   : > { %12678 = vmatmul.mubr.bf16.vlgmr.msra.gmra.mrb[72].mxu1 %v12196_v63  ;;  %15767 = vmatpush3.bf16.msra.mxu0 %v16599_v4  ;;  %v16649_v4 = vld [vmem:[%s22501_s10 + $0x468] sm:$0xff]  }
 0x86d   : > { %12717 = vmatprep.mubr.bf16.mxu0 %v12205_v48  ;;  %15789 = vmatpush3.bf16.msra.mxu1 %v16600_v3  ;;  %v16651_v3 = vld [vmem:[%s22501_s10 + $0x428] sm:$0xff]   ;;  %v16654_v48 = vld [vmem:[%s22501_s10 + $0x4f0] sm:$0xff]  }
 0x86e   : > { %12757 = vmatprep.mubr.bf16.mxu1 %v12211_v60  ;;  %15768 = vmatprep.subr.bf16.mxu0 %v16601_v51  ;;  %v16652_v63 = vld [vmem:[%s22501_s10 + $0x4a8] sm:$0xff]   ;;  %v16653_v51 = vld [vmem:[%s22501_s10 + $0x470] sm:$0xff]  }
 0x86f   : > { %15790 = vmatprep.subr.bf16.mxu1 %v16602_v16  ;;  %v16655_v16 = vld [vmem:[%s22501_s10 + $0x430] sm:$0xff]  }
 0x870   : > { %15769 = vmatpush3.bf16.msra.mxu0 %v16603_v55  ;;  %v16656_v60 = vld [vmem:[%s22501_s10 + $0x4b0] sm:$0xff]   ;;  %v16657_v55 = vld [vmem:[%s22501_s10 + $0x478] sm:$0xff]  }
 0x871   : > { %15791 = vmatpush3.bf16.msra.mxu1 %v16604_v27  ;;  %15770 = vmatprep.subr.bf16.mxu0 %v16605_v23  ;;  %v16658_v27 = vld [vmem:[%s22501_s10 + $0x4f8] sm:$0xff]  }
 0x872   : > { %15792 = vmatprep.subr.bf16.mxu1 %v16606_v34  ;;  %v16659_v23 = vld [vmem:[%s22501_s10 + $0x438] sm:$0xff]  }
 0x873   : > { %v16660_v34 = vld [vmem:[%s22501_s10 + $0x4b8] sm:$0xff]  }
 0x874   : > { %15771 = vmatpush3.bf16.msra.mxu0 %v16607_v0  ;;  %v16661_v0 = vld [vmem:[%s22501_s10 + $0x540] sm:$0xff]  }
 0x875   : > { %15793 = vmatpush3.bf16.msra.mxu1 %v16608_v8  ;;  %15772 = vmatprep.subr.bf16.mxu0 %v16609_v45  ;;  %v16662_v8 = vld [vmem:[%s22501_s10 + $0x5c0] sm:$0xff]  }
 0x876   : > { %15794 = vmatprep.subr.bf16.mxu1 %v16610_v18  ;;  %v16663_v45 = vld [vmem:[%s22501_s10 + $0x500] sm:$0xff]   ;;  %v12903_v18 = vrot.slane %v21910_v43, 1  ;;  %v12910_v43 = vrot.slane %v22040_v14, 1  ;;  %v16670_v14 = vld [vmem:[%s22501_s10 + $0x5d0] sm:$0xff]  }
 0x878   : > { %15773 = vmatpush3.bf16.msra.mxu0 %v16611_v57  ;;  %v16664_v57 = vld [vmem:[%s22501_s10 + $0x580] sm:$0xff]  }
 0x879   : > { %15795 = vmatpush3.bf16.msra.mxu1 %v16612_v58  ;;  %15774 = vmatprep.subr.bf16.mxu0 %v16613_v59  ;;  %v12905_v58 = vrot.slane %v21919_v44, 1  ;;  %v16665_v59 = vld [vmem:[%s22501_s10 + $0x548] sm:$0xff]  }
 0x87a   : > { %15796 = vmatprep.subr.bf16.mxu1 %v16614_v61  ;;  %v12908_v61 = vrot.slane %v22035_v10, 1  ;;  %v16667_v44 = vld [vmem:[%s22501_s10 + $0x508] sm:$0xff]   ;;  %v16669_v10 = vld [vmem:[%s22501_s10 + $0x550] sm:$0xff]  }
 0x87c   : > { %15775 = vmatpush3.bf16.msra.mxu0 %v16615_v2  ;;  %v16666_v2 = vld [vmem:[%s22501_s10 + $0x5c8] sm:$0xff]  }
 0x87d   : > { %15797 = vmatpush3.bf16.msra.mxu1 %v16616_v1  ;;  %15776 = vmatprep.subr.bf16.mxu0 %v16617_v13  ;;  %v16668_v1 = vld [vmem:[%s22501_s10 + $0x588] sm:$0xff]   ;;  %v16671_v13 = vld [vmem:[%s22501_s10 + $0x510] sm:$0xff]  }
 0x87e   : > { %15798 = vmatprep.subr.bf16.mxu1 %v16618_v25  ;;  %v16672_v25 = vld [vmem:[%s22501_s10 + $0x590] sm:$0xff]  }
 0x880   : > { %15777 = vmatpush3.bf16.msra.mxu0 %v16619_v28  ;;  %v16673_v28 = vld [vmem:[%s22501_s10 + $0x558] sm:$0xff]  }
 0x881   : > { %15799 = vmatpush3.bf16.msra.mxu1 %v16620_v22  ;;  %15778 = vmatprep.subr.bf16.mxu0 %v16621_v29  ;;  %v16674_v22 = vld [vmem:[%s22501_s10 + $0x5d8] sm:$0xff]  }
 0x882   : > { %15800 = vmatprep.subr.bf16.mxu1 %v16622_v7  ;;  %v16675_v29 = vld [vmem:[%s22501_s10 + $0x518] sm:$0xff]  }
 0x883   : > { %v16676_v7 = vld [vmem:[%s22501_s10 + $0x598] sm:$0xff]  }
 0x884   : > { %15779 = vmatpush3.bf16.msra.mxu0 %v16623_v21  ;;  %v16677_v21 = vld [vmem:[%s22501_s10 + $0x560] sm:$0xff]  }
 0x885   : > { %15801 = vmatpush3.bf16.msra.mxu1 %v16624_v9  ;;  %15780 = vmatprep.subr.bf16.mxu0 %v16625_v41  ;;  %v16678_v9 = vld [vmem:[%s22501_s10 + $0x5e0] sm:$0xff]  }
 0x886   : > { %15802 = vmatprep.subr.bf16.mxu1 %v16626_v30  ;;  %v16679_v41 = vld [vmem:[%s22501_s10 + $0x520] sm:$0xff]  }
 0x887   : > { %v16680_v30 = vld [vmem:[%s22501_s10 + $0x5a0] sm:$0xff]  }
 0x888   : > { %15781 = vmatpush3.bf16.msra.mxu0 %v16627_v47  ;;  %v16681_v47 = vld [vmem:[%s22501_s10 + $0x568] sm:$0xff]  }
 0x889   : > { %15803 = vmatpush3.bf16.msra.mxu1 %v16628_v19  ;;  %15810 = vmatprep.subr.bf16.mxu0 %v16629_v35  ;;  %v16682_v19 = vld [vmem:[%s22501_s10 + $0x5e8] sm:$0xff]  }
 0x88a   : > { %15832 = vmatprep.subr.bf16.mxu1 %v16630_v32  ;;  %v16683_v35 = vld [vmem:[%s22501_s10 + $0x528] sm:$0xff]  }
 0x88b   : > { %12718 = vmatmul.mubr.bf16.vlgmr.msra.gmra.mrb[76].mxu0 %v12202_v37  ;;  %v16684_v32 = vld [vmem:[%s22501_s10 + $0x5a8] sm:$0xff]   ;;  %v16686_v37 = vld [vmem:[%s22501_s10 + $0x5f0] sm:$0xff]  }
 0x88c   : > { %12758 = vmatmul.mubr.bf16.vlgmr.msra.gmra.mrb[76].mxu1 %v12208_v50  ;;  %15811 = vmatpush3.bf16.msra.mxu0 %v16631_v49  ;;  %v16685_v49 = vld [vmem:[%s22501_s10 + $0x570] sm:$0xff]  }
 0x88d   : > { %13335 = vmatprep.mubr.bf16.mxu0 %v12904_v62  ;;  %15833 = vmatpush3.bf16.msra.mxu1 %v16632_v36  ;;  %v16687_v36 = vld [vmem:[%s22501_s10 + $0x530] sm:$0xff]   ;;  %v16690_v62 = vld [vmem:[%s22501_s10 + $0x5f8] sm:$0xff]  }
 0x88e   : > { %13375 = vmatprep.mubr.bf16.mxu1 %v12906_v24  ;;  %15812 = vmatprep.subr.bf16.mxu0 %v16633_v53  ;;  %v16688_v50 = vld [vmem:[%s22501_s10 + $0x5b0] sm:$0xff]   ;;  %v16689_v53 = vld [vmem:[%s22501_s10 + $0x578] sm:$0xff]  }
 0x88f   : > { %15834 = vmatprep.subr.bf16.mxu1 %v16634_v38  ;;  %v16691_v38 = vld [vmem:[%s22501_s10 + $0x538] sm:$0xff]  }
 0x890   : > { %15813 = vmatpush3.bf16.msra.mxu0 %v16635_v5  ;;  %v16692_v24 = vld [vmem:[%s22501_s10 + $0x5b8] sm:$0xff]   ;;  %v12907_v5 = vrot.slane %v22042_v15, 1 }
 0x891   : > { %15835 = vmatpush3.bf16.msra.mxu1 %v16636_v54  ;;  %15814 = vmatprep.subr.bf16.mxu0 %v16637_v40  ;;  %v12909_v54 = vrot.slane %v22048_v26, 1 }
 0x892   : > { %15836 = vmatprep.subr.bf16.mxu1 %v16638_v6 }
 0x894   : > { %15815 = vmatpush3.bf16.msra.mxu0 %v16639_v56 }
 0x895   : > { %15837 = vmatpush3.bf16.msra.mxu1 %v16640_v31  ;;  %15816 = vmatprep.subr.bf16.mxu0 %v16641_v20 }
 0x896   : > { %15838 = vmatprep.subr.bf16.mxu1 %v16642_v17 }
 0x898   : > { %15817 = vmatpush3.bf16.msra.mxu0 %v16643_v11 }
 0x899   : > { %15839 = vmatpush3.bf16.msra.mxu1 %v16644_v33  ;;  %15818 = vmatprep.subr.bf16.mxu0 %v16645_v39 }
 0x89a   : > { %15840 = vmatprep.subr.bf16.mxu1 %v16646_v12 }
 0x89c   : > { %15819 = vmatpush3.bf16.msra.mxu0 %v16647_v42 }
 0x89d   : > { %15841 = vmatpush3.bf16.msra.mxu1 %v16648_v52  ;;  %15820 = vmatprep.subr.bf16.mxu0 %v16649_v4 }
 0x89e   : > { %15842 = vmatprep.subr.bf16.mxu1 %v16650_v46 }
 0x8a0   : > { %15821 = vmatpush3.bf16.msra.mxu0 %v16651_v3 }
 0x8a1   : > { %15843 = vmatpush3.bf16.msra.mxu1 %v16652_v63  ;;  %15822 = vmatprep.subr.bf16.mxu0 %v16653_v51 }
 0x8a2   : > { %15844 = vmatprep.subr.bf16.mxu1 %v16654_v48 }
 0x8a4   : > { %15823 = vmatpush3.bf16.msra.mxu0 %v16655_v16 }
 0x8a5   : > { %15845 = vmatpush3.bf16.msra.mxu1 %v16656_v60  ;;  %15824 = vmatprep.subr.bf16.mxu0 %v16657_v55 }
 0x8a6   : > { %15846 = vmatprep.subr.bf16.mxu1 %v16658_v27 }
 0x8a8   : > { %15825 = vmatpush3.bf16.msra.mxu0 %v16659_v23 }
 0x8a9   : > { %15847 = vmatpush3.bf16.msra.mxu1 %v16660_v34  ;;  %15854 = vmatprep.subr.bf16.mxu0 %v16661_v0 }
 0x8aa   : > { %15876 = vmatprep.subr.bf16.mxu1 %v16662_v8 }
 0x8ab   : > { %13336 = vmatmul.mubr.bf16.vlgmr.msra.gmra.mrb[80].mxu0 %v12903_v18 }
 0x8ac   : > { %13376 = vmatmul.mubr.bf16.vlgmr.msra.gmra.mrb[80].mxu1 %v12905_v58  ;;  %15855 = vmatpush3.bf16.msra.mxu0 %v16663_v45 }
 0x8ad   : > { %13415 = vmatprep.mubr.bf16.mxu0 %v12908_v61  ;;  %15877 = vmatpush3.bf16.msra.mxu1 %v16664_v57 }
 0x8ae   : > { %13455 = vmatprep.mubr.bf16.mxu1 %v12910_v43  ;;  %15856 = vmatprep.subr.bf16.mxu0 %v16665_v59 }
 0x8af   : > { %15878 = vmatprep.subr.bf16.mxu1 %v16666_v2 }
 0x8b0   : > { %15857 = vmatpush3.bf16.msra.mxu0 %v16667_v44 }
 0x8b1   : > { %15879 = vmatpush3.bf16.msra.mxu1 %v16668_v1  ;;  %15858 = vmatprep.subr.bf16.mxu0 %v16669_v10 }
 0x8b2   : > { %15880 = vmatprep.subr.bf16.mxu1 %v16670_v14 }
 0x8b4   : > { %15859 = vmatpush3.bf16.msra.mxu0 %v16671_v13  ;;  %v11386_v13 = vld [vmem:[%s22502_s11] sm:$0x1] }
 0x8b5   : > { %15881 = vmatpush3.bf16.msra.mxu1 %v16672_v25  ;;  %15860 = vmatprep.subr.bf16.mxu0 %v16673_v28 }
 0x8b6   : > { %15882 = vmatprep.subr.bf16.mxu1 %v16674_v22 }
 0x8b8   : > { %15861 = vmatpush3.bf16.msra.mxu0 %v16675_v29 }
 0x8b9   : > { %15883 = vmatpush3.bf16.msra.mxu1 %v16676_v7  ;;  %15862 = vmatprep.subr.bf16.mxu0 %v16677_v21 }
 0x8ba   : > { %15884 = vmatprep.subr.bf16.mxu1 %v16678_v9 }
 0x8bc   : > { %15863 = vmatpush3.bf16.msra.mxu0 %v16679_v41 }
 0x8bd   : > { %15885 = vmatpush3.bf16.msra.mxu1 %v16680_v30  ;;  %15864 = vmatprep.subr.bf16.mxu0 %v16681_v47 }
 0x8be   : > { %15886 = vmatprep.subr.bf16.mxu1 %v16682_v19 }
 0x8c0   : > { %15865 = vmatpush3.bf16.msra.mxu0 %v16683_v35 }
 0x8c1   : > { %15887 = vmatpush3.bf16.msra.mxu1 %v16684_v32  ;;  %15866 = vmatprep.subr.bf16.mxu0 %v16685_v49 }
 0x8c2   : > { %15888 = vmatprep.subr.bf16.mxu1 %v16686_v37 }
 0x8c4   : > { %15867 = vmatpush3.bf16.msra.mxu0 %v16687_v36 }
 0x8c5   : > { %15889 = vmatpush3.bf16.msra.mxu1 %v16688_v50  ;;  %15868 = vmatprep.subr.bf16.mxu0 %v16689_v53 }
 0x8c6   : > { %15890 = vmatprep.subr.bf16.mxu1 %v16690_v62 }
 0x8c8   : > { %15869 = vmatpush3.bf16.msra.mxu0 %v16691_v38 }
 0x8c9   : > { %15891 = vmatpush3.bf16.msra.mxu1 %v16692_v24 }
 0x8cb   : > { %13416 = vmatmul.mubr.bf16.vlgmr.msra.gmra.mrb[84].mxu0 %v12907_v5 }
 0x8cc   : > { %13456 = vmatmul.mubr.bf16.vlgmr.msra.gmra.mrb[84].mxu1 %v12909_v54 }
 0x8fe   : > { %v15650_v40 = vpop.f32.mrb[64].mxu0 }
 0x8ff   : > { %v15672_v6 = vpop.f32.mrb[64].mxu1  ;;  %v15651_v56 = vpop.f32.mrb[65].mxu0 }
 0x900   : > { %v15652_v31 = vadd.f32 %v15651_v56, %v15650_v40  ;;  %v15673_v20 = vpop.f32.mrb[65].mxu1  ;;  %v15653_v17 = vpop.f32.mrb[66].mxu0 }
 0x901   : > { %v15674_v11 = vadd.f32 %v15673_v20, %v15672_v6  ;;  %v15675_v33 = vpop.f32.mrb[66].mxu1  ;;  %v15654_v39 = vpop.f32.mrb[67].mxu0 }
 0x902   : > { %v15676_v12 = vpop.f32.mrb[67].mxu1 }
 0x903   : > { %v11974_v42 = vadd.f32 %v15674_v11, %v15652_v31 }
 0x91e   : > { %v15694_v52 = vpop.f32.mrb[68].mxu0 }
 0x91f   : > { %v15716_v4 = vpop.f32.mrb[68].mxu1  ;;  %v15695_v46 = vpop.f32.mrb[69].mxu0 }
 0x920   : > { %v15696_v3 = vadd.f32 %v15695_v46, %v15694_v52  ;;  %v15717_v15 = vpop.f32.mrb[69].mxu1  ;;  %v15697_v63 = vpop.f32.mrb[70].mxu0 }
 0x921   : > { %v15718_v26 = vadd.f32 %v15717_v15, %v15716_v4  ;;  %v15719_v51 = vpop.f32.mrb[70].mxu1  ;;  %v15698_v48 = vpop.f32.mrb[71].mxu0 }
 0x922   : > { %v12014_v16 = vadd.f32 %v15696_v3, %v11974_v42  ;;  %v15720_v60 = vpop.f32.mrb[71].mxu1 }
 0x924   : > { %v12054_v55 = vadd.f32 %v15718_v26, %v12014_v16 }
 0x926   : > { %v12059_v21 = vadd.f32 %v12054_v55, %v11386_v13 }
 0x93e   : > { %v15738_v27 = vpop.f32.mrb[72].mxu0 }
 0x93f   : > { %v15760_v23 = vpop.f32.mrb[72].mxu1  ;;  %v15739_v34 = vpop.f32.mrb[73].mxu0 }
 0x940   : > { %v15740_v0 = vadd.f32 %v15739_v34, %v15738_v27  ;;  %v15761_v8 = vpop.f32.mrb[73].mxu1  ;;  %v15741_v45 = vpop.f32.mrb[74].mxu0 }
 0x941   : > { %v15762_v18 = vadd.f32 %v15761_v8, %v15760_v23  ;;  %v15763_v57 = vpop.f32.mrb[74].mxu1  ;;  %v15742_v58 = vpop.f32.mrb[75].mxu0 }
 0x942   : > { %v15764_v59 = vpop.f32.mrb[75].mxu1 }
 0x943   : > { %v12680_v61 = vadd.f32 %v15762_v18, %v15740_v0 }
 0x95e   : > { %v15782_v2 = vpop.f32.mrb[76].mxu0 }
 0x95f   : > { %v15804_v43 = vpop.f32.mrb[76].mxu1  ;;  %v15783_v44 = vpop.f32.mrb[77].mxu0 }
 0x960   : > { %v15784_v1 = vadd.f32 %v15783_v44, %v15782_v2  ;;  %v15805_v10 = vpop.f32.mrb[77].mxu1  ;;  %v15785_v14 = vpop.f32.mrb[78].mxu0 }
 0x961   : > { %v15806_v25 = vadd.f32 %v15805_v10, %v15804_v43  ;;  %v15807_v28 = vpop.f32.mrb[78].mxu1  ;;  %v15786_v22 = vpop.f32.mrb[79].mxu0 }
 0x962   : > { %v12720_v29 = vadd.f32 %v15784_v1, %v12680_v61  ;;  %v15808_v7 = vpop.f32.mrb[79].mxu1 }
 0x964   : > { %v12760_v9 = vadd.f32 %v15806_v25, %v12720_v29 }
 0x966   : > { %v12765_v41 = vadd.f32 %v12760_v9, %v12059_v21 }
 0x97e   : > { %v15826_v30 = vpop.f32.mrb[80].mxu0 }
 0x97f   : > { %v15848_v47 = vpop.f32.mrb[80].mxu1  ;;  %v15827_v19 = vpop.f32.mrb[81].mxu0 }
 0x980   : > { %v15828_v35 = vadd.f32 %v15827_v19, %v15826_v30  ;;  %v15849_v32 = vpop.f32.mrb[81].mxu1  ;;  %v15829_v49 = vpop.f32.mrb[82].mxu0 }
 0x981   : > { %v15850_v37 = vadd.f32 %v15849_v32, %v15848_v47  ;;  %v15851_v36 = vpop.f32.mrb[82].mxu1  ;;  %v15830_v50 = vpop.f32.mrb[83].mxu0 }
 0x982   : > { %v15852_v53 = vpop.f32.mrb[83].mxu1 }
 0x983   : > { %v13378_v62 = vadd.f32 %v15850_v37, %v15828_v35 }
 0x99e   : > { %v15870_v38 = vpop.f32.mrb[84].mxu0 }
 0x99f   : > { %v15892_v24 = vpop.f32.mrb[84].mxu1  ;;  %v15871_v5 = vpop.f32.mrb[85].mxu0 }
 0x9a0   : > { %v15872_v54 = vadd.f32 %v15871_v5, %v15870_v38  ;;  %v15893_v40 = vpop.f32.mrb[85].mxu1  ;;  %v15873_v6 = vpop.f32.mrb[86].mxu0 }
 0x9a1   : > { %v15894_v56 = vadd.f32 %v15893_v40, %v15892_v24  ;;  %v15895_v31 = vpop.f32.mrb[86].mxu1  ;;  %v15874_v20 = vpop.f32.mrb[87].mxu0 }
 0x9a2   : > { %v13418_v17 = vadd.f32 %v15872_v54, %v13378_v62  ;;  %v15896_v11 = vpop.f32.mrb[87].mxu1 }
 0x9a4   : > { %v13458_v33 = vadd.f32 %v15894_v56, %v13418_v17 }
 0x9a6   : > { %v13463_v39 = vadd.f32 %v13458_v33, %v12765_v41 }
 0x9a8   : > { %13464 = vst [vmem:[%s451_s20] sm:$0x1] %v13463_v39 }
 0x9a9   : > { %16706 = shalt.err (!%p16703_p3)
}
 0x9aa   : > { %s16707_s25 = scalar_lea.hbm %s22449_s15, 16  ;;  %s16711_s23 = scalar_lea.hbm %s22504_s13, 32 }
 0x9ab   : > { %p16708_p4 = scmp.ne.s32.totalorder %s22449_s15, %s16707_s25  ;;  %p16712_p9 = scmp.lt.u32.totalorder %s22449_s15, %s22504_s13 }
 0x9ac   : > { %p16713_p10 = scmp.lt.u32.totalorder %s16711_s23, %s16707_s25  ;;  %p16715_p12 = scmp.lt.u32.totalorder %s16707_s25, %s22449_s15 }
 0x9ad   : > { %p16709_p7 = pnand %p16708_p4, %p16869_p5 }
 0x9ae   : > { %p16714_p11 = por %p16713_p10, %p16712_p9 }
 0x9af   : > { %p16710_p8 = pneg %p16709_p7 }
 0x9b0   : > { %p16716_p13 = por %p16715_p12, %p16714_p11 }
 0x9b2   : > { %p16717_p0 = pnand %p16716_p13, %p16710_p8 }
 0x9b4   : > { %16720 = shalt.err (!%p16717_p0)
}
 0x9b5   : > { %16451 = dma.vmem_to_hbm [thread:$0]  (%p16869_p5), %s22451_s24, 16, %s22449_s15, %s13471_s17  }
 0x9b6 PF: > { %s22521_s14 = sld [smem:[#allocation5_spill]]  ;;  %p16457_p1 = scmp.ge.s32.totalorder %s16755_s28, 2 }
 0x9b8   : > { %p16454_p2 = pnand %p16457_p1, %p16873_p6 }
 0x9bc   : > { %s13506_s27 = sand.u32 1, %s22521_s14  }
 0x9bd   : > { %s13507_s29 = scalar_lea.sflag [#allocation3], %s13506_s27 }
 0x9be   : > { %16738 = dma.done.wait (!%p16454_p2), %s13507_s29, 16  }
 0x9bf   : > { %16740 = vsyncadd (!%p16454_p2), %s13507_s29, 4294967280  ;;  %s22523_s28 = sld [smem:[#allocation7_spill]]  ;;  %s22524_s0 = sld [smem:[#allocation6_spill]] }
 0x9c0   : > { %s22525_s27 = sld [smem:[#allocation8_spill]]  ;;  %s22526_s25 = smov %s16747_s26 }
 0x9c5   : > { %p24_p3 = scmp.ge.s32.totalorder %s22523_s28, 4   ;;  %s22527_s26 = smov %s22524_s0 }
 0x9c7   :  { %26 = sbr.rel (!%p24_p3) target bundleno = 5 (0x5), region = 120 }
 0x9ce   :  { %13511 = vsyncpa [#allocation3], 1 }
 0x9cf   :  { %13513 = vsyncpa [#allocation3 + $0x1], 1 }

</bundles_post_ra>
